<compile_context>
chip_gen: v7x
topology: tpu7x:2x2x1
jax: 0.10.0
libtpu: 0.0.40
codegen_flags: <defaults>
</compile_context>

<pallas_src>
import jax
import jax.numpy as jnp
from jax.experimental import pallas as pl
from jax.experimental.pallas import tpu as pltpu

NUM_CLASSES = 3
NUM_FEATURES = 5
NUM_HIDDEN1 = 512
NUM_HIDDEN2 = 1024
NUM_HIDDEN3 = 2048
BN_EPS = 1e-5
LANE = 128   # lane-padded width of the tiny output heads
K_PAD = 8    # sublane-padded contraction dim of the first layer


def _dnn_fused_kernel(
    # tiny auto-pipelined VMEM inputs
    x_ref, e3b_ref, d3b_ref, ob_ref,
    # raw HBM weight refs (memory_space=pl.ANY)
    e1_hbm, e2_hbm, e3_hbm, d1_hbm, d2_hbm, d3_hbm, ow_hbm,
    # lane-dense VMEM outputs
    out_ref, dec_ref,
    # single-buffered VMEM weight landing zones + DMA semaphores
    e1_v, e2_v, e3_v, d1_v, d2_v, d3_v, ow_v, sems,
):
    """Whole DNNModel forward; weight DMA overlapped with MXU compute."""
    # Issue all weight DMAs up-front, in compute order. The remaining weights
    # keep streaming from HBM while earlier layers' matmuls run.
    pairs = ((e1_hbm, e1_v), (e2_hbm, e2_v), (e3_hbm, e3_v),
             (d1_hbm, d1_v), (d2_hbm, d2_v), (d3_hbm, d3_v),
             (ow_hbm, ow_v))
    copies = [pltpu.make_async_copy(src, dst, sems.at[i])
              for i, (src, dst) in enumerate(pairs)]
    for cp in copies:
        cp.start()

    def mm(a, w_ref):
        # bf16 x bf16 on the MXU, f32 accumulation.
        return jnp.dot(a.astype(jnp.bfloat16), w_ref[...],
                       preferred_element_type=jnp.float32)

    x = x_ref[...]                                           # (B, 8) bf16

    # --- Encoder --- (Flatten = id for 2D input; eval BN folded into weights;
    #                  eval Dropout = identity)
    copies[0].wait()
    h = jnp.maximum(mm(x, e1_v), 0.0)                        # 8    -> 512
    copies[1].wait()
    h = jnp.maximum(mm(h, e2_v), 0.0)                        # 512  -> 1024
    copies[2].wait()
    enc = jnp.maximum(mm(h, e3_v) + e3b_ref[...], 0.0)       # 1024 -> 2048

    # --- Decoder ---
    copies[3].wait()
    d = jnp.maximum(mm(enc, d1_v), 0.0)                      # 2048 -> 1024
    copies[4].wait()
    d = jnp.maximum(mm(d, d2_v), 0.0)                        # 1024 -> 512
    copies[5].wait()
    dec = jnp.maximum(mm(d, d3_v) + d3b_ref[...], 0.0)       # 512  -> 128(pad)

    # --- Output head (no ReLU) ---
    copies[6].wait()
    out = mm(enc, ow_v) + ob_ref[...]                        # 2048 -> 128(pad)

    # Lane-dense (B, 128) unmasked stores; valid columns sliced in the wrapper.
    out_ref[...] = out.astype(out_ref.dtype)
    dec_ref[...] = dec.astype(dec_ref.dtype)


def dnn_forward(params, x):
    """x: (B, NUM_FEATURES) float32. Returns (output (B,3), decoded (B,5))."""
    B = x.shape[0]
    # Pad K=5 -> 8 and cast to bf16 once in the wrapper (tiny XLA op).
    x_pad = jnp.pad(x, ((0, 0), (0, K_PAD - NUM_FEATURES))).astype(jnp.bfloat16)

    vmem_in = (x_pad, params["e3_b"], params["d3_b"], params["o_b"])
    hbm_in = (params["e1_w"], params["e2_w"], params["e3_w"],
              params["d1_w"], params["d2_w"], params["d3_w"], params["o_w"])

    def vmem_spec(a):
        return pl.BlockSpec(a.shape, lambda i: (0, 0))

    in_specs = ([vmem_spec(a) for a in vmem_in]
                + [pl.BlockSpec(memory_space=pl.ANY) for _ in hbm_in])

    scratch_shapes = ([pltpu.VMEM(w.shape, w.dtype) for w in hbm_in]
                      + [pltpu.SemaphoreType.DMA((len(hbm_in),))])

    out_pad, dec_pad = pl.pallas_call(
        _dnn_fused_kernel,
        out_shape=(jax.ShapeDtypeStruct((B, LANE), jnp.float32),
                   jax.ShapeDtypeStruct((B, LANE), jnp.float32)),
        grid_spec=pltpu.PrefetchScalarGridSpec(
            num_scalar_prefetch=0,
            grid=(1,),
            in_specs=in_specs,
            out_specs=(pl.BlockSpec((B, LANE), lambda i: (0, 0)),
                       pl.BlockSpec((B, LANE), lambda i: (0, 0))),
            scratch_shapes=scratch_shapes,
        ),
        compiler_params=pltpu.CompilerParams(
            dimension_semantics=("arbitrary",),
            # ~10.7 MB of single-buffered bf16 weight scratch + small blocks;
            # stays inside the default scoped budget on v7x (64 MiB physical).
            vmem_limit_bytes=24 * 1024 * 1024),
    )(*vmem_in, *hbm_in)

    return out_pad[:, :NUM_CLASSES], dec_pad[:, :NUM_FEATURES]


def dnn_forward_ref(params, x):
    """Pure-JAX reference using the SAME prepped (bf16, padded) weights."""
    xp = jnp.pad(x, ((0, 0), (0, K_PAD - NUM_FEATURES))).astype(jnp.bfloat16)

    def mm(a, w):
        return jnp.dot(a.astype(jnp.bfloat16), w,
                       preferred_element_type=jnp.float32)

    h = jnp.maximum(mm(xp, params["e1_w"]), 0.0)
    h = jnp.maximum(mm(h, params["e2_w"]), 0.0)
    enc = jnp.maximum(mm(h, params["e3_w"]) + params["e3_b"], 0.0)
    d = jnp.maximum(mm(enc, params["d1_w"]), 0.0)
    d = jnp.maximum(mm(d, params["d2_w"]), 0.0)
    dec = jnp.maximum(mm(d, params["d3_w"]) + params["d3_b"], 0.0)
    out = mm(enc, params["o_w"]) + params["o_b"]
    return out[:, :NUM_CLASSES], dec[:, :NUM_FEATURES]


def init_params(key):
    """Deterministic synthetic parameters matching DNNModel's shapes.

    Weights use the (K_in, N_out) layout (transpose of nn.Linear's (out, in))
    so the kernel hot path is a plain x @ W matmul.
    """
    def dense(k, fan_in, fan_out):
        return jax.random.normal(k, (fan_in, fan_out), jnp.float32) * 0.02

    ks = jax.random.split(key, 10)
    p = {}
    # Encoder
    p["e1_w"] = dense(ks[0], NUM_FEATURES, NUM_HIDDEN1)   # Linear(no bias)+BN
    p["e2_w"] = dense(ks[1], NUM_HIDDEN1, NUM_HIDDEN2)    # Linear(no bias)+BN
    p["e3_w"] = dense(ks[2], NUM_HIDDEN2, NUM_HIDDEN3)    # Linear with bias
    p["e3_b"] = jax.random.normal(ks[3], (NUM_HIDDEN3,), jnp.float32) * 0.02
    # Decoder
    p["d1_w"] = dense(ks[4], NUM_HIDDEN3, NUM_HIDDEN2)    # Linear(no bias)+BN
    p["d2_w"] = dense(ks[5], NUM_HIDDEN2, NUM_HIDDEN1)    # Linear(no bias)+BN
    p["d3_w"] = dense(ks[6], NUM_HIDDEN1, NUM_FEATURES)   # Linear with bias
    p["d3_b"] = jax.random.normal(ks[7], (NUM_FEATURES,), jnp.float32) * 0.02
    # Output layer
    p["o_w"] = dense(ks[8], NUM_HIDDEN3, NUM_CLASSES)     # Linear with bias
    p["o_b"] = jax.random.normal(ks[9], (NUM_CLASSES,), jnp.float32) * 0.02
    return p


def prepare_params(p):
    """One-time preparation (NOT per forward):
       - fold eval-mode BN scale 1/sqrt(var+eps) (identity stats) into weights,
       - cast weights to bf16,
       - zero-pad the first layer's K (5->8) and the tiny heads' N (->128),
       - reshape biases to (1, N) f32 rows (lane-padded where needed)."""
    bn_scale = 1.0 / jnp.sqrt(jnp.float32(1.0) + BN_EPS)

    def pad_cols(w, n):
        return jnp.pad(w, ((0, 0), (0, n - w.shape[1])))

    def pad_rows(w, n):
        return jnp.pad(w, ((0, n - w.shape[0]), (0, 0)))

    return {
        # Layers followed by BatchNorm: fold the constant positive scale in
        # (commutes with ReLU).
        "e1_w": pad_rows(p["e1_w"] * bn_scale, K_PAD).astype(jnp.bfloat16),
        "e2_w": (p["e2_w"] * bn_scale).astype(jnp.bfloat16),
        "d1_w": (p["d1_w"] * bn_scale).astype(jnp.bfloat16),
        "d2_w": (p["d2_w"] * bn_scale).astype(jnp.bfloat16),
        # Plain Linear layers.
        "e3_w": p["e3_w"].astype(jnp.bfloat16),
        "d3_w": pad_cols(p["d3_w"], LANE).astype(jnp.bfloat16),
        "o_w": pad_cols(p["o_w"], LANE).astype(jnp.bfloat16),
        # Biases stay f32 (added after f32 accumulation); padded cols are 0.
        "e3_b": p["e3_b"].reshape(1, -1).astype(jnp.float32),
        "d3_b": pad_cols(p["d3_b"].reshape(1, -1), LANE).astype(jnp.float32),
        "o_b": pad_cols(p["o_b"].reshape(1, -1), LANE).astype(jnp.float32),
    }


if __name__ == "__main__":
    key = jax.random.PRNGKey(0)
    k_param, k_x = jax.random.split(key)
    params = prepare_params(init_params(k_param))

    B = 8
    x = jax.random.normal(k_x, (B, NUM_FEATURES), jnp.float32)

    output, decoded = jax.jit(dnn_forward)(params, x)
    jax.block_until_ready((output, decoded))

    assert output.shape == (B, NUM_CLASSES), output.shape
    assert decoded.shape == (B, NUM_FEATURES), decoded.shape

    # Sanity-check against a pure-JAX reference built from the SAME bf16
    # prepped weights (only difference should be matmul rounding order).
    out_ref, dec_ref = jax.jit(dnn_forward_ref)(params, x)
    assert float(jnp.max(jnp.abs(output - out_ref))) < 1e-2
    assert float(jnp.max(jnp.abs(decoded - dec_ref))) < 1e-2

    print("KERNEL_OK")
</pallas_src>

<mosaic_0001>
module attributes {stable_mosaic.version = 11 : i64} {
  func.func @_dnn_fused_kernel(%arg0: i32, %arg1: memref<8x8xbf16, #tpu.memory_space<vmem>>, %arg2: memref<1x2048xf32, #tpu.memory_space<vmem>>, %arg3: memref<1x128xf32, #tpu.memory_space<vmem>>, %arg4: memref<1x128xf32, #tpu.memory_space<vmem>>, %arg5: memref<8x512xbf16, #tpu.memory_space<any>>, %arg6: memref<512x1024xbf16, #tpu.memory_space<any>>, %arg7: memref<1024x2048xbf16, #tpu.memory_space<any>>, %arg8: memref<2048x1024xbf16, #tpu.memory_space<any>>, %arg9: memref<1024x512xbf16, #tpu.memory_space<any>>, %arg10: memref<512x128xbf16, #tpu.memory_space<any>>, %arg11: memref<2048x128xbf16, #tpu.memory_space<any>>, %arg12: memref<8x128xf32, #tpu.memory_space<vmem>>, %arg13: memref<8x128xf32, #tpu.memory_space<vmem>>, %arg14: memref<8x512xbf16, #tpu.memory_space<vmem>>, %arg15: memref<512x1024xbf16, #tpu.memory_space<vmem>>, %arg16: memref<1024x2048xbf16, #tpu.memory_space<vmem>>, %arg17: memref<2048x1024xbf16, #tpu.memory_space<vmem>>, %arg18: memref<1024x512xbf16, #tpu.memory_space<vmem>>, %arg19: memref<512x128xbf16, #tpu.memory_space<vmem>>, %arg20: memref<2048x128xbf16, #tpu.memory_space<vmem>>, %arg21: memref<7x!tpu.dma_semaphore, #tpu.memory_space<semaphore_mem>>) attributes {dimension_semantics = [#tpu.dimension_semantics<arbitrary>], iteration_bounds = array<i64: 1>, scalar_prefetch = 0 : i64, scratch_operands = 8 : i64, tpu.core_type = #tpu.core_type<tc>, window_params = [{pipeline_mode = #tpu.pipeline_mode<synchronous>, transform_indices = @transform_0, window_bounds = array<i64: 8, 8>}, {pipeline_mode = #tpu.pipeline_mode<synchronous>, transform_indices = @transform_1, window_bounds = array<i64: 1, 2048>}, {pipeline_mode = #tpu.pipeline_mode<synchronous>, transform_indices = @transform_2, window_bounds = array<i64: 1, 128>}, {pipeline_mode = #tpu.pipeline_mode<synchronous>, transform_indices = @transform_3, window_bounds = array<i64: 1, 128>}, {}, {}, {}, {}, {}, {}, {}, {pipeline_mode = #tpu.pipeline_mode<synchronous>, transform_indices = @transform_11, window_bounds = array<i64: 8, 128>}, {pipeline_mode = #tpu.pipeline_mode<synchronous>, transform_indices = @transform_12, window_bounds = array<i64: 8, 128>}]} {
    %c0_i32 = arith.constant 0 : i32
    %0 = tpu.memref_slice %arg21[%c0_i32] : memref<7x!tpu.dma_semaphore, #tpu.memory_space<semaphore_mem>> -> memref<1x!tpu.dma_semaphore, #tpu.memory_space<semaphore_mem>>
    %1 = tpu.memref_squeeze %0 : memref<1x!tpu.dma_semaphore, #tpu.memory_space<semaphore_mem>> -> memref<!tpu.dma_semaphore, #tpu.memory_space<semaphore_mem>>
    tpu.enqueue_dma source(%arg5 : memref<8x512xbf16, #tpu.memory_space<any>>) target(%arg14 : memref<8x512xbf16, #tpu.memory_space<vmem>>) target_semaphore(%1 : memref<!tpu.dma_semaphore, #tpu.memory_space<semaphore_mem>>)
    %c1_i32 = arith.constant 1 : i32
    %2 = tpu.memref_slice %arg21[%c1_i32] : memref<7x!tpu.dma_semaphore, #tpu.memory_space<semaphore_mem>> -> memref<1x!tpu.dma_semaphore, #tpu.memory_space<semaphore_mem>>
    %3 = tpu.memref_squeeze %2 : memref<1x!tpu.dma_semaphore, #tpu.memory_space<semaphore_mem>> -> memref<!tpu.dma_semaphore, #tpu.memory_space<semaphore_mem>>
    tpu.enqueue_dma source(%arg6 : memref<512x1024xbf16, #tpu.memory_space<any>>) target(%arg15 : memref<512x1024xbf16, #tpu.memory_space<vmem>>) target_semaphore(%3 : memref<!tpu.dma_semaphore, #tpu.memory_space<semaphore_mem>>)
    %c2_i32 = arith.constant 2 : i32
    %4 = tpu.memref_slice %arg21[%c2_i32] : memref<7x!tpu.dma_semaphore, #tpu.memory_space<semaphore_mem>> -> memref<1x!tpu.dma_semaphore, #tpu.memory_space<semaphore_mem>>
    %5 = tpu.memref_squeeze %4 : memref<1x!tpu.dma_semaphore, #tpu.memory_space<semaphore_mem>> -> memref<!tpu.dma_semaphore, #tpu.memory_space<semaphore_mem>>
    tpu.enqueue_dma source(%arg7 : memref<1024x2048xbf16, #tpu.memory_space<any>>) target(%arg16 : memref<1024x2048xbf16, #tpu.memory_space<vmem>>) target_semaphore(%5 : memref<!tpu.dma_semaphore, #tpu.memory_space<semaphore_mem>>)
    %c3_i32 = arith.constant 3 : i32
    %6 = tpu.memref_slice %arg21[%c3_i32] : memref<7x!tpu.dma_semaphore, #tpu.memory_space<semaphore_mem>> -> memref<1x!tpu.dma_semaphore, #tpu.memory_space<semaphore_mem>>
    %7 = tpu.memref_squeeze %6 : memref<1x!tpu.dma_semaphore, #tpu.memory_space<semaphore_mem>> -> memref<!tpu.dma_semaphore, #tpu.memory_space<semaphore_mem>>
    tpu.enqueue_dma source(%arg8 : memref<2048x1024xbf16, #tpu.memory_space<any>>) target(%arg17 : memref<2048x1024xbf16, #tpu.memory_space<vmem>>) target_semaphore(%7 : memref<!tpu.dma_semaphore, #tpu.memory_space<semaphore_mem>>)
    %c4_i32 = arith.constant 4 : i32
    %8 = tpu.memref_slice %arg21[%c4_i32] : memref<7x!tpu.dma_semaphore, #tpu.memory_space<semaphore_mem>> -> memref<1x!tpu.dma_semaphore, #tpu.memory_space<semaphore_mem>>
    %9 = tpu.memref_squeeze %8 : memref<1x!tpu.dma_semaphore, #tpu.memory_space<semaphore_mem>> -> memref<!tpu.dma_semaphore, #tpu.memory_space<semaphore_mem>>
    tpu.enqueue_dma source(%arg9 : memref<1024x512xbf16, #tpu.memory_space<any>>) target(%arg18 : memref<1024x512xbf16, #tpu.memory_space<vmem>>) target_semaphore(%9 : memref<!tpu.dma_semaphore, #tpu.memory_space<semaphore_mem>>)
    %c5_i32 = arith.constant 5 : i32
    %10 = tpu.memref_slice %arg21[%c5_i32] : memref<7x!tpu.dma_semaphore, #tpu.memory_space<semaphore_mem>> -> memref<1x!tpu.dma_semaphore, #tpu.memory_space<semaphore_mem>>
    %11 = tpu.memref_squeeze %10 : memref<1x!tpu.dma_semaphore, #tpu.memory_space<semaphore_mem>> -> memref<!tpu.dma_semaphore, #tpu.memory_space<semaphore_mem>>
    tpu.enqueue_dma source(%arg10 : memref<512x128xbf16, #tpu.memory_space<any>>) target(%arg19 : memref<512x128xbf16, #tpu.memory_space<vmem>>) target_semaphore(%11 : memref<!tpu.dma_semaphore, #tpu.memory_space<semaphore_mem>>)
    %c6_i32 = arith.constant 6 : i32
    %12 = tpu.memref_slice %arg21[%c6_i32] : memref<7x!tpu.dma_semaphore, #tpu.memory_space<semaphore_mem>> -> memref<1x!tpu.dma_semaphore, #tpu.memory_space<semaphore_mem>>
    %13 = tpu.memref_squeeze %12 : memref<1x!tpu.dma_semaphore, #tpu.memory_space<semaphore_mem>> -> memref<!tpu.dma_semaphore, #tpu.memory_space<semaphore_mem>>
    tpu.enqueue_dma source(%arg11 : memref<2048x128xbf16, #tpu.memory_space<any>>) target(%arg20 : memref<2048x128xbf16, #tpu.memory_space<vmem>>) target_semaphore(%13 : memref<!tpu.dma_semaphore, #tpu.memory_space<semaphore_mem>>)
    %c0 = arith.constant 0 : index
    %c0_0 = arith.constant 0 : index
    %14 = vector.load %arg1[%c0, %c0_0] : memref<8x8xbf16, #tpu.memory_space<vmem>>, vector<8x8xbf16>
    %c0_i32_1 = arith.constant 0 : i32
    %15 = tpu.memref_slice %arg21[%c0_i32_1] : memref<7x!tpu.dma_semaphore, #tpu.memory_space<semaphore_mem>> -> memref<1x!tpu.dma_semaphore, #tpu.memory_space<semaphore_mem>>
    %16 = tpu.memref_squeeze %15 : memref<1x!tpu.dma_semaphore, #tpu.memory_space<semaphore_mem>> -> memref<!tpu.dma_semaphore, #tpu.memory_space<semaphore_mem>>
    tpu.wait_dma2 semaphore(%16 : memref<!tpu.dma_semaphore, #tpu.memory_space<semaphore_mem>>) src(%arg5 : memref<8x512xbf16, #tpu.memory_space<any>>) dst(%arg14 : memref<8x512xbf16, #tpu.memory_space<vmem>>)
    %c0_2 = arith.constant 0 : index
    %c0_3 = arith.constant 0 : index
    %17 = vector.load %arg14[%c0_2, %c0_3] : memref<8x512xbf16, #tpu.memory_space<vmem>>, vector<8x512xbf16>
    %cst = arith.constant dense<0.000000e+00> : vector<8x512xf32>
    %18 = tpu.matmul %14, %17, %cst {dimension_numbers = #tpu.dot_dimension_numbers<[1], [0], [0], [1], [0, 0, 1, 1], [], []>} : vector<8x8xbf16>, vector<8x512xbf16>, vector<8x512xf32> -> vector<8x512xf32>
    %cst_4 = arith.constant 0.000000e+00 : f32
    %19 = vector.broadcast %cst_4 : f32 to vector<8x512xf32>
    %20 = arith.maximumf %18, %19 : vector<8x512xf32>
    %c1_i32_5 = arith.constant 1 : i32
    %21 = tpu.memref_slice %arg21[%c1_i32_5] : memref<7x!tpu.dma_semaphore, #tpu.memory_space<semaphore_mem>> -> memref<1x!tpu.dma_semaphore, #tpu.memory_space<semaphore_mem>>
    %22 = tpu.memref_squeeze %21 : memref<1x!tpu.dma_semaphore, #tpu.memory_space<semaphore_mem>> -> memref<!tpu.dma_semaphore, #tpu.memory_space<semaphore_mem>>
    tpu.wait_dma2 semaphore(%22 : memref<!tpu.dma_semaphore, #tpu.memory_space<semaphore_mem>>) src(%arg6 : memref<512x1024xbf16, #tpu.memory_space<any>>) dst(%arg15 : memref<512x1024xbf16, #tpu.memory_space<vmem>>)
    %23 = arith.truncf %20 : vector<8x512xf32> to vector<8x512xbf16>
    %c0_6 = arith.constant 0 : index
    %c0_7 = arith.constant 0 : index
    %24 = vector.load %arg15[%c0_6, %c0_7] : memref<512x1024xbf16, #tpu.memory_space<vmem>>, vector<512x1024xbf16>
    %cst_8 = arith.constant dense<0.000000e+00> : vector<8x1024xf32>
    %25 = tpu.matmul %23, %24, %cst_8 {dimension_numbers = #tpu.dot_dimension_numbers<[1], [0], [0], [1], [0, 0, 1, 1], [], []>} : vector<8x512xbf16>, vector<512x1024xbf16>, vector<8x1024xf32> -> vector<8x1024xf32>
    %cst_9 = arith.constant 0.000000e+00 : f32
    %26 = vector.broadcast %cst_9 : f32 to vector<8x1024xf32>
    %27 = arith.maximumf %25, %26 : vector<8x1024xf32>
    %c2_i32_10 = arith.constant 2 : i32
    %28 = tpu.memref_slice %arg21[%c2_i32_10] : memref<7x!tpu.dma_semaphore, #tpu.memory_space<semaphore_mem>> -> memref<1x!tpu.dma_semaphore, #tpu.memory_space<semaphore_mem>>
    %29 = tpu.memref_squeeze %28 : memref<1x!tpu.dma_semaphore, #tpu.memory_space<semaphore_mem>> -> memref<!tpu.dma_semaphore, #tpu.memory_space<semaphore_mem>>
    tpu.wait_dma2 semaphore(%29 : memref<!tpu.dma_semaphore, #tpu.memory_space<semaphore_mem>>) src(%arg7 : memref<1024x2048xbf16, #tpu.memory_space<any>>) dst(%arg16 : memref<1024x2048xbf16, #tpu.memory_space<vmem>>)
    %30 = arith.truncf %27 : vector<8x1024xf32> to vector<8x1024xbf16>
    %c0_11 = arith.constant 0 : index
    %c0_12 = arith.constant 0 : index
    %31 = vector.load %arg16[%c0_11, %c0_12] : memref<1024x2048xbf16, #tpu.memory_space<vmem>>, vector<1024x2048xbf16>
    %cst_13 = arith.constant dense<0.000000e+00> : vector<8x2048xf32>
    %32 = tpu.matmul %30, %31, %cst_13 {dimension_numbers = #tpu.dot_dimension_numbers<[1], [0], [0], [1], [0, 0, 1, 1], [], []>} : vector<8x1024xbf16>, vector<1024x2048xbf16>, vector<8x2048xf32> -> vector<8x2048xf32>
    %c0_14 = arith.constant 0 : index
    %c0_15 = arith.constant 0 : index
    %33 = vector.load %arg2[%c0_14, %c0_15] : memref<1x2048xf32, #tpu.memory_space<vmem>>, vector<1x2048xf32>
    %34 = vector.broadcast %33 : vector<1x2048xf32> to vector<8x2048xf32>
    %35 = arith.addf %32, %34 : vector<8x2048xf32>
    %cst_16 = arith.constant 0.000000e+00 : f32
    %36 = vector.broadcast %cst_16 : f32 to vector<8x2048xf32>
    %37 = arith.maximumf %35, %36 : vector<8x2048xf32>
    %c3_i32_17 = arith.constant 3 : i32
    %38 = tpu.memref_slice %arg21[%c3_i32_17] : memref<7x!tpu.dma_semaphore, #tpu.memory_space<semaphore_mem>> -> memref<1x!tpu.dma_semaphore, #tpu.memory_space<semaphore_mem>>
    %39 = tpu.memref_squeeze %38 : memref<1x!tpu.dma_semaphore, #tpu.memory_space<semaphore_mem>> -> memref<!tpu.dma_semaphore, #tpu.memory_space<semaphore_mem>>
    tpu.wait_dma2 semaphore(%39 : memref<!tpu.dma_semaphore, #tpu.memory_space<semaphore_mem>>) src(%arg8 : memref<2048x1024xbf16, #tpu.memory_space<any>>) dst(%arg17 : memref<2048x1024xbf16, #tpu.memory_space<vmem>>)
    %40 = arith.truncf %37 : vector<8x2048xf32> to vector<8x2048xbf16>
    %c0_18 = arith.constant 0 : index
    %c0_19 = arith.constant 0 : index
    %41 = vector.load %arg17[%c0_18, %c0_19] : memref<2048x1024xbf16, #tpu.memory_space<vmem>>, vector<2048x1024xbf16>
    %cst_20 = arith.constant dense<0.000000e+00> : vector<8x1024xf32>
    %42 = tpu.matmul %40, %41, %cst_20 {dimension_numbers = #tpu.dot_dimension_numbers<[1], [0], [0], [1], [0, 0, 1, 1], [], []>} : vector<8x2048xbf16>, vector<2048x1024xbf16>, vector<8x1024xf32> -> vector<8x1024xf32>
    %cst_21 = arith.constant 0.000000e+00 : f32
    %43 = vector.broadcast %cst_21 : f32 to vector<8x1024xf32>
    %44 = arith.maximumf %42, %43 : vector<8x1024xf32>
    %c4_i32_22 = arith.constant 4 : i32
    %45 = tpu.memref_slice %arg21[%c4_i32_22] : memref<7x!tpu.dma_semaphore, #tpu.memory_space<semaphore_mem>> -> memref<1x!tpu.dma_semaphore, #tpu.memory_space<semaphore_mem>>
    %46 = tpu.memref_squeeze %45 : memref<1x!tpu.dma_semaphore, #tpu.memory_space<semaphore_mem>> -> memref<!tpu.dma_semaphore, #tpu.memory_space<semaphore_mem>>
    tpu.wait_dma2 semaphore(%46 : memref<!tpu.dma_semaphore, #tpu.memory_space<semaphore_mem>>) src(%arg9 : memref<1024x512xbf16, #tpu.memory_space<any>>) dst(%arg18 : memref<1024x512xbf16, #tpu.memory_space<vmem>>)
    %47 = arith.truncf %44 : vector<8x1024xf32> to vector<8x1024xbf16>
    %c0_23 = arith.constant 0 : index
    %c0_24 = arith.constant 0 : index
    %48 = vector.load %arg18[%c0_23, %c0_24] : memref<1024x512xbf16, #tpu.memory_space<vmem>>, vector<1024x512xbf16>
    %cst_25 = arith.constant dense<0.000000e+00> : vector<8x512xf32>
    %49 = tpu.matmul %47, %48, %cst_25 {dimension_numbers = #tpu.dot_dimension_numbers<[1], [0], [0], [1], [0, 0, 1, 1], [], []>} : vector<8x1024xbf16>, vector<1024x512xbf16>, vector<8x512xf32> -> vector<8x512xf32>
    %cst_26 = arith.constant 0.000000e+00 : f32
    %50 = vector.broadcast %cst_26 : f32 to vector<8x512xf32>
    %51 = arith.maximumf %49, %50 : vector<8x512xf32>
    %c5_i32_27 = arith.constant 5 : i32
    %52 = tpu.memref_slice %arg21[%c5_i32_27] : memref<7x!tpu.dma_semaphore, #tpu.memory_space<semaphore_mem>> -> memref<1x!tpu.dma_semaphore, #tpu.memory_space<semaphore_mem>>
    %53 = tpu.memref_squeeze %52 : memref<1x!tpu.dma_semaphore, #tpu.memory_space<semaphore_mem>> -> memref<!tpu.dma_semaphore, #tpu.memory_space<semaphore_mem>>
    tpu.wait_dma2 semaphore(%53 : memref<!tpu.dma_semaphore, #tpu.memory_space<semaphore_mem>>) src(%arg10 : memref<512x128xbf16, #tpu.memory_space<any>>) dst(%arg19 : memref<512x128xbf16, #tpu.memory_space<vmem>>)
    %54 = arith.truncf %51 : vector<8x512xf32> to vector<8x512xbf16>
    %c0_28 = arith.constant 0 : index
    %c0_29 = arith.constant 0 : index
    %55 = vector.load %arg19[%c0_28, %c0_29] : memref<512x128xbf16, #tpu.memory_space<vmem>>, vector<512x128xbf16>
    %cst_30 = arith.constant dense<0.000000e+00> : vector<8x128xf32>
    %56 = tpu.matmul %54, %55, %cst_30 {dimension_numbers = #tpu.dot_dimension_numbers<[1], [0], [0], [1], [0, 0, 1, 1], [], []>} : vector<8x512xbf16>, vector<512x128xbf16>, vector<8x128xf32> -> vector<8x128xf32>
    %c0_31 = arith.constant 0 : index
    %c0_32 = arith.constant 0 : index
    %57 = vector.load %arg3[%c0_31, %c0_32] : memref<1x128xf32, #tpu.memory_space<vmem>>, vector<1x128xf32>
    %58 = vector.broadcast %57 : vector<1x128xf32> to vector<8x128xf32>
    %59 = arith.addf %56, %58 : vector<8x128xf32>
    %cst_33 = arith.constant 0.000000e+00 : f32
    %60 = vector.broadcast %cst_33 : f32 to vector<8x128xf32>
    %61 = arith.maximumf %59, %60 : vector<8x128xf32>
    %c6_i32_34 = arith.constant 6 : i32
    %62 = tpu.memref_slice %arg21[%c6_i32_34] : memref<7x!tpu.dma_semaphore, #tpu.memory_space<semaphore_mem>> -> memref<1x!tpu.dma_semaphore, #tpu.memory_space<semaphore_mem>>
    %63 = tpu.memref_squeeze %62 : memref<1x!tpu.dma_semaphore, #tpu.memory_space<semaphore_mem>> -> memref<!tpu.dma_semaphore, #tpu.memory_space<semaphore_mem>>
    tpu.wait_dma2 semaphore(%63 : memref<!tpu.dma_semaphore, #tpu.memory_space<semaphore_mem>>) src(%arg11 : memref<2048x128xbf16, #tpu.memory_space<any>>) dst(%arg20 : memref<2048x128xbf16, #tpu.memory_space<vmem>>)
    %64 = arith.truncf %37 : vector<8x2048xf32> to vector<8x2048xbf16>
    %c0_35 = arith.constant 0 : index
    %c0_36 = arith.constant 0 : index
    %65 = vector.load %arg20[%c0_35, %c0_36] : memref<2048x128xbf16, #tpu.memory_space<vmem>>, vector<2048x128xbf16>
    %cst_37 = arith.constant dense<0.000000e+00> : vector<8x128xf32>
    %66 = tpu.matmul %64, %65, %cst_37 {dimension_numbers = #tpu.dot_dimension_numbers<[1], [0], [0], [1], [0, 0, 1, 1], [], []>} : vector<8x2048xbf16>, vector<2048x128xbf16>, vector<8x128xf32> -> vector<8x128xf32>
    %c0_38 = arith.constant 0 : index
    %c0_39 = arith.constant 0 : index
    %67 = vector.load %arg4[%c0_38, %c0_39] : memref<1x128xf32, #tpu.memory_space<vmem>>, vector<1x128xf32>
    %68 = vector.broadcast %67 : vector<1x128xf32> to vector<8x128xf32>
    %69 = arith.addf %66, %68 : vector<8x128xf32>
    %c0_40 = arith.constant 0 : index
    %c0_41 = arith.constant 0 : index
    %70 = vector.load %arg12[%c0_40, %c0_41] : memref<8x128xf32, #tpu.memory_space<vmem>>, vector<8x128xf32>
    tpu.vector_store %arg12[%c0_40, %c0_41], %69 {strides = array<i32>} : memref<8x128xf32, #tpu.memory_space<vmem>>, vector<8x128xf32>,
    %c0_42 = arith.constant 0 : index
    %c0_43 = arith.constant 0 : index
    %71 = vector.load %arg13[%c0_42, %c0_43] : memref<8x128xf32, #tpu.memory_space<vmem>>, vector<8x128xf32>
    tpu.vector_store %arg13[%c0_42, %c0_43], %61 {strides = array<i32>} : memref<8x128xf32, #tpu.memory_space<vmem>>, vector<8x128xf32>,
    return
  }
  func.func @transform_0(%arg0: i32) -> (i32, i32) {
    %c0_i32 = arith.constant 0 : i32
    %c0_i32_0 = arith.constant 0 : i32
    %c0_i32_1 = arith.constant 0 : i32
    return %c0_i32, %c0_i32_0 : i32, i32
  }
  func.func @transform_1(%arg0: i32) -> (i32, i32) {
    %c0_i32 = arith.constant 0 : i32
    %c0_i32_0 = arith.constant 0 : i32
    %c0_i32_1 = arith.constant 0 : i32
    return %c0_i32, %c0_i32_0 : i32, i32
  }
  func.func @transform_2(%arg0: i32) -> (i32, i32) {
    %c0_i32 = arith.constant 0 : i32
    %c0_i32_0 = arith.constant 0 : i32
    %c0_i32_1 = arith.constant 0 : i32
    return %c0_i32, %c0_i32_0 : i32, i32
  }
  func.func @transform_3(%arg0: i32) -> (i32, i32) {
    %c0_i32 = arith.constant 0 : i32
    %c0_i32_0 = arith.constant 0 : i32
    %c0_i32_1 = arith.constant 0 : i32
    return %c0_i32, %c0_i32_0 : i32, i32
  }
  func.func @transform_11(%arg0: i32) -> (i32, i32) {
    %c0_i32 = arith.constant 0 : i32
    %c0_i32_0 = arith.constant 0 : i32
    %c0_i32_1 = arith.constant 0 : i32
    return %c0_i32, %c0_i32_0 : i32, i32
  }
  func.func @transform_12(%arg0: i32) -> (i32, i32) {
    %c0_i32 = arith.constant 0 : i32
    %c0_i32_0 = arith.constant 0 : i32
    %c0_i32_1 = arith.constant 0 : i32
    return %c0_i32, %c0_i32_0 : i32, i32
  }
}

</mosaic_0001>

<bundles_post_ra>
// kernel: dnn_forward.1
= control target key start
LH: loop header
LB: loop body
LE: loop exit
PB: predicated region body
PF: predicated region fallthrough
CT: control target
= control target key end

     0   :  { %18 = vsyncpa [#allocation11], 0  ;;  %s8469_s0 = inlined_call_operand.vmem [shape: bf16[8,8], index: 0, kind: input, shape index: {}]   ;;  %s8470_s1 = inlined_call_operand.hbm [shape: f32[1,2048], index: 1, kind: input, shape index: {}]   ;;  %s8471_s2 = inlined_call_operand.hbm [shape: f32[1,128], index: 2, kind: input, shape index: {}]   ;;  %s8472_s3 = inlined_call_operand.hbm [shape: f32[1,128], index: 3, kind: input, shape index: {}]   ;;  %s8473_s4 = inlined_call_operand.hbm [shape: bf16[8,512], index: 4, kind: input, shape index: {}]   ;;  %s8474_s5 = inlined_call_operand.hbm [shape: bf16[512,1024], index: 5, kind: input, shape index: {}]   ;;  %s8475_s6 = inlined_call_operand.hbm [shape: bf16[1024,2048], index: 6, kind: input, shape index: {}]   ;;  %s8476_s7 = inlined_call_operand.hbm [shape: bf16[2048,1024], index: 7, kind: input, shape index: {}]   ;;  %s8477_s8 = inlined_call_operand.hbm [shape: bf16[1024,512], index: 8, kind: input, shape index: {}]   ;;  %s8478_s9 = inlined_call_operand.hbm [shape: bf16[512,128], index: 9, kind: input, shape index: {}]   ;;  %s8479_s10 = inlined_call_operand.hbm [shape: bf16[2048,128], index: 10, kind: input, shape index: {}]   ;;  %s8480_s11 = inlined_call_operand.vmem [shape: f32[8,128], index: 11, kind: output, shape index: {0}]   ;;  %s8481_s12 = inlined_call_operand.hbm [shape: f32[8,128], index: 12, kind: output, shape index: {1}]  }
   0x1   :  { %19 = vsyncpa [#allocation14], 0 }
   0x2   :  { %20 = vsyncpa [#allocation12], 0  ;;  %s7743_s21 = smov [#allocation13]   ;;  %s7744_s23 = smov [#allocation10]  }
   0x3   :  { %s39_s22 = sshll.u32 %s7743_s21, 4  ;;  %s29_s24 = sshll.u32 %s7744_s23, 4  ;;  %s40_s22 = int_to_ptr.vmem [resolvable:$true] %s39_s22  ;;  %s30_s24 = int_to_ptr.vmem [resolvable:$true] %s29_s24 }
   0x4   :  { %s7569_s27 = scalar_lea.hbm %s8471_s2, 16 }
   0x5   :  { %p7570_p0 = scmp.ne.s32.totalorder %s8471_s2, %s7569_s27  ;;  %p7573_p1 = scmp.lt.u32.totalorder %s7569_s27, %s8471_s2 }
   0x7   :  { %p7575_p2 = pnand %p7573_p1, %p7570_p0 }
   0x9   :  { %7578 = shalt.err (!%p7575_p2)
}
   0xa   :  { %s7579_s14 = scalar_lea.vmem %s40_s22, 16  ;;  %s7583_s15 = scalar_lea.vmem %s40_s22, 32 }
   0xb   :  { %p7580_p3 = scmp.ne.s32.totalorder %s40_s22, %s7579_s14  ;;  %p7584_p4 = scmp.lt.s32.totalorder %s40_s22, %s40_s22 }
   0xc   :  { %p7585_p5 = scmp.lt.s32.totalorder %s7583_s15, %s7579_s14 }
   0xe   :  { %p7586_p6 = por %p7585_p5, %p7584_p4 }
  0x10   :  { %p7587_p7 = pnand %p7586_p6, %p7580_p3 }
  0x12   :  { %7590 = shalt.err (!%p7587_p7)
}
  0x13   :  { %42 = dma.hbm_to_vmem [thread:$0]  %s8471_s2, 16, %s40_s22, [#allocation14]  }
  0x14   :  { %s7591_s20 = scalar_lea.hbm %s8470_s1, 256 }
  0x15   :  { %p7592_p8 = scmp.ne.s32.totalorder %s8470_s1, %s7591_s20  ;;  %p7595_p9 = scmp.lt.u32.totalorder %s7591_s20, %s8470_s1 }
  0x17   :  { %p7597_p10 = pnand %p7595_p9, %p7592_p8 }
  0x19   :  { %7600 = shalt.err (!%p7597_p10)
}
  0x1a   :  { %s7601_s27 = scalar_lea.vmem %s30_s24, 256  ;;  %p7606_p12 = scmp.lt.s32.totalorder %s30_s24, %s30_s24 }
  0x1b   :  { %p7602_p11 = scmp.ne.s32.totalorder %s30_s24, %s7601_s27  ;;  %p7607_p13 = scmp.lt.s32.totalorder %s7601_s27, %s7601_s27 }
  0x1d   :  { %p7608_p0 = por %p7607_p13, %p7606_p12 }
  0x1f   :  { %p7609_p1 = pnand %p7608_p0, %p7602_p11 }
  0x21   :  { %7612 = shalt.err (!%p7609_p1)
}
  0x22   :  { %32 = dma.hbm_to_vmem [thread:$0]  %s8470_s1, 256, %s30_s24, [#allocation11]  }
  0x23   :  { %s7745_s28 = smov [#allocation15]   ;;  %s7613_s14 = scalar_lea.hbm %s8472_s3, 16 }
  0x24   :  { %s49_s29 = sshll.u32 %s7745_s28, 4  ;;  %p7614_p2 = scmp.ne.s32.totalorder %s8472_s3, %s7613_s14  ;;  %s50_s29 = int_to_ptr.vmem [resolvable:$true] %s49_s29 }
  0x25   :  { %p7617_p3 = scmp.lt.u32.totalorder %s7613_s14, %s8472_s3 }
  0x27   :  { %p7619_p4 = pnand %p7617_p3, %p7614_p2 }
  0x29   :  { %7622 = shalt.err (!%p7619_p4)
}
  0x2a   :  { %s7623_s19 = scalar_lea.vmem %s50_s29, 16  ;;  %s7627_s1 = scalar_lea.vmem %s50_s29, 32 }
  0x2b   :  { %p7624_p5 = scmp.ne.s32.totalorder %s50_s29, %s7623_s19  ;;  %p7628_p6 = scmp.lt.s32.totalorder %s50_s29, %s50_s29 }
  0x2c   :  { %p7629_p7 = scmp.lt.s32.totalorder %s7627_s1, %s7623_s19 }
  0x2e   :  { %p7630_p8 = por %p7629_p7, %p7628_p6 }
  0x30   :  { %p7631_p9 = pnand %p7630_p8, %p7624_p5 }
  0x32   :  { %7634 = shalt.err (!%p7631_p9)
}
  0x33   :  { %52 = dma.hbm_to_vmem [thread:$0]  %s8472_s3, 16, %s50_s29, [#allocation14]  }
  0x34   :  { %7723 = dma.done.wait [#allocation11], 256  }
  0x35   :  { %7724 = vsyncadd [#allocation11], 4294967040 }
  0x36   :  { %7725 = dma.done.wait [#allocation14], 32  }
  0x37   :  { %7726 = vsyncadd [#allocation14], 4294967264  ;;  %s79_s21 = sld [smem:[#allocation0]]   ;;  %s7746_s23 = smov 8  }
  0x38   :  { %95 = sst [smem:[#allocation22 + $0x2]] %s7746_s23  ;;  %s7747_s25 = smov 64  }
  0x39   :  { %97 = sst [smem:[#allocation22 + $0x3]] %s7747_s25  ;;  %s7748_s26 = smov 512  }
  0x3a   :  { %103 = sst [smem:[#allocation22 + $0x6]] %s7748_s26  ;;  %s7749_s27 = smov [#allocation2]  }
  0x3b   :  { %105 = sst [smem:[#allocation22 + $0x7]] %s7747_s25  ;;  %s70_s2 = sshll.u32 %s7749_s27, 4  ;;  %s71_s2 = int_to_ptr.vmem [resolvable:$true] %s70_s2 }
  0x3c   :  { %s7635_s28 = scalar_lea.hbm %s8473_s4, 256 }
  0x3d   :  { %p7636_p10 = scmp.ne.s32.totalorder %s8473_s4, %s7635_s28  ;;  %p7639_p11 = scmp.lt.u32.totalorder %s7635_s28, %s8473_s4 }
  0x3f   :  { %p7641_p12 = pnand %p7639_p11, %p7636_p10 }
  0x41   :  { %7644 = shalt.err (!%p7641_p12)  }
  0x42   :  { %s7645_s15 = scalar_lea.vmem %s71_s2, 256  ;;  %p7650_p0 = scmp.lt.s32.totalorder %s71_s2, %s71_s2 }
  0x43   :  { %p7646_p13 = scmp.ne.s32.totalorder %s71_s2, %s7645_s15  ;;  %p7651_p1 = scmp.lt.s32.totalorder %s7645_s15, %s7645_s15 }
  0x45   :  { %p7652_p2 = por %p7651_p1, %p7650_p0 }
  0x47   :  { %p7653_p3 = pnand %p7652_p2, %p7646_p13 }
  0x49   :  { %7656 = shalt.err (!%p7653_p3)  }
  0x4a   :  { %73 = dma.hbm_to_vmem [thread:$0]  %s8473_s4, 256, %s71_s2, [#allocation9] }
  0x4b   :  { %s7025_s18 = sshll.u32 %s79_s21, 26  ;;  %s7750_s19 = smov [#allocation3]  }
  0x4c   :  { %s87_s1 = sshll.u32 %s7750_s19, 4  ;;  %s7890_s24 = sadd.s32 134217728, %s7025_s18  ;;  %s88_s1 = int_to_ptr.vmem [resolvable:$true] %s87_s1 }
  0x4d   :  { %s7751_s20 = smov 1024   ;;  %s7752_s27 = smov 128  }
  0x4e   :  { %91 = sst [smem:[#allocation22]] %s7751_s20  ;;  %s7753_s3 = smov 2  }
  0x4f   :  { %93 = sst [smem:[#allocation22 + $0x1]] %s7751_s20  ;;  %s7754_s22 = smov 4  }
  0x50   :  { %99 = sst [smem:[#allocation22 + $0x4]] %s7752_s27  ;;  %s7755_s4 = smov [#allocation9 + $0x1]  }
  0x51   :  { %101 = sst [smem:[#allocation22 + $0x5]] %s7753_s3  ;;  %s7756_s21 = smov [#allocation21]  }
  0x52   :  { %107 = sst [smem:[#allocation22 + $0x8]] %s7754_s22  ;;  %s7757_s29 = smov 2048  }
  0x53   :  { %109 = dma.general %s8474_s5, 32768, %s88_s1, %s7755_s4, %s7756_s21, [#allocation22], %s7890_s24, 0  }
  0x54   :  { %126 = sst [smem:[#allocation24]] %s7757_s29  ;;  %s7758_s30 = smov 16  }
  0x55   :  { %128 = sst [smem:[#allocation24 + $0x1]] %s7757_s29  ;;  %s7759_s13 = smov [#allocation4]  }
  0x56   :  { %130 = sst [smem:[#allocation24 + $0x2]] %s7758_s30  ;;  %s122_s14 = sshll.u32 %s7759_s13, 4  ;;  %s123_s14 = int_to_ptr.vmem [resolvable:$true] %s122_s14 }
  0x57   :  { %132 = sst [smem:[#allocation24 + $0x3]] %s7747_s25  ;;  %s7760_s5 = smov [#allocation9 + $0x2]  }
  0x58   :  { %134 = sst [smem:[#allocation24 + $0x4]] %s7752_s27  ;;  %s7761_s15 = smov [#allocation23]  }
  0x59   :  { %136 = sst [smem:[#allocation24 + $0x5]] %s7753_s3  ;;  %s7762_s18 = smov [#allocation5]  }
  0x5a   :  { %138 = sst [smem:[#allocation24 + $0x6]] %s7751_s20  ;;  %s157_s19 = sshll.u32 %s7762_s18, 4  ;;  %s158_s19 = int_to_ptr.vmem [resolvable:$true] %s157_s19 }
  0x5b   :  { %140 = sst [smem:[#allocation24 + $0x7]] %s7747_s25  ;;  %s7764_s4 = smov [#allocation9 + $0x3]  }
  0x5c   :  { %142 = sst [smem:[#allocation24 + $0x8]] %s7754_s22  ;;  %s7765_s21 = smov [#allocation25]  }
  0x5d   :  { %144 = dma.general %s8475_s6, 131072, %s123_s14, %s7760_s5, %s7761_s15, [#allocation24], %s7890_s24, 0  }
  0x5e   :  { %161 = sst [smem:[#allocation26]] %s7751_s20  ;;  %s7763_s6 = smov [#allocation6]  }
  0x5f   :  { %163 = sst [smem:[#allocation26 + $0x1]] %s7751_s20  ;;  %s192_s1 = sshll.u32 %s7763_s6, 4  ;;  %s193_s1 = int_to_ptr.vmem [resolvable:$true] %s192_s1 }
  0x60   :  { %165 = sst [smem:[#allocation26 + $0x2]] %s7746_s23  ;;  %s7766_s23 = smov [#allocation7]  }
  0x61   :  { %167 = sst [smem:[#allocation26 + $0x3]] %s7747_s25  ;;  %s223_s28 = sshll.u32 %s7766_s23, 4  ;;  %s224_s28 = int_to_ptr.vmem [resolvable:$true] %s223_s28 }
  0x62   :  { %169 = sst [smem:[#allocation26 + $0x4]] %s7752_s27  ;;  %s7767_s29 = smov [#allocation8]  }
  0x63   :  { %171 = sst [smem:[#allocation26 + $0x5]] %s7753_s3  ;;  %s235_s30 = sshll.u32 %s7767_s29, 4  ;;  %s7932_s30 = int_to_ptr.vmem [resolvable:$true] %s235_s30 }
  0x64   :  { %173 = sst [smem:[#allocation26 + $0x6]] %s7748_s26  ;;  %s7768_s13 = smov 256  }
  0x65   :  { %175 = sst [smem:[#allocation26 + $0x7]] %s7747_s25 }
  0x66   :  { %177 = sst [smem:[#allocation26 + $0x8]] %s7754_s22 }
  0x67   :  { %179 = dma.general %s8476_s7, 131072, %s158_s19, %s7764_s4, %s7765_s21, [#allocation26], %s7890_s24, 0  }
  0x68   :  { %196 = sst [smem:[#allocation28]] %s7748_s26  ;;  %s7769_s7 = smov [#allocation9 + $0x4]  }
  0x69   :  { %198 = sst [smem:[#allocation28 + $0x1]] %s7748_s26  ;;  %s7770_s26 = smov [#allocation27]  }
  0x6a   :  { %200 = sst [smem:[#allocation28 + $0x2]] %s7754_s22 }
  0x6b   :  { %202 = sst [smem:[#allocation28 + $0x3]] %s7747_s25 }
  0x6c   :  { %204 = sst [smem:[#allocation28 + $0x4]] %s7752_s27 }
  0x6d   :  { %206 = sst [smem:[#allocation28 + $0x5]] %s7753_s3  ;;  %s7657_s3 = scalar_lea.hbm %s8478_s9, 4096 }
  0x6e   :  { %208 = sst [smem:[#allocation28 + $0x6]] %s7768_s13  ;;  %p7658_p4 = scmp.ne.s32.totalorder %s8478_s9, %s7657_s3 }
  0x6f   :  { %210 = sst [smem:[#allocation28 + $0x7]] %s7747_s25  ;;  %p7661_p5 = scmp.lt.u32.totalorder %s7657_s3, %s8478_s9 }
  0x70   :  { %212 = sst [smem:[#allocation28 + $0x8]] %s7754_s22 }
  0x71   :  { %214 = dma.general %s8477_s8, 32768, %s193_s1, %s7769_s7, %s7770_s26, [#allocation28], %s7890_s24, 0  }
  0x72   :  { %p7663_p6 = pnand %p7661_p5, %p7658_p4 }
  0x74   :  { %7666 = shalt.err (!%p7663_p6)  }
  0x75   :  { %s7667_s22 = scalar_lea.vmem %s224_s28, 4096  ;;  %p7672_p8 = scmp.lt.s32.totalorder %s224_s28, %s224_s28 }
  0x76   :  { %p7668_p7 = scmp.ne.s32.totalorder %s224_s28, %s7667_s22  ;;  %p7673_p9 = scmp.lt.s32.totalorder %s7667_s22, %s7667_s22 }
  0x78   :  { %p7674_p10 = por %p7673_p9, %p7672_p8 }
  0x7a   :  { %p7675_p11 = pnand %p7674_p10, %p7668_p7 }
  0x7c   :  { %7678 = shalt.err (!%p7675_p11)  }
  0x7d   :  { %226 = dma.hbm_to_vmem [thread:$0]  %s8478_s9, 4096, %s224_s28, [#allocation9 + $0x5] }
  0x7e   :  { %s7679_s1 = scalar_lea.hbm %s8479_s10, 16384 }
  0x7f   :  { %p7680_p12 = scmp.ne.s32.totalorder %s8479_s10, %s7679_s1  ;;  %p7683_p13 = scmp.lt.u32.totalorder %s7679_s1, %s8479_s10 }
  0x81   :  { %p7685_p0 = pnand %p7683_p13, %p7680_p12 }
  0x83   :  { %7688 = shalt.err (!%p7685_p0)  }
  0x84   :  { %s7689_s23 = scalar_lea.vmem %s7932_s30, 16384  ;;  %p7694_p2 = scmp.lt.s32.totalorder %s7932_s30, %s7932_s30 }
  0x85   :  { %p7690_p1 = scmp.ne.s32.totalorder %s7932_s30, %s7689_s23  ;;  %p7695_p3 = scmp.lt.s32.totalorder %s7689_s23, %s7689_s23 }
  0x87   :  { %p7696_p4 = por %p7695_p3, %p7694_p2 }
  0x89   :  { %p7697_p5 = pnand %p7696_p4, %p7690_p1 }
  0x8b   :  { %7700 = shalt.err (!%p7697_p5)  }
  0x8c   :  { %238 = dma.hbm_to_vmem [thread:$0]  %s8479_s10, 16384, %s7932_s30, [#allocation9 + $0x6]  ;;  %v239_v0 = vld [vmem:[%s8469_s0] sm:$0xf] }
  0x8d   :  { %7727 = dma.done.wait [#allocation9], 256 }
  0x8e   :  { %7728 = vsyncadd [#allocation9], 4294967040  ;;  %v7771_v1 = vmov 0   ;;  %v244_v2 = vld [vmem:[#allocation2] sm:$0xff]  ;;  %vm260_vm0 = vcmask 1043456   ;;  %v245_v3 = vld [vmem:[#allocation2 + $0x8] sm:$0xff] }
  0x8f   :  { %305 = vmatprep.mubr.bf16.mxu0 %v7771_v1  ;;  %346 = vmatprep.mubr.bf16.mxu1 %v7771_v1  ;;  %v7034_v4 = vcombine.high %v244_v2, %v244_v2  ;;  %v7036_v5 = vcombine.high %v245_v3, %v245_v3  ;;  %v7033_v6 = vcombine.low %v244_v2, %v244_v2  ;;  %vm256_vm1 = vcmask 64512  }
  0x90   :  { %v7035_v7 = vcombine.low %v245_v3, %v245_v3 }
  0x91   :  { %7037 = vmatprep.subr.msk.bf16.mxu0 %vm260_vm0, %v7034_v4  ;;  %7039 = vmatprep.subr.msk.bf16.mxu1 %vm260_vm0, %v7036_v5  ;;  %v262_v8 = vsel %vm260_vm0, %v7033_v6, 0 }
  0x92   :  { %v268_v9 = vsel %vm260_vm0, %v7035_v7, 0  ;;  %274 = vmatpush1.bf16.msra.mxu0 %v262_v8 }
  0x93   :  { %315 = vmatpush1.bf16.msra.mxu1 %v268_v9 }
  0x95   :  { %7038 = vmatmul.mubr.msk.bf16.vlgmr.msra.gmra.mrb[0].mxu0 %vm256_vm1, %v239_v0 }
  0x96   :  { %7040 = vmatmul.mubr.msk.bf16.vlgmr.msra.gmra.mrb[0].mxu1 %vm256_vm1, %v239_v0 }
 0x168   :  { %v7970_v10 = vpop.f32.mrb[0].mxu0 }
 0x169   :  { %v7972_v11 = vpop.f32.mrb[0].mxu1  ;;  %v355_v12 = vmax.f32 %v7970_v10, 0.0  ;;  %v309_v14 = vpop.f32.mrb[1].mxu0 }
 0x16a   :  { %v357_v13 = vmax.f32 %v7972_v11, 0.0  ;;  %v7976_v15 = vpop.f32.mrb[1].mxu1  ;;  %v356_v16 = vmax.f32 %v309_v14, 0.0  ;;  %v311_v18 = vpop.f32.mrb[2].mxu0 }
 0x16b   :  { %v358_v17 = vmax.f32 %v7976_v15, 0.0  ;;  %v352_v19 = vpop.f32.mrb[2].mxu1  ;;  %v312_v20 = vpop.f32.mrb[3].mxu0 }
 0x16c   :  { %v353_v21 = vpop.f32.mrb[3].mxu1 }
 0x16d   :  { %7729 = dma.done.wait [#allocation9 + $0x1], 32768 }
 0x16e   :  { %7730 = vsyncadd [#allocation9 + $0x1], 4294934528  ;;  %v7979_v22 = vpack.c.bf16 %v356_v16, %v356_v16  ;;  %v368_v23 = vld [vmem:[#allocation3 + $0x8] sm:$0xff]  ;;  %v370_v24 = vld [vmem:[#allocation3 + $0x18] sm:$0xff] }
 0x16f   :  { %v367_v25 = vld [vmem:[#allocation3] sm:$0xff]  ;;  %623 = vmatprep.subr.bf16.mxu0 %v368_v23  ;;  %705 = vmatprep.subr.bf16.mxu1 %v370_v24  ;;  %v369_v26 = vld [vmem:[#allocation3 + $0x10] sm:$0xff]  ;;  %v376_v27 = vld [vmem:[#allocation3 + $0x48] sm:$0xff] }
 0x170   :  { %655 = vmatprep.mubr.bf16.mxu0 %v7979_v22  ;;  %737 = vmatprep.mubr.bf16.mxu1 %v7979_v22  ;;  %v378_v28 = vld [vmem:[#allocation3 + $0x58] sm:$0xff]  ;;  %v375_v29 = vld [vmem:[#allocation3 + $0x40] sm:$0xff]  ;;  %v377_v30 = vld [vmem:[#allocation3 + $0x50] sm:$0xff] }
 0x171   :  { %624 = vmatpush1.bf16.msra.mxu0 %v367_v25  ;;  %706 = vmatpush1.bf16.msra.mxu1 %v369_v26  ;;  %v384_v31 = vld [vmem:[#allocation3 + $0x88] sm:$0xff]  ;;  %v386_v32 = vld [vmem:[#allocation3 + $0x98] sm:$0xff]  ;;  %v383_v33 = vld [vmem:[#allocation3 + $0x80] sm:$0xff] }
 0x172   :  { %625 = vmatprep.subr.bf16.mxu0 %v376_v27  ;;  %707 = vmatprep.subr.bf16.mxu1 %v378_v28  ;;  %v385_v34 = vld [vmem:[#allocation3 + $0x90] sm:$0xff]  ;;  %v392_v35 = vld [vmem:[#allocation3 + $0xc8] sm:$0xff]  ;;  %v394_v36 = vld [vmem:[#allocation3 + $0xd8] sm:$0xff] }
 0x173   :  { %v391_v37 = vld [vmem:[#allocation3 + $0xc0] sm:$0xff]  ;;  %v393_v38 = vld [vmem:[#allocation3 + $0xd0] sm:$0xff]  ;;  %v400_v39 = vld [vmem:[#allocation3 + $0x108] sm:$0xff] }
 0x174   :  { %v402_v40 = vld [vmem:[#allocation3 + $0x118] sm:$0xff]  ;;  %v399_v41 = vld [vmem:[#allocation3 + $0x100] sm:$0xff]  ;;  %v401_v42 = vld [vmem:[#allocation3 + $0x110] sm:$0xff] }
 0x175   :  { %626 = vmatpush1.bf16.msra.mxu0 %v375_v29  ;;  %708 = vmatpush1.bf16.msra.mxu1 %v377_v30  ;;  %v408_v43 = vld [vmem:[#allocation3 + $0x148] sm:$0xff]  ;;  %v410_v44 = vld [vmem:[#allocation3 + $0x158] sm:$0xff]  ;;  %v407_v45 = vld [vmem:[#allocation3 + $0x140] sm:$0xff] }
 0x176   :  { %627 = vmatprep.subr.bf16.mxu0 %v384_v31  ;;  %709 = vmatprep.subr.bf16.mxu1 %v386_v32  ;;  %v409_v46 = vld [vmem:[#allocation3 + $0x150] sm:$0xff]  ;;  %v416_v47 = vld [vmem:[#allocation3 + $0x188] sm:$0xff]  ;;  %v418_v48 = vld [vmem:[#allocation3 + $0x198] sm:$0xff]  ;;  %v7986_v32 = vpack.c.bf16 %v355_v12, %v355_v12 }
 0x177   :  { %v415_v49 = vld [vmem:[#allocation3 + $0x180] sm:$0xff]  ;;  %v417_v50 = vld [vmem:[#allocation3 + $0x190] sm:$0xff]  ;;  %v424_v51 = vld [vmem:[#allocation3 + $0x1c8] sm:$0xff] }
 0x178   :  { %v426_v52 = vld [vmem:[#allocation3 + $0x1d8] sm:$0xff]  ;;  %v423_v53 = vld [vmem:[#allocation3 + $0x1c0] sm:$0xff]  ;;  %v425_v54 = vld [vmem:[#allocation3 + $0x1d0] sm:$0xff] }
 0x179   :  { %628 = vmatpush1.bf16.msra.mxu0 %v383_v33  ;;  %710 = vmatpush1.bf16.msra.mxu1 %v385_v34  ;;  %v432_v55 = vld [vmem:[#allocation3 + $0x208] sm:$0xff]  ;;  %v434_v56 = vld [vmem:[#allocation3 + $0x218] sm:$0xff]  ;;  %v431_v57 = vld [vmem:[#allocation3 + $0x200] sm:$0xff] }
 0x17a   :  { %629 = vmatprep.subr.bf16.mxu0 %v392_v35  ;;  %711 = vmatprep.subr.bf16.mxu1 %v394_v36  ;;  %v433_v58 = vld [vmem:[#allocation3 + $0x210] sm:$0xff]  ;;  %v440_v59 = vld [vmem:[#allocation3 + $0x248] sm:$0xff]  ;;  %v442_v60 = vld [vmem:[#allocation3 + $0x258] sm:$0xff] }
 0x17b   :  { %v439_v61 = vld [vmem:[#allocation3 + $0x240] sm:$0xff]  ;;  %v441_v62 = vld [vmem:[#allocation3 + $0x250] sm:$0xff]  ;;  %v448_v63 = vld [vmem:[#allocation3 + $0x288] sm:$0xff] }
 0x17c   :  { %v450_v0 = vld [vmem:[#allocation3 + $0x298] sm:$0xff]  ;;  %v447_v1 = vld [vmem:[#allocation3 + $0x280] sm:$0xff]  ;;  %v449_v2 = vld [vmem:[#allocation3 + $0x290] sm:$0xff] }
 0x17d   :  { %630 = vmatpush1.bf16.msra.mxu0 %v391_v37  ;;  %712 = vmatpush1.bf16.msra.mxu1 %v393_v38  ;;  %v456_v3 = vld [vmem:[#allocation3 + $0x2c8] sm:$0xff]  ;;  %v458_v4 = vld [vmem:[#allocation3 + $0x2d8] sm:$0xff]  ;;  %v455_v5 = vld [vmem:[#allocation3 + $0x2c0] sm:$0xff]  ;;  %v7991_v37 = vpack.c.bf16 %v358_v17, %v358_v17 }
 0x17e   :  { %631 = vmatprep.subr.bf16.mxu0 %v400_v39  ;;  %713 = vmatprep.subr.bf16.mxu1 %v402_v40  ;;  %v457_v6 = vld [vmem:[#allocation3 + $0x2d0] sm:$0xff]  ;;  %v464_v7 = vld [vmem:[#allocation3 + $0x308] sm:$0xff]  ;;  %v466_v8 = vld [vmem:[#allocation3 + $0x318] sm:$0xff] }
 0x17f   :  { %v463_v9 = vld [vmem:[#allocation3 + $0x300] sm:$0xff]  ;;  %v465_v14 = vld [vmem:[#allocation3 + $0x310] sm:$0xff]  ;;  %v472_v16 = vld [vmem:[#allocation3 + $0x348] sm:$0xff] }
 0x180   :  { %v474_v18 = vld [vmem:[#allocation3 + $0x358] sm:$0xff]  ;;  %v471_v19 = vld [vmem:[#allocation3 + $0x340] sm:$0xff]  ;;  %v473_v20 = vld [vmem:[#allocation3 + $0x350] sm:$0xff] }
 0x181   :  { %632 = vmatpush1.bf16.msra.mxu0 %v399_v41  ;;  %714 = vmatpush1.bf16.msra.mxu1 %v401_v42  ;;  %v480_v21 = vld [vmem:[#allocation3 + $0x388] sm:$0xff]  ;;  %v482_v23 = vld [vmem:[#allocation3 + $0x398] sm:$0xff]  ;;  %v479_v24 = vld [vmem:[#allocation3 + $0x380] sm:$0xff] }
 0x182   :  { %633 = vmatprep.subr.bf16.mxu0 %v408_v43  ;;  %715 = vmatprep.subr.bf16.mxu1 %v410_v44  ;;  %v481_v25 = vld [vmem:[#allocation3 + $0x390] sm:$0xff]  ;;  %v488_v26 = vld [vmem:[#allocation3 + $0x3c8] sm:$0xff]  ;;  %v490_v27 = vld [vmem:[#allocation3 + $0x3d8] sm:$0xff] }
 0x183   :  { %v487_v28 = vld [vmem:[#allocation3 + $0x3c0] sm:$0xff]  ;;  %v489_v29 = vld [vmem:[#allocation3 + $0x3d0] sm:$0xff]  ;;  %v496_v30 = vld [vmem:[#allocation3 + $0x408] sm:$0xff] }
 0x184   :  { %v498_v31 = vld [vmem:[#allocation3 + $0x418] sm:$0xff]  ;;  %v495_v33 = vld [vmem:[#allocation3 + $0x400] sm:$0xff]  ;;  %v497_v34 = vld [vmem:[#allocation3 + $0x410] sm:$0xff] }
 0x185   :  { %634 = vmatpush1.bf16.msra.mxu0 %v407_v45  ;;  %716 = vmatpush1.bf16.msra.mxu1 %v409_v46  ;;  %v504_v35 = vld [vmem:[#allocation3 + $0x448] sm:$0xff]  ;;  %v506_v36 = vld [vmem:[#allocation3 + $0x458] sm:$0xff]  ;;  %v503_v10 = vld [vmem:[#allocation3 + $0x440] sm:$0xff] }
 0x186   :  { %635 = vmatprep.subr.bf16.mxu0 %v416_v47  ;;  %717 = vmatprep.subr.bf16.mxu1 %v418_v48  ;;  %v505_v12 = vld [vmem:[#allocation3 + $0x450] sm:$0xff]  ;;  %v512_v38 = vld [vmem:[#allocation3 + $0x488] sm:$0xff]  ;;  %v514_v39 = vld [vmem:[#allocation3 + $0x498] sm:$0xff] }
 0x187   :  { %v511_v15 = vld [vmem:[#allocation3 + $0x480] sm:$0xff]  ;;  %v513_v17 = vld [vmem:[#allocation3 + $0x490] sm:$0xff]  ;;  %v520_v40 = vld [vmem:[#allocation3 + $0x4c8] sm:$0xff] }
 0x188   :  { %v522_v41 = vld [vmem:[#allocation3 + $0x4d8] sm:$0xff]  ;;  %v519_v42 = vld [vmem:[#allocation3 + $0x4c0] sm:$0xff]  ;;  %v521_v43 = vld [vmem:[#allocation3 + $0x4d0] sm:$0xff] }
 0x189   :  { %636 = vmatpush1.bf16.msra.mxu0 %v415_v49  ;;  %718 = vmatpush1.bf16.msra.mxu1 %v417_v50  ;;  %v528_v44 = vld [vmem:[#allocation3 + $0x508] sm:$0xff]  ;;  %v530_v45 = vld [vmem:[#allocation3 + $0x518] sm:$0xff]  ;;  %v527_v46 = vld [vmem:[#allocation3 + $0x500] sm:$0xff] }
 0x18a   :  { %637 = vmatprep.subr.bf16.mxu0 %v424_v51  ;;  %719 = vmatprep.subr.bf16.mxu1 %v426_v52  ;;  %v529_v47 = vld [vmem:[#allocation3 + $0x510] sm:$0xff]  ;;  %v536_v48 = vld [vmem:[#allocation3 + $0x548] sm:$0xff]  ;;  %v538_v49 = vld [vmem:[#allocation3 + $0x558] sm:$0xff] }
 0x18b   :  { %v535_v50 = vld [vmem:[#allocation3 + $0x540] sm:$0xff]  ;;  %v537_v51 = vld [vmem:[#allocation3 + $0x550] sm:$0xff]  ;;  %v544_v52 = vld [vmem:[#allocation3 + $0x588] sm:$0xff] }
 0x18c   :  { %v379_v11 = vld [vmem:[#allocation3 + $0x60] sm:$0xff] }
 0x18d   :  { %638 = vmatpush1.bf16.msra.mxu0 %v423_v53  ;;  %720 = vmatpush1.bf16.msra.mxu1 %v425_v54  ;;  %v546_v53 = vld [vmem:[#allocation3 + $0x598] sm:$0xff]  ;;  %v543_v54 = vld [vmem:[#allocation3 + $0x580] sm:$0xff] }
 0x18e   :  { %639 = vmatprep.subr.bf16.mxu0 %v432_v55  ;;  %721 = vmatprep.subr.bf16.mxu1 %v434_v56  ;;  %v545_v55 = vld [vmem:[#allocation3 + $0x590] sm:$0xff]  ;;  %v552_v56 = vld [vmem:[#allocation3 + $0x5c8] sm:$0xff] }
 0x191   :  { %640 = vmatpush1.bf16.msra.mxu0 %v431_v57  ;;  %722 = vmatpush1.bf16.msra.mxu1 %v433_v58  ;;  %v554_v57 = vld [vmem:[#allocation3 + $0x5d8] sm:$0xff]  ;;  %v551_v58 = vld [vmem:[#allocation3 + $0x5c0] sm:$0xff] }
 0x192   :  { %641 = vmatprep.subr.bf16.mxu0 %v440_v59  ;;  %723 = vmatprep.subr.bf16.mxu1 %v442_v60  ;;  %v553_v59 = vld [vmem:[#allocation3 + $0x5d0] sm:$0xff]  ;;  %v560_v60 = vld [vmem:[#allocation3 + $0x608] sm:$0xff] }
 0x195   :  { %642 = vmatpush1.bf16.msra.mxu0 %v439_v61  ;;  %724 = vmatpush1.bf16.msra.mxu1 %v441_v62  ;;  %v562_v61 = vld [vmem:[#allocation3 + $0x618] sm:$0xff]  ;;  %v559_v62 = vld [vmem:[#allocation3 + $0x600] sm:$0xff] }
 0x196   :  { %643 = vmatprep.subr.bf16.mxu0 %v448_v63  ;;  %725 = vmatprep.subr.bf16.mxu1 %v450_v0  ;;  %v561_v63 = vld [vmem:[#allocation3 + $0x610] sm:$0xff]  ;;  %v568_v0 = vld [vmem:[#allocation3 + $0x648] sm:$0xff] }
 0x199   :  { %644 = vmatpush1.bf16.msra.mxu0 %v447_v1  ;;  %726 = vmatpush1.bf16.msra.mxu1 %v449_v2  ;;  %v570_v1 = vld [vmem:[#allocation3 + $0x658] sm:$0xff]  ;;  %v567_v2 = vld [vmem:[#allocation3 + $0x640] sm:$0xff] }
 0x19a   :  { %645 = vmatprep.subr.bf16.mxu0 %v456_v3  ;;  %727 = vmatprep.subr.bf16.mxu1 %v458_v4  ;;  %v569_v3 = vld [vmem:[#allocation3 + $0x650] sm:$0xff]  ;;  %v576_v4 = vld [vmem:[#allocation3 + $0x688] sm:$0xff] }
 0x19d   :  { %646 = vmatpush1.bf16.msra.mxu0 %v455_v5  ;;  %728 = vmatpush1.bf16.msra.mxu1 %v457_v6  ;;  %v578_v5 = vld [vmem:[#allocation3 + $0x698] sm:$0xff]  ;;  %v575_v6 = vld [vmem:[#allocation3 + $0x680] sm:$0xff] }
 0x19e   :  { %647 = vmatprep.subr.bf16.mxu0 %v464_v7  ;;  %729 = vmatprep.subr.bf16.mxu1 %v466_v8  ;;  %v577_v7 = vld [vmem:[#allocation3 + $0x690] sm:$0xff]  ;;  %v584_v8 = vld [vmem:[#allocation3 + $0x6c8] sm:$0xff] }
 0x1a1   :  { %648 = vmatpush1.bf16.msra.mxu0 %v463_v9  ;;  %730 = vmatpush1.bf16.msra.mxu1 %v465_v14  ;;  %v586_v9 = vld [vmem:[#allocation3 + $0x6d8] sm:$0xff]  ;;  %v583_v14 = vld [vmem:[#allocation3 + $0x6c0] sm:$0xff] }
 0x1a2   :  { %649 = vmatprep.subr.bf16.mxu0 %v472_v16  ;;  %731 = vmatprep.subr.bf16.mxu1 %v474_v18  ;;  %v585_v16 = vld [vmem:[#allocation3 + $0x6d0] sm:$0xff]  ;;  %v592_v18 = vld [vmem:[#allocation3 + $0x708] sm:$0xff] }
 0x1a5   :  { %650 = vmatpush1.bf16.msra.mxu0 %v471_v19  ;;  %732 = vmatpush1.bf16.msra.mxu1 %v473_v20  ;;  %v594_v19 = vld [vmem:[#allocation3 + $0x718] sm:$0xff]  ;;  %v591_v20 = vld [vmem:[#allocation3 + $0x700] sm:$0xff] }
 0x1a6   :  { %651 = vmatprep.subr.bf16.mxu0 %v480_v21  ;;  %733 = vmatprep.subr.bf16.mxu1 %v482_v23  ;;  %v593_v21 = vld [vmem:[#allocation3 + $0x710] sm:$0xff]  ;;  %v600_v23 = vld [vmem:[#allocation3 + $0x748] sm:$0xff] }
 0x1a9   :  { %652 = vmatpush1.bf16.msra.mxu0 %v479_v24  ;;  %734 = vmatpush1.bf16.msra.mxu1 %v481_v25  ;;  %v602_v24 = vld [vmem:[#allocation3 + $0x758] sm:$0xff]  ;;  %v599_v25 = vld [vmem:[#allocation3 + $0x740] sm:$0xff] }
 0x1aa   :  { %653 = vmatprep.subr.bf16.mxu0 %v488_v26  ;;  %735 = vmatprep.subr.bf16.mxu1 %v490_v27  ;;  %v601_v26 = vld [vmem:[#allocation3 + $0x750] sm:$0xff]  ;;  %v608_v27 = vld [vmem:[#allocation3 + $0x788] sm:$0xff] }
 0x1ad   :  { %654 = vmatpush1.bf16.msra.mxu0 %v487_v28  ;;  %736 = vmatpush1.bf16.msra.mxu1 %v489_v29  ;;  %v610_v28 = vld [vmem:[#allocation3 + $0x798] sm:$0xff]  ;;  %v607_v29 = vld [vmem:[#allocation3 + $0x780] sm:$0xff] }
 0x1ae   :  { %664 = vmatprep.subr.bf16.mxu0 %v496_v30  ;;  %746 = vmatprep.subr.bf16.mxu1 %v498_v31  ;;  %v609_v30 = vld [vmem:[#allocation3 + $0x790] sm:$0xff]  ;;  %v616_v31 = vld [vmem:[#allocation3 + $0x7c8] sm:$0xff] }
 0x1b0   :  { %656 = vmatmul.mubr.bf16.vlgmr.msra.gmra.mrb[4].mxu0 %v7986_v32  ;;  %738 = vmatmul.mubr.bf16.vlgmr.msra.gmra.mrb[4].mxu1 %v7986_v32 }
 0x1b1   :  { %665 = vmatpush1.bf16.msra.mxu0 %v495_v33  ;;  %747 = vmatpush1.bf16.msra.mxu1 %v497_v34  ;;  %v618_v33 = vld [vmem:[#allocation3 + $0x7d8] sm:$0xff]  ;;  %v615_v34 = vld [vmem:[#allocation3 + $0x7c0] sm:$0xff] }
 0x1b2   :  { %666 = vmatprep.subr.bf16.mxu0 %v504_v35  ;;  %748 = vmatprep.subr.bf16.mxu1 %v506_v36  ;;  %v617_v35 = vld [vmem:[#allocation3 + $0x7d0] sm:$0xff]  ;;  %v372_v36 = vld [vmem:[#allocation3 + $0x28] sm:$0xff] }
 0x1b3   :  { %696 = vmatprep.mubr.bf16.mxu0 %v7991_v37  ;;  %778 = vmatprep.mubr.bf16.mxu1 %v7991_v37 }
 0x1b5   :  { %667 = vmatpush1.bf16.msra.mxu0 %v503_v10  ;;  %749 = vmatpush1.bf16.msra.mxu1 %v505_v12  ;;  %v374_v10 = vld [vmem:[#allocation3 + $0x38] sm:$0xff]  ;;  %v8000_v12 = vpack.c.bf16 %v357_v13, %v357_v13  ;;  %v388_v13 = vld [vmem:[#allocation3 + $0xa8] sm:$0xff] }
 0x1b6   :  { %668 = vmatprep.subr.bf16.mxu0 %v512_v38  ;;  %750 = vmatprep.subr.bf16.mxu1 %v514_v39  ;;  %v371_v38 = vld [vmem:[#allocation3 + $0x20] sm:$0xff]  ;;  %v373_v39 = vld [vmem:[#allocation3 + $0x30] sm:$0xff] }
 0x1b9   :  { %669 = vmatpush1.bf16.msra.mxu0 %v511_v15  ;;  %751 = vmatpush1.bf16.msra.mxu1 %v513_v17  ;;  %v380_v15 = vld [vmem:[#allocation3 + $0x68] sm:$0xff]  ;;  %v382_v17 = vld [vmem:[#allocation3 + $0x78] sm:$0xff] }
 0x1ba   :  { %670 = vmatprep.subr.bf16.mxu0 %v520_v40  ;;  %752 = vmatprep.subr.bf16.mxu1 %v522_v41  ;;  %v381_v40 = vld [vmem:[#allocation3 + $0x70] sm:$0xff]  ;;  %v390_v41 = vld [vmem:[#allocation3 + $0xb8] sm:$0xff] }
 0x1bd   :  { %671 = vmatpush1.bf16.msra.mxu0 %v519_v42  ;;  %753 = vmatpush1.bf16.msra.mxu1 %v521_v43  ;;  %v387_v42 = vld [vmem:[#allocation3 + $0xa0] sm:$0xff]  ;;  %v389_v43 = vld [vmem:[#allocation3 + $0xb0] sm:$0xff] }
 0x1be   :  { %672 = vmatprep.subr.bf16.mxu0 %v528_v44  ;;  %754 = vmatprep.subr.bf16.mxu1 %v530_v45  ;;  %v396_v44 = vld [vmem:[#allocation3 + $0xe8] sm:$0xff]  ;;  %v398_v45 = vld [vmem:[#allocation3 + $0xf8] sm:$0xff] }
 0x1c1   :  { %673 = vmatpush1.bf16.msra.mxu0 %v527_v46  ;;  %755 = vmatpush1.bf16.msra.mxu1 %v529_v47  ;;  %v395_v46 = vld [vmem:[#allocation3 + $0xe0] sm:$0xff]  ;;  %v397_v47 = vld [vmem:[#allocation3 + $0xf0] sm:$0xff] }
 0x1c2   :  { %674 = vmatprep.subr.bf16.mxu0 %v536_v48  ;;  %756 = vmatprep.subr.bf16.mxu1 %v538_v49  ;;  %v404_v48 = vld [vmem:[#allocation3 + $0x128] sm:$0xff]  ;;  %v406_v49 = vld [vmem:[#allocation3 + $0x138] sm:$0xff] }
 0x1c5   :  { %675 = vmatpush1.bf16.msra.mxu0 %v535_v50  ;;  %757 = vmatpush1.bf16.msra.mxu1 %v537_v51  ;;  %v405_v50 = vld [vmem:[#allocation3 + $0x130] sm:$0xff]  ;;  %v412_v51 = vld [vmem:[#allocation3 + $0x168] sm:$0xff] }
 0x1c6   :  { %676 = vmatprep.subr.bf16.mxu0 %v544_v52  ;;  %758 = vmatprep.subr.bf16.mxu1 %v546_v53  ;;  %v414_v52 = vld [vmem:[#allocation3 + $0x178] sm:$0xff]  ;;  %v411_v53 = vld [vmem:[#allocation3 + $0x160] sm:$0xff] }
 0x1c9   :  { %677 = vmatpush1.bf16.msra.mxu0 %v543_v54  ;;  %759 = vmatpush1.bf16.msra.mxu1 %v545_v55  ;;  %v413_v54 = vld [vmem:[#allocation3 + $0x170] sm:$0xff]  ;;  %v420_v55 = vld [vmem:[#allocation3 + $0x1a8] sm:$0xff] }
 0x1ca   :  { %678 = vmatprep.subr.bf16.mxu0 %v552_v56  ;;  %760 = vmatprep.subr.bf16.mxu1 %v554_v57  ;;  %v422_v56 = vld [vmem:[#allocation3 + $0x1b8] sm:$0xff]  ;;  %v419_v57 = vld [vmem:[#allocation3 + $0x1a0] sm:$0xff] }
 0x1cd   :  { %679 = vmatpush1.bf16.msra.mxu0 %v551_v58  ;;  %761 = vmatpush1.bf16.msra.mxu1 %v553_v59  ;;  %v421_v58 = vld [vmem:[#allocation3 + $0x1b0] sm:$0xff]  ;;  %v428_v59 = vld [vmem:[#allocation3 + $0x1e8] sm:$0xff] }
 0x1ce   :  { %680 = vmatprep.subr.bf16.mxu0 %v560_v60  ;;  %762 = vmatprep.subr.bf16.mxu1 %v562_v61  ;;  %v430_v60 = vld [vmem:[#allocation3 + $0x1f8] sm:$0xff]  ;;  %v427_v61 = vld [vmem:[#allocation3 + $0x1e0] sm:$0xff] }
 0x1d1   :  { %681 = vmatpush1.bf16.msra.mxu0 %v559_v62  ;;  %763 = vmatpush1.bf16.msra.mxu1 %v561_v63  ;;  %v429_v62 = vld [vmem:[#allocation3 + $0x1f0] sm:$0xff]  ;;  %v436_v63 = vld [vmem:[#allocation3 + $0x228] sm:$0xff] }
 0x1d2   :  { %682 = vmatprep.subr.bf16.mxu0 %v568_v0  ;;  %764 = vmatprep.subr.bf16.mxu1 %v570_v1  ;;  %v438_v0 = vld [vmem:[#allocation3 + $0x238] sm:$0xff]  ;;  %v435_v1 = vld [vmem:[#allocation3 + $0x220] sm:$0xff] }
 0x1d5   :  { %683 = vmatpush1.bf16.msra.mxu0 %v567_v2  ;;  %765 = vmatpush1.bf16.msra.mxu1 %v569_v3  ;;  %v437_v2 = vld [vmem:[#allocation3 + $0x230] sm:$0xff]  ;;  %v444_v3 = vld [vmem:[#allocation3 + $0x268] sm:$0xff] }
 0x1d6   :  { %684 = vmatprep.subr.bf16.mxu0 %v576_v4  ;;  %766 = vmatprep.subr.bf16.mxu1 %v578_v5  ;;  %v446_v4 = vld [vmem:[#allocation3 + $0x278] sm:$0xff]  ;;  %v443_v5 = vld [vmem:[#allocation3 + $0x260] sm:$0xff] }
 0x1d9   :  { %685 = vmatpush1.bf16.msra.mxu0 %v575_v6  ;;  %767 = vmatpush1.bf16.msra.mxu1 %v577_v7  ;;  %v445_v6 = vld [vmem:[#allocation3 + $0x270] sm:$0xff]  ;;  %v452_v7 = vld [vmem:[#allocation3 + $0x2a8] sm:$0xff] }
 0x1da   :  { %686 = vmatprep.subr.bf16.mxu0 %v584_v8  ;;  %768 = vmatprep.subr.bf16.mxu1 %v586_v9  ;;  %v454_v8 = vld [vmem:[#allocation3 + $0x2b8] sm:$0xff]  ;;  %v451_v9 = vld [vmem:[#allocation3 + $0x2a0] sm:$0xff] }
 0x1dd   :  { %687 = vmatpush1.bf16.msra.mxu0 %v583_v14  ;;  %769 = vmatpush1.bf16.msra.mxu1 %v585_v16  ;;  %v453_v14 = vld [vmem:[#allocation3 + $0x2b0] sm:$0xff]  ;;  %v460_v16 = vld [vmem:[#allocation3 + $0x2e8] sm:$0xff] }
 0x1de   :  { %688 = vmatprep.subr.bf16.mxu0 %v592_v18  ;;  %770 = vmatprep.subr.bf16.mxu1 %v594_v19  ;;  %v462_v18 = vld [vmem:[#allocation3 + $0x2f8] sm:$0xff]  ;;  %v459_v19 = vld [vmem:[#allocation3 + $0x2e0] sm:$0xff] }
 0x1e1   :  { %689 = vmatpush1.bf16.msra.mxu0 %v591_v20  ;;  %771 = vmatpush1.bf16.msra.mxu1 %v593_v21  ;;  %v461_v20 = vld [vmem:[#allocation3 + $0x2f0] sm:$0xff]  ;;  %v468_v21 = vld [vmem:[#allocation3 + $0x328] sm:$0xff] }
 0x1e2   :  { %690 = vmatprep.subr.bf16.mxu0 %v600_v23  ;;  %772 = vmatprep.subr.bf16.mxu1 %v602_v24  ;;  %v470_v23 = vld [vmem:[#allocation3 + $0x338] sm:$0xff]  ;;  %v467_v24 = vld [vmem:[#allocation3 + $0x320] sm:$0xff] }
 0x1e5   :  { %691 = vmatpush1.bf16.msra.mxu0 %v599_v25  ;;  %773 = vmatpush1.bf16.msra.mxu1 %v601_v26  ;;  %v469_v25 = vld [vmem:[#allocation3 + $0x330] sm:$0xff]  ;;  %v476_v26 = vld [vmem:[#allocation3 + $0x368] sm:$0xff] }
 0x1e6   :  { %692 = vmatprep.subr.bf16.mxu0 %v608_v27  ;;  %774 = vmatprep.subr.bf16.mxu1 %v610_v28  ;;  %v478_v27 = vld [vmem:[#allocation3 + $0x378] sm:$0xff]  ;;  %v475_v28 = vld [vmem:[#allocation3 + $0x360] sm:$0xff] }
 0x1e9   :  { %693 = vmatpush1.bf16.msra.mxu0 %v607_v29  ;;  %775 = vmatpush1.bf16.msra.mxu1 %v609_v30  ;;  %v477_v29 = vld [vmem:[#allocation3 + $0x370] sm:$0xff]  ;;  %v484_v30 = vld [vmem:[#allocation3 + $0x3a8] sm:$0xff] }
 0x1ea   :  { %694 = vmatprep.subr.bf16.mxu0 %v616_v31  ;;  %776 = vmatprep.subr.bf16.mxu1 %v618_v33  ;;  %v486_v31 = vld [vmem:[#allocation3 + $0x3b8] sm:$0xff]  ;;  %v483_v33 = vld [vmem:[#allocation3 + $0x3a0] sm:$0xff] }
 0x1ed   :  { %695 = vmatpush1.bf16.msra.mxu0 %v615_v34  ;;  %777 = vmatpush1.bf16.msra.mxu1 %v617_v35  ;;  %v485_v34 = vld [vmem:[#allocation3 + $0x3b0] sm:$0xff]  ;;  %v492_v35 = vld [vmem:[#allocation3 + $0x3e8] sm:$0xff] }
 0x1ee   :  { %787 = vmatprep.subr.bf16.mxu0 %v372_v36  ;;  %869 = vmatprep.subr.bf16.mxu1 %v374_v10  ;;  %v494_v36 = vld [vmem:[#allocation3 + $0x3f8] sm:$0xff]  ;;  %v491_v10 = vld [vmem:[#allocation3 + $0x3e0] sm:$0xff] }
 0x1f0   :  { %697 = vmatmul.mubr.bf16.vlgmr.msra.gmra.mrb[4].mxu0 %v8000_v12  ;;  %779 = vmatmul.mubr.bf16.vlgmr.msra.gmra.mrb[4].mxu1 %v8000_v12 }
 0x1f1   :  { %788 = vmatpush1.bf16.msra.mxu0 %v371_v38  ;;  %870 = vmatpush1.bf16.msra.mxu1 %v373_v39  ;;  %v493_v38 = vld [vmem:[#allocation3 + $0x3f0] sm:$0xff]  ;;  %v500_v39 = vld [vmem:[#allocation3 + $0x428] sm:$0xff] }
 0x1f2   :  { %789 = vmatprep.subr.bf16.mxu0 %v380_v15  ;;  %871 = vmatprep.subr.bf16.mxu1 %v382_v17  ;;  %v502_v15 = vld [vmem:[#allocation3 + $0x438] sm:$0xff]  ;;  %v499_v17 = vld [vmem:[#allocation3 + $0x420] sm:$0xff] }
 0x1f3   :  { %819 = vmatprep.mubr.bf16.mxu0 %v7979_v22  ;;  %901 = vmatprep.mubr.bf16.mxu1 %v7979_v22  ;;  %v403_v22 = vld [vmem:[#allocation3 + $0x120] sm:$0xff] }
 0x1f5   :  { %790 = vmatpush1.bf16.msra.mxu0 %v379_v11  ;;  %872 = vmatpush1.bf16.msra.mxu1 %v381_v40  ;;  %v501_v11 = vld [vmem:[#allocation3 + $0x430] sm:$0xff]  ;;  %v508_v40 = vld [vmem:[#allocation3 + $0x468] sm:$0xff] }
 0x1f6   :  { %791 = vmatprep.subr.bf16.mxu0 %v388_v13  ;;  %873 = vmatprep.subr.bf16.mxu1 %v390_v41  ;;  %v510_v13 = vld [vmem:[#allocation3 + $0x478] sm:$0xff]  ;;  %v507_v41 = vld [vmem:[#allocation3 + $0x460] sm:$0xff] }
 0x1f9   :  { %792 = vmatpush1.bf16.msra.mxu0 %v387_v42  ;;  %874 = vmatpush1.bf16.msra.mxu1 %v389_v43  ;;  %v509_v42 = vld [vmem:[#allocation3 + $0x470] sm:$0xff]  ;;  %v516_v43 = vld [vmem:[#allocation3 + $0x4a8] sm:$0xff] }
 0x1fa   :  { %793 = vmatprep.subr.bf16.mxu0 %v396_v44  ;;  %875 = vmatprep.subr.bf16.mxu1 %v398_v45  ;;  %v518_v44 = vld [vmem:[#allocation3 + $0x4b8] sm:$0xff]  ;;  %v515_v45 = vld [vmem:[#allocation3 + $0x4a0] sm:$0xff] }
 0x1fd   :  { %794 = vmatpush1.bf16.msra.mxu0 %v395_v46  ;;  %876 = vmatpush1.bf16.msra.mxu1 %v397_v47  ;;  %v517_v46 = vld [vmem:[#allocation3 + $0x4b0] sm:$0xff]  ;;  %v524_v47 = vld [vmem:[#allocation3 + $0x4e8] sm:$0xff] }
 0x1fe   :  { %795 = vmatprep.subr.bf16.mxu0 %v404_v48  ;;  %877 = vmatprep.subr.bf16.mxu1 %v406_v49  ;;  %v523_v48 = vld [vmem:[#allocation3 + $0x4e0] sm:$0xff]  ;;  %v525_v49 = vld [vmem:[#allocation3 + $0x4f0] sm:$0xff] }
 0x201   :  { %796 = vmatpush1.bf16.msra.mxu0 %v403_v22  ;;  %878 = vmatpush1.bf16.msra.mxu1 %v405_v50  ;;  %v532_v22 = vld [vmem:[#allocation3 + $0x528] sm:$0xff]  ;;  %v534_v50 = vld [vmem:[#allocation3 + $0x538] sm:$0xff] }
 0x202   :  { %797 = vmatprep.subr.bf16.mxu0 %v412_v51  ;;  %879 = vmatprep.subr.bf16.mxu1 %v414_v52  ;;  %v533_v51 = vld [vmem:[#allocation3 + $0x530] sm:$0xff]  ;;  %v540_v52 = vld [vmem:[#allocation3 + $0x568] sm:$0xff] }
 0x205   :  { %798 = vmatpush1.bf16.msra.mxu0 %v411_v53  ;;  %880 = vmatpush1.bf16.msra.mxu1 %v413_v54  ;;  %v542_v53 = vld [vmem:[#allocation3 + $0x578] sm:$0xff]  ;;  %v539_v54 = vld [vmem:[#allocation3 + $0x560] sm:$0xff] }
 0x206   :  { %799 = vmatprep.subr.bf16.mxu0 %v420_v55  ;;  %881 = vmatprep.subr.bf16.mxu1 %v422_v56  ;;  %v541_v55 = vld [vmem:[#allocation3 + $0x570] sm:$0xff]  ;;  %v548_v56 = vld [vmem:[#allocation3 + $0x5a8] sm:$0xff] }
 0x209   :  { %800 = vmatpush1.bf16.msra.mxu0 %v419_v57  ;;  %882 = vmatpush1.bf16.msra.mxu1 %v421_v58  ;;  %v550_v57 = vld [vmem:[#allocation3 + $0x5b8] sm:$0xff]  ;;  %v547_v58 = vld [vmem:[#allocation3 + $0x5a0] sm:$0xff] }
 0x20a   :  { %801 = vmatprep.subr.bf16.mxu0 %v428_v59  ;;  %883 = vmatprep.subr.bf16.mxu1 %v430_v60  ;;  %v549_v59 = vld [vmem:[#allocation3 + $0x5b0] sm:$0xff]  ;;  %v556_v60 = vld [vmem:[#allocation3 + $0x5e8] sm:$0xff] }
 0x20d   :  { %802 = vmatpush1.bf16.msra.mxu0 %v427_v61  ;;  %884 = vmatpush1.bf16.msra.mxu1 %v429_v62  ;;  %v558_v61 = vld [vmem:[#allocation3 + $0x5f8] sm:$0xff]  ;;  %v555_v62 = vld [vmem:[#allocation3 + $0x5e0] sm:$0xff] }
 0x20e   :  { %803 = vmatprep.subr.bf16.mxu0 %v436_v63  ;;  %885 = vmatprep.subr.bf16.mxu1 %v438_v0  ;;  %v557_v63 = vld [vmem:[#allocation3 + $0x5f0] sm:$0xff]  ;;  %v564_v0 = vld [vmem:[#allocation3 + $0x628] sm:$0xff] }
 0x211   :  { %804 = vmatpush1.bf16.msra.mxu0 %v435_v1  ;;  %886 = vmatpush1.bf16.msra.mxu1 %v437_v2  ;;  %v566_v1 = vld [vmem:[#allocation3 + $0x638] sm:$0xff]  ;;  %v563_v2 = vld [vmem:[#allocation3 + $0x620] sm:$0xff] }
 0x212   :  { %805 = vmatprep.subr.bf16.mxu0 %v444_v3  ;;  %887 = vmatprep.subr.bf16.mxu1 %v446_v4  ;;  %v565_v3 = vld [vmem:[#allocation3 + $0x630] sm:$0xff]  ;;  %v572_v4 = vld [vmem:[#allocation3 + $0x668] sm:$0xff] }
 0x215   :  { %806 = vmatpush1.bf16.msra.mxu0 %v443_v5  ;;  %888 = vmatpush1.bf16.msra.mxu1 %v445_v6  ;;  %v574_v5 = vld [vmem:[#allocation3 + $0x678] sm:$0xff]  ;;  %v571_v6 = vld [vmem:[#allocation3 + $0x660] sm:$0xff] }
 0x216   :  { %807 = vmatprep.subr.bf16.mxu0 %v452_v7  ;;  %889 = vmatprep.subr.bf16.mxu1 %v454_v8  ;;  %v573_v7 = vld [vmem:[#allocation3 + $0x670] sm:$0xff]  ;;  %v580_v8 = vld [vmem:[#allocation3 + $0x6a8] sm:$0xff] }
 0x219   :  { %808 = vmatpush1.bf16.msra.mxu0 %v451_v9  ;;  %890 = vmatpush1.bf16.msra.mxu1 %v453_v14  ;;  %v582_v9 = vld [vmem:[#allocation3 + $0x6b8] sm:$0xff]  ;;  %v579_v14 = vld [vmem:[#allocation3 + $0x6a0] sm:$0xff] }
 0x21a   :  { %809 = vmatprep.subr.bf16.mxu0 %v460_v16  ;;  %891 = vmatprep.subr.bf16.mxu1 %v462_v18  ;;  %v581_v16 = vld [vmem:[#allocation3 + $0x6b0] sm:$0xff]  ;;  %v588_v18 = vld [vmem:[#allocation3 + $0x6e8] sm:$0xff] }
 0x21d   :  { %810 = vmatpush1.bf16.msra.mxu0 %v459_v19  ;;  %892 = vmatpush1.bf16.msra.mxu1 %v461_v20  ;;  %v590_v19 = vld [vmem:[#allocation3 + $0x6f8] sm:$0xff]  ;;  %v587_v20 = vld [vmem:[#allocation3 + $0x6e0] sm:$0xff] }
 0x21e   :  { %811 = vmatprep.subr.bf16.mxu0 %v468_v21  ;;  %893 = vmatprep.subr.bf16.mxu1 %v470_v23  ;;  %v589_v21 = vld [vmem:[#allocation3 + $0x6f0] sm:$0xff]  ;;  %v596_v23 = vld [vmem:[#allocation3 + $0x728] sm:$0xff] }
 0x221   :  { %812 = vmatpush1.bf16.msra.mxu0 %v467_v24  ;;  %894 = vmatpush1.bf16.msra.mxu1 %v469_v25  ;;  %v598_v24 = vld [vmem:[#allocation3 + $0x738] sm:$0xff]  ;;  %v595_v25 = vld [vmem:[#allocation3 + $0x720] sm:$0xff] }
 0x222   :  { %813 = vmatprep.subr.bf16.mxu0 %v476_v26  ;;  %895 = vmatprep.subr.bf16.mxu1 %v478_v27  ;;  %v597_v26 = vld [vmem:[#allocation3 + $0x730] sm:$0xff]  ;;  %v604_v27 = vld [vmem:[#allocation3 + $0x768] sm:$0xff] }
 0x225   :  { %814 = vmatpush1.bf16.msra.mxu0 %v475_v28  ;;  %896 = vmatpush1.bf16.msra.mxu1 %v477_v29  ;;  %v606_v28 = vld [vmem:[#allocation3 + $0x778] sm:$0xff]  ;;  %v603_v29 = vld [vmem:[#allocation3 + $0x760] sm:$0xff] }
 0x226   :  { %815 = vmatprep.subr.bf16.mxu0 %v484_v30  ;;  %897 = vmatprep.subr.bf16.mxu1 %v486_v31  ;;  %v605_v30 = vld [vmem:[#allocation3 + $0x770] sm:$0xff]  ;;  %v612_v31 = vld [vmem:[#allocation3 + $0x7a8] sm:$0xff] }
 0x229   :  { %816 = vmatpush1.bf16.msra.mxu0 %v483_v33  ;;  %898 = vmatpush1.bf16.msra.mxu1 %v485_v34  ;;  %v614_v33 = vld [vmem:[#allocation3 + $0x7b8] sm:$0xff]  ;;  %v611_v34 = vld [vmem:[#allocation3 + $0x7a0] sm:$0xff] }
 0x22a   :  { %817 = vmatprep.subr.bf16.mxu0 %v492_v35  ;;  %899 = vmatprep.subr.bf16.mxu1 %v494_v36  ;;  %v613_v35 = vld [vmem:[#allocation3 + $0x7b0] sm:$0xff]  ;;  %v620_v36 = vld [vmem:[#allocation3 + $0x7e8] sm:$0xff] }
 0x22d   :  { %818 = vmatpush1.bf16.msra.mxu0 %v491_v10  ;;  %900 = vmatpush1.bf16.msra.mxu1 %v493_v38  ;;  %v622_v10 = vld [vmem:[#allocation3 + $0x7f8] sm:$0xff]  ;;  %v619_v38 = vld [vmem:[#allocation3 + $0x7e0] sm:$0xff] }
 0x22e   :  { %828 = vmatprep.subr.bf16.mxu0 %v500_v39  ;;  %910 = vmatprep.subr.bf16.mxu1 %v502_v15  ;;  %v621_v39 = vld [vmem:[#allocation3 + $0x7f0] sm:$0xff] }
 0x230   :  { %820 = vmatmul.mubr.bf16.vlgmr.msra.gmra.mrb[8].mxu0 %v7986_v32  ;;  %902 = vmatmul.mubr.bf16.vlgmr.msra.gmra.mrb[8].mxu1 %v7986_v32  ;;  %v526_v32 = vld [vmem:[#allocation3 + $0x4f8] sm:$0xff] }
 0x231   :  { %829 = vmatpush1.bf16.msra.mxu0 %v499_v17  ;;  %911 = vmatpush1.bf16.msra.mxu1 %v501_v11 }
 0x232   :  { %830 = vmatprep.subr.bf16.mxu0 %v508_v40  ;;  %912 = vmatprep.subr.bf16.mxu1 %v510_v13 }
 0x233   :  { %860 = vmatprep.mubr.bf16.mxu0 %v7991_v37  ;;  %942 = vmatprep.mubr.bf16.mxu1 %v7991_v37  ;;  %v531_v37 = vld [vmem:[#allocation3 + $0x520] sm:$0xff] }
 0x235   :  { %831 = vmatpush1.bf16.msra.mxu0 %v507_v41  ;;  %913 = vmatpush1.bf16.msra.mxu1 %v509_v42 }
 0x236   :  { %832 = vmatprep.subr.bf16.mxu0 %v516_v43  ;;  %914 = vmatprep.subr.bf16.mxu1 %v518_v44 }
 0x239   :  { %833 = vmatpush1.bf16.msra.mxu0 %v515_v45  ;;  %915 = vmatpush1.bf16.msra.mxu1 %v517_v46 }
 0x23a   :  { %834 = vmatprep.subr.bf16.mxu0 %v524_v47  ;;  %916 = vmatprep.subr.bf16.mxu1 %v526_v32 }
 0x23d   :  { %835 = vmatpush1.bf16.msra.mxu0 %v523_v48  ;;  %917 = vmatpush1.bf16.msra.mxu1 %v525_v49 }
 0x23e   :  { %836 = vmatprep.subr.bf16.mxu0 %v532_v22  ;;  %918 = vmatprep.subr.bf16.mxu1 %v534_v50 }
 0x241   :  { %837 = vmatpush1.bf16.msra.mxu0 %v531_v37  ;;  %919 = vmatpush1.bf16.msra.mxu1 %v533_v51 }
 0x242   :  { %838 = vmatprep.subr.bf16.mxu0 %v540_v52  ;;  %920 = vmatprep.subr.bf16.mxu1 %v542_v53 }
 0x245   :  { %839 = vmatpush1.bf16.msra.mxu0 %v539_v54  ;;  %921 = vmatpush1.bf16.msra.mxu1 %v541_v55 }
 0x246   :  { %840 = vmatprep.subr.bf16.mxu0 %v548_v56  ;;  %922 = vmatprep.subr.bf16.mxu1 %v550_v57 }
 0x249   :  { %841 = vmatpush1.bf16.msra.mxu0 %v547_v58  ;;  %923 = vmatpush1.bf16.msra.mxu1 %v549_v59 }
 0x24a   :  { %842 = vmatprep.subr.bf16.mxu0 %v556_v60  ;;  %924 = vmatprep.subr.bf16.mxu1 %v558_v61 }
 0x24d   :  { %843 = vmatpush1.bf16.msra.mxu0 %v555_v62  ;;  %925 = vmatpush1.bf16.msra.mxu1 %v557_v63 }
 0x24e   :  { %844 = vmatprep.subr.bf16.mxu0 %v564_v0  ;;  %926 = vmatprep.subr.bf16.mxu1 %v566_v1 }
 0x251   :  { %845 = vmatpush1.bf16.msra.mxu0 %v563_v2  ;;  %927 = vmatpush1.bf16.msra.mxu1 %v565_v3 }
 0x252   :  { %846 = vmatprep.subr.bf16.mxu0 %v572_v4  ;;  %928 = vmatprep.subr.bf16.mxu1 %v574_v5 }
 0x255   :  { %847 = vmatpush1.bf16.msra.mxu0 %v571_v6  ;;  %929 = vmatpush1.bf16.msra.mxu1 %v573_v7 }
 0x256   :  { %848 = vmatprep.subr.bf16.mxu0 %v580_v8  ;;  %930 = vmatprep.subr.bf16.mxu1 %v582_v9 }
 0x259   :  { %849 = vmatpush1.bf16.msra.mxu0 %v579_v14  ;;  %931 = vmatpush1.bf16.msra.mxu1 %v581_v16 }
 0x25a   :  { %850 = vmatprep.subr.bf16.mxu0 %v588_v18  ;;  %932 = vmatprep.subr.bf16.mxu1 %v590_v19 }
 0x25d   :  { %851 = vmatpush1.bf16.msra.mxu0 %v587_v20  ;;  %933 = vmatpush1.bf16.msra.mxu1 %v589_v21 }
 0x25e   :  { %852 = vmatprep.subr.bf16.mxu0 %v596_v23  ;;  %934 = vmatprep.subr.bf16.mxu1 %v598_v24 }
 0x261   :  { %853 = vmatpush1.bf16.msra.mxu0 %v595_v25  ;;  %935 = vmatpush1.bf16.msra.mxu1 %v597_v26 }
 0x262   :  { %854 = vmatprep.subr.bf16.mxu0 %v604_v27  ;;  %936 = vmatprep.subr.bf16.mxu1 %v606_v28 }
 0x265   :  { %855 = vmatpush1.bf16.msra.mxu0 %v603_v29  ;;  %937 = vmatpush1.bf16.msra.mxu1 %v605_v30 }
 0x266   :  { %856 = vmatprep.subr.bf16.mxu0 %v612_v31  ;;  %938 = vmatprep.subr.bf16.mxu1 %v614_v33 }
 0x269   :  { %857 = vmatpush1.bf16.msra.mxu0 %v611_v34  ;;  %939 = vmatpush1.bf16.msra.mxu1 %v613_v35 }
 0x26a   :  { %858 = vmatprep.subr.bf16.mxu0 %v620_v36  ;;  %940 = vmatprep.subr.bf16.mxu1 %v622_v10 }
 0x26d   :  { %859 = vmatpush1.bf16.msra.mxu0 %v619_v38  ;;  %941 = vmatpush1.bf16.msra.mxu1 %v621_v39 }
 0x270   :  { %861 = vmatmul.mubr.bf16.vlgmr.msra.gmra.mrb[8].mxu0 %v8000_v12  ;;  %943 = vmatmul.mubr.bf16.vlgmr.msra.gmra.mrb[8].mxu1 %v8000_v12 }
 0x2c3   :  { %v8012_v15 = vpop.f32.mrb[4].mxu0  ;;  %v8014_v17 = vpop.f32.mrb[4].mxu1 }
 0x2c4   :  { %v951_v11 = vmax.f32 %v8012_v15, 0.0  ;;  %v953_v40 = vmax.f32 %v8014_v17, 0.0  ;;  %v700_v13 = vpop.f32.mrb[5].mxu0  ;;  %v8018_v41 = vpop.f32.mrb[5].mxu1 }
 0x2c5   :  { %v952_v42 = vmax.f32 %v700_v13, 0.0  ;;  %v954_v43 = vmax.f32 %v8018_v41, 0.0  ;;  %v702_v44 = vpop.f32.mrb[6].mxu0  ;;  %v784_v45 = vpop.f32.mrb[6].mxu1 }
 0x2c6   :  { %v703_v46 = vpop.f32.mrb[7].mxu0  ;;  %v785_v47 = vpop.f32.mrb[7].mxu1 }
 0x343   :  { %v8021_v32 = vpop.f32.mrb[8].mxu0  ;;  %v8023_v12 = vpop.f32.mrb[8].mxu1 }
 0x344   :  { %v955_v48 = vmax.f32 %v8021_v32, 0.0  ;;  %v957_v49 = vmax.f32 %v8023_v12, 0.0  ;;  %v8027_v22 = vpop.f32.mrb[9].mxu0  ;;  %v8029_v50 = vpop.f32.mrb[9].mxu1 }
 0x345   :  { %v956_v37 = vmax.f32 %v8027_v22, 0.0  ;;  %v958_v51 = vmax.f32 %v8029_v50, 0.0  ;;  %v866_v52 = vpop.f32.mrb[10].mxu0  ;;  %v948_v53 = vpop.f32.mrb[10].mxu1 }
 0x346   :  { %v867_v54 = vpop.f32.mrb[11].mxu0  ;;  %v949_v55 = vpop.f32.mrb[11].mxu1 }
 0x347   :  { %7731 = dma.done.wait [#allocation9 + $0x2], 131072 }
 0x348   :  { %7732 = vsyncadd [#allocation9 + $0x2], 4294836224  ;;  %v8033_v56 = vpack.c.bf16 %v952_v42, %v952_v42  ;;  %v972_v57 = vld [vmem:[#allocation4 + $0x8] sm:$0xff]  ;;  %v974_v58 = vld [vmem:[#allocation4 + $0x18] sm:$0xff] }
 0x349   :  { %v971_v59 = vld [vmem:[#allocation4] sm:$0xff]  ;;  %2079 = vmatprep.subr.bf16.mxu0 %v972_v57  ;;  %2243 = vmatprep.subr.bf16.mxu1 %v974_v58  ;;  %v973_v60 = vld [vmem:[#allocation4 + $0x10] sm:$0xff]  ;;  %v988_v61 = vld [vmem:[#allocation4 + $0x88] sm:$0xff] }
 0x34a   :  { %2111 = vmatprep.mubr.bf16.mxu0 %v8033_v56  ;;  %2275 = vmatprep.mubr.bf16.mxu1 %v8033_v56  ;;  %v990_v62 = vld [vmem:[#allocation4 + $0x98] sm:$0xff]  ;;  %v987_v63 = vld [vmem:[#allocation4 + $0x80] sm:$0xff]  ;;  %v989_v0 = vld [vmem:[#allocation4 + $0x90] sm:$0xff] }
 0x34b   :  { %2080 = vmatpush1.bf16.msra.mxu0 %v971_v59  ;;  %2244 = vmatpush1.bf16.msra.mxu1 %v973_v60  ;;  %v1004_v1 = vld [vmem:[#allocation4 + $0x108] sm:$0xff]  ;;  %v1006_v2 = vld [vmem:[#allocation4 + $0x118] sm:$0xff]  ;;  %v1003_v3 = vld [vmem:[#allocation4 + $0x100] sm:$0xff] }
 0x34c   :  { %2081 = vmatprep.subr.bf16.mxu0 %v988_v61  ;;  %2245 = vmatprep.subr.bf16.mxu1 %v990_v62  ;;  %v1005_v4 = vld [vmem:[#allocation4 + $0x110] sm:$0xff]  ;;  %v1020_v5 = vld [vmem:[#allocation4 + $0x188] sm:$0xff]  ;;  %v1022_v6 = vld [vmem:[#allocation4 + $0x198] sm:$0xff] }
 0x34d   :  { %v1019_v7 = vld [vmem:[#allocation4 + $0x180] sm:$0xff]  ;;  %v1021_v8 = vld [vmem:[#allocation4 + $0x190] sm:$0xff]  ;;  %v1036_v9 = vld [vmem:[#allocation4 + $0x208] sm:$0xff] }
 0x34e   :  { %v1038_v14 = vld [vmem:[#allocation4 + $0x218] sm:$0xff]  ;;  %v1035_v16 = vld [vmem:[#allocation4 + $0x200] sm:$0xff]  ;;  %v1037_v18 = vld [vmem:[#allocation4 + $0x210] sm:$0xff] }
 0x34f   :  { %2082 = vmatpush1.bf16.msra.mxu0 %v987_v63  ;;  %2246 = vmatpush1.bf16.msra.mxu1 %v989_v0  ;;  %v1052_v19 = vld [vmem:[#allocation4 + $0x288] sm:$0xff]  ;;  %v1054_v20 = vld [vmem:[#allocation4 + $0x298] sm:$0xff]  ;;  %v1051_v21 = vld [vmem:[#allocation4 + $0x280] sm:$0xff] }
 0x350   :  { %2083 = vmatprep.subr.bf16.mxu0 %v1004_v1  ;;  %2247 = vmatprep.subr.bf16.mxu1 %v1006_v2  ;;  %v1053_v23 = vld [vmem:[#allocation4 + $0x290] sm:$0xff]  ;;  %v1068_v24 = vld [vmem:[#allocation4 + $0x308] sm:$0xff]  ;;  %v1070_v25 = vld [vmem:[#allocation4 + $0x318] sm:$0xff] }
 0x351   :  { %v1067_v26 = vld [vmem:[#allocation4 + $0x300] sm:$0xff]  ;;  %v1069_v27 = vld [vmem:[#allocation4 + $0x310] sm:$0xff]  ;;  %v1084_v28 = vld [vmem:[#allocation4 + $0x388] sm:$0xff] }
 0x352   :  { %v1086_v29 = vld [vmem:[#allocation4 + $0x398] sm:$0xff]  ;;  %v1083_v30 = vld [vmem:[#allocation4 + $0x380] sm:$0xff]  ;;  %v1085_v31 = vld [vmem:[#allocation4 + $0x390] sm:$0xff] }
 0x353   :  { %2084 = vmatpush1.bf16.msra.mxu0 %v1003_v3  ;;  %2248 = vmatpush1.bf16.msra.mxu1 %v1005_v4  ;;  %v1100_v33 = vld [vmem:[#allocation4 + $0x408] sm:$0xff]  ;;  %v1102_v34 = vld [vmem:[#allocation4 + $0x418] sm:$0xff]  ;;  %v1099_v35 = vld [vmem:[#allocation4 + $0x400] sm:$0xff] }
 0x354   :  { %2085 = vmatprep.subr.bf16.mxu0 %v1020_v5  ;;  %2249 = vmatprep.subr.bf16.mxu1 %v1022_v6  ;;  %v1101_v36 = vld [vmem:[#allocation4 + $0x410] sm:$0xff]  ;;  %v1116_v10 = vld [vmem:[#allocation4 + $0x488] sm:$0xff]  ;;  %v1118_v38 = vld [vmem:[#allocation4 + $0x498] sm:$0xff] }
 0x355   :  { %v1115_v39 = vld [vmem:[#allocation4 + $0x480] sm:$0xff]  ;;  %v1117_v13 = vld [vmem:[#allocation4 + $0x490] sm:$0xff]  ;;  %v1132_v42 = vld [vmem:[#allocation4 + $0x508] sm:$0xff] }
 0x356   :  { %v1134_v44 = vld [vmem:[#allocation4 + $0x518] sm:$0xff]  ;;  %v1131_v45 = vld [vmem:[#allocation4 + $0x500] sm:$0xff]  ;;  %v1133_v46 = vld [vmem:[#allocation4 + $0x510] sm:$0xff] }
 0x357   :  { %2086 = vmatpush1.bf16.msra.mxu0 %v1019_v7  ;;  %2250 = vmatpush1.bf16.msra.mxu1 %v1021_v8  ;;  %v1148_v47 = vld [vmem:[#allocation4 + $0x588] sm:$0xff]  ;;  %v1150_v52 = vld [vmem:[#allocation4 + $0x598] sm:$0xff]  ;;  %v1147_v53 = vld [vmem:[#allocation4 + $0x580] sm:$0xff] }
 0x358   :  { %2087 = vmatprep.subr.bf16.mxu0 %v1036_v9  ;;  %2251 = vmatprep.subr.bf16.mxu1 %v1038_v14  ;;  %v1149_v54 = vld [vmem:[#allocation4 + $0x590] sm:$0xff]  ;;  %v1164_v55 = vld [vmem:[#allocation4 + $0x608] sm:$0xff]  ;;  %v1166_v57 = vld [vmem:[#allocation4 + $0x618] sm:$0xff]  ;;  %v8040_v14 = vpack.c.bf16 %v951_v11, %v951_v11 }
 0x359   :  { %v1163_v58 = vld [vmem:[#allocation4 + $0x600] sm:$0xff]  ;;  %v1165_v59 = vld [vmem:[#allocation4 + $0x610] sm:$0xff]  ;;  %v1180_v60 = vld [vmem:[#allocation4 + $0x688] sm:$0xff] }
 0x35a   :  { %v1182_v61 = vld [vmem:[#allocation4 + $0x698] sm:$0xff]  ;;  %v1179_v62 = vld [vmem:[#allocation4 + $0x680] sm:$0xff]  ;;  %v1181_v63 = vld [vmem:[#allocation4 + $0x690] sm:$0xff] }
 0x35b   :  { %2088 = vmatpush1.bf16.msra.mxu0 %v1035_v16  ;;  %2252 = vmatpush1.bf16.msra.mxu1 %v1037_v18  ;;  %v1196_v0 = vld [vmem:[#allocation4 + $0x708] sm:$0xff]  ;;  %v1198_v1 = vld [vmem:[#allocation4 + $0x718] sm:$0xff]  ;;  %v1195_v2 = vld [vmem:[#allocation4 + $0x700] sm:$0xff] }
 0x35c   :  { %2089 = vmatprep.subr.bf16.mxu0 %v1052_v19  ;;  %2253 = vmatprep.subr.bf16.mxu1 %v1054_v20  ;;  %v1197_v3 = vld [vmem:[#allocation4 + $0x710] sm:$0xff]  ;;  %v1212_v4 = vld [vmem:[#allocation4 + $0x788] sm:$0xff]  ;;  %v1214_v5 = vld [vmem:[#allocation4 + $0x798] sm:$0xff] }
 0x35d   :  { %v1211_v6 = vld [vmem:[#allocation4 + $0x780] sm:$0xff]  ;;  %v1213_v7 = vld [vmem:[#allocation4 + $0x790] sm:$0xff]  ;;  %v1228_v8 = vld [vmem:[#allocation4 + $0x808] sm:$0xff] }
 0x35e   :  { %v1230_v9 = vld [vmem:[#allocation4 + $0x818] sm:$0xff]  ;;  %v1227_v16 = vld [vmem:[#allocation4 + $0x800] sm:$0xff]  ;;  %v1229_v18 = vld [vmem:[#allocation4 + $0x810] sm:$0xff] }
 0x35f   :  { %2090 = vmatpush1.bf16.msra.mxu0 %v1051_v21  ;;  %2254 = vmatpush1.bf16.msra.mxu1 %v1053_v23  ;;  %v1244_v19 = vld [vmem:[#allocation4 + $0x888] sm:$0xff]  ;;  %v1246_v20 = vld [vmem:[#allocation4 + $0x898] sm:$0xff]  ;;  %v8045_v21 = vpack.c.bf16 %v954_v43, %v954_v43  ;;  %v1243_v15 = vld [vmem:[#allocation4 + $0x880] sm:$0xff] }
 0x360   :  { %2091 = vmatprep.subr.bf16.mxu0 %v1068_v24  ;;  %2255 = vmatprep.subr.bf16.mxu1 %v1070_v25  ;;  %v1245_v11 = vld [vmem:[#allocation4 + $0x890] sm:$0xff]  ;;  %v1260_v23 = vld [vmem:[#allocation4 + $0x908] sm:$0xff]  ;;  %v1262_v24 = vld [vmem:[#allocation4 + $0x918] sm:$0xff] }
 0x361   :  { %v1259_v41 = vld [vmem:[#allocation4 + $0x900] sm:$0xff]  ;;  %v1261_v43 = vld [vmem:[#allocation4 + $0x910] sm:$0xff]  ;;  %v1276_v25 = vld [vmem:[#allocation4 + $0x988] sm:$0xff] }
 0x362   :  { %v1499_v17 = vld [vmem:[#allocation4 + $0x1080] sm:$0xff] }
 0x363   :  { %2092 = vmatpush1.bf16.msra.mxu0 %v1067_v26  ;;  %2256 = vmatpush1.bf16.msra.mxu1 %v1069_v27  ;;  %v1278_v26 = vld [vmem:[#allocation4 + $0x998] sm:$0xff]  ;;  %v1275_v27 = vld [vmem:[#allocation4 + $0x980] sm:$0xff] }
 0x364   :  { %2093 = vmatprep.subr.bf16.mxu0 %v1084_v28  ;;  %2257 = vmatprep.subr.bf16.mxu1 %v1086_v29  ;;  %v1277_v28 = vld [vmem:[#allocation4 + $0x990] sm:$0xff]  ;;  %v1292_v29 = vld [vmem:[#allocation4 + $0xa08] sm:$0xff]  ;;  %v1515_v22 = vld [vmem:[#allocation4 + $0x1100] sm:$0xff] }
 0x365   :  { %v1755_v32 = vld [vmem:[#allocation4 + $0x1880] sm:$0xff] }
 0x366   :  { %v1771_v50 = vld [vmem:[#allocation4 + $0x1900] sm:$0xff] }
 0x367   :  { %2094 = vmatpush1.bf16.msra.mxu0 %v1083_v30  ;;  %2258 = vmatpush1.bf16.msra.mxu1 %v1085_v31  ;;  %v1294_v30 = vld [vmem:[#allocation4 + $0xa18] sm:$0xff]  ;;  %v1291_v31 = vld [vmem:[#allocation4 + $0xa00] sm:$0xff] }
 0x368   :  { %2095 = vmatprep.subr.bf16.mxu0 %v1100_v33  ;;  %2259 = vmatprep.subr.bf16.mxu1 %v1102_v34  ;;  %v1293_v33 = vld [vmem:[#allocation4 + $0xa10] sm:$0xff]  ;;  %v1308_v34 = vld [vmem:[#allocation4 + $0xa88] sm:$0xff]  ;;  %v991_v12 = vld [vmem:[#allocation4 + $0xa0] sm:$0xff] }
 0x36b   :  { %2096 = vmatpush1.bf16.msra.mxu0 %v1099_v35  ;;  %2260 = vmatpush1.bf16.msra.mxu1 %v1101_v36  ;;  %v1310_v35 = vld [vmem:[#allocation4 + $0xa98] sm:$0xff]  ;;  %v1307_v36 = vld [vmem:[#allocation4 + $0xa80] sm:$0xff] }
 0x36c   :  { %2097 = vmatprep.subr.bf16.mxu0 %v1116_v10  ;;  %2261 = vmatprep.subr.bf16.mxu1 %v1118_v38  ;;  %v1309_v10 = vld [vmem:[#allocation4 + $0xa90] sm:$0xff]  ;;  %v1324_v38 = vld [vmem:[#allocation4 + $0xb08] sm:$0xff] }
 0x36f   :  { %2098 = vmatpush1.bf16.msra.mxu0 %v1115_v39  ;;  %2262 = vmatpush1.bf16.msra.mxu1 %v1117_v13  ;;  %v1326_v39 = vld [vmem:[#allocation4 + $0xb18] sm:$0xff]  ;;  %v1323_v13 = vld [vmem:[#allocation4 + $0xb00] sm:$0xff] }
 0x370   :  { %2099 = vmatprep.subr.bf16.mxu0 %v1132_v42  ;;  %2263 = vmatprep.subr.bf16.mxu1 %v1134_v44  ;;  %v1325_v42 = vld [vmem:[#allocation4 + $0xb10] sm:$0xff]  ;;  %v1340_v44 = vld [vmem:[#allocation4 + $0xb88] sm:$0xff] }
 0x373   :  { %2100 = vmatpush1.bf16.msra.mxu0 %v1131_v45  ;;  %2264 = vmatpush1.bf16.msra.mxu1 %v1133_v46  ;;  %v1342_v45 = vld [vmem:[#allocation4 + $0xb98] sm:$0xff]  ;;  %v1339_v46 = vld [vmem:[#allocation4 + $0xb80] sm:$0xff] }
 0x374   :  { %2101 = vmatprep.subr.bf16.mxu0 %v1148_v47  ;;  %2265 = vmatprep.subr.bf16.mxu1 %v1150_v52  ;;  %v1341_v47 = vld [vmem:[#allocation4 + $0xb90] sm:$0xff]  ;;  %v1356_v52 = vld [vmem:[#allocation4 + $0xc08] sm:$0xff] }
 0x377   :  { %2102 = vmatpush1.bf16.msra.mxu0 %v1147_v53  ;;  %2266 = vmatpush1.bf16.msra.mxu1 %v1149_v54  ;;  %v1358_v53 = vld [vmem:[#allocation4 + $0xc18] sm:$0xff]  ;;  %v1355_v54 = vld [vmem:[#allocation4 + $0xc00] sm:$0xff] }
 0x378   :  { %2103 = vmatprep.subr.bf16.mxu0 %v1164_v55  ;;  %2267 = vmatprep.subr.bf16.mxu1 %v1166_v57  ;;  %v1357_v55 = vld [vmem:[#allocation4 + $0xc10] sm:$0xff]  ;;  %v1372_v57 = vld [vmem:[#allocation4 + $0xc88] sm:$0xff] }
 0x37b   :  { %2104 = vmatpush1.bf16.msra.mxu0 %v1163_v58  ;;  %2268 = vmatpush1.bf16.msra.mxu1 %v1165_v59  ;;  %v1374_v58 = vld [vmem:[#allocation4 + $0xc98] sm:$0xff]  ;;  %v1371_v59 = vld [vmem:[#allocation4 + $0xc80] sm:$0xff] }
 0x37c   :  { %2105 = vmatprep.subr.bf16.mxu0 %v1180_v60  ;;  %2269 = vmatprep.subr.bf16.mxu1 %v1182_v61  ;;  %v1373_v60 = vld [vmem:[#allocation4 + $0xc90] sm:$0xff]  ;;  %v1388_v61 = vld [vmem:[#allocation4 + $0xd08] sm:$0xff] }
 0x37f   :  { %2106 = vmatpush1.bf16.msra.mxu0 %v1179_v62  ;;  %2270 = vmatpush1.bf16.msra.mxu1 %v1181_v63  ;;  %v1390_v62 = vld [vmem:[#allocation4 + $0xd18] sm:$0xff]  ;;  %v1387_v63 = vld [vmem:[#allocation4 + $0xd00] sm:$0xff] }
 0x380   :  { %2107 = vmatprep.subr.bf16.mxu0 %v1196_v0  ;;  %2271 = vmatprep.subr.bf16.mxu1 %v1198_v1  ;;  %v1389_v0 = vld [vmem:[#allocation4 + $0xd10] sm:$0xff]  ;;  %v1404_v1 = vld [vmem:[#allocation4 + $0xd88] sm:$0xff] }
 0x383   :  { %2108 = vmatpush1.bf16.msra.mxu0 %v1195_v2  ;;  %2272 = vmatpush1.bf16.msra.mxu1 %v1197_v3  ;;  %v1406_v2 = vld [vmem:[#allocation4 + $0xd98] sm:$0xff]  ;;  %v1403_v3 = vld [vmem:[#allocation4 + $0xd80] sm:$0xff] }
 0x384   :  { %2109 = vmatprep.subr.bf16.mxu0 %v1212_v4  ;;  %2273 = vmatprep.subr.bf16.mxu1 %v1214_v5  ;;  %v1405_v4 = vld [vmem:[#allocation4 + $0xd90] sm:$0xff]  ;;  %v1420_v5 = vld [vmem:[#allocation4 + $0xe08] sm:$0xff] }
 0x387   :  { %2110 = vmatpush1.bf16.msra.mxu0 %v1211_v6  ;;  %2274 = vmatpush1.bf16.msra.mxu1 %v1213_v7  ;;  %v1422_v6 = vld [vmem:[#allocation4 + $0xe18] sm:$0xff]  ;;  %v1419_v7 = vld [vmem:[#allocation4 + $0xe00] sm:$0xff] }
 0x388   :  { %2120 = vmatprep.subr.bf16.mxu0 %v1228_v8  ;;  %2284 = vmatprep.subr.bf16.mxu1 %v1230_v9  ;;  %v1421_v8 = vld [vmem:[#allocation4 + $0xe10] sm:$0xff]  ;;  %v1436_v9 = vld [vmem:[#allocation4 + $0xe88] sm:$0xff] }
 0x38a   :  { %2112 = vmatmul.mubr.bf16.vlgmr.msra.gmra.mrb[12].mxu0 %v8040_v14  ;;  %2276 = vmatmul.mubr.bf16.vlgmr.msra.gmra.mrb[12].mxu1 %v8040_v14 }
 0x38b   :  { %2121 = vmatpush1.bf16.msra.mxu0 %v1227_v16  ;;  %2285 = vmatpush1.bf16.msra.mxu1 %v1229_v18  ;;  %v1438_v16 = vld [vmem:[#allocation4 + $0xe98] sm:$0xff]  ;;  %v1435_v18 = vld [vmem:[#allocation4 + $0xe80] sm:$0xff] }
 0x38c   :  { %2122 = vmatprep.subr.bf16.mxu0 %v1244_v19  ;;  %2286 = vmatprep.subr.bf16.mxu1 %v1246_v20  ;;  %v1437_v19 = vld [vmem:[#allocation4 + $0xe90] sm:$0xff]  ;;  %v1452_v20 = vld [vmem:[#allocation4 + $0xf08] sm:$0xff] }
 0x38d   :  { %2152 = vmatprep.mubr.bf16.mxu0 %v8045_v21  ;;  %2316 = vmatprep.mubr.bf16.mxu1 %v8045_v21 }
 0x38f   :  { %2123 = vmatpush1.bf16.msra.mxu0 %v1243_v15  ;;  %2287 = vmatpush1.bf16.msra.mxu1 %v1245_v11  ;;  %v1454_v15 = vld [vmem:[#allocation4 + $0xf18] sm:$0xff]  ;;  %v1451_v11 = vld [vmem:[#allocation4 + $0xf00] sm:$0xff] }
 0x390   :  { %2124 = vmatprep.subr.bf16.mxu0 %v1260_v23  ;;  %2288 = vmatprep.subr.bf16.mxu1 %v1262_v24  ;;  %v1453_v23 = vld [vmem:[#allocation4 + $0xf10] sm:$0xff]  ;;  %v1468_v24 = vld [vmem:[#allocation4 + $0xf88] sm:$0xff] }
 0x393   :  { %2125 = vmatpush1.bf16.msra.mxu0 %v1259_v41  ;;  %2289 = vmatpush1.bf16.msra.mxu1 %v1261_v43  ;;  %v1470_v41 = vld [vmem:[#allocation4 + $0xf98] sm:$0xff]  ;;  %v1467_v43 = vld [vmem:[#allocation4 + $0xf80] sm:$0xff] }
 0x394   :  { %2126 = vmatprep.subr.bf16.mxu0 %v1276_v25  ;;  %2290 = vmatprep.subr.bf16.mxu1 %v1278_v26  ;;  %v1469_v25 = vld [vmem:[#allocation4 + $0xf90] sm:$0xff]  ;;  %v1484_v26 = vld [vmem:[#allocation4 + $0x1008] sm:$0xff] }
 0x397   :  { %2127 = vmatpush1.bf16.msra.mxu0 %v1275_v27  ;;  %2291 = vmatpush1.bf16.msra.mxu1 %v1277_v28  ;;  %v1486_v27 = vld [vmem:[#allocation4 + $0x1018] sm:$0xff]  ;;  %v8054_v28 = vpack.c.bf16 %v953_v40, %v953_v40  ;;  %v1501_v40 = vld [vmem:[#allocation4 + $0x1090] sm:$0xff] }
 0x398   :  { %2128 = vmatprep.subr.bf16.mxu0 %v1292_v29  ;;  %2292 = vmatprep.subr.bf16.mxu1 %v1294_v30  ;;  %v1483_v29 = vld [vmem:[#allocation4 + $0x1000] sm:$0xff]  ;;  %v1485_v30 = vld [vmem:[#allocation4 + $0x1010] sm:$0xff] }
 0x39b   :  { %2129 = vmatpush1.bf16.msra.mxu0 %v1291_v31  ;;  %2293 = vmatpush1.bf16.msra.mxu1 %v1293_v33  ;;  %v1500_v31 = vld [vmem:[#allocation4 + $0x1088] sm:$0xff]  ;;  %v1502_v33 = vld [vmem:[#allocation4 + $0x1098] sm:$0xff] }
 0x39c   :  { %2130 = vmatprep.subr.bf16.mxu0 %v1308_v34  ;;  %2294 = vmatprep.subr.bf16.mxu1 %v1310_v35  ;;  %v8059_v34 = vpack.c.bf16 %v956_v37, %v956_v37  ;;  %v1516_v35 = vld [vmem:[#allocation4 + $0x1108] sm:$0xff]  ;;  %v1517_v37 = vld [vmem:[#allocation4 + $0x1110] sm:$0xff] }
 0x39f   :  { %2131 = vmatpush1.bf16.msra.mxu0 %v1307_v36  ;;  %2295 = vmatpush1.bf16.msra.mxu1 %v1309_v10  ;;  %v1518_v36 = vld [vmem:[#allocation4 + $0x1118] sm:$0xff]  ;;  %v1532_v10 = vld [vmem:[#allocation4 + $0x1188] sm:$0xff] }
 0x3a0   :  { %2132 = vmatprep.subr.bf16.mxu0 %v1324_v38  ;;  %2296 = vmatprep.subr.bf16.mxu1 %v1326_v39  ;;  %v1534_v38 = vld [vmem:[#allocation4 + $0x1198] sm:$0xff]  ;;  %v1531_v39 = vld [vmem:[#allocation4 + $0x1180] sm:$0xff] }
 0x3a3   :  { %2133 = vmatpush1.bf16.msra.mxu0 %v1323_v13  ;;  %2297 = vmatpush1.bf16.msra.mxu1 %v1325_v42  ;;  %v1533_v13 = vld [vmem:[#allocation4 + $0x1190] sm:$0xff]  ;;  %v1548_v42 = vld [vmem:[#allocation4 + $0x1208] sm:$0xff] }
 0x3a4   :  { %2134 = vmatprep.subr.bf16.mxu0 %v1340_v44  ;;  %2298 = vmatprep.subr.bf16.mxu1 %v1342_v45  ;;  %v1550_v44 = vld [vmem:[#allocation4 + $0x1218] sm:$0xff]  ;;  %v1547_v45 = vld [vmem:[#allocation4 + $0x1200] sm:$0xff] }
 0x3a7   :  { %2135 = vmatpush1.bf16.msra.mxu0 %v1339_v46  ;;  %2299 = vmatpush1.bf16.msra.mxu1 %v1341_v47  ;;  %v1549_v46 = vld [vmem:[#allocation4 + $0x1210] sm:$0xff]  ;;  %v1564_v47 = vld [vmem:[#allocation4 + $0x1288] sm:$0xff] }
 0x3a8   :  { %2136 = vmatprep.subr.bf16.mxu0 %v1356_v52  ;;  %2300 = vmatprep.subr.bf16.mxu1 %v1358_v53  ;;  %v1566_v52 = vld [vmem:[#allocation4 + $0x1298] sm:$0xff]  ;;  %v1563_v53 = vld [vmem:[#allocation4 + $0x1280] sm:$0xff] }
 0x3ab   :  { %2137 = vmatpush1.bf16.msra.mxu0 %v1355_v54  ;;  %2301 = vmatpush1.bf16.msra.mxu1 %v1357_v55  ;;  %v1565_v54 = vld [vmem:[#allocation4 + $0x1290] sm:$0xff]  ;;  %v1580_v55 = vld [vmem:[#allocation4 + $0x1308] sm:$0xff] }
 0x3ac   :  { %2138 = vmatprep.subr.bf16.mxu0 %v1372_v57  ;;  %2302 = vmatprep.subr.bf16.mxu1 %v1374_v58  ;;  %v1582_v57 = vld [vmem:[#allocation4 + $0x1318] sm:$0xff]  ;;  %v1579_v58 = vld [vmem:[#allocation4 + $0x1300] sm:$0xff] }
 0x3af   :  { %2139 = vmatpush1.bf16.msra.mxu0 %v1371_v59  ;;  %2303 = vmatpush1.bf16.msra.mxu1 %v1373_v60  ;;  %v1581_v59 = vld [vmem:[#allocation4 + $0x1310] sm:$0xff]  ;;  %v1596_v60 = vld [vmem:[#allocation4 + $0x1388] sm:$0xff] }
 0x3b0   :  { %2140 = vmatprep.subr.bf16.mxu0 %v1388_v61  ;;  %2304 = vmatprep.subr.bf16.mxu1 %v1390_v62  ;;  %v1598_v61 = vld [vmem:[#allocation4 + $0x1398] sm:$0xff]  ;;  %v1595_v62 = vld [vmem:[#allocation4 + $0x1380] sm:$0xff] }
 0x3b3   :  { %2141 = vmatpush1.bf16.msra.mxu0 %v1387_v63  ;;  %2305 = vmatpush1.bf16.msra.mxu1 %v1389_v0  ;;  %v1597_v63 = vld [vmem:[#allocation4 + $0x1390] sm:$0xff]  ;;  %v1612_v0 = vld [vmem:[#allocation4 + $0x1408] sm:$0xff] }
 0x3b4   :  { %2142 = vmatprep.subr.bf16.mxu0 %v1404_v1  ;;  %2306 = vmatprep.subr.bf16.mxu1 %v1406_v2  ;;  %v1614_v1 = vld [vmem:[#allocation4 + $0x1418] sm:$0xff]  ;;  %v1611_v2 = vld [vmem:[#allocation4 + $0x1400] sm:$0xff] }
 0x3b7   :  { %2143 = vmatpush1.bf16.msra.mxu0 %v1403_v3  ;;  %2307 = vmatpush1.bf16.msra.mxu1 %v1405_v4  ;;  %v1613_v3 = vld [vmem:[#allocation4 + $0x1410] sm:$0xff]  ;;  %v1628_v4 = vld [vmem:[#allocation4 + $0x1488] sm:$0xff] }
 0x3b8   :  { %2144 = vmatprep.subr.bf16.mxu0 %v1420_v5  ;;  %2308 = vmatprep.subr.bf16.mxu1 %v1422_v6  ;;  %v1630_v5 = vld [vmem:[#allocation4 + $0x1498] sm:$0xff]  ;;  %v1627_v6 = vld [vmem:[#allocation4 + $0x1480] sm:$0xff] }
 0x3bb   :  { %2145 = vmatpush1.bf16.msra.mxu0 %v1419_v7  ;;  %2309 = vmatpush1.bf16.msra.mxu1 %v1421_v8  ;;  %v1629_v7 = vld [vmem:[#allocation4 + $0x1490] sm:$0xff]  ;;  %v1644_v8 = vld [vmem:[#allocation4 + $0x1508] sm:$0xff] }
 0x3bc   :  { %2146 = vmatprep.subr.bf16.mxu0 %v1436_v9  ;;  %2310 = vmatprep.subr.bf16.mxu1 %v1438_v16  ;;  %v1646_v9 = vld [vmem:[#allocation4 + $0x1518] sm:$0xff]  ;;  %v1643_v16 = vld [vmem:[#allocation4 + $0x1500] sm:$0xff] }
 0x3bf   :  { %2147 = vmatpush1.bf16.msra.mxu0 %v1435_v18  ;;  %2311 = vmatpush1.bf16.msra.mxu1 %v1437_v19  ;;  %v1645_v18 = vld [vmem:[#allocation4 + $0x1510] sm:$0xff]  ;;  %v1660_v19 = vld [vmem:[#allocation4 + $0x1588] sm:$0xff] }
 0x3c0   :  { %2148 = vmatprep.subr.bf16.mxu0 %v1452_v20  ;;  %2312 = vmatprep.subr.bf16.mxu1 %v1454_v15  ;;  %v1662_v20 = vld [vmem:[#allocation4 + $0x1598] sm:$0xff]  ;;  %v1659_v15 = vld [vmem:[#allocation4 + $0x1580] sm:$0xff] }
 0x3c3   :  { %2149 = vmatpush1.bf16.msra.mxu0 %v1451_v11  ;;  %2313 = vmatpush1.bf16.msra.mxu1 %v1453_v23  ;;  %v1661_v11 = vld [vmem:[#allocation4 + $0x1590] sm:$0xff]  ;;  %v1676_v23 = vld [vmem:[#allocation4 + $0x1608] sm:$0xff] }
 0x3c4   :  { %2150 = vmatprep.subr.bf16.mxu0 %v1468_v24  ;;  %2314 = vmatprep.subr.bf16.mxu1 %v1470_v41  ;;  %v1678_v24 = vld [vmem:[#allocation4 + $0x1618] sm:$0xff]  ;;  %v1675_v41 = vld [vmem:[#allocation4 + $0x1600] sm:$0xff] }
 0x3c7   :  { %2151 = vmatpush1.bf16.msra.mxu0 %v1467_v43  ;;  %2315 = vmatpush1.bf16.msra.mxu1 %v1469_v25  ;;  %v1677_v43 = vld [vmem:[#allocation4 + $0x1610] sm:$0xff]  ;;  %v1692_v25 = vld [vmem:[#allocation4 + $0x1688] sm:$0xff] }
 0x3c8   :  { %2161 = vmatprep.subr.bf16.mxu0 %v1484_v26  ;;  %2325 = vmatprep.subr.bf16.mxu1 %v1486_v27  ;;  %v1694_v26 = vld [vmem:[#allocation4 + $0x1698] sm:$0xff]  ;;  %v1691_v27 = vld [vmem:[#allocation4 + $0x1680] sm:$0xff] }
 0x3ca   :  { %2153 = vmatmul.mubr.bf16.vlgmr.msra.gmra.mrb[12].mxu0 %v8054_v28  ;;  %2317 = vmatmul.mubr.bf16.vlgmr.msra.gmra.mrb[12].mxu1 %v8054_v28 }
 0x3cb   :  { %2162 = vmatpush1.bf16.msra.mxu0 %v1483_v29  ;;  %2326 = vmatpush1.bf16.msra.mxu1 %v1485_v30  ;;  %v1693_v29 = vld [vmem:[#allocation4 + $0x1690] sm:$0xff]  ;;  %v1708_v30 = vld [vmem:[#allocation4 + $0x1708] sm:$0xff] }
 0x3cc   :  { %2163 = vmatprep.subr.bf16.mxu0 %v1500_v31  ;;  %2327 = vmatprep.subr.bf16.mxu1 %v1502_v33  ;;  %v1710_v31 = vld [vmem:[#allocation4 + $0x1718] sm:$0xff]  ;;  %v1707_v33 = vld [vmem:[#allocation4 + $0x1700] sm:$0xff] }
 0x3cd   :  { %2193 = vmatprep.mubr.bf16.mxu0 %v8059_v34  ;;  %2357 = vmatprep.mubr.bf16.mxu1 %v8059_v34 }
 0x3cf   :  { %2164 = vmatpush1.bf16.msra.mxu0 %v1499_v17  ;;  %2328 = vmatpush1.bf16.msra.mxu1 %v1501_v40  ;;  %v1709_v17 = vld [vmem:[#allocation4 + $0x1710] sm:$0xff]  ;;  %v1724_v40 = vld [vmem:[#allocation4 + $0x1788] sm:$0xff] }
 0x3d0   :  { %2165 = vmatprep.subr.bf16.mxu0 %v1516_v35  ;;  %2329 = vmatprep.subr.bf16.mxu1 %v1518_v36  ;;  %v1726_v35 = vld [vmem:[#allocation4 + $0x1798] sm:$0xff]  ;;  %v1723_v36 = vld [vmem:[#allocation4 + $0x1780] sm:$0xff] }
 0x3d3   :  { %2166 = vmatpush1.bf16.msra.mxu0 %v1515_v22  ;;  %2330 = vmatpush1.bf16.msra.mxu1 %v1517_v37  ;;  %v1725_v22 = vld [vmem:[#allocation4 + $0x1790] sm:$0xff]  ;;  %v1740_v37 = vld [vmem:[#allocation4 + $0x1808] sm:$0xff] }
 0x3d4   :  { %2167 = vmatprep.subr.bf16.mxu0 %v1532_v10  ;;  %2331 = vmatprep.subr.bf16.mxu1 %v1534_v38  ;;  %v1742_v10 = vld [vmem:[#allocation4 + $0x1818] sm:$0xff]  ;;  %v8068_v38 = vpack.c.bf16 %v955_v48, %v955_v48  ;;  %v1757_v48 = vld [vmem:[#allocation4 + $0x1890] sm:$0xff] }
 0x3d7   :  { %2168 = vmatpush1.bf16.msra.mxu0 %v1531_v39  ;;  %2332 = vmatpush1.bf16.msra.mxu1 %v1533_v13  ;;  %v1739_v39 = vld [vmem:[#allocation4 + $0x1800] sm:$0xff]  ;;  %v1741_v13 = vld [vmem:[#allocation4 + $0x1810] sm:$0xff] }
 0x3d8   :  { %2169 = vmatprep.subr.bf16.mxu0 %v1548_v42  ;;  %2333 = vmatprep.subr.bf16.mxu1 %v1550_v44  ;;  %v1756_v42 = vld [vmem:[#allocation4 + $0x1888] sm:$0xff]  ;;  %v1758_v44 = vld [vmem:[#allocation4 + $0x1898] sm:$0xff] }
 0x3db   :  { %2170 = vmatpush1.bf16.msra.mxu0 %v1547_v45  ;;  %2334 = vmatpush1.bf16.msra.mxu1 %v1549_v46  ;;  %v8073_v45 = vpack.c.bf16 %v958_v51, %v958_v51  ;;  %v1772_v46 = vld [vmem:[#allocation4 + $0x1908] sm:$0xff]  ;;  %v1773_v51 = vld [vmem:[#allocation4 + $0x1910] sm:$0xff] }
 0x3dc   :  { %2171 = vmatprep.subr.bf16.mxu0 %v1564_v47  ;;  %2335 = vmatprep.subr.bf16.mxu1 %v1566_v52  ;;  %v1774_v47 = vld [vmem:[#allocation4 + $0x1918] sm:$0xff]  ;;  %v1788_v52 = vld [vmem:[#allocation4 + $0x1988] sm:$0xff] }
 0x3df   :  { %2172 = vmatpush1.bf16.msra.mxu0 %v1563_v53  ;;  %2336 = vmatpush1.bf16.msra.mxu1 %v1565_v54  ;;  %v1790_v53 = vld [vmem:[#allocation4 + $0x1998] sm:$0xff]  ;;  %v1787_v54 = vld [vmem:[#allocation4 + $0x1980] sm:$0xff] }
 0x3e0   :  { %2173 = vmatprep.subr.bf16.mxu0 %v1580_v55  ;;  %2337 = vmatprep.subr.bf16.mxu1 %v1582_v57  ;;  %v1789_v55 = vld [vmem:[#allocation4 + $0x1990] sm:$0xff]  ;;  %v1804_v57 = vld [vmem:[#allocation4 + $0x1a08] sm:$0xff] }
 0x3e3   :  { %2174 = vmatpush1.bf16.msra.mxu0 %v1579_v58  ;;  %2338 = vmatpush1.bf16.msra.mxu1 %v1581_v59  ;;  %v1806_v58 = vld [vmem:[#allocation4 + $0x1a18] sm:$0xff]  ;;  %v1803_v59 = vld [vmem:[#allocation4 + $0x1a00] sm:$0xff] }
 0x3e4   :  { %2175 = vmatprep.subr.bf16.mxu0 %v1596_v60  ;;  %2339 = vmatprep.subr.bf16.mxu1 %v1598_v61  ;;  %v1805_v60 = vld [vmem:[#allocation4 + $0x1a10] sm:$0xff]  ;;  %v1820_v61 = vld [vmem:[#allocation4 + $0x1a88] sm:$0xff] }
 0x3e7   :  { %2176 = vmatpush1.bf16.msra.mxu0 %v1595_v62  ;;  %2340 = vmatpush1.bf16.msra.mxu1 %v1597_v63  ;;  %v1822_v62 = vld [vmem:[#allocation4 + $0x1a98] sm:$0xff]  ;;  %v1819_v63 = vld [vmem:[#allocation4 + $0x1a80] sm:$0xff] }
 0x3e8   :  { %2177 = vmatprep.subr.bf16.mxu0 %v1612_v0  ;;  %2341 = vmatprep.subr.bf16.mxu1 %v1614_v1  ;;  %v1821_v0 = vld [vmem:[#allocation4 + $0x1a90] sm:$0xff]  ;;  %v1836_v1 = vld [vmem:[#allocation4 + $0x1b08] sm:$0xff] }
 0x3eb   :  { %2178 = vmatpush1.bf16.msra.mxu0 %v1611_v2  ;;  %2342 = vmatpush1.bf16.msra.mxu1 %v1613_v3  ;;  %v1838_v2 = vld [vmem:[#allocation4 + $0x1b18] sm:$0xff]  ;;  %v1835_v3 = vld [vmem:[#allocation4 + $0x1b00] sm:$0xff] }
 0x3ec   :  { %2179 = vmatprep.subr.bf16.mxu0 %v1628_v4  ;;  %2343 = vmatprep.subr.bf16.mxu1 %v1630_v5  ;;  %v1837_v4 = vld [vmem:[#allocation4 + $0x1b10] sm:$0xff]  ;;  %v1852_v5 = vld [vmem:[#allocation4 + $0x1b88] sm:$0xff] }
 0x3ef   :  { %2180 = vmatpush1.bf16.msra.mxu0 %v1627_v6  ;;  %2344 = vmatpush1.bf16.msra.mxu1 %v1629_v7  ;;  %v1854_v6 = vld [vmem:[#allocation4 + $0x1b98] sm:$0xff]  ;;  %v1851_v7 = vld [vmem:[#allocation4 + $0x1b80] sm:$0xff] }
 0x3f0   :  { %2181 = vmatprep.subr.bf16.mxu0 %v1644_v8  ;;  %2345 = vmatprep.subr.bf16.mxu1 %v1646_v9  ;;  %v1853_v8 = vld [vmem:[#allocation4 + $0x1b90] sm:$0xff]  ;;  %v1868_v9 = vld [vmem:[#allocation4 + $0x1c08] sm:$0xff] }
 0x3f3   :  { %2182 = vmatpush1.bf16.msra.mxu0 %v1643_v16  ;;  %2346 = vmatpush1.bf16.msra.mxu1 %v1645_v18  ;;  %v1870_v16 = vld [vmem:[#allocation4 + $0x1c18] sm:$0xff]  ;;  %v1867_v18 = vld [vmem:[#allocation4 + $0x1c00] sm:$0xff] }
 0x3f4   :  { %2183 = vmatprep.subr.bf16.mxu0 %v1660_v19  ;;  %2347 = vmatprep.subr.bf16.mxu1 %v1662_v20  ;;  %v1869_v19 = vld [vmem:[#allocation4 + $0x1c10] sm:$0xff]  ;;  %v1884_v20 = vld [vmem:[#allocation4 + $0x1c88] sm:$0xff] }
 0x3f7   :  { %2184 = vmatpush1.bf16.msra.mxu0 %v1659_v15  ;;  %2348 = vmatpush1.bf16.msra.mxu1 %v1661_v11  ;;  %v1886_v15 = vld [vmem:[#allocation4 + $0x1c98] sm:$0xff]  ;;  %v1883_v11 = vld [vmem:[#allocation4 + $0x1c80] sm:$0xff] }
 0x3f8   :  { %2185 = vmatprep.subr.bf16.mxu0 %v1676_v23  ;;  %2349 = vmatprep.subr.bf16.mxu1 %v1678_v24  ;;  %v1885_v23 = vld [vmem:[#allocation4 + $0x1c90] sm:$0xff]  ;;  %v1900_v24 = vld [vmem:[#allocation4 + $0x1d08] sm:$0xff] }
 0x3fb   :  { %2186 = vmatpush1.bf16.msra.mxu0 %v1675_v41  ;;  %2350 = vmatpush1.bf16.msra.mxu1 %v1677_v43  ;;  %v1902_v41 = vld [vmem:[#allocation4 + $0x1d18] sm:$0xff]  ;;  %v1899_v43 = vld [vmem:[#allocation4 + $0x1d00] sm:$0xff] }
 0x3fc   :  { %2187 = vmatprep.subr.bf16.mxu0 %v1692_v25  ;;  %2351 = vmatprep.subr.bf16.mxu1 %v1694_v26  ;;  %v1901_v25 = vld [vmem:[#allocation4 + $0x1d10] sm:$0xff]  ;;  %v1916_v26 = vld [vmem:[#allocation4 + $0x1d88] sm:$0xff] }
 0x3ff   :  { %2188 = vmatpush1.bf16.msra.mxu0 %v1691_v27  ;;  %2352 = vmatpush1.bf16.msra.mxu1 %v1693_v29  ;;  %v1918_v27 = vld [vmem:[#allocation4 + $0x1d98] sm:$0xff]  ;;  %v1915_v29 = vld [vmem:[#allocation4 + $0x1d80] sm:$0xff] }
 0x400   :  { %2189 = vmatprep.subr.bf16.mxu0 %v1708_v30  ;;  %2353 = vmatprep.subr.bf16.mxu1 %v1710_v31  ;;  %v1917_v30 = vld [vmem:[#allocation4 + $0x1d90] sm:$0xff]  ;;  %v1932_v31 = vld [vmem:[#allocation4 + $0x1e08] sm:$0xff] }
 0x403   :  { %2190 = vmatpush1.bf16.msra.mxu0 %v1707_v33  ;;  %2354 = vmatpush1.bf16.msra.mxu1 %v1709_v17  ;;  %v1934_v33 = vld [vmem:[#allocation4 + $0x1e18] sm:$0xff]  ;;  %v1931_v17 = vld [vmem:[#allocation4 + $0x1e00] sm:$0xff] }
 0x404   :  { %2191 = vmatprep.subr.bf16.mxu0 %v1724_v40  ;;  %2355 = vmatprep.subr.bf16.mxu1 %v1726_v35  ;;  %v1933_v40 = vld [vmem:[#allocation4 + $0x1e10] sm:$0xff]  ;;  %v1948_v35 = vld [vmem:[#allocation4 + $0x1e88] sm:$0xff] }
 0x407   :  { %2192 = vmatpush1.bf16.msra.mxu0 %v1723_v36  ;;  %2356 = vmatpush1.bf16.msra.mxu1 %v1725_v22  ;;  %v1950_v36 = vld [vmem:[#allocation4 + $0x1e98] sm:$0xff]  ;;  %v1947_v22 = vld [vmem:[#allocation4 + $0x1e80] sm:$0xff] }
 0x408   :  { %2202 = vmatprep.subr.bf16.mxu0 %v1740_v37  ;;  %2366 = vmatprep.subr.bf16.mxu1 %v1742_v10  ;;  %v1949_v37 = vld [vmem:[#allocation4 + $0x1e90] sm:$0xff]  ;;  %v1964_v10 = vld [vmem:[#allocation4 + $0x1f08] sm:$0xff] }
 0x40a   :  { %2194 = vmatmul.mubr.bf16.vlgmr.msra.gmra.mrb[12].mxu0 %v8068_v38  ;;  %2358 = vmatmul.mubr.bf16.vlgmr.msra.gmra.mrb[12].mxu1 %v8068_v38 }
 0x40b   :  { %2203 = vmatpush1.bf16.msra.mxu0 %v1739_v39  ;;  %2367 = vmatpush1.bf16.msra.mxu1 %v1741_v13  ;;  %v1966_v39 = vld [vmem:[#allocation4 + $0x1f18] sm:$0xff]  ;;  %v1963_v13 = vld [vmem:[#allocation4 + $0x1f00] sm:$0xff] }
 0x40c   :  { %2204 = vmatprep.subr.bf16.mxu0 %v1756_v42  ;;  %2368 = vmatprep.subr.bf16.mxu1 %v1758_v44  ;;  %v1965_v42 = vld [vmem:[#allocation4 + $0x1f10] sm:$0xff]  ;;  %v1980_v44 = vld [vmem:[#allocation4 + $0x1f88] sm:$0xff] }
 0x40d   :  { %2234 = vmatprep.mubr.bf16.mxu0 %v8073_v45  ;;  %2398 = vmatprep.mubr.bf16.mxu1 %v8073_v45 }
 0x40f   :  { %2205 = vmatpush1.bf16.msra.mxu0 %v1755_v32  ;;  %2369 = vmatpush1.bf16.msra.mxu1 %v1757_v48  ;;  %v1982_v32 = vld [vmem:[#allocation4 + $0x1f98] sm:$0xff]  ;;  %v1979_v48 = vld [vmem:[#allocation4 + $0x1f80] sm:$0xff] }
 0x410   :  { %2206 = vmatprep.subr.bf16.mxu0 %v1772_v46  ;;  %2370 = vmatprep.subr.bf16.mxu1 %v1774_v47  ;;  %v1981_v46 = vld [vmem:[#allocation4 + $0x1f90] sm:$0xff]  ;;  %v976_v47 = vld [vmem:[#allocation4 + $0x28] sm:$0xff] }
 0x413   :  { %2207 = vmatpush1.bf16.msra.mxu0 %v1771_v50  ;;  %2371 = vmatpush1.bf16.msra.mxu1 %v1773_v51  ;;  %v978_v50 = vld [vmem:[#allocation4 + $0x38] sm:$0xff]  ;;  %v8082_v51 = vpack.c.bf16 %v957_v49, %v957_v49  ;;  %v1008_v49 = vld [vmem:[#allocation4 + $0x128] sm:$0xff] }
 0x414   :  { %2208 = vmatprep.subr.bf16.mxu0 %v1788_v52  ;;  %2372 = vmatprep.subr.bf16.mxu1 %v1790_v53  ;;  %v975_v52 = vld [vmem:[#allocation4 + $0x20] sm:$0xff]  ;;  %v977_v53 = vld [vmem:[#allocation4 + $0x30] sm:$0xff] }
 0x417   :  { %2209 = vmatpush1.bf16.msra.mxu0 %v1787_v54  ;;  %2373 = vmatpush1.bf16.msra.mxu1 %v1789_v55  ;;  %v992_v54 = vld [vmem:[#allocation4 + $0xa8] sm:$0xff]  ;;  %v994_v55 = vld [vmem:[#allocation4 + $0xb8] sm:$0xff] }
 0x418   :  { %2210 = vmatprep.subr.bf16.mxu0 %v1804_v57  ;;  %2374 = vmatprep.subr.bf16.mxu1 %v1806_v58  ;;  %v993_v57 = vld [vmem:[#allocation4 + $0xb0] sm:$0xff]  ;;  %v1010_v58 = vld [vmem:[#allocation4 + $0x138] sm:$0xff] }
 0x41b   :  { %2211 = vmatpush1.bf16.msra.mxu0 %v1803_v59  ;;  %2375 = vmatpush1.bf16.msra.mxu1 %v1805_v60  ;;  %v1007_v59 = vld [vmem:[#allocation4 + $0x120] sm:$0xff]  ;;  %v1009_v60 = vld [vmem:[#allocation4 + $0x130] sm:$0xff] }
 0x41c   :  { %2212 = vmatprep.subr.bf16.mxu0 %v1820_v61  ;;  %2376 = vmatprep.subr.bf16.mxu1 %v1822_v62  ;;  %v1024_v61 = vld [vmem:[#allocation4 + $0x1a8] sm:$0xff]  ;;  %v1026_v62 = vld [vmem:[#allocation4 + $0x1b8] sm:$0xff] }
 0x41f   :  { %2213 = vmatpush1.bf16.msra.mxu0 %v1819_v63  ;;  %2377 = vmatpush1.bf16.msra.mxu1 %v1821_v0  ;;  %v1023_v63 = vld [vmem:[#allocation4 + $0x1a0] sm:$0xff]  ;;  %v1025_v0 = vld [vmem:[#allocation4 + $0x1b0] sm:$0xff] }
 0x420   :  { %2214 = vmatprep.subr.bf16.mxu0 %v1836_v1  ;;  %2378 = vmatprep.subr.bf16.mxu1 %v1838_v2  ;;  %v1040_v1 = vld [vmem:[#allocation4 + $0x228] sm:$0xff]  ;;  %v1042_v2 = vld [vmem:[#allocation4 + $0x238] sm:$0xff] }
 0x423   :  { %2215 = vmatpush1.bf16.msra.mxu0 %v1835_v3  ;;  %2379 = vmatpush1.bf16.msra.mxu1 %v1837_v4  ;;  %v1039_v3 = vld [vmem:[#allocation4 + $0x220] sm:$0xff]  ;;  %v1041_v4 = vld [vmem:[#allocation4 + $0x230] sm:$0xff] }
 0x424   :  { %2216 = vmatprep.subr.bf16.mxu0 %v1852_v5  ;;  %2380 = vmatprep.subr.bf16.mxu1 %v1854_v6  ;;  %v1056_v5 = vld [vmem:[#allocation4 + $0x2a8] sm:$0xff]  ;;  %v1058_v6 = vld [vmem:[#allocation4 + $0x2b8] sm:$0xff] }
 0x427   :  { %2217 = vmatpush1.bf16.msra.mxu0 %v1851_v7  ;;  %2381 = vmatpush1.bf16.msra.mxu1 %v1853_v8  ;;  %v1055_v7 = vld [vmem:[#allocation4 + $0x2a0] sm:$0xff]  ;;  %v1057_v8 = vld [vmem:[#allocation4 + $0x2b0] sm:$0xff] }
 0x428   :  { %2218 = vmatprep.subr.bf16.mxu0 %v1868_v9  ;;  %2382 = vmatprep.subr.bf16.mxu1 %v1870_v16  ;;  %v1072_v9 = vld [vmem:[#allocation4 + $0x328] sm:$0xff]  ;;  %v1074_v16 = vld [vmem:[#allocation4 + $0x338] sm:$0xff] }
 0x42b   :  { %2219 = vmatpush1.bf16.msra.mxu0 %v1867_v18  ;;  %2383 = vmatpush1.bf16.msra.mxu1 %v1869_v19  ;;  %v1071_v18 = vld [vmem:[#allocation4 + $0x320] sm:$0xff]  ;;  %v1073_v19 = vld [vmem:[#allocation4 + $0x330] sm:$0xff] }
 0x42c   :  { %2220 = vmatprep.subr.bf16.mxu0 %v1884_v20  ;;  %2384 = vmatprep.subr.bf16.mxu1 %v1886_v15  ;;  %v1088_v20 = vld [vmem:[#allocation4 + $0x3a8] sm:$0xff]  ;;  %v1090_v15 = vld [vmem:[#allocation4 + $0x3b8] sm:$0xff] }
 0x42f   :  { %2221 = vmatpush1.bf16.msra.mxu0 %v1883_v11  ;;  %2385 = vmatpush1.bf16.msra.mxu1 %v1885_v23  ;;  %v1087_v11 = vld [vmem:[#allocation4 + $0x3a0] sm:$0xff]  ;;  %v1089_v23 = vld [vmem:[#allocation4 + $0x3b0] sm:$0xff] }
 0x430   :  { %2222 = vmatprep.subr.bf16.mxu0 %v1900_v24  ;;  %2386 = vmatprep.subr.bf16.mxu1 %v1902_v41  ;;  %v1104_v24 = vld [vmem:[#allocation4 + $0x428] sm:$0xff]  ;;  %v1106_v41 = vld [vmem:[#allocation4 + $0x438] sm:$0xff] }
 0x433   :  { %2223 = vmatpush1.bf16.msra.mxu0 %v1899_v43  ;;  %2387 = vmatpush1.bf16.msra.mxu1 %v1901_v25  ;;  %v1103_v43 = vld [vmem:[#allocation4 + $0x420] sm:$0xff]  ;;  %v1105_v25 = vld [vmem:[#allocation4 + $0x430] sm:$0xff] }
 0x434   :  { %2224 = vmatprep.subr.bf16.mxu0 %v1916_v26  ;;  %2388 = vmatprep.subr.bf16.mxu1 %v1918_v27  ;;  %v1120_v26 = vld [vmem:[#allocation4 + $0x4a8] sm:$0xff]  ;;  %v1122_v27 = vld [vmem:[#allocation4 + $0x4b8] sm:$0xff] }
 0x437   :  { %2225 = vmatpush1.bf16.msra.mxu0 %v1915_v29  ;;  %2389 = vmatpush1.bf16.msra.mxu1 %v1917_v30  ;;  %v1119_v29 = vld [vmem:[#allocation4 + $0x4a0] sm:$0xff]  ;;  %v1121_v30 = vld [vmem:[#allocation4 + $0x4b0] sm:$0xff] }
 0x438   :  { %2226 = vmatprep.subr.bf16.mxu0 %v1932_v31  ;;  %2390 = vmatprep.subr.bf16.mxu1 %v1934_v33  ;;  %v1136_v31 = vld [vmem:[#allocation4 + $0x528] sm:$0xff]  ;;  %v1138_v33 = vld [vmem:[#allocation4 + $0x538] sm:$0xff] }
 0x43b   :  { %2227 = vmatpush1.bf16.msra.mxu0 %v1931_v17  ;;  %2391 = vmatpush1.bf16.msra.mxu1 %v1933_v40  ;;  %v1135_v17 = vld [vmem:[#allocation4 + $0x520] sm:$0xff]  ;;  %v1137_v40 = vld [vmem:[#allocation4 + $0x530] sm:$0xff] }
 0x43c   :  { %2228 = vmatprep.subr.bf16.mxu0 %v1948_v35  ;;  %2392 = vmatprep.subr.bf16.mxu1 %v1950_v36  ;;  %v1152_v35 = vld [vmem:[#allocation4 + $0x5a8] sm:$0xff]  ;;  %v1154_v36 = vld [vmem:[#allocation4 + $0x5b8] sm:$0xff] }
 0x43f   :  { %2229 = vmatpush1.bf16.msra.mxu0 %v1947_v22  ;;  %2393 = vmatpush1.bf16.msra.mxu1 %v1949_v37  ;;  %v1151_v22 = vld [vmem:[#allocation4 + $0x5a0] sm:$0xff]  ;;  %v1153_v37 = vld [vmem:[#allocation4 + $0x5b0] sm:$0xff] }
 0x440   :  { %2230 = vmatprep.subr.bf16.mxu0 %v1964_v10  ;;  %2394 = vmatprep.subr.bf16.mxu1 %v1966_v39  ;;  %v1168_v10 = vld [vmem:[#allocation4 + $0x628] sm:$0xff]  ;;  %v1170_v39 = vld [vmem:[#allocation4 + $0x638] sm:$0xff] }
 0x443   :  { %2231 = vmatpush1.bf16.msra.mxu0 %v1963_v13  ;;  %2395 = vmatpush1.bf16.msra.mxu1 %v1965_v42  ;;  %v1167_v13 = vld [vmem:[#allocation4 + $0x620] sm:$0xff]  ;;  %v1169_v42 = vld [vmem:[#allocation4 + $0x630] sm:$0xff] }
 0x444   :  { %2232 = vmatprep.subr.bf16.mxu0 %v1980_v44  ;;  %2396 = vmatprep.subr.bf16.mxu1 %v1982_v32  ;;  %v1184_v44 = vld [vmem:[#allocation4 + $0x6a8] sm:$0xff]  ;;  %v1186_v32 = vld [vmem:[#allocation4 + $0x6b8] sm:$0xff] }
 0x447   :  { %2233 = vmatpush1.bf16.msra.mxu0 %v1979_v48  ;;  %2397 = vmatpush1.bf16.msra.mxu1 %v1981_v46  ;;  %v1183_v48 = vld [vmem:[#allocation4 + $0x6a0] sm:$0xff]  ;;  %v1185_v46 = vld [vmem:[#allocation4 + $0x6b0] sm:$0xff] }
 0x448   :  { %2407 = vmatprep.subr.bf16.mxu0 %v976_v47  ;;  %2571 = vmatprep.subr.bf16.mxu1 %v978_v50  ;;  %v1200_v47 = vld [vmem:[#allocation4 + $0x728] sm:$0xff]  ;;  %v1202_v50 = vld [vmem:[#allocation4 + $0x738] sm:$0xff] }
 0x44a   :  { %2235 = vmatmul.mubr.bf16.vlgmr.msra.gmra.mrb[12].mxu0 %v8082_v51  ;;  %2399 = vmatmul.mubr.bf16.vlgmr.msra.gmra.mrb[12].mxu1 %v8082_v51 }
 0x44b   :  { %2408 = vmatpush1.bf16.msra.mxu0 %v975_v52  ;;  %2572 = vmatpush1.bf16.msra.mxu1 %v977_v53  ;;  %v1199_v52 = vld [vmem:[#allocation4 + $0x720] sm:$0xff]  ;;  %v1201_v53 = vld [vmem:[#allocation4 + $0x730] sm:$0xff] }
 0x44c   :  { %2409 = vmatprep.subr.bf16.mxu0 %v992_v54  ;;  %2573 = vmatprep.subr.bf16.mxu1 %v994_v55  ;;  %v1216_v54 = vld [vmem:[#allocation4 + $0x7a8] sm:$0xff]  ;;  %v1218_v55 = vld [vmem:[#allocation4 + $0x7b8] sm:$0xff] }
 0x44d   :  { %2439 = vmatprep.mubr.bf16.mxu0 %v8033_v56  ;;  %2603 = vmatprep.mubr.bf16.mxu1 %v8033_v56 }
 0x44f   :  { %2410 = vmatpush1.bf16.msra.mxu0 %v991_v12  ;;  %2574 = vmatpush1.bf16.msra.mxu1 %v993_v57  ;;  %v1215_v12 = vld [vmem:[#allocation4 + $0x7a0] sm:$0xff]  ;;  %v1217_v57 = vld [vmem:[#allocation4 + $0x7b0] sm:$0xff] }
 0x450   :  { %2411 = vmatprep.subr.bf16.mxu0 %v1008_v49  ;;  %2575 = vmatprep.subr.bf16.mxu1 %v1010_v58  ;;  %v1232_v49 = vld [vmem:[#allocation4 + $0x828] sm:$0xff]  ;;  %v1234_v58 = vld [vmem:[#allocation4 + $0x838] sm:$0xff] }
 0x453   :  { %2412 = vmatpush1.bf16.msra.mxu0 %v1007_v59  ;;  %2576 = vmatpush1.bf16.msra.mxu1 %v1009_v60  ;;  %v1231_v59 = vld [vmem:[#allocation4 + $0x820] sm:$0xff]  ;;  %v1233_v60 = vld [vmem:[#allocation4 + $0x830] sm:$0xff] }
 0x454   :  { %2413 = vmatprep.subr.bf16.mxu0 %v1024_v61  ;;  %2577 = vmatprep.subr.bf16.mxu1 %v1026_v62  ;;  %v1248_v61 = vld [vmem:[#allocation4 + $0x8a8] sm:$0xff]  ;;  %v1250_v62 = vld [vmem:[#allocation4 + $0x8b8] sm:$0xff] }
 0x457   :  { %2414 = vmatpush1.bf16.msra.mxu0 %v1023_v63  ;;  %2578 = vmatpush1.bf16.msra.mxu1 %v1025_v0  ;;  %v1247_v63 = vld [vmem:[#allocation4 + $0x8a0] sm:$0xff]  ;;  %v1249_v0 = vld [vmem:[#allocation4 + $0x8b0] sm:$0xff] }
 0x458   :  { %2415 = vmatprep.subr.bf16.mxu0 %v1040_v1  ;;  %2579 = vmatprep.subr.bf16.mxu1 %v1042_v2  ;;  %v1264_v1 = vld [vmem:[#allocation4 + $0x928] sm:$0xff]  ;;  %v1266_v2 = vld [vmem:[#allocation4 + $0x938] sm:$0xff] }
 0x45b   :  { %2416 = vmatpush1.bf16.msra.mxu0 %v1039_v3  ;;  %2580 = vmatpush1.bf16.msra.mxu1 %v1041_v4  ;;  %v1263_v3 = vld [vmem:[#allocation4 + $0x920] sm:$0xff]  ;;  %v1265_v4 = vld [vmem:[#allocation4 + $0x930] sm:$0xff] }
 0x45c   :  { %2417 = vmatprep.subr.bf16.mxu0 %v1056_v5  ;;  %2581 = vmatprep.subr.bf16.mxu1 %v1058_v6  ;;  %v1280_v5 = vld [vmem:[#allocation4 + $0x9a8] sm:$0xff]  ;;  %v1282_v6 = vld [vmem:[#allocation4 + $0x9b8] sm:$0xff] }
 0x45f   :  { %2418 = vmatpush1.bf16.msra.mxu0 %v1055_v7  ;;  %2582 = vmatpush1.bf16.msra.mxu1 %v1057_v8  ;;  %v1279_v7 = vld [vmem:[#allocation4 + $0x9a0] sm:$0xff]  ;;  %v1281_v8 = vld [vmem:[#allocation4 + $0x9b0] sm:$0xff] }
 0x460   :  { %2419 = vmatprep.subr.bf16.mxu0 %v1072_v9  ;;  %2583 = vmatprep.subr.bf16.mxu1 %v1074_v16  ;;  %v1296_v9 = vld [vmem:[#allocation4 + $0xa28] sm:$0xff]  ;;  %v1298_v16 = vld [vmem:[#allocation4 + $0xa38] sm:$0xff] }
 0x463   :  { %2420 = vmatpush1.bf16.msra.mxu0 %v1071_v18  ;;  %2584 = vmatpush1.bf16.msra.mxu1 %v1073_v19  ;;  %v1295_v18 = vld [vmem:[#allocation4 + $0xa20] sm:$0xff]  ;;  %v1297_v19 = vld [vmem:[#allocation4 + $0xa30] sm:$0xff] }
 0x464   :  { %2421 = vmatprep.subr.bf16.mxu0 %v1088_v20  ;;  %2585 = vmatprep.subr.bf16.mxu1 %v1090_v15  ;;  %v1312_v20 = vld [vmem:[#allocation4 + $0xaa8] sm:$0xff]  ;;  %v1314_v15 = vld [vmem:[#allocation4 + $0xab8] sm:$0xff] }
 0x467   :  { %2422 = vmatpush1.bf16.msra.mxu0 %v1087_v11  ;;  %2586 = vmatpush1.bf16.msra.mxu1 %v1089_v23  ;;  %v1311_v11 = vld [vmem:[#allocation4 + $0xaa0] sm:$0xff]  ;;  %v1313_v23 = vld [vmem:[#allocation4 + $0xab0] sm:$0xff] }
 0x468   :  { %2423 = vmatprep.subr.bf16.mxu0 %v1104_v24  ;;  %2587 = vmatprep.subr.bf16.mxu1 %v1106_v41  ;;  %v1328_v24 = vld [vmem:[#allocation4 + $0xb28] sm:$0xff]  ;;  %v1330_v41 = vld [vmem:[#allocation4 + $0xb38] sm:$0xff] }
 0x46b   :  { %2424 = vmatpush1.bf16.msra.mxu0 %v1103_v43  ;;  %2588 = vmatpush1.bf16.msra.mxu1 %v1105_v25  ;;  %v1327_v43 = vld [vmem:[#allocation4 + $0xb20] sm:$0xff]  ;;  %v1329_v25 = vld [vmem:[#allocation4 + $0xb30] sm:$0xff] }
 0x46c   :  { %2425 = vmatprep.subr.bf16.mxu0 %v1120_v26  ;;  %2589 = vmatprep.subr.bf16.mxu1 %v1122_v27  ;;  %v1344_v26 = vld [vmem:[#allocation4 + $0xba8] sm:$0xff]  ;;  %v1346_v27 = vld [vmem:[#allocation4 + $0xbb8] sm:$0xff] }
 0x46f   :  { %2426 = vmatpush1.bf16.msra.mxu0 %v1119_v29  ;;  %2590 = vmatpush1.bf16.msra.mxu1 %v1121_v30  ;;  %v1343_v29 = vld [vmem:[#allocation4 + $0xba0] sm:$0xff]  ;;  %v1345_v30 = vld [vmem:[#allocation4 + $0xbb0] sm:$0xff] }
 0x470   :  { %2427 = vmatprep.subr.bf16.mxu0 %v1136_v31  ;;  %2591 = vmatprep.subr.bf16.mxu1 %v1138_v33  ;;  %v1360_v31 = vld [vmem:[#allocation4 + $0xc28] sm:$0xff]  ;;  %v1362_v33 = vld [vmem:[#allocation4 + $0xc38] sm:$0xff] }
 0x473   :  { %2428 = vmatpush1.bf16.msra.mxu0 %v1135_v17  ;;  %2592 = vmatpush1.bf16.msra.mxu1 %v1137_v40  ;;  %v1359_v17 = vld [vmem:[#allocation4 + $0xc20] sm:$0xff]  ;;  %v1361_v40 = vld [vmem:[#allocation4 + $0xc30] sm:$0xff] }
 0x474   :  { %2429 = vmatprep.subr.bf16.mxu0 %v1152_v35  ;;  %2593 = vmatprep.subr.bf16.mxu1 %v1154_v36  ;;  %v1376_v35 = vld [vmem:[#allocation4 + $0xca8] sm:$0xff]  ;;  %v1378_v36 = vld [vmem:[#allocation4 + $0xcb8] sm:$0xff] }
 0x477   :  { %2430 = vmatpush1.bf16.msra.mxu0 %v1151_v22  ;;  %2594 = vmatpush1.bf16.msra.mxu1 %v1153_v37  ;;  %v1375_v22 = vld [vmem:[#allocation4 + $0xca0] sm:$0xff]  ;;  %v1377_v37 = vld [vmem:[#allocation4 + $0xcb0] sm:$0xff] }
 0x478   :  { %2431 = vmatprep.subr.bf16.mxu0 %v1168_v10  ;;  %2595 = vmatprep.subr.bf16.mxu1 %v1170_v39  ;;  %v1392_v10 = vld [vmem:[#allocation4 + $0xd28] sm:$0xff]  ;;  %v1394_v39 = vld [vmem:[#allocation4 + $0xd38] sm:$0xff] }
 0x47b   :  { %2432 = vmatpush1.bf16.msra.mxu0 %v1167_v13  ;;  %2596 = vmatpush1.bf16.msra.mxu1 %v1169_v42  ;;  %v1391_v13 = vld [vmem:[#allocation4 + $0xd20] sm:$0xff]  ;;  %v1393_v42 = vld [vmem:[#allocation4 + $0xd30] sm:$0xff] }
 0x47c   :  { %2433 = vmatprep.subr.bf16.mxu0 %v1184_v44  ;;  %2597 = vmatprep.subr.bf16.mxu1 %v1186_v32  ;;  %v1408_v44 = vld [vmem:[#allocation4 + $0xda8] sm:$0xff]  ;;  %v1410_v32 = vld [vmem:[#allocation4 + $0xdb8] sm:$0xff] }
 0x47f   :  { %2434 = vmatpush1.bf16.msra.mxu0 %v1183_v48  ;;  %2598 = vmatpush1.bf16.msra.mxu1 %v1185_v46  ;;  %v1407_v48 = vld [vmem:[#allocation4 + $0xda0] sm:$0xff]  ;;  %v1409_v46 = vld [vmem:[#allocation4 + $0xdb0] sm:$0xff] }
 0x480   :  { %2435 = vmatprep.subr.bf16.mxu0 %v1200_v47  ;;  %2599 = vmatprep.subr.bf16.mxu1 %v1202_v50  ;;  %v1424_v47 = vld [vmem:[#allocation4 + $0xe28] sm:$0xff]  ;;  %v1426_v50 = vld [vmem:[#allocation4 + $0xe38] sm:$0xff] }
 0x483   :  { %2436 = vmatpush1.bf16.msra.mxu0 %v1199_v52  ;;  %2600 = vmatpush1.bf16.msra.mxu1 %v1201_v53  ;;  %v1423_v52 = vld [vmem:[#allocation4 + $0xe20] sm:$0xff]  ;;  %v1425_v53 = vld [vmem:[#allocation4 + $0xe30] sm:$0xff] }
 0x484   :  { %2437 = vmatprep.subr.bf16.mxu0 %v1216_v54  ;;  %2601 = vmatprep.subr.bf16.mxu1 %v1218_v55  ;;  %v1440_v54 = vld [vmem:[#allocation4 + $0xea8] sm:$0xff]  ;;  %v1442_v55 = vld [vmem:[#allocation4 + $0xeb8] sm:$0xff] }
 0x487   :  { %2438 = vmatpush1.bf16.msra.mxu0 %v1215_v12  ;;  %2602 = vmatpush1.bf16.msra.mxu1 %v1217_v57  ;;  %v1439_v12 = vld [vmem:[#allocation4 + $0xea0] sm:$0xff]  ;;  %v1441_v57 = vld [vmem:[#allocation4 + $0xeb0] sm:$0xff] }
 0x488   :  { %2448 = vmatprep.subr.bf16.mxu0 %v1232_v49  ;;  %2612 = vmatprep.subr.bf16.mxu1 %v1234_v58  ;;  %v1456_v49 = vld [vmem:[#allocation4 + $0xf28] sm:$0xff]  ;;  %v1458_v58 = vld [vmem:[#allocation4 + $0xf38] sm:$0xff] }
 0x48a   :  { %2440 = vmatmul.mubr.bf16.vlgmr.msra.gmra.mrb[16].mxu0 %v8040_v14  ;;  %2604 = vmatmul.mubr.bf16.vlgmr.msra.gmra.mrb[16].mxu1 %v8040_v14 }
 0x48b   :  { %2449 = vmatpush1.bf16.msra.mxu0 %v1231_v59  ;;  %2613 = vmatpush1.bf16.msra.mxu1 %v1233_v60  ;;  %v1455_v59 = vld [vmem:[#allocation4 + $0xf20] sm:$0xff]  ;;  %v1457_v60 = vld [vmem:[#allocation4 + $0xf30] sm:$0xff] }
 0x48c   :  { %2450 = vmatprep.subr.bf16.mxu0 %v1248_v61  ;;  %2614 = vmatprep.subr.bf16.mxu1 %v1250_v62  ;;  %v1472_v61 = vld [vmem:[#allocation4 + $0xfa8] sm:$0xff]  ;;  %v1474_v62 = vld [vmem:[#allocation4 + $0xfb8] sm:$0xff] }
 0x48d   :  { %2480 = vmatprep.mubr.bf16.mxu0 %v8045_v21  ;;  %2644 = vmatprep.mubr.bf16.mxu1 %v8045_v21 }
 0x48f   :  { %2451 = vmatpush1.bf16.msra.mxu0 %v1247_v63  ;;  %2615 = vmatpush1.bf16.msra.mxu1 %v1249_v0  ;;  %v1471_v63 = vld [vmem:[#allocation4 + $0xfa0] sm:$0xff]  ;;  %v1473_v0 = vld [vmem:[#allocation4 + $0xfb0] sm:$0xff] }
 0x490   :  { %2452 = vmatprep.subr.bf16.mxu0 %v1264_v1  ;;  %2616 = vmatprep.subr.bf16.mxu1 %v1266_v2  ;;  %v1488_v1 = vld [vmem:[#allocation4 + $0x1028] sm:$0xff]  ;;  %v1490_v2 = vld [vmem:[#allocation4 + $0x1038] sm:$0xff] }
 0x493   :  { %2453 = vmatpush1.bf16.msra.mxu0 %v1263_v3  ;;  %2617 = vmatpush1.bf16.msra.mxu1 %v1265_v4  ;;  %v1487_v3 = vld [vmem:[#allocation4 + $0x1020] sm:$0xff]  ;;  %v1489_v4 = vld [vmem:[#allocation4 + $0x1030] sm:$0xff] }
 0x494   :  { %2454 = vmatprep.subr.bf16.mxu0 %v1280_v5  ;;  %2618 = vmatprep.subr.bf16.mxu1 %v1282_v6  ;;  %v1504_v5 = vld [vmem:[#allocation4 + $0x10a8] sm:$0xff]  ;;  %v1506_v6 = vld [vmem:[#allocation4 + $0x10b8] sm:$0xff] }
 0x497   :  { %2455 = vmatpush1.bf16.msra.mxu0 %v1279_v7  ;;  %2619 = vmatpush1.bf16.msra.mxu1 %v1281_v8  ;;  %v1503_v7 = vld [vmem:[#allocation4 + $0x10a0] sm:$0xff]  ;;  %v1505_v8 = vld [vmem:[#allocation4 + $0x10b0] sm:$0xff] }
 0x498   :  { %2456 = vmatprep.subr.bf16.mxu0 %v1296_v9  ;;  %2620 = vmatprep.subr.bf16.mxu1 %v1298_v16  ;;  %v1520_v9 = vld [vmem:[#allocation4 + $0x1128] sm:$0xff]  ;;  %v1522_v16 = vld [vmem:[#allocation4 + $0x1138] sm:$0xff] }
 0x49b   :  { %2457 = vmatpush1.bf16.msra.mxu0 %v1295_v18  ;;  %2621 = vmatpush1.bf16.msra.mxu1 %v1297_v19  ;;  %v1519_v18 = vld [vmem:[#allocation4 + $0x1120] sm:$0xff]  ;;  %v1521_v19 = vld [vmem:[#allocation4 + $0x1130] sm:$0xff] }
 0x49c   :  { %2458 = vmatprep.subr.bf16.mxu0 %v1312_v20  ;;  %2622 = vmatprep.subr.bf16.mxu1 %v1314_v15  ;;  %v1536_v20 = vld [vmem:[#allocation4 + $0x11a8] sm:$0xff]  ;;  %v1538_v15 = vld [vmem:[#allocation4 + $0x11b8] sm:$0xff] }
 0x49f   :  { %2459 = vmatpush1.bf16.msra.mxu0 %v1311_v11  ;;  %2623 = vmatpush1.bf16.msra.mxu1 %v1313_v23  ;;  %v1535_v11 = vld [vmem:[#allocation4 + $0x11a0] sm:$0xff]  ;;  %v1537_v23 = vld [vmem:[#allocation4 + $0x11b0] sm:$0xff] }
 0x4a0   :  { %2460 = vmatprep.subr.bf16.mxu0 %v1328_v24  ;;  %2624 = vmatprep.subr.bf16.mxu1 %v1330_v41  ;;  %v1552_v24 = vld [vmem:[#allocation4 + $0x1228] sm:$0xff]  ;;  %v1554_v41 = vld [vmem:[#allocation4 + $0x1238] sm:$0xff] }
 0x4a3   :  { %2461 = vmatpush1.bf16.msra.mxu0 %v1327_v43  ;;  %2625 = vmatpush1.bf16.msra.mxu1 %v1329_v25  ;;  %v1551_v43 = vld [vmem:[#allocation4 + $0x1220] sm:$0xff]  ;;  %v1553_v25 = vld [vmem:[#allocation4 + $0x1230] sm:$0xff] }
 0x4a4   :  { %2462 = vmatprep.subr.bf16.mxu0 %v1344_v26  ;;  %2626 = vmatprep.subr.bf16.mxu1 %v1346_v27  ;;  %v1568_v26 = vld [vmem:[#allocation4 + $0x12a8] sm:$0xff]  ;;  %v1570_v27 = vld [vmem:[#allocation4 + $0x12b8] sm:$0xff] }
 0x4a7   :  { %2463 = vmatpush1.bf16.msra.mxu0 %v1343_v29  ;;  %2627 = vmatpush1.bf16.msra.mxu1 %v1345_v30  ;;  %v1567_v29 = vld [vmem:[#allocation4 + $0x12a0] sm:$0xff]  ;;  %v1569_v30 = vld [vmem:[#allocation4 + $0x12b0] sm:$0xff] }
 0x4a8   :  { %2464 = vmatprep.subr.bf16.mxu0 %v1360_v31  ;;  %2628 = vmatprep.subr.bf16.mxu1 %v1362_v33  ;;  %v1584_v31 = vld [vmem:[#allocation4 + $0x1328] sm:$0xff]  ;;  %v1586_v33 = vld [vmem:[#allocation4 + $0x1338] sm:$0xff] }
 0x4ab   :  { %2465 = vmatpush1.bf16.msra.mxu0 %v1359_v17  ;;  %2629 = vmatpush1.bf16.msra.mxu1 %v1361_v40  ;;  %v1583_v17 = vld [vmem:[#allocation4 + $0x1320] sm:$0xff]  ;;  %v1585_v40 = vld [vmem:[#allocation4 + $0x1330] sm:$0xff] }
 0x4ac   :  { %2466 = vmatprep.subr.bf16.mxu0 %v1376_v35  ;;  %2630 = vmatprep.subr.bf16.mxu1 %v1378_v36  ;;  %v1600_v35 = vld [vmem:[#allocation4 + $0x13a8] sm:$0xff]  ;;  %v1602_v36 = vld [vmem:[#allocation4 + $0x13b8] sm:$0xff] }
 0x4af   :  { %2467 = vmatpush1.bf16.msra.mxu0 %v1375_v22  ;;  %2631 = vmatpush1.bf16.msra.mxu1 %v1377_v37  ;;  %v1599_v22 = vld [vmem:[#allocation4 + $0x13a0] sm:$0xff]  ;;  %v1601_v37 = vld [vmem:[#allocation4 + $0x13b0] sm:$0xff] }
 0x4b0   :  { %2468 = vmatprep.subr.bf16.mxu0 %v1392_v10  ;;  %2632 = vmatprep.subr.bf16.mxu1 %v1394_v39  ;;  %v1616_v10 = vld [vmem:[#allocation4 + $0x1428] sm:$0xff]  ;;  %v1618_v39 = vld [vmem:[#allocation4 + $0x1438] sm:$0xff] }
 0x4b3   :  { %2469 = vmatpush1.bf16.msra.mxu0 %v1391_v13  ;;  %2633 = vmatpush1.bf16.msra.mxu1 %v1393_v42  ;;  %v1615_v13 = vld [vmem:[#allocation4 + $0x1420] sm:$0xff]  ;;  %v1617_v42 = vld [vmem:[#allocation4 + $0x1430] sm:$0xff] }
 0x4b4   :  { %2470 = vmatprep.subr.bf16.mxu0 %v1408_v44  ;;  %2634 = vmatprep.subr.bf16.mxu1 %v1410_v32  ;;  %v1632_v44 = vld [vmem:[#allocation4 + $0x14a8] sm:$0xff]  ;;  %v1634_v32 = vld [vmem:[#allocation4 + $0x14b8] sm:$0xff] }
 0x4b7   :  { %2471 = vmatpush1.bf16.msra.mxu0 %v1407_v48  ;;  %2635 = vmatpush1.bf16.msra.mxu1 %v1409_v46  ;;  %v1631_v48 = vld [vmem:[#allocation4 + $0x14a0] sm:$0xff]  ;;  %v1633_v46 = vld [vmem:[#allocation4 + $0x14b0] sm:$0xff] }
 0x4b8   :  { %2472 = vmatprep.subr.bf16.mxu0 %v1424_v47  ;;  %2636 = vmatprep.subr.bf16.mxu1 %v1426_v50  ;;  %v1648_v47 = vld [vmem:[#allocation4 + $0x1528] sm:$0xff]  ;;  %v1650_v50 = vld [vmem:[#allocation4 + $0x1538] sm:$0xff] }
 0x4bb   :  { %2473 = vmatpush1.bf16.msra.mxu0 %v1423_v52  ;;  %2637 = vmatpush1.bf16.msra.mxu1 %v1425_v53  ;;  %v1647_v52 = vld [vmem:[#allocation4 + $0x1520] sm:$0xff]  ;;  %v1649_v53 = vld [vmem:[#allocation4 + $0x1530] sm:$0xff] }
 0x4bc   :  { %2474 = vmatprep.subr.bf16.mxu0 %v1440_v54  ;;  %2638 = vmatprep.subr.bf16.mxu1 %v1442_v55  ;;  %v1664_v54 = vld [vmem:[#allocation4 + $0x15a8] sm:$0xff]  ;;  %v1666_v55 = vld [vmem:[#allocation4 + $0x15b8] sm:$0xff] }
 0x4bf   :  { %2475 = vmatpush1.bf16.msra.mxu0 %v1439_v12  ;;  %2639 = vmatpush1.bf16.msra.mxu1 %v1441_v57  ;;  %v1663_v12 = vld [vmem:[#allocation4 + $0x15a0] sm:$0xff]  ;;  %v1665_v57 = vld [vmem:[#allocation4 + $0x15b0] sm:$0xff] }
 0x4c0   :  { %2476 = vmatprep.subr.bf16.mxu0 %v1456_v49  ;;  %2640 = vmatprep.subr.bf16.mxu1 %v1458_v58  ;;  %v1680_v49 = vld [vmem:[#allocation4 + $0x1628] sm:$0xff]  ;;  %v1682_v58 = vld [vmem:[#allocation4 + $0x1638] sm:$0xff] }
 0x4c3   :  { %2477 = vmatpush1.bf16.msra.mxu0 %v1455_v59  ;;  %2641 = vmatpush1.bf16.msra.mxu1 %v1457_v60  ;;  %v1679_v59 = vld [vmem:[#allocation4 + $0x1620] sm:$0xff]  ;;  %v1681_v60 = vld [vmem:[#allocation4 + $0x1630] sm:$0xff] }
 0x4c4   :  { %2478 = vmatprep.subr.bf16.mxu0 %v1472_v61  ;;  %2642 = vmatprep.subr.bf16.mxu1 %v1474_v62  ;;  %v1696_v61 = vld [vmem:[#allocation4 + $0x16a8] sm:$0xff]  ;;  %v1698_v62 = vld [vmem:[#allocation4 + $0x16b8] sm:$0xff] }
 0x4c7   :  { %2479 = vmatpush1.bf16.msra.mxu0 %v1471_v63  ;;  %2643 = vmatpush1.bf16.msra.mxu1 %v1473_v0  ;;  %v1695_v63 = vld [vmem:[#allocation4 + $0x16a0] sm:$0xff]  ;;  %v1697_v0 = vld [vmem:[#allocation4 + $0x16b0] sm:$0xff] }
 0x4c8   :  { %2489 = vmatprep.subr.bf16.mxu0 %v1488_v1  ;;  %2653 = vmatprep.subr.bf16.mxu1 %v1490_v2  ;;  %v1712_v1 = vld [vmem:[#allocation4 + $0x1728] sm:$0xff]  ;;  %v1714_v2 = vld [vmem:[#allocation4 + $0x1738] sm:$0xff] }
 0x4ca   :  { %2481 = vmatmul.mubr.bf16.vlgmr.msra.gmra.mrb[16].mxu0 %v8054_v28  ;;  %2645 = vmatmul.mubr.bf16.vlgmr.msra.gmra.mrb[16].mxu1 %v8054_v28 }
 0x4cb   :  { %2490 = vmatpush1.bf16.msra.mxu0 %v1487_v3  ;;  %2654 = vmatpush1.bf16.msra.mxu1 %v1489_v4  ;;  %v1711_v3 = vld [vmem:[#allocation4 + $0x1720] sm:$0xff]  ;;  %v1713_v4 = vld [vmem:[#allocation4 + $0x1730] sm:$0xff] }
 0x4cc   :  { %2491 = vmatprep.subr.bf16.mxu0 %v1504_v5  ;;  %2655 = vmatprep.subr.bf16.mxu1 %v1506_v6  ;;  %v1728_v5 = vld [vmem:[#allocation4 + $0x17a8] sm:$0xff]  ;;  %v1730_v6 = vld [vmem:[#allocation4 + $0x17b8] sm:$0xff] }
 0x4cd   :  { %2521 = vmatprep.mubr.bf16.mxu0 %v8059_v34  ;;  %2685 = vmatprep.mubr.bf16.mxu1 %v8059_v34 }
 0x4cf   :  { %2492 = vmatpush1.bf16.msra.mxu0 %v1503_v7  ;;  %2656 = vmatpush1.bf16.msra.mxu1 %v1505_v8  ;;  %v1727_v7 = vld [vmem:[#allocation4 + $0x17a0] sm:$0xff]  ;;  %v1729_v8 = vld [vmem:[#allocation4 + $0x17b0] sm:$0xff] }
 0x4d0   :  { %2493 = vmatprep.subr.bf16.mxu0 %v1520_v9  ;;  %2657 = vmatprep.subr.bf16.mxu1 %v1522_v16  ;;  %v1744_v9 = vld [vmem:[#allocation4 + $0x1828] sm:$0xff]  ;;  %v1746_v16 = vld [vmem:[#allocation4 + $0x1838] sm:$0xff] }
 0x4d3   :  { %2494 = vmatpush1.bf16.msra.mxu0 %v1519_v18  ;;  %2658 = vmatpush1.bf16.msra.mxu1 %v1521_v19  ;;  %v1743_v18 = vld [vmem:[#allocation4 + $0x1820] sm:$0xff]  ;;  %v1745_v19 = vld [vmem:[#allocation4 + $0x1830] sm:$0xff] }
 0x4d4   :  { %2495 = vmatprep.subr.bf16.mxu0 %v1536_v20  ;;  %2659 = vmatprep.subr.bf16.mxu1 %v1538_v15  ;;  %v1760_v20 = vld [vmem:[#allocation4 + $0x18a8] sm:$0xff]  ;;  %v1762_v15 = vld [vmem:[#allocation4 + $0x18b8] sm:$0xff] }
 0x4d7   :  { %2496 = vmatpush1.bf16.msra.mxu0 %v1535_v11  ;;  %2660 = vmatpush1.bf16.msra.mxu1 %v1537_v23  ;;  %v1759_v11 = vld [vmem:[#allocation4 + $0x18a0] sm:$0xff]  ;;  %v1761_v23 = vld [vmem:[#allocation4 + $0x18b0] sm:$0xff] }
 0x4d8   :  { %2497 = vmatprep.subr.bf16.mxu0 %v1552_v24  ;;  %2661 = vmatprep.subr.bf16.mxu1 %v1554_v41  ;;  %v1776_v24 = vld [vmem:[#allocation4 + $0x1928] sm:$0xff]  ;;  %v1778_v41 = vld [vmem:[#allocation4 + $0x1938] sm:$0xff] }
 0x4db   :  { %2498 = vmatpush1.bf16.msra.mxu0 %v1551_v43  ;;  %2662 = vmatpush1.bf16.msra.mxu1 %v1553_v25  ;;  %v1999_v43 = vlaneseq  ;;  %v1775_v25 = vld [vmem:[#allocation4 + $0x1920] sm:$0xff] }
 0x4dc   :  { %2499 = vmatprep.subr.bf16.mxu0 %v1568_v26  ;;  %2663 = vmatprep.subr.bf16.mxu1 %v1570_v27  ;;  %v1777_v26 = vld [vmem:[#allocation4 + $0x1930] sm:$0xff]  ;;  %v1792_v27 = vld [vmem:[#allocation4 + $0x19a8] sm:$0xff] }
 0x4df   :  { %2500 = vmatpush1.bf16.msra.mxu0 %v1567_v29  ;;  %2664 = vmatpush1.bf16.msra.mxu1 %v1569_v30  ;;  %v1794_v29 = vld [vmem:[#allocation4 + $0x19b8] sm:$0xff]  ;;  %v8100_v30 = vshrl.u32 %v1999_v43, 7  ;;  %v1889_v43 = vld [vmem:[#allocation4 + $0x1cb0] sm:$0xff] }
 0x4e0   :  { %2501 = vmatprep.subr.bf16.mxu0 %v1584_v31  ;;  %2665 = vmatprep.subr.bf16.mxu1 %v1586_v33  ;;  %v1791_v31 = vld [vmem:[#allocation4 + $0x19a0] sm:$0xff]  ;;  %v1793_v33 = vld [vmem:[#allocation4 + $0x19b0] sm:$0xff] }
 0x4e3   :  { %2502 = vmatpush1.bf16.msra.mxu0 %v1583_v17  ;;  %2666 = vmatpush1.bf16.msra.mxu1 %v1585_v40  ;;  %v1808_v17 = vld [vmem:[#allocation4 + $0x1a28] sm:$0xff]  ;;  %v1810_v40 = vld [vmem:[#allocation4 + $0x1a38] sm:$0xff] }
 0x4e4   :  { %2503 = vmatprep.subr.bf16.mxu0 %v1600_v35  ;;  %2667 = vmatprep.subr.bf16.mxu1 %v1602_v36  ;;  %v2001_v35 = vsub.s32 0, %v8100_v30  ;;  %v2009_v36 = vsub.s32 2, %v8100_v30 }
 0x4e7   :  { %2504 = vmatpush1.bf16.msra.mxu0 %v1599_v22  ;;  %2668 = vmatpush1.bf16.msra.mxu1 %v1601_v37  ;;  %v1995_v22 = vld [vmem:[#allocation10] sm:$0xff]  ;;  %v2005_v37 = vsub.s32 1, %v8100_v30 }
 0x4e8   :  { %2505 = vmatprep.subr.bf16.mxu0 %v1616_v10  ;;  %2669 = vmatprep.subr.bf16.mxu1 %v1618_v39  ;;  %v2013_v10 = vsub.s32 3, %v8100_v30  ;;  %v1807_v39 = vld [vmem:[#allocation4 + $0x1a20] sm:$0xff] }
 0x4eb   :  { %2506 = vmatpush1.bf16.msra.mxu0 %v1615_v13  ;;  %2670 = vmatpush1.bf16.msra.mxu1 %v1617_v42  ;;  %v1809_v13 = vld [vmem:[#allocation4 + $0x1a30] sm:$0xff]  ;;  %v1824_v42 = vld [vmem:[#allocation4 + $0x1aa8] sm:$0xff] }
 0x4ec   :  { %2507 = vmatprep.subr.bf16.mxu0 %v1632_v44  ;;  %2671 = vmatprep.subr.bf16.mxu1 %v1634_v32  ;;  %v1826_v44 = vld [vmem:[#allocation4 + $0x1ab8] sm:$0xff]  ;;  %v2002_v32 = vrot.slane %v1995_v22, %v2001_v35 }
 0x4ef   :  { %2508 = vmatpush1.bf16.msra.mxu0 %v1631_v48  ;;  %2672 = vmatpush1.bf16.msra.mxu1 %v1633_v46  ;;  %v2010_v48 = vrot.slane %v1995_v22, %v2009_v36  ;;  %v2006_v46 = vrot.slane %v1995_v22, %v2005_v37 }
 0x4f0   :  { %2509 = vmatprep.subr.bf16.mxu0 %v1648_v47  ;;  %2673 = vmatprep.subr.bf16.mxu1 %v1650_v50  ;;  %v2014_v47 = vrot.slane %v1995_v22, %v2013_v10  ;;  %v1823_v50 = vld [vmem:[#allocation4 + $0x1aa0] sm:$0xff]  ;;  %v1936_v22 = vld [vmem:[#allocation4 + $0x1e28] sm:$0xff] }
 0x4f3   :  { %2510 = vmatpush1.bf16.msra.mxu0 %v1647_v52  ;;  %2674 = vmatpush1.bf16.msra.mxu1 %v1649_v53  ;;  %v1825_v52 = vld [vmem:[#allocation4 + $0x1ab0] sm:$0xff] }
 0x4f4   :  { %2511 = vmatprep.subr.bf16.mxu0 %v1664_v54  ;;  %2675 = vmatprep.subr.bf16.mxu1 %v1666_v55  ;;  %v1840_v55 = vld [vmem:[#allocation4 + $0x1b28] sm:$0xff] }
 0x4f7   :  { %2512 = vmatpush1.bf16.msra.mxu0 %v1663_v12  ;;  %2676 = vmatpush1.bf16.msra.mxu1 %v1665_v57  ;;  %v1842_v12 = vld [vmem:[#allocation4 + $0x1b38] sm:$0xff] }
 0x4f8   :  { %2513 = vmatprep.subr.bf16.mxu0 %v1680_v49  ;;  %2677 = vmatprep.subr.bf16.mxu1 %v1682_v58 }
 0x4fb   :  { %2514 = vmatpush1.bf16.msra.mxu0 %v1679_v59  ;;  %2678 = vmatpush1.bf16.msra.mxu1 %v1681_v60 }
 0x4fc   :  { %2515 = vmatprep.subr.bf16.mxu0 %v1696_v61  ;;  %2679 = vmatprep.subr.bf16.mxu1 %v1698_v62 }
 0x4ff   :  { %2516 = vmatpush1.bf16.msra.mxu0 %v1695_v63  ;;  %2680 = vmatpush1.bf16.msra.mxu1 %v1697_v0 }
 0x500   :  { %2517 = vmatprep.subr.bf16.mxu0 %v1712_v1  ;;  %2681 = vmatprep.subr.bf16.mxu1 %v1714_v2 }
 0x503   :  { %2518 = vmatpush1.bf16.msra.mxu0 %v1711_v3  ;;  %2682 = vmatpush1.bf16.msra.mxu1 %v1713_v4  ;;  %v1839_v4 = vld [vmem:[#allocation4 + $0x1b20] sm:$0xff] }
 0x504   :  { %2519 = vmatprep.subr.bf16.mxu0 %v1728_v5  ;;  %2683 = vmatprep.subr.bf16.mxu1 %v1730_v6  ;;  %v1841_v5 = vld [vmem:[#allocation4 + $0x1b30] sm:$0xff] }
 0x507   :  { %2520 = vmatpush1.bf16.msra.mxu0 %v1727_v7  ;;  %2684 = vmatpush1.bf16.msra.mxu1 %v1729_v8  ;;  %v1856_v8 = vld [vmem:[#allocation4 + $0x1ba8] sm:$0xff] }
 0x508   :  { %2530 = vmatprep.subr.bf16.mxu0 %v1744_v9  ;;  %2694 = vmatprep.subr.bf16.mxu1 %v1746_v16  ;;  %v1858_v9 = vld [vmem:[#allocation4 + $0x1bb8] sm:$0xff]  ;;  %v1855_v16 = vld [vmem:[#allocation4 + $0x1ba0] sm:$0xff] }
 0x50a   :  { %2522 = vmatmul.mubr.bf16.vlgmr.msra.gmra.mrb[16].mxu0 %v8068_v38  ;;  %2686 = vmatmul.mubr.bf16.vlgmr.msra.gmra.mrb[16].mxu1 %v8068_v38 }
 0x50b   :  { %2531 = vmatpush1.bf16.msra.mxu0 %v1743_v18  ;;  %2695 = vmatpush1.bf16.msra.mxu1 %v1745_v19  ;;  %v1857_v18 = vld [vmem:[#allocation4 + $0x1bb0] sm:$0xff]  ;;  %v1872_v19 = vld [vmem:[#allocation4 + $0x1c28] sm:$0xff] }
 0x50c   :  { %2532 = vmatprep.subr.bf16.mxu0 %v1760_v20  ;;  %2696 = vmatprep.subr.bf16.mxu1 %v1762_v15  ;;  %v1874_v20 = vld [vmem:[#allocation4 + $0x1c38] sm:$0xff]  ;;  %v1871_v15 = vld [vmem:[#allocation4 + $0x1c20] sm:$0xff] }
 0x50d   :  { %2562 = vmatprep.mubr.bf16.mxu0 %v8073_v45  ;;  %2726 = vmatprep.mubr.bf16.mxu1 %v8073_v45 }
 0x50f   :  { %2533 = vmatpush1.bf16.msra.mxu0 %v1759_v11  ;;  %2697 = vmatpush1.bf16.msra.mxu1 %v1761_v23  ;;  %v1873_v11 = vld [vmem:[#allocation4 + $0x1c30] sm:$0xff]  ;;  %v1888_v23 = vld [vmem:[#allocation4 + $0x1ca8] sm:$0xff] }
 0x510   :  { %2534 = vmatprep.subr.bf16.mxu0 %v1776_v24  ;;  %2698 = vmatprep.subr.bf16.mxu1 %v1778_v41  ;;  %v1890_v24 = vld [vmem:[#allocation4 + $0x1cb8] sm:$0xff]  ;;  %v1887_v41 = vld [vmem:[#allocation4 + $0x1ca0] sm:$0xff] }
 0x513   :  { %2535 = vmatpush1.bf16.msra.mxu0 %v1775_v25  ;;  %2699 = vmatpush1.bf16.msra.mxu1 %v1777_v26  ;;  %v1904_v25 = vld [vmem:[#allocation4 + $0x1d28] sm:$0xff]  ;;  %v1906_v26 = vld [vmem:[#allocation4 + $0x1d38] sm:$0xff] }
 0x514   :  { %2536 = vmatprep.subr.bf16.mxu0 %v1792_v27  ;;  %2700 = vmatprep.subr.bf16.mxu1 %v1794_v29  ;;  %v1903_v27 = vld [vmem:[#allocation4 + $0x1d20] sm:$0xff]  ;;  %v1905_v29 = vld [vmem:[#allocation4 + $0x1d30] sm:$0xff] }
 0x517   :  { %2537 = vmatpush1.bf16.msra.mxu0 %v1791_v31  ;;  %2701 = vmatpush1.bf16.msra.mxu1 %v1793_v33  ;;  %v1920_v31 = vld [vmem:[#allocation4 + $0x1da8] sm:$0xff]  ;;  %v1922_v33 = vld [vmem:[#allocation4 + $0x1db8] sm:$0xff] }
 0x518   :  { %2538 = vmatprep.subr.bf16.mxu0 %v1808_v17  ;;  %2702 = vmatprep.subr.bf16.mxu1 %v1810_v40  ;;  %v1919_v17 = vld [vmem:[#allocation4 + $0x1da0] sm:$0xff]  ;;  %v1921_v40 = vld [vmem:[#allocation4 + $0x1db0] sm:$0xff] }
 0x51b   :  { %2539 = vmatpush1.bf16.msra.mxu0 %v1807_v39  ;;  %2703 = vmatpush1.bf16.msra.mxu1 %v1809_v13  ;;  %v1938_v39 = vld [vmem:[#allocation4 + $0x1e38] sm:$0xff]  ;;  %v1935_v13 = vld [vmem:[#allocation4 + $0x1e20] sm:$0xff] }
 0x51c   :  { %2540 = vmatprep.subr.bf16.mxu0 %v1824_v42  ;;  %2704 = vmatprep.subr.bf16.mxu1 %v1826_v44  ;;  %v1937_v42 = vld [vmem:[#allocation4 + $0x1e30] sm:$0xff]  ;;  %v1952_v44 = vld [vmem:[#allocation4 + $0x1ea8] sm:$0xff] }
 0x51d   :  { %v2236_v53 = vpop.f32.mrb[12].mxu0  ;;  %v2400_v54 = vpop.f32.mrb[12].mxu1 }
 0x51e   :  { %v8114_v57 = vadd.f32 %v2236_v53, %v2002_v32  ;;  %v8116_v49 = vadd.f32 %v2400_v54, %v2010_v48  ;;  %v2238_v58 = vpop.f32.mrb[13].mxu0  ;;  %v2402_v59 = vpop.f32.mrb[13].mxu1  ;;  %v1954_v32 = vld [vmem:[#allocation4 + $0x1eb8] sm:$0xff]  ;;  %v1951_v48 = vld [vmem:[#allocation4 + $0x1ea0] sm:$0xff]  ;;  %v1969_v53 = vld [vmem:[#allocation4 + $0x1f30] sm:$0xff] }
 0x51f   :  { %v8118_v60 = vadd.f32 %v2238_v58, %v2006_v46  ;;  %v8120_v61 = vadd.f32 %v2402_v59, %v2014_v47  ;;  %v2240_v62 = vpop.f32.mrb[14].mxu0  ;;  %v2404_v63 = vpop.f32.mrb[14].mxu1  ;;  %2541 = vmatpush1.bf16.msra.mxu0 %v1823_v50  ;;  %2705 = vmatpush1.bf16.msra.mxu1 %v1825_v52  ;;  %v1953_v46 = vld [vmem:[#allocation4 + $0x1eb0] sm:$0xff]  ;;  %v1968_v47 = vld [vmem:[#allocation4 + $0x1f28] sm:$0xff]  ;;  %v1970_v50 = vld [vmem:[#allocation4 + $0x1f38] sm:$0xff] }
 0x520   :  { %v3391_v0 = vmax.f32 %v8114_v57, 0.0  ;;  %v3393_v1 = vmax.f32 %v8116_v49, 0.0  ;;  %v2241_v2 = vpop.f32.mrb[15].mxu0  ;;  %v2405_v3 = vpop.f32.mrb[15].mxu1  ;;  %2542 = vmatprep.subr.bf16.mxu0 %v1840_v55  ;;  %2706 = vmatprep.subr.bf16.mxu1 %v1842_v12  ;;  %v1967_v52 = vld [vmem:[#allocation4 + $0x1f20] sm:$0xff]  ;;  %v1984_v54 = vld [vmem:[#allocation4 + $0x1fa8] sm:$0xff] }
 0x521   :  { %v3392_v6 = vmax.f32 %v8118_v60, 0.0  ;;  %v3394_v7 = vmax.f32 %v8120_v61, 0.0  ;;  %v1986_v55 = vld [vmem:[#allocation4 + $0x1fb8] sm:$0xff]  ;;  %v1983_v12 = vld [vmem:[#allocation4 + $0x1fa0] sm:$0xff]  ;;  %v1985_v58 = vld [vmem:[#allocation4 + $0x1fb0] sm:$0xff] }
 0x522   :  { %v980_v59 = vld [vmem:[#allocation4 + $0x48] sm:$0xff]  ;;  %v982_v62 = vld [vmem:[#allocation4 + $0x58] sm:$0xff]  ;;  %v979_v63 = vld [vmem:[#allocation4 + $0x40] sm:$0xff] }
 0x523   :  { %2543 = vmatpush1.bf16.msra.mxu0 %v1839_v4  ;;  %2707 = vmatpush1.bf16.msra.mxu1 %v1841_v5  ;;  %v981_v2 = vld [vmem:[#allocation4 + $0x50] sm:$0xff]  ;;  %v996_v3 = vld [vmem:[#allocation4 + $0xc8] sm:$0xff]  ;;  %v998_v4 = vld [vmem:[#allocation4 + $0xd8] sm:$0xff] }
 0x524   :  { %2544 = vmatprep.subr.bf16.mxu0 %v1856_v8  ;;  %2708 = vmatprep.subr.bf16.mxu1 %v1858_v9  ;;  %v995_v5 = vld [vmem:[#allocation4 + $0xc0] sm:$0xff]  ;;  %v997_v8 = vld [vmem:[#allocation4 + $0xd0] sm:$0xff]  ;;  %v1012_v9 = vld [vmem:[#allocation4 + $0x148] sm:$0xff] }
 0x527   :  { %2545 = vmatpush1.bf16.msra.mxu0 %v1855_v16  ;;  %2709 = vmatpush1.bf16.msra.mxu1 %v1857_v18  ;;  %v1014_v16 = vld [vmem:[#allocation4 + $0x158] sm:$0xff]  ;;  %v1011_v18 = vld [vmem:[#allocation4 + $0x140] sm:$0xff] }
 0x528   :  { %2546 = vmatprep.subr.bf16.mxu0 %v1872_v19  ;;  %2710 = vmatprep.subr.bf16.mxu1 %v1874_v20  ;;  %v1013_v19 = vld [vmem:[#allocation4 + $0x150] sm:$0xff]  ;;  %v1028_v20 = vld [vmem:[#allocation4 + $0x1c8] sm:$0xff] }
 0x52b   :  { %2547 = vmatpush1.bf16.msra.mxu0 %v1871_v15  ;;  %2711 = vmatpush1.bf16.msra.mxu1 %v1873_v11  ;;  %v1030_v15 = vld [vmem:[#allocation4 + $0x1d8] sm:$0xff]  ;;  %v1027_v11 = vld [vmem:[#allocation4 + $0x1c0] sm:$0xff] }
 0x52c   :  { %2548 = vmatprep.subr.bf16.mxu0 %v1888_v23  ;;  %2712 = vmatprep.subr.bf16.mxu1 %v1890_v24  ;;  %v1029_v23 = vld [vmem:[#allocation4 + $0x1d0] sm:$0xff]  ;;  %v1044_v24 = vld [vmem:[#allocation4 + $0x248] sm:$0xff] }
 0x52f   :  { %2549 = vmatpush1.bf16.msra.mxu0 %v1887_v41  ;;  %2713 = vmatpush1.bf16.msra.mxu1 %v1889_v43  ;;  %v1046_v41 = vld [vmem:[#allocation4 + $0x258] sm:$0xff]  ;;  %v1043_v43 = vld [vmem:[#allocation4 + $0x240] sm:$0xff] }
 0x530   :  { %2550 = vmatprep.subr.bf16.mxu0 %v1904_v25  ;;  %2714 = vmatprep.subr.bf16.mxu1 %v1906_v26  ;;  %v1045_v25 = vld [vmem:[#allocation4 + $0x250] sm:$0xff]  ;;  %v1060_v26 = vld [vmem:[#allocation4 + $0x2c8] sm:$0xff] }
 0x533   :  { %2551 = vmatpush1.bf16.msra.mxu0 %v1903_v27  ;;  %2715 = vmatpush1.bf16.msra.mxu1 %v1905_v29  ;;  %v1062_v27 = vld [vmem:[#allocation4 + $0x2d8] sm:$0xff]  ;;  %v1059_v29 = vld [vmem:[#allocation4 + $0x2c0] sm:$0xff] }
 0x534   :  { %2552 = vmatprep.subr.bf16.mxu0 %v1920_v31  ;;  %2716 = vmatprep.subr.bf16.mxu1 %v1922_v33  ;;  %v1061_v31 = vld [vmem:[#allocation4 + $0x2d0] sm:$0xff]  ;;  %v1076_v33 = vld [vmem:[#allocation4 + $0x348] sm:$0xff] }
 0x537   :  { %2553 = vmatpush1.bf16.msra.mxu0 %v1919_v17  ;;  %2717 = vmatpush1.bf16.msra.mxu1 %v1921_v40  ;;  %v1078_v17 = vld [vmem:[#allocation4 + $0x358] sm:$0xff]  ;;  %v1075_v40 = vld [vmem:[#allocation4 + $0x340] sm:$0xff] }
 0x538   :  { %2554 = vmatprep.subr.bf16.mxu0 %v1936_v22  ;;  %2718 = vmatprep.subr.bf16.mxu1 %v1938_v39  ;;  %v1077_v22 = vld [vmem:[#allocation4 + $0x350] sm:$0xff]  ;;  %v1092_v39 = vld [vmem:[#allocation4 + $0x3c8] sm:$0xff] }
 0x53b   :  { %2555 = vmatpush1.bf16.msra.mxu0 %v1935_v13  ;;  %2719 = vmatpush1.bf16.msra.mxu1 %v1937_v42  ;;  %v1094_v13 = vld [vmem:[#allocation4 + $0x3d8] sm:$0xff]  ;;  %v1091_v42 = vld [vmem:[#allocation4 + $0x3c0] sm:$0xff] }
 0x53c   :  { %2556 = vmatprep.subr.bf16.mxu0 %v1952_v44  ;;  %2720 = vmatprep.subr.bf16.mxu1 %v1954_v32  ;;  %v1093_v44 = vld [vmem:[#allocation4 + $0x3d0] sm:$0xff]  ;;  %v1108_v32 = vld [vmem:[#allocation4 + $0x448] sm:$0xff] }
 0x53f   :  { %2557 = vmatpush1.bf16.msra.mxu0 %v1951_v48  ;;  %2721 = vmatpush1.bf16.msra.mxu1 %v1953_v46  ;;  %v1110_v48 = vld [vmem:[#allocation4 + $0x458] sm:$0xff]  ;;  %v1107_v46 = vld [vmem:[#allocation4 + $0x440] sm:$0xff] }
 0x540   :  { %2558 = vmatprep.subr.bf16.mxu0 %v1968_v47  ;;  %2722 = vmatprep.subr.bf16.mxu1 %v1970_v50  ;;  %v1109_v47 = vld [vmem:[#allocation4 + $0x450] sm:$0xff]  ;;  %v1124_v50 = vld [vmem:[#allocation4 + $0x4c8] sm:$0xff] }
 0x543   :  { %2559 = vmatpush1.bf16.msra.mxu0 %v1967_v52  ;;  %2723 = vmatpush1.bf16.msra.mxu1 %v1969_v53  ;;  %v1126_v52 = vld [vmem:[#allocation4 + $0x4d8] sm:$0xff]  ;;  %v1123_v53 = vld [vmem:[#allocation4 + $0x4c0] sm:$0xff] }
 0x544   :  { %2560 = vmatprep.subr.bf16.mxu0 %v1984_v54  ;;  %2724 = vmatprep.subr.bf16.mxu1 %v1986_v55  ;;  %v1125_v54 = vld [vmem:[#allocation4 + $0x4d0] sm:$0xff]  ;;  %v1140_v55 = vld [vmem:[#allocation4 + $0x548] sm:$0xff] }
 0x547   :  { %2561 = vmatpush1.bf16.msra.mxu0 %v1983_v12  ;;  %2725 = vmatpush1.bf16.msra.mxu1 %v1985_v58  ;;  %v1142_v12 = vld [vmem:[#allocation4 + $0x558] sm:$0xff]  ;;  %v1139_v58 = vld [vmem:[#allocation4 + $0x540] sm:$0xff] }
 0x548   :  { %2735 = vmatprep.subr.bf16.mxu0 %v980_v59  ;;  %2899 = vmatprep.subr.bf16.mxu1 %v982_v62  ;;  %v1141_v59 = vld [vmem:[#allocation4 + $0x550] sm:$0xff]  ;;  %v1156_v62 = vld [vmem:[#allocation4 + $0x5c8] sm:$0xff] }
 0x54a   :  { %2563 = vmatmul.mubr.bf16.vlgmr.msra.gmra.mrb[16].mxu0 %v8082_v51  ;;  %2727 = vmatmul.mubr.bf16.vlgmr.msra.gmra.mrb[16].mxu1 %v8082_v51 }
 0x54b   :  { %2736 = vmatpush1.bf16.msra.mxu0 %v979_v63  ;;  %2900 = vmatpush1.bf16.msra.mxu1 %v981_v2  ;;  %v1158_v63 = vld [vmem:[#allocation4 + $0x5d8] sm:$0xff]  ;;  %v1155_v2 = vld [vmem:[#allocation4 + $0x5c0] sm:$0xff] }
 0x54c   :  { %2737 = vmatprep.subr.bf16.mxu0 %v996_v3  ;;  %2901 = vmatprep.subr.bf16.mxu1 %v998_v4  ;;  %v1157_v3 = vld [vmem:[#allocation4 + $0x5d0] sm:$0xff]  ;;  %v1172_v4 = vld [vmem:[#allocation4 + $0x648] sm:$0xff] }
 0x54d   :  { %2767 = vmatprep.mubr.bf16.mxu0 %v8033_v56  ;;  %2931 = vmatprep.mubr.bf16.mxu1 %v8033_v56 }
 0x54f   :  { %2738 = vmatpush1.bf16.msra.mxu0 %v995_v5  ;;  %2902 = vmatpush1.bf16.msra.mxu1 %v997_v8  ;;  %v1174_v5 = vld [vmem:[#allocation4 + $0x658] sm:$0xff]  ;;  %v1171_v8 = vld [vmem:[#allocation4 + $0x640] sm:$0xff] }
 0x550   :  { %2739 = vmatprep.subr.bf16.mxu0 %v1012_v9  ;;  %2903 = vmatprep.subr.bf16.mxu1 %v1014_v16  ;;  %v1173_v9 = vld [vmem:[#allocation4 + $0x650] sm:$0xff]  ;;  %v1188_v16 = vld [vmem:[#allocation4 + $0x6c8] sm:$0xff] }
 0x553   :  { %2740 = vmatpush1.bf16.msra.mxu0 %v1011_v18  ;;  %2904 = vmatpush1.bf16.msra.mxu1 %v1013_v19  ;;  %v1190_v18 = vld [vmem:[#allocation4 + $0x6d8] sm:$0xff]  ;;  %v1187_v19 = vld [vmem:[#allocation4 + $0x6c0] sm:$0xff] }
 0x554   :  { %2741 = vmatprep.subr.bf16.mxu0 %v1028_v20  ;;  %2905 = vmatprep.subr.bf16.mxu1 %v1030_v15  ;;  %v1189_v20 = vld [vmem:[#allocation4 + $0x6d0] sm:$0xff]  ;;  %v1204_v15 = vld [vmem:[#allocation4 + $0x748] sm:$0xff] }
 0x557   :  { %2742 = vmatpush1.bf16.msra.mxu0 %v1027_v11  ;;  %2906 = vmatpush1.bf16.msra.mxu1 %v1029_v23  ;;  %v1206_v11 = vld [vmem:[#allocation4 + $0x758] sm:$0xff]  ;;  %v1203_v23 = vld [vmem:[#allocation4 + $0x740] sm:$0xff] }
 0x558   :  { %2743 = vmatprep.subr.bf16.mxu0 %v1044_v24  ;;  %2907 = vmatprep.subr.bf16.mxu1 %v1046_v41  ;;  %v1205_v24 = vld [vmem:[#allocation4 + $0x750] sm:$0xff]  ;;  %v1220_v41 = vld [vmem:[#allocation4 + $0x7c8] sm:$0xff] }
 0x55b   :  { %2744 = vmatpush1.bf16.msra.mxu0 %v1043_v43  ;;  %2908 = vmatpush1.bf16.msra.mxu1 %v1045_v25  ;;  %v1222_v43 = vld [vmem:[#allocation4 + $0x7d8] sm:$0xff]  ;;  %v1219_v25 = vld [vmem:[#allocation4 + $0x7c0] sm:$0xff] }
 0x55c   :  { %2745 = vmatprep.subr.bf16.mxu0 %v1060_v26  ;;  %2909 = vmatprep.subr.bf16.mxu1 %v1062_v27  ;;  %v1221_v26 = vld [vmem:[#allocation4 + $0x7d0] sm:$0xff]  ;;  %v1236_v27 = vld [vmem:[#allocation4 + $0x848] sm:$0xff] }
 0x55f   :  { %2746 = vmatpush1.bf16.msra.mxu0 %v1059_v29  ;;  %2910 = vmatpush1.bf16.msra.mxu1 %v1061_v31  ;;  %v1238_v29 = vld [vmem:[#allocation4 + $0x858] sm:$0xff]  ;;  %v1235_v31 = vld [vmem:[#allocation4 + $0x840] sm:$0xff] }
 0x560   :  { %2747 = vmatprep.subr.bf16.mxu0 %v1076_v33  ;;  %2911 = vmatprep.subr.bf16.mxu1 %v1078_v17  ;;  %v1237_v33 = vld [vmem:[#allocation4 + $0x850] sm:$0xff]  ;;  %v1252_v17 = vld [vmem:[#allocation4 + $0x8c8] sm:$0xff] }
 0x563   :  { %2748 = vmatpush1.bf16.msra.mxu0 %v1075_v40  ;;  %2912 = vmatpush1.bf16.msra.mxu1 %v1077_v22  ;;  %v1254_v40 = vld [vmem:[#allocation4 + $0x8d8] sm:$0xff]  ;;  %v1251_v22 = vld [vmem:[#allocation4 + $0x8c0] sm:$0xff] }
 0x564   :  { %2749 = vmatprep.subr.bf16.mxu0 %v1092_v39  ;;  %2913 = vmatprep.subr.bf16.mxu1 %v1094_v13  ;;  %v1253_v39 = vld [vmem:[#allocation4 + $0x8d0] sm:$0xff]  ;;  %v1268_v13 = vld [vmem:[#allocation4 + $0x948] sm:$0xff] }
 0x567   :  { %2750 = vmatpush1.bf16.msra.mxu0 %v1091_v42  ;;  %2914 = vmatpush1.bf16.msra.mxu1 %v1093_v44  ;;  %v1270_v42 = vld [vmem:[#allocation4 + $0x958] sm:$0xff]  ;;  %v1267_v44 = vld [vmem:[#allocation4 + $0x940] sm:$0xff] }
 0x568   :  { %2751 = vmatprep.subr.bf16.mxu0 %v1108_v32  ;;  %2915 = vmatprep.subr.bf16.mxu1 %v1110_v48  ;;  %v1269_v32 = vld [vmem:[#allocation4 + $0x950] sm:$0xff]  ;;  %v1284_v48 = vld [vmem:[#allocation4 + $0x9c8] sm:$0xff] }
 0x56b   :  { %2752 = vmatpush1.bf16.msra.mxu0 %v1107_v46  ;;  %2916 = vmatpush1.bf16.msra.mxu1 %v1109_v47  ;;  %v1286_v46 = vld [vmem:[#allocation4 + $0x9d8] sm:$0xff]  ;;  %v1283_v47 = vld [vmem:[#allocation4 + $0x9c0] sm:$0xff] }
 0x56c   :  { %2753 = vmatprep.subr.bf16.mxu0 %v1124_v50  ;;  %2917 = vmatprep.subr.bf16.mxu1 %v1126_v52  ;;  %v1285_v50 = vld [vmem:[#allocation4 + $0x9d0] sm:$0xff]  ;;  %v1300_v52 = vld [vmem:[#allocation4 + $0xa48] sm:$0xff] }
 0x56f   :  { %2754 = vmatpush1.bf16.msra.mxu0 %v1123_v53  ;;  %2918 = vmatpush1.bf16.msra.mxu1 %v1125_v54  ;;  %v1302_v53 = vld [vmem:[#allocation4 + $0xa58] sm:$0xff]  ;;  %v1299_v54 = vld [vmem:[#allocation4 + $0xa40] sm:$0xff] }
 0x570   :  { %2755 = vmatprep.subr.bf16.mxu0 %v1140_v55  ;;  %2919 = vmatprep.subr.bf16.mxu1 %v1142_v12  ;;  %v1301_v55 = vld [vmem:[#allocation4 + $0xa50] sm:$0xff]  ;;  %v1316_v12 = vld [vmem:[#allocation4 + $0xac8] sm:$0xff] }
 0x573   :  { %2756 = vmatpush1.bf16.msra.mxu0 %v1139_v58  ;;  %2920 = vmatpush1.bf16.msra.mxu1 %v1141_v59  ;;  %v1318_v58 = vld [vmem:[#allocation4 + $0xad8] sm:$0xff]  ;;  %v1315_v59 = vld [vmem:[#allocation4 + $0xac0] sm:$0xff] }
 0x574   :  { %2757 = vmatprep.subr.bf16.mxu0 %v1156_v62  ;;  %2921 = vmatprep.subr.bf16.mxu1 %v1158_v63  ;;  %v1317_v62 = vld [vmem:[#allocation4 + $0xad0] sm:$0xff]  ;;  %v1332_v63 = vld [vmem:[#allocation4 + $0xb48] sm:$0xff] }
 0x577   :  { %2758 = vmatpush1.bf16.msra.mxu0 %v1155_v2  ;;  %2922 = vmatpush1.bf16.msra.mxu1 %v1157_v3  ;;  %v1334_v2 = vld [vmem:[#allocation4 + $0xb58] sm:$0xff]  ;;  %v1331_v3 = vld [vmem:[#allocation4 + $0xb40] sm:$0xff] }
 0x578   :  { %2759 = vmatprep.subr.bf16.mxu0 %v1172_v4  ;;  %2923 = vmatprep.subr.bf16.mxu1 %v1174_v5  ;;  %v1333_v4 = vld [vmem:[#allocation4 + $0xb50] sm:$0xff]  ;;  %v1348_v5 = vld [vmem:[#allocation4 + $0xbc8] sm:$0xff] }
 0x57b   :  { %2760 = vmatpush1.bf16.msra.mxu0 %v1171_v8  ;;  %2924 = vmatpush1.bf16.msra.mxu1 %v1173_v9  ;;  %v1350_v8 = vld [vmem:[#allocation4 + $0xbd8] sm:$0xff]  ;;  %v1347_v9 = vld [vmem:[#allocation4 + $0xbc0] sm:$0xff] }
 0x57c   :  { %2761 = vmatprep.subr.bf16.mxu0 %v1188_v16  ;;  %2925 = vmatprep.subr.bf16.mxu1 %v1190_v18  ;;  %v1349_v16 = vld [vmem:[#allocation4 + $0xbd0] sm:$0xff]  ;;  %v1364_v18 = vld [vmem:[#allocation4 + $0xc48] sm:$0xff] }
 0x57f   :  { %2762 = vmatpush1.bf16.msra.mxu0 %v1187_v19  ;;  %2926 = vmatpush1.bf16.msra.mxu1 %v1189_v20  ;;  %v1366_v19 = vld [vmem:[#allocation4 + $0xc58] sm:$0xff]  ;;  %v1363_v20 = vld [vmem:[#allocation4 + $0xc40] sm:$0xff] }
 0x580   :  { %2763 = vmatprep.subr.bf16.mxu0 %v1204_v15  ;;  %2927 = vmatprep.subr.bf16.mxu1 %v1206_v11  ;;  %v1365_v15 = vld [vmem:[#allocation4 + $0xc50] sm:$0xff]  ;;  %v1380_v11 = vld [vmem:[#allocation4 + $0xcc8] sm:$0xff] }
 0x583   :  { %2764 = vmatpush1.bf16.msra.mxu0 %v1203_v23  ;;  %2928 = vmatpush1.bf16.msra.mxu1 %v1205_v24  ;;  %v1382_v23 = vld [vmem:[#allocation4 + $0xcd8] sm:$0xff]  ;;  %v1379_v24 = vld [vmem:[#allocation4 + $0xcc0] sm:$0xff] }
 0x584   :  { %2765 = vmatprep.subr.bf16.mxu0 %v1220_v41  ;;  %2929 = vmatprep.subr.bf16.mxu1 %v1222_v43  ;;  %v1381_v41 = vld [vmem:[#allocation4 + $0xcd0] sm:$0xff]  ;;  %v1396_v43 = vld [vmem:[#allocation4 + $0xd48] sm:$0xff] }
 0x587   :  { %2766 = vmatpush1.bf16.msra.mxu0 %v1219_v25  ;;  %2930 = vmatpush1.bf16.msra.mxu1 %v1221_v26  ;;  %v1398_v25 = vld [vmem:[#allocation4 + $0xd58] sm:$0xff]  ;;  %v1395_v26 = vld [vmem:[#allocation4 + $0xd40] sm:$0xff] }
 0x588   :  { %2776 = vmatprep.subr.bf16.mxu0 %v1236_v27  ;;  %2940 = vmatprep.subr.bf16.mxu1 %v1238_v29  ;;  %v1397_v27 = vld [vmem:[#allocation4 + $0xd50] sm:$0xff]  ;;  %v1412_v29 = vld [vmem:[#allocation4 + $0xdc8] sm:$0xff] }
 0x58a   :  { %2768 = vmatmul.mubr.bf16.vlgmr.msra.gmra.mrb[20].mxu0 %v8040_v14  ;;  %2932 = vmatmul.mubr.bf16.vlgmr.msra.gmra.mrb[20].mxu1 %v8040_v14 }
 0x58b   :  { %2777 = vmatpush1.bf16.msra.mxu0 %v1235_v31  ;;  %2941 = vmatpush1.bf16.msra.mxu1 %v1237_v33  ;;  %v1414_v31 = vld [vmem:[#allocation4 + $0xdd8] sm:$0xff]  ;;  %v1411_v33 = vld [vmem:[#allocation4 + $0xdc0] sm:$0xff] }
 0x58c   :  { %2778 = vmatprep.subr.bf16.mxu0 %v1252_v17  ;;  %2942 = vmatprep.subr.bf16.mxu1 %v1254_v40  ;;  %v1413_v17 = vld [vmem:[#allocation4 + $0xdd0] sm:$0xff]  ;;  %v1428_v40 = vld [vmem:[#allocation4 + $0xe48] sm:$0xff] }
 0x58d   :  { %2808 = vmatprep.mubr.bf16.mxu0 %v8045_v21  ;;  %2972 = vmatprep.mubr.bf16.mxu1 %v8045_v21 }
 0x58f   :  { %2779 = vmatpush1.bf16.msra.mxu0 %v1251_v22  ;;  %2943 = vmatpush1.bf16.msra.mxu1 %v1253_v39  ;;  %v1430_v22 = vld [vmem:[#allocation4 + $0xe58] sm:$0xff]  ;;  %v1427_v39 = vld [vmem:[#allocation4 + $0xe40] sm:$0xff] }
 0x590   :  { %2780 = vmatprep.subr.bf16.mxu0 %v1268_v13  ;;  %2944 = vmatprep.subr.bf16.mxu1 %v1270_v42  ;;  %v1429_v13 = vld [vmem:[#allocation4 + $0xe50] sm:$0xff]  ;;  %v1444_v42 = vld [vmem:[#allocation4 + $0xec8] sm:$0xff] }
 0x593   :  { %2781 = vmatpush1.bf16.msra.mxu0 %v1267_v44  ;;  %2945 = vmatpush1.bf16.msra.mxu1 %v1269_v32  ;;  %v1446_v44 = vld [vmem:[#allocation4 + $0xed8] sm:$0xff]  ;;  %v1443_v32 = vld [vmem:[#allocation4 + $0xec0] sm:$0xff] }
 0x594   :  { %2782 = vmatprep.subr.bf16.mxu0 %v1284_v48  ;;  %2946 = vmatprep.subr.bf16.mxu1 %v1286_v46  ;;  %v1445_v48 = vld [vmem:[#allocation4 + $0xed0] sm:$0xff]  ;;  %v1460_v46 = vld [vmem:[#allocation4 + $0xf48] sm:$0xff] }
 0x597   :  { %2783 = vmatpush1.bf16.msra.mxu0 %v1283_v47  ;;  %2947 = vmatpush1.bf16.msra.mxu1 %v1285_v50  ;;  %v1462_v47 = vld [vmem:[#allocation4 + $0xf58] sm:$0xff]  ;;  %v1459_v50 = vld [vmem:[#allocation4 + $0xf40] sm:$0xff] }
 0x598   :  { %2784 = vmatprep.subr.bf16.mxu0 %v1300_v52  ;;  %2948 = vmatprep.subr.bf16.mxu1 %v1302_v53  ;;  %v1461_v52 = vld [vmem:[#allocation4 + $0xf50] sm:$0xff]  ;;  %v1476_v53 = vld [vmem:[#allocation4 + $0xfc8] sm:$0xff] }
 0x59b   :  { %2785 = vmatpush1.bf16.msra.mxu0 %v1299_v54  ;;  %2949 = vmatpush1.bf16.msra.mxu1 %v1301_v55  ;;  %v1478_v54 = vld [vmem:[#allocation4 + $0xfd8] sm:$0xff]  ;;  %v1475_v55 = vld [vmem:[#allocation4 + $0xfc0] sm:$0xff] }
 0x59c   :  { %2786 = vmatprep.subr.bf16.mxu0 %v1316_v12  ;;  %2950 = vmatprep.subr.bf16.mxu1 %v1318_v58  ;;  %v1477_v12 = vld [vmem:[#allocation4 + $0xfd0] sm:$0xff]  ;;  %v1492_v58 = vld [vmem:[#allocation4 + $0x1048] sm:$0xff] }
 0x59f   :  { %2787 = vmatpush1.bf16.msra.mxu0 %v1315_v59  ;;  %2951 = vmatpush1.bf16.msra.mxu1 %v1317_v62  ;;  %v1494_v59 = vld [vmem:[#allocation4 + $0x1058] sm:$0xff]  ;;  %v1491_v62 = vld [vmem:[#allocation4 + $0x1040] sm:$0xff] }
 0x5a0   :  { %2788 = vmatprep.subr.bf16.mxu0 %v1332_v63  ;;  %2952 = vmatprep.subr.bf16.mxu1 %v1334_v2  ;;  %v1493_v63 = vld [vmem:[#allocation4 + $0x1050] sm:$0xff]  ;;  %v1508_v2 = vld [vmem:[#allocation4 + $0x10c8] sm:$0xff] }
 0x5a3   :  { %2789 = vmatpush1.bf16.msra.mxu0 %v1331_v3  ;;  %2953 = vmatpush1.bf16.msra.mxu1 %v1333_v4  ;;  %v1510_v3 = vld [vmem:[#allocation4 + $0x10d8] sm:$0xff]  ;;  %v1507_v4 = vld [vmem:[#allocation4 + $0x10c0] sm:$0xff] }
 0x5a4   :  { %2790 = vmatprep.subr.bf16.mxu0 %v1348_v5  ;;  %2954 = vmatprep.subr.bf16.mxu1 %v1350_v8  ;;  %v1509_v5 = vld [vmem:[#allocation4 + $0x10d0] sm:$0xff]  ;;  %v1524_v8 = vld [vmem:[#allocation4 + $0x1148] sm:$0xff] }
 0x5a7   :  { %2791 = vmatpush1.bf16.msra.mxu0 %v1347_v9  ;;  %2955 = vmatpush1.bf16.msra.mxu1 %v1349_v16  ;;  %v1526_v9 = vld [vmem:[#allocation4 + $0x1158] sm:$0xff]  ;;  %v1523_v16 = vld [vmem:[#allocation4 + $0x1140] sm:$0xff] }
 0x5a8   :  { %2792 = vmatprep.subr.bf16.mxu0 %v1364_v18  ;;  %2956 = vmatprep.subr.bf16.mxu1 %v1366_v19  ;;  %v1525_v18 = vld [vmem:[#allocation4 + $0x1150] sm:$0xff]  ;;  %v1540_v19 = vld [vmem:[#allocation4 + $0x11c8] sm:$0xff] }
 0x5ab   :  { %2793 = vmatpush1.bf16.msra.mxu0 %v1363_v20  ;;  %2957 = vmatpush1.bf16.msra.mxu1 %v1365_v15  ;;  %v1542_v20 = vld [vmem:[#allocation4 + $0x11d8] sm:$0xff]  ;;  %v1539_v15 = vld [vmem:[#allocation4 + $0x11c0] sm:$0xff] }
 0x5ac   :  { %2794 = vmatprep.subr.bf16.mxu0 %v1380_v11  ;;  %2958 = vmatprep.subr.bf16.mxu1 %v1382_v23  ;;  %v1541_v11 = vld [vmem:[#allocation4 + $0x11d0] sm:$0xff]  ;;  %v1556_v23 = vld [vmem:[#allocation4 + $0x1248] sm:$0xff] }
 0x5af   :  { %2795 = vmatpush1.bf16.msra.mxu0 %v1379_v24  ;;  %2959 = vmatpush1.bf16.msra.mxu1 %v1381_v41  ;;  %v1558_v24 = vld [vmem:[#allocation4 + $0x1258] sm:$0xff]  ;;  %v1555_v41 = vld [vmem:[#allocation4 + $0x1240] sm:$0xff] }
 0x5b0   :  { %2796 = vmatprep.subr.bf16.mxu0 %v1396_v43  ;;  %2960 = vmatprep.subr.bf16.mxu1 %v1398_v25  ;;  %v1557_v43 = vld [vmem:[#allocation4 + $0x1250] sm:$0xff]  ;;  %v1572_v25 = vld [vmem:[#allocation4 + $0x12c8] sm:$0xff] }
 0x5b3   :  { %2797 = vmatpush1.bf16.msra.mxu0 %v1395_v26  ;;  %2961 = vmatpush1.bf16.msra.mxu1 %v1397_v27  ;;  %v1574_v26 = vld [vmem:[#allocation4 + $0x12d8] sm:$0xff]  ;;  %v1571_v27 = vld [vmem:[#allocation4 + $0x12c0] sm:$0xff] }
 0x5b4   :  { %2798 = vmatprep.subr.bf16.mxu0 %v1412_v29  ;;  %2962 = vmatprep.subr.bf16.mxu1 %v1414_v31  ;;  %v1573_v29 = vld [vmem:[#allocation4 + $0x12d0] sm:$0xff]  ;;  %v1588_v31 = vld [vmem:[#allocation4 + $0x1348] sm:$0xff] }
 0x5b7   :  { %2799 = vmatpush1.bf16.msra.mxu0 %v1411_v33  ;;  %2963 = vmatpush1.bf16.msra.mxu1 %v1413_v17  ;;  %v1590_v33 = vld [vmem:[#allocation4 + $0x1358] sm:$0xff]  ;;  %v1587_v17 = vld [vmem:[#allocation4 + $0x1340] sm:$0xff] }
 0x5b8   :  { %2800 = vmatprep.subr.bf16.mxu0 %v1428_v40  ;;  %2964 = vmatprep.subr.bf16.mxu1 %v1430_v22  ;;  %v1589_v40 = vld [vmem:[#allocation4 + $0x1350] sm:$0xff]  ;;  %v1604_v22 = vld [vmem:[#allocation4 + $0x13c8] sm:$0xff] }
 0x5bb   :  { %2801 = vmatpush1.bf16.msra.mxu0 %v1427_v39  ;;  %2965 = vmatpush1.bf16.msra.mxu1 %v1429_v13  ;;  %v1606_v39 = vld [vmem:[#allocation4 + $0x13d8] sm:$0xff]  ;;  %v1603_v13 = vld [vmem:[#allocation4 + $0x13c0] sm:$0xff] }
 0x5bc   :  { %2802 = vmatprep.subr.bf16.mxu0 %v1444_v42  ;;  %2966 = vmatprep.subr.bf16.mxu1 %v1446_v44  ;;  %v1605_v42 = vld [vmem:[#allocation4 + $0x13d0] sm:$0xff]  ;;  %v1620_v44 = vld [vmem:[#allocation4 + $0x1448] sm:$0xff] }
 0x5bf   :  { %2803 = vmatpush1.bf16.msra.mxu0 %v1443_v32  ;;  %2967 = vmatpush1.bf16.msra.mxu1 %v1445_v48  ;;  %v1622_v32 = vld [vmem:[#allocation4 + $0x1458] sm:$0xff]  ;;  %v1619_v48 = vld [vmem:[#allocation4 + $0x1440] sm:$0xff] }
 0x5c0   :  { %2804 = vmatprep.subr.bf16.mxu0 %v1460_v46  ;;  %2968 = vmatprep.subr.bf16.mxu1 %v1462_v47  ;;  %v1621_v46 = vld [vmem:[#allocation4 + $0x1450] sm:$0xff]  ;;  %v1636_v47 = vld [vmem:[#allocation4 + $0x14c8] sm:$0xff] }
 0x5c3   :  { %2805 = vmatpush1.bf16.msra.mxu0 %v1459_v50  ;;  %2969 = vmatpush1.bf16.msra.mxu1 %v1461_v52  ;;  %v1638_v50 = vld [vmem:[#allocation4 + $0x14d8] sm:$0xff]  ;;  %v1635_v52 = vld [vmem:[#allocation4 + $0x14c0] sm:$0xff] }
 0x5c4   :  { %2806 = vmatprep.subr.bf16.mxu0 %v1476_v53  ;;  %2970 = vmatprep.subr.bf16.mxu1 %v1478_v54  ;;  %v1637_v53 = vld [vmem:[#allocation4 + $0x14d0] sm:$0xff]  ;;  %v1652_v54 = vld [vmem:[#allocation4 + $0x1548] sm:$0xff] }
 0x5c7   :  { %2807 = vmatpush1.bf16.msra.mxu0 %v1475_v55  ;;  %2971 = vmatpush1.bf16.msra.mxu1 %v1477_v12  ;;  %v1654_v55 = vld [vmem:[#allocation4 + $0x1558] sm:$0xff]  ;;  %v1651_v12 = vld [vmem:[#allocation4 + $0x1540] sm:$0xff] }
 0x5c8   :  { %2817 = vmatprep.subr.bf16.mxu0 %v1492_v58  ;;  %2981 = vmatprep.subr.bf16.mxu1 %v1494_v59  ;;  %v1653_v58 = vld [vmem:[#allocation4 + $0x1550] sm:$0xff]  ;;  %v1668_v59 = vld [vmem:[#allocation4 + $0x15c8] sm:$0xff] }
 0x5ca   :  { %2809 = vmatmul.mubr.bf16.vlgmr.msra.gmra.mrb[20].mxu0 %v8054_v28  ;;  %2973 = vmatmul.mubr.bf16.vlgmr.msra.gmra.mrb[20].mxu1 %v8054_v28 }
 0x5cb   :  { %2818 = vmatpush1.bf16.msra.mxu0 %v1491_v62  ;;  %2982 = vmatpush1.bf16.msra.mxu1 %v1493_v63  ;;  %v1670_v62 = vld [vmem:[#allocation4 + $0x15d8] sm:$0xff]  ;;  %v1667_v63 = vld [vmem:[#allocation4 + $0x15c0] sm:$0xff] }
 0x5cc   :  { %2819 = vmatprep.subr.bf16.mxu0 %v1508_v2  ;;  %2983 = vmatprep.subr.bf16.mxu1 %v1510_v3  ;;  %v1669_v2 = vld [vmem:[#allocation4 + $0x15d0] sm:$0xff]  ;;  %v1684_v3 = vld [vmem:[#allocation4 + $0x1648] sm:$0xff] }
 0x5cd   :  { %2849 = vmatprep.mubr.bf16.mxu0 %v8059_v34  ;;  %3013 = vmatprep.mubr.bf16.mxu1 %v8059_v34 }
 0x5cf   :  { %2820 = vmatpush1.bf16.msra.mxu0 %v1507_v4  ;;  %2984 = vmatpush1.bf16.msra.mxu1 %v1509_v5  ;;  %v1686_v4 = vld [vmem:[#allocation4 + $0x1658] sm:$0xff]  ;;  %v1683_v5 = vld [vmem:[#allocation4 + $0x1640] sm:$0xff] }
 0x5d0   :  { %2821 = vmatprep.subr.bf16.mxu0 %v1524_v8  ;;  %2985 = vmatprep.subr.bf16.mxu1 %v1526_v9  ;;  %v1685_v8 = vld [vmem:[#allocation4 + $0x1650] sm:$0xff]  ;;  %v1700_v9 = vld [vmem:[#allocation4 + $0x16c8] sm:$0xff] }
 0x5d3   :  { %2822 = vmatpush1.bf16.msra.mxu0 %v1523_v16  ;;  %2986 = vmatpush1.bf16.msra.mxu1 %v1525_v18  ;;  %v1702_v16 = vld [vmem:[#allocation4 + $0x16d8] sm:$0xff]  ;;  %v1699_v18 = vld [vmem:[#allocation4 + $0x16c0] sm:$0xff] }
 0x5d4   :  { %2823 = vmatprep.subr.bf16.mxu0 %v1540_v19  ;;  %2987 = vmatprep.subr.bf16.mxu1 %v1542_v20  ;;  %v1701_v19 = vld [vmem:[#allocation4 + $0x16d0] sm:$0xff]  ;;  %v1716_v20 = vld [vmem:[#allocation4 + $0x1748] sm:$0xff] }
 0x5d7   :  { %2824 = vmatpush1.bf16.msra.mxu0 %v1539_v15  ;;  %2988 = vmatpush1.bf16.msra.mxu1 %v1541_v11  ;;  %v1718_v15 = vld [vmem:[#allocation4 + $0x1758] sm:$0xff]  ;;  %v1715_v11 = vld [vmem:[#allocation4 + $0x1740] sm:$0xff] }
 0x5d8   :  { %2825 = vmatprep.subr.bf16.mxu0 %v1556_v23  ;;  %2989 = vmatprep.subr.bf16.mxu1 %v1558_v24  ;;  %v1717_v23 = vld [vmem:[#allocation4 + $0x1750] sm:$0xff]  ;;  %v1732_v24 = vld [vmem:[#allocation4 + $0x17c8] sm:$0xff] }
 0x5db   :  { %2826 = vmatpush1.bf16.msra.mxu0 %v1555_v41  ;;  %2990 = vmatpush1.bf16.msra.mxu1 %v1557_v43  ;;  %v1734_v41 = vld [vmem:[#allocation4 + $0x17d8] sm:$0xff]  ;;  %v1731_v43 = vld [vmem:[#allocation4 + $0x17c0] sm:$0xff] }
 0x5dc   :  { %2827 = vmatprep.subr.bf16.mxu0 %v1572_v25  ;;  %2991 = vmatprep.subr.bf16.mxu1 %v1574_v26  ;;  %v1733_v25 = vld [vmem:[#allocation4 + $0x17d0] sm:$0xff]  ;;  %v1748_v26 = vld [vmem:[#allocation4 + $0x1848] sm:$0xff] }
 0x5df   :  { %2828 = vmatpush1.bf16.msra.mxu0 %v1571_v27  ;;  %2992 = vmatpush1.bf16.msra.mxu1 %v1573_v29  ;;  %v1750_v27 = vld [vmem:[#allocation4 + $0x1858] sm:$0xff]  ;;  %v1747_v29 = vld [vmem:[#allocation4 + $0x1840] sm:$0xff] }
 0x5e0   :  { %2829 = vmatprep.subr.bf16.mxu0 %v1588_v31  ;;  %2993 = vmatprep.subr.bf16.mxu1 %v1590_v33  ;;  %v1749_v31 = vld [vmem:[#allocation4 + $0x1850] sm:$0xff]  ;;  %v1764_v33 = vld [vmem:[#allocation4 + $0x18c8] sm:$0xff] }
 0x5e3   :  { %2830 = vmatpush1.bf16.msra.mxu0 %v1587_v17  ;;  %2994 = vmatpush1.bf16.msra.mxu1 %v1589_v40  ;;  %v1766_v17 = vld [vmem:[#allocation4 + $0x18d8] sm:$0xff]  ;;  %v1763_v40 = vld [vmem:[#allocation4 + $0x18c0] sm:$0xff] }
 0x5e4   :  { %2831 = vmatprep.subr.bf16.mxu0 %v1604_v22  ;;  %2995 = vmatprep.subr.bf16.mxu1 %v1606_v39  ;;  %v1765_v22 = vld [vmem:[#allocation4 + $0x18d0] sm:$0xff]  ;;  %v1780_v39 = vld [vmem:[#allocation4 + $0x1948] sm:$0xff] }
 0x5e7   :  { %2832 = vmatpush1.bf16.msra.mxu0 %v1603_v13  ;;  %2996 = vmatpush1.bf16.msra.mxu1 %v1605_v42  ;;  %v1782_v13 = vld [vmem:[#allocation4 + $0x1958] sm:$0xff]  ;;  %v1779_v42 = vld [vmem:[#allocation4 + $0x1940] sm:$0xff] }
 0x5e8   :  { %2833 = vmatprep.subr.bf16.mxu0 %v1620_v44  ;;  %2997 = vmatprep.subr.bf16.mxu1 %v1622_v32  ;;  %v1781_v44 = vld [vmem:[#allocation4 + $0x1950] sm:$0xff]  ;;  %v1796_v32 = vld [vmem:[#allocation4 + $0x19c8] sm:$0xff] }
 0x5eb   :  { %2834 = vmatpush1.bf16.msra.mxu0 %v1619_v48  ;;  %2998 = vmatpush1.bf16.msra.mxu1 %v1621_v46  ;;  %v1798_v48 = vld [vmem:[#allocation4 + $0x19d8] sm:$0xff]  ;;  %v1795_v46 = vld [vmem:[#allocation4 + $0x19c0] sm:$0xff] }
 0x5ec   :  { %2835 = vmatprep.subr.bf16.mxu0 %v1636_v47  ;;  %2999 = vmatprep.subr.bf16.mxu1 %v1638_v50  ;;  %v1797_v47 = vld [vmem:[#allocation4 + $0x19d0] sm:$0xff]  ;;  %v1812_v50 = vld [vmem:[#allocation4 + $0x1a48] sm:$0xff] }
 0x5ef   :  { %2836 = vmatpush1.bf16.msra.mxu0 %v1635_v52  ;;  %3000 = vmatpush1.bf16.msra.mxu1 %v1637_v53  ;;  %v1814_v52 = vld [vmem:[#allocation4 + $0x1a58] sm:$0xff]  ;;  %v2017_v53 = vsub.s32 4, %v8100_v30 }
 0x5f0   :  { %2837 = vmatprep.subr.bf16.mxu0 %v1652_v54  ;;  %3001 = vmatprep.subr.bf16.mxu1 %v1654_v55  ;;  %v2025_v54 = vsub.s32 6, %v8100_v30  ;;  %v2021_v55 = vsub.s32 5, %v8100_v30 }
 0x5f3   :  { %2838 = vmatpush1.bf16.msra.mxu0 %v1651_v12  ;;  %3002 = vmatpush1.bf16.msra.mxu1 %v1653_v58  ;;  %v2029_v12 = vsub.s32 7, %v8100_v30  ;;  %v1811_v58 = vld [vmem:[#allocation4 + $0x1a40] sm:$0xff] }
 0x5f4   :  { %2839 = vmatprep.subr.bf16.mxu0 %v1668_v59  ;;  %3003 = vmatprep.subr.bf16.mxu1 %v1670_v62  ;;  %v1813_v59 = vld [vmem:[#allocation4 + $0x1a50] sm:$0xff]  ;;  %v1828_v62 = vld [vmem:[#allocation4 + $0x1ac8] sm:$0xff] }
 0x5f7   :  { %2840 = vmatpush1.bf16.msra.mxu0 %v1667_v63  ;;  %3004 = vmatpush1.bf16.msra.mxu1 %v1669_v2  ;;  %v1830_v63 = vld [vmem:[#allocation4 + $0x1ad8] sm:$0xff]  ;;  %v7568_v2 = vld [vmem:[#allocation10] sm:$0xff] }
 0x5f8   :  { %2841 = vmatprep.subr.bf16.mxu0 %v1684_v3  ;;  %3005 = vmatprep.subr.bf16.mxu1 %v1686_v4  ;;  %v2018_v3 = vrot.slane %v7568_v2, %v2017_v53  ;;  %v2026_v4 = vrot.slane %v7568_v2, %v2025_v54 }
 0x5fb   :  { %2842 = vmatpush1.bf16.msra.mxu0 %v1683_v5  ;;  %3006 = vmatpush1.bf16.msra.mxu1 %v1685_v8  ;;  %v2022_v5 = vrot.slane %v7568_v2, %v2021_v55  ;;  %v2030_v8 = vrot.slane %v7568_v2, %v2029_v12  ;;  %v1908_v2 = vld [vmem:[#allocation4 + $0x1d48] sm:$0xff] }
 0x5fc   :  { %2843 = vmatprep.subr.bf16.mxu0 %v1700_v9  ;;  %3007 = vmatprep.subr.bf16.mxu1 %v1702_v16  ;;  %v1827_v9 = vld [vmem:[#allocation4 + $0x1ac0] sm:$0xff]  ;;  %v1829_v16 = vld [vmem:[#allocation4 + $0x1ad0] sm:$0xff] }
 0x5ff   :  { %2844 = vmatpush1.bf16.msra.mxu0 %v1699_v18  ;;  %3008 = vmatpush1.bf16.msra.mxu1 %v1701_v19 }
 0x600   :  { %2845 = vmatprep.subr.bf16.mxu0 %v1716_v20  ;;  %3009 = vmatprep.subr.bf16.mxu1 %v1718_v15  ;;  %v1844_v20 = vld [vmem:[#allocation4 + $0x1b48] sm:$0xff]  ;;  %v1846_v15 = vld [vmem:[#allocation4 + $0x1b58] sm:$0xff] }
 0x603   :  { %2846 = vmatpush1.bf16.msra.mxu0 %v1715_v11  ;;  %3010 = vmatpush1.bf16.msra.mxu1 %v1717_v23 }
 0x604   :  { %2847 = vmatprep.subr.bf16.mxu0 %v1732_v24  ;;  %3011 = vmatprep.subr.bf16.mxu1 %v1734_v41 }
 0x607   :  { %2848 = vmatpush1.bf16.msra.mxu0 %v1731_v43  ;;  %3012 = vmatpush1.bf16.msra.mxu1 %v1733_v25 }
 0x608   :  { %2858 = vmatprep.subr.bf16.mxu0 %v1748_v26  ;;  %3022 = vmatprep.subr.bf16.mxu1 %v1750_v27 }
 0x60a   :  { %2850 = vmatmul.mubr.bf16.vlgmr.msra.gmra.mrb[20].mxu0 %v8068_v38  ;;  %3014 = vmatmul.mubr.bf16.vlgmr.msra.gmra.mrb[20].mxu1 %v8068_v38 }
 0x60b   :  { %2859 = vmatpush1.bf16.msra.mxu0 %v1747_v29  ;;  %3023 = vmatpush1.bf16.msra.mxu1 %v1749_v31 }
 0x60c   :  { %2860 = vmatprep.subr.bf16.mxu0 %v1764_v33  ;;  %3024 = vmatprep.subr.bf16.mxu1 %v1766_v17 }
 0x60d   :  { %2890 = vmatprep.mubr.bf16.mxu0 %v8073_v45  ;;  %3054 = vmatprep.mubr.bf16.mxu1 %v8073_v45 }
 0x60f   :  { %2861 = vmatpush1.bf16.msra.mxu0 %v1763_v40  ;;  %3025 = vmatpush1.bf16.msra.mxu1 %v1765_v22  ;;  %v1843_v40 = vld [vmem:[#allocation4 + $0x1b40] sm:$0xff]  ;;  %v1845_v22 = vld [vmem:[#allocation4 + $0x1b50] sm:$0xff] }
 0x610   :  { %2862 = vmatprep.subr.bf16.mxu0 %v1780_v39  ;;  %3026 = vmatprep.subr.bf16.mxu1 %v1782_v13 }
 0x613   :  { %2863 = vmatpush1.bf16.msra.mxu0 %v1779_v42  ;;  %3027 = vmatpush1.bf16.msra.mxu1 %v1781_v44  ;;  %v1860_v42 = vld [vmem:[#allocation4 + $0x1bc8] sm:$0xff]  ;;  %v1862_v44 = vld [vmem:[#allocation4 + $0x1bd8] sm:$0xff] }
 0x614   :  { %2864 = vmatprep.subr.bf16.mxu0 %v1796_v32  ;;  %3028 = vmatprep.subr.bf16.mxu1 %v1798_v48  ;;  %v1859_v32 = vld [vmem:[#allocation4 + $0x1bc0] sm:$0xff]  ;;  %v1861_v48 = vld [vmem:[#allocation4 + $0x1bd0] sm:$0xff] }
 0x617   :  { %2865 = vmatpush1.bf16.msra.mxu0 %v1795_v46  ;;  %3029 = vmatpush1.bf16.msra.mxu1 %v1797_v47  ;;  %v1876_v46 = vld [vmem:[#allocation4 + $0x1c48] sm:$0xff]  ;;  %v1878_v47 = vld [vmem:[#allocation4 + $0x1c58] sm:$0xff] }
 0x618   :  { %2866 = vmatprep.subr.bf16.mxu0 %v1812_v50  ;;  %3030 = vmatprep.subr.bf16.mxu1 %v1814_v52  ;;  %v1875_v50 = vld [vmem:[#allocation4 + $0x1c40] sm:$0xff]  ;;  %v1877_v52 = vld [vmem:[#allocation4 + $0x1c50] sm:$0xff] }
 0x61b   :  { %2867 = vmatpush1.bf16.msra.mxu0 %v1811_v58  ;;  %3031 = vmatpush1.bf16.msra.mxu1 %v1813_v59  ;;  %v1892_v58 = vld [vmem:[#allocation4 + $0x1cc8] sm:$0xff]  ;;  %v1894_v59 = vld [vmem:[#allocation4 + $0x1cd8] sm:$0xff] }
 0x61c   :  { %2868 = vmatprep.subr.bf16.mxu0 %v1828_v62  ;;  %3032 = vmatprep.subr.bf16.mxu1 %v1830_v63  ;;  %v1891_v62 = vld [vmem:[#allocation4 + $0x1cc0] sm:$0xff]  ;;  %v1893_v63 = vld [vmem:[#allocation4 + $0x1cd0] sm:$0xff] }
 0x61d   :  { %v2564_v18 = vpop.f32.mrb[16].mxu0  ;;  %v2728_v19 = vpop.f32.mrb[16].mxu1 }
 0x61e   :  { %v8154_v11 = vadd.f32 %v2564_v18, %v2018_v3  ;;  %v8156_v23 = vadd.f32 %v2728_v19, %v2026_v4  ;;  %v2566_v24 = vpop.f32.mrb[17].mxu0  ;;  %v2730_v41 = vpop.f32.mrb[17].mxu1  ;;  %v1910_v3 = vld [vmem:[#allocation4 + $0x1d58] sm:$0xff]  ;;  %v1907_v4 = vld [vmem:[#allocation4 + $0x1d40] sm:$0xff]  ;;  %v1925_v18 = vld [vmem:[#allocation4 + $0x1dd0] sm:$0xff] }
 0x61f   :  { %v8158_v43 = vadd.f32 %v2566_v24, %v2022_v5  ;;  %v8160_v25 = vadd.f32 %v2730_v41, %v2030_v8  ;;  %v2568_v26 = vpop.f32.mrb[18].mxu0  ;;  %v2732_v27 = vpop.f32.mrb[18].mxu1  ;;  %2869 = vmatpush1.bf16.msra.mxu0 %v1827_v9  ;;  %3033 = vmatpush1.bf16.msra.mxu1 %v1829_v16  ;;  %v1909_v5 = vld [vmem:[#allocation4 + $0x1d50] sm:$0xff]  ;;  %v1924_v8 = vld [vmem:[#allocation4 + $0x1dc8] sm:$0xff]  ;;  %v1926_v9 = vld [vmem:[#allocation4 + $0x1dd8] sm:$0xff] }
 0x620   :  { %v3395_v29 = vmax.f32 %v8154_v11, 0.0  ;;  %v3397_v31 = vmax.f32 %v8156_v23, 0.0  ;;  %v2569_v33 = vpop.f32.mrb[19].mxu0  ;;  %v2733_v17 = vpop.f32.mrb[19].mxu1  ;;  %2870 = vmatprep.subr.bf16.mxu0 %v1844_v20  ;;  %3034 = vmatprep.subr.bf16.mxu1 %v1846_v15  ;;  %v1923_v16 = vld [vmem:[#allocation4 + $0x1dc0] sm:$0xff]  ;;  %v1940_v19 = vld [vmem:[#allocation4 + $0x1e48] sm:$0xff] }
 0x621   :  { %v3396_v39 = vmax.f32 %v8158_v43, 0.0  ;;  %v3398_v13 = vmax.f32 %v8160_v25, 0.0  ;;  %v1942_v20 = vld [vmem:[#allocation4 + $0x1e58] sm:$0xff]  ;;  %v1939_v15 = vld [vmem:[#allocation4 + $0x1e40] sm:$0xff]  ;;  %v1941_v24 = vld [vmem:[#allocation4 + $0x1e50] sm:$0xff] }
 0x622   :  { %v1956_v41 = vld [vmem:[#allocation4 + $0x1ec8] sm:$0xff]  ;;  %v1958_v26 = vld [vmem:[#allocation4 + $0x1ed8] sm:$0xff]  ;;  %v1955_v27 = vld [vmem:[#allocation4 + $0x1ec0] sm:$0xff] }
 0x623   :  { %2871 = vmatpush1.bf16.msra.mxu0 %v1843_v40  ;;  %3035 = vmatpush1.bf16.msra.mxu1 %v1845_v22  ;;  %v1957_v33 = vld [vmem:[#allocation4 + $0x1ed0] sm:$0xff]  ;;  %v1972_v17 = vld [vmem:[#allocation4 + $0x1f48] sm:$0xff]  ;;  %v1974_v40 = vld [vmem:[#allocation4 + $0x1f58] sm:$0xff] }
 0x624   :  { %2872 = vmatprep.subr.bf16.mxu0 %v1860_v42  ;;  %3036 = vmatprep.subr.bf16.mxu1 %v1862_v44  ;;  %v1971_v22 = vld [vmem:[#allocation4 + $0x1f40] sm:$0xff]  ;;  %v1973_v42 = vld [vmem:[#allocation4 + $0x1f50] sm:$0xff]  ;;  %v1988_v44 = vld [vmem:[#allocation4 + $0x1fc8] sm:$0xff] }
 0x627   :  { %2873 = vmatpush1.bf16.msra.mxu0 %v1859_v32  ;;  %3037 = vmatpush1.bf16.msra.mxu1 %v1861_v48  ;;  %v1990_v32 = vld [vmem:[#allocation4 + $0x1fd8] sm:$0xff]  ;;  %v1987_v48 = vld [vmem:[#allocation4 + $0x1fc0] sm:$0xff] }
 0x628   :  { %2874 = vmatprep.subr.bf16.mxu0 %v1876_v46  ;;  %3038 = vmatprep.subr.bf16.mxu1 %v1878_v47  ;;  %v1989_v46 = vld [vmem:[#allocation4 + $0x1fd0] sm:$0xff]  ;;  %v984_v47 = vld [vmem:[#allocation4 + $0x68] sm:$0xff] }
 0x62b   :  { %2875 = vmatpush1.bf16.msra.mxu0 %v1875_v50  ;;  %3039 = vmatpush1.bf16.msra.mxu1 %v1877_v52  ;;  %v986_v50 = vld [vmem:[#allocation4 + $0x78] sm:$0xff]  ;;  %v983_v52 = vld [vmem:[#allocation4 + $0x60] sm:$0xff] }
 0x62c   :  { %2876 = vmatprep.subr.bf16.mxu0 %v1892_v58  ;;  %3040 = vmatprep.subr.bf16.mxu1 %v1894_v59  ;;  %v985_v58 = vld [vmem:[#allocation4 + $0x70] sm:$0xff]  ;;  %v1000_v59 = vld [vmem:[#allocation4 + $0xe8] sm:$0xff] }
 0x62f   :  { %2877 = vmatpush1.bf16.msra.mxu0 %v1891_v62  ;;  %3041 = vmatpush1.bf16.msra.mxu1 %v1893_v63  ;;  %v1002_v62 = vld [vmem:[#allocation4 + $0xf8] sm:$0xff]  ;;  %v999_v63 = vld [vmem:[#allocation4 + $0xe0] sm:$0xff] }
 0x630   :  { %2878 = vmatprep.subr.bf16.mxu0 %v1908_v2  ;;  %3042 = vmatprep.subr.bf16.mxu1 %v1910_v3  ;;  %v1001_v2 = vld [vmem:[#allocation4 + $0xf0] sm:$0xff]  ;;  %v1016_v3 = vld [vmem:[#allocation4 + $0x168] sm:$0xff] }
 0x633   :  { %2879 = vmatpush1.bf16.msra.mxu0 %v1907_v4  ;;  %3043 = vmatpush1.bf16.msra.mxu1 %v1909_v5  ;;  %v1018_v4 = vld [vmem:[#allocation4 + $0x178] sm:$0xff]  ;;  %v1015_v5 = vld [vmem:[#allocation4 + $0x160] sm:$0xff] }
 0x634   :  { %2880 = vmatprep.subr.bf16.mxu0 %v1924_v8  ;;  %3044 = vmatprep.subr.bf16.mxu1 %v1926_v9  ;;  %v1017_v8 = vld [vmem:[#allocation4 + $0x170] sm:$0xff]  ;;  %v1032_v9 = vld [vmem:[#allocation4 + $0x1e8] sm:$0xff] }
 0x637   :  { %2881 = vmatpush1.bf16.msra.mxu0 %v1923_v16  ;;  %3045 = vmatpush1.bf16.msra.mxu1 %v1925_v18  ;;  %v1034_v16 = vld [vmem:[#allocation4 + $0x1f8] sm:$0xff]  ;;  %v1031_v18 = vld [vmem:[#allocation4 + $0x1e0] sm:$0xff] }
 0x638   :  { %2882 = vmatprep.subr.bf16.mxu0 %v1940_v19  ;;  %3046 = vmatprep.subr.bf16.mxu1 %v1942_v20  ;;  %v1033_v19 = vld [vmem:[#allocation4 + $0x1f0] sm:$0xff]  ;;  %v1048_v20 = vld [vmem:[#allocation4 + $0x268] sm:$0xff] }
 0x63b   :  { %2883 = vmatpush1.bf16.msra.mxu0 %v1939_v15  ;;  %3047 = vmatpush1.bf16.msra.mxu1 %v1941_v24  ;;  %v1050_v15 = vld [vmem:[#allocation4 + $0x278] sm:$0xff]  ;;  %v1049_v24 = vld [vmem:[#allocation4 + $0x270] sm:$0xff] }
 0x63c   :  { %2884 = vmatprep.subr.bf16.mxu0 %v1956_v41  ;;  %3048 = vmatprep.subr.bf16.mxu1 %v1958_v26  ;;  %v1064_v41 = vld [vmem:[#allocation4 + $0x2e8] sm:$0xff]  ;;  %v1066_v26 = vld [vmem:[#allocation4 + $0x2f8] sm:$0xff] }
 0x63f   :  { %2885 = vmatpush1.bf16.msra.mxu0 %v1955_v27  ;;  %3049 = vmatpush1.bf16.msra.mxu1 %v1957_v33  ;;  %v1063_v27 = vld [vmem:[#allocation4 + $0x2e0] sm:$0xff]  ;;  %v1065_v33 = vld [vmem:[#allocation4 + $0x2f0] sm:$0xff] }
 0x640   :  { %2886 = vmatprep.subr.bf16.mxu0 %v1972_v17  ;;  %3050 = vmatprep.subr.bf16.mxu1 %v1974_v40  ;;  %v1080_v17 = vld [vmem:[#allocation4 + $0x368] sm:$0xff]  ;;  %v1082_v40 = vld [vmem:[#allocation4 + $0x378] sm:$0xff] }
 0x643   :  { %2887 = vmatpush1.bf16.msra.mxu0 %v1971_v22  ;;  %3051 = vmatpush1.bf16.msra.mxu1 %v1973_v42  ;;  %v1079_v22 = vld [vmem:[#allocation4 + $0x360] sm:$0xff]  ;;  %v1081_v42 = vld [vmem:[#allocation4 + $0x370] sm:$0xff] }
 0x644   :  { %2888 = vmatprep.subr.bf16.mxu0 %v1988_v44  ;;  %3052 = vmatprep.subr.bf16.mxu1 %v1990_v32  ;;  %v1096_v44 = vld [vmem:[#allocation4 + $0x3e8] sm:$0xff]  ;;  %v1098_v32 = vld [vmem:[#allocation4 + $0x3f8] sm:$0xff] }
 0x647   :  { %2889 = vmatpush1.bf16.msra.mxu0 %v1987_v48  ;;  %3053 = vmatpush1.bf16.msra.mxu1 %v1989_v46  ;;  %v1095_v48 = vld [vmem:[#allocation4 + $0x3e0] sm:$0xff]  ;;  %v1097_v46 = vld [vmem:[#allocation4 + $0x3f0] sm:$0xff] }
 0x648   :  { %3063 = vmatprep.subr.bf16.mxu0 %v984_v47  ;;  %3227 = vmatprep.subr.bf16.mxu1 %v986_v50  ;;  %v1112_v47 = vld [vmem:[#allocation4 + $0x468] sm:$0xff]  ;;  %v1114_v50 = vld [vmem:[#allocation4 + $0x478] sm:$0xff] }
 0x64a   :  { %2891 = vmatmul.mubr.bf16.vlgmr.msra.gmra.mrb[20].mxu0 %v8082_v51  ;;  %3055 = vmatmul.mubr.bf16.vlgmr.msra.gmra.mrb[20].mxu1 %v8082_v51 }
 0x64b   :  { %3064 = vmatpush1.bf16.msra.mxu0 %v983_v52  ;;  %3228 = vmatpush1.bf16.msra.mxu1 %v985_v58  ;;  %v1111_v52 = vld [vmem:[#allocation4 + $0x460] sm:$0xff]  ;;  %v1113_v58 = vld [vmem:[#allocation4 + $0x470] sm:$0xff] }
 0x64c   :  { %3065 = vmatprep.subr.bf16.mxu0 %v1000_v59  ;;  %3229 = vmatprep.subr.bf16.mxu1 %v1002_v62  ;;  %v1128_v59 = vld [vmem:[#allocation4 + $0x4e8] sm:$0xff]  ;;  %v1130_v62 = vld [vmem:[#allocation4 + $0x4f8] sm:$0xff] }
 0x64d   :  { %3095 = vmatprep.mubr.bf16.mxu0 %v8033_v56  ;;  %3259 = vmatprep.mubr.bf16.mxu1 %v8033_v56  ;;  %v1047_v56 = vld [vmem:[#allocation4 + $0x260] sm:$0xff] }
 0x64f   :  { %3066 = vmatpush1.bf16.msra.mxu0 %v999_v63  ;;  %3230 = vmatpush1.bf16.msra.mxu1 %v1001_v2  ;;  %v1127_v63 = vld [vmem:[#allocation4 + $0x4e0] sm:$0xff]  ;;  %v1129_v2 = vld [vmem:[#allocation4 + $0x4f0] sm:$0xff] }
 0x650   :  { %3067 = vmatprep.subr.bf16.mxu0 %v1016_v3  ;;  %3231 = vmatprep.subr.bf16.mxu1 %v1018_v4  ;;  %v1144_v3 = vld [vmem:[#allocation4 + $0x568] sm:$0xff]  ;;  %v1146_v4 = vld [vmem:[#allocation4 + $0x578] sm:$0xff] }
 0x653   :  { %3068 = vmatpush1.bf16.msra.mxu0 %v1015_v5  ;;  %3232 = vmatpush1.bf16.msra.mxu1 %v1017_v8  ;;  %v1143_v5 = vld [vmem:[#allocation4 + $0x560] sm:$0xff]  ;;  %v1145_v8 = vld [vmem:[#allocation4 + $0x570] sm:$0xff] }
 0x654   :  { %3069 = vmatprep.subr.bf16.mxu0 %v1032_v9  ;;  %3233 = vmatprep.subr.bf16.mxu1 %v1034_v16  ;;  %v1160_v9 = vld [vmem:[#allocation4 + $0x5e8] sm:$0xff]  ;;  %v1162_v16 = vld [vmem:[#allocation4 + $0x5f8] sm:$0xff] }
 0x657   :  { %3070 = vmatpush1.bf16.msra.mxu0 %v1031_v18  ;;  %3234 = vmatpush1.bf16.msra.mxu1 %v1033_v19  ;;  %v1159_v18 = vld [vmem:[#allocation4 + $0x5e0] sm:$0xff]  ;;  %v1161_v19 = vld [vmem:[#allocation4 + $0x5f0] sm:$0xff] }
 0x658   :  { %3071 = vmatprep.subr.bf16.mxu0 %v1048_v20  ;;  %3235 = vmatprep.subr.bf16.mxu1 %v1050_v15  ;;  %v1176_v20 = vld [vmem:[#allocation4 + $0x668] sm:$0xff]  ;;  %v1178_v15 = vld [vmem:[#allocation4 + $0x678] sm:$0xff] }
 0x65b   :  { %3072 = vmatpush1.bf16.msra.mxu0 %v1047_v56  ;;  %3236 = vmatpush1.bf16.msra.mxu1 %v1049_v24  ;;  %v1175_v56 = vld [vmem:[#allocation4 + $0x660] sm:$0xff]  ;;  %v1177_v24 = vld [vmem:[#allocation4 + $0x670] sm:$0xff] }
 0x65c   :  { %3073 = vmatprep.subr.bf16.mxu0 %v1064_v41  ;;  %3237 = vmatprep.subr.bf16.mxu1 %v1066_v26  ;;  %v1192_v41 = vld [vmem:[#allocation4 + $0x6e8] sm:$0xff]  ;;  %v1194_v26 = vld [vmem:[#allocation4 + $0x6f8] sm:$0xff] }
 0x65f   :  { %3074 = vmatpush1.bf16.msra.mxu0 %v1063_v27  ;;  %3238 = vmatpush1.bf16.msra.mxu1 %v1065_v33  ;;  %v1191_v27 = vld [vmem:[#allocation4 + $0x6e0] sm:$0xff]  ;;  %v1193_v33 = vld [vmem:[#allocation4 + $0x6f0] sm:$0xff] }
 0x660   :  { %3075 = vmatprep.subr.bf16.mxu0 %v1080_v17  ;;  %3239 = vmatprep.subr.bf16.mxu1 %v1082_v40  ;;  %v1208_v17 = vld [vmem:[#allocation4 + $0x768] sm:$0xff]  ;;  %v1210_v40 = vld [vmem:[#allocation4 + $0x778] sm:$0xff] }
 0x663   :  { %3076 = vmatpush1.bf16.msra.mxu0 %v1079_v22  ;;  %3240 = vmatpush1.bf16.msra.mxu1 %v1081_v42  ;;  %v1207_v22 = vld [vmem:[#allocation4 + $0x760] sm:$0xff]  ;;  %v1209_v42 = vld [vmem:[#allocation4 + $0x770] sm:$0xff] }
 0x664   :  { %3077 = vmatprep.subr.bf16.mxu0 %v1096_v44  ;;  %3241 = vmatprep.subr.bf16.mxu1 %v1098_v32  ;;  %v1224_v44 = vld [vmem:[#allocation4 + $0x7e8] sm:$0xff]  ;;  %v1226_v32 = vld [vmem:[#allocation4 + $0x7f8] sm:$0xff] }
 0x667   :  { %3078 = vmatpush1.bf16.msra.mxu0 %v1095_v48  ;;  %3242 = vmatpush1.bf16.msra.mxu1 %v1097_v46  ;;  %v1223_v48 = vld [vmem:[#allocation4 + $0x7e0] sm:$0xff]  ;;  %v1225_v46 = vld [vmem:[#allocation4 + $0x7f0] sm:$0xff] }
 0x668   :  { %3079 = vmatprep.subr.bf16.mxu0 %v1112_v47  ;;  %3243 = vmatprep.subr.bf16.mxu1 %v1114_v50  ;;  %v1240_v47 = vld [vmem:[#allocation4 + $0x868] sm:$0xff]  ;;  %v1242_v50 = vld [vmem:[#allocation4 + $0x878] sm:$0xff] }
 0x66b   :  { %3080 = vmatpush1.bf16.msra.mxu0 %v1111_v52  ;;  %3244 = vmatpush1.bf16.msra.mxu1 %v1113_v58  ;;  %v1239_v52 = vld [vmem:[#allocation4 + $0x860] sm:$0xff]  ;;  %v1241_v58 = vld [vmem:[#allocation4 + $0x870] sm:$0xff] }
 0x66c   :  { %3081 = vmatprep.subr.bf16.mxu0 %v1128_v59  ;;  %3245 = vmatprep.subr.bf16.mxu1 %v1130_v62  ;;  %v1256_v59 = vld [vmem:[#allocation4 + $0x8e8] sm:$0xff]  ;;  %v1258_v62 = vld [vmem:[#allocation4 + $0x8f8] sm:$0xff] }
 0x66f   :  { %3082 = vmatpush1.bf16.msra.mxu0 %v1127_v63  ;;  %3246 = vmatpush1.bf16.msra.mxu1 %v1129_v2  ;;  %v1255_v63 = vld [vmem:[#allocation4 + $0x8e0] sm:$0xff]  ;;  %v1257_v2 = vld [vmem:[#allocation4 + $0x8f0] sm:$0xff] }
 0x670   :  { %3083 = vmatprep.subr.bf16.mxu0 %v1144_v3  ;;  %3247 = vmatprep.subr.bf16.mxu1 %v1146_v4  ;;  %v1272_v3 = vld [vmem:[#allocation4 + $0x968] sm:$0xff]  ;;  %v1274_v4 = vld [vmem:[#allocation4 + $0x978] sm:$0xff] }
 0x673   :  { %3084 = vmatpush1.bf16.msra.mxu0 %v1143_v5  ;;  %3248 = vmatpush1.bf16.msra.mxu1 %v1145_v8  ;;  %v1271_v5 = vld [vmem:[#allocation4 + $0x960] sm:$0xff]  ;;  %v1273_v8 = vld [vmem:[#allocation4 + $0x970] sm:$0xff] }
 0x674   :  { %3085 = vmatprep.subr.bf16.mxu0 %v1160_v9  ;;  %3249 = vmatprep.subr.bf16.mxu1 %v1162_v16  ;;  %v1288_v9 = vld [vmem:[#allocation4 + $0x9e8] sm:$0xff]  ;;  %v1287_v16 = vld [vmem:[#allocation4 + $0x9e0] sm:$0xff] }
 0x677   :  { %3086 = vmatpush1.bf16.msra.mxu0 %v1159_v18  ;;  %3250 = vmatpush1.bf16.msra.mxu1 %v1161_v19  ;;  %v1289_v18 = vld [vmem:[#allocation4 + $0x9f0] sm:$0xff]  ;;  %v1304_v19 = vld [vmem:[#allocation4 + $0xa68] sm:$0xff] }
 0x678   :  { %3087 = vmatprep.subr.bf16.mxu0 %v1176_v20  ;;  %3251 = vmatprep.subr.bf16.mxu1 %v1178_v15  ;;  %v1306_v20 = vld [vmem:[#allocation4 + $0xa78] sm:$0xff]  ;;  %v1305_v15 = vld [vmem:[#allocation4 + $0xa70] sm:$0xff] }
 0x67b   :  { %3088 = vmatpush1.bf16.msra.mxu0 %v1175_v56  ;;  %3252 = vmatpush1.bf16.msra.mxu1 %v1177_v24  ;;  %v1320_v56 = vld [vmem:[#allocation4 + $0xae8] sm:$0xff]  ;;  %v1322_v24 = vld [vmem:[#allocation4 + $0xaf8] sm:$0xff] }
 0x67c   :  { %3089 = vmatprep.subr.bf16.mxu0 %v1192_v41  ;;  %3253 = vmatprep.subr.bf16.mxu1 %v1194_v26  ;;  %v1319_v41 = vld [vmem:[#allocation4 + $0xae0] sm:$0xff]  ;;  %v1321_v26 = vld [vmem:[#allocation4 + $0xaf0] sm:$0xff] }
 0x67f   :  { %3090 = vmatpush1.bf16.msra.mxu0 %v1191_v27  ;;  %3254 = vmatpush1.bf16.msra.mxu1 %v1193_v33  ;;  %v1336_v27 = vld [vmem:[#allocation4 + $0xb68] sm:$0xff]  ;;  %v1338_v33 = vld [vmem:[#allocation4 + $0xb78] sm:$0xff] }
 0x680   :  { %3091 = vmatprep.subr.bf16.mxu0 %v1208_v17  ;;  %3255 = vmatprep.subr.bf16.mxu1 %v1210_v40  ;;  %v1335_v17 = vld [vmem:[#allocation4 + $0xb60] sm:$0xff]  ;;  %v1337_v40 = vld [vmem:[#allocation4 + $0xb70] sm:$0xff] }
 0x683   :  { %3092 = vmatpush1.bf16.msra.mxu0 %v1207_v22  ;;  %3256 = vmatpush1.bf16.msra.mxu1 %v1209_v42  ;;  %v1352_v22 = vld [vmem:[#allocation4 + $0xbe8] sm:$0xff]  ;;  %v1354_v42 = vld [vmem:[#allocation4 + $0xbf8] sm:$0xff] }
 0x684   :  { %3093 = vmatprep.subr.bf16.mxu0 %v1224_v44  ;;  %3257 = vmatprep.subr.bf16.mxu1 %v1226_v32  ;;  %v1351_v44 = vld [vmem:[#allocation4 + $0xbe0] sm:$0xff]  ;;  %v1353_v32 = vld [vmem:[#allocation4 + $0xbf0] sm:$0xff] }
 0x687   :  { %3094 = vmatpush1.bf16.msra.mxu0 %v1223_v48  ;;  %3258 = vmatpush1.bf16.msra.mxu1 %v1225_v46  ;;  %v1368_v48 = vld [vmem:[#allocation4 + $0xc68] sm:$0xff]  ;;  %v1370_v46 = vld [vmem:[#allocation4 + $0xc78] sm:$0xff] }
 0x688   :  { %3104 = vmatprep.subr.bf16.mxu0 %v1240_v47  ;;  %3268 = vmatprep.subr.bf16.mxu1 %v1242_v50  ;;  %v1367_v47 = vld [vmem:[#allocation4 + $0xc60] sm:$0xff]  ;;  %v1369_v50 = vld [vmem:[#allocation4 + $0xc70] sm:$0xff] }
 0x68a   :  { %3096 = vmatmul.mubr.bf16.vlgmr.msra.gmra.mrb[24].mxu0 %v8040_v14  ;;  %3260 = vmatmul.mubr.bf16.vlgmr.msra.gmra.mrb[24].mxu1 %v8040_v14  ;;  %v1290_v14 = vld [vmem:[#allocation4 + $0x9f8] sm:$0xff] }
 0x68b   :  { %3105 = vmatpush1.bf16.msra.mxu0 %v1239_v52  ;;  %3269 = vmatpush1.bf16.msra.mxu1 %v1241_v58  ;;  %v1384_v52 = vld [vmem:[#allocation4 + $0xce8] sm:$0xff]  ;;  %v1386_v58 = vld [vmem:[#allocation4 + $0xcf8] sm:$0xff] }
 0x68c   :  { %3106 = vmatprep.subr.bf16.mxu0 %v1256_v59  ;;  %3270 = vmatprep.subr.bf16.mxu1 %v1258_v62  ;;  %v1383_v59 = vld [vmem:[#allocation4 + $0xce0] sm:$0xff]  ;;  %v1385_v62 = vld [vmem:[#allocation4 + $0xcf0] sm:$0xff] }
 0x68d   :  { %3136 = vmatprep.mubr.bf16.mxu0 %v8045_v21  ;;  %3300 = vmatprep.mubr.bf16.mxu1 %v8045_v21  ;;  %v1303_v21 = vld [vmem:[#allocation4 + $0xa60] sm:$0xff] }
 0x68f   :  { %3107 = vmatpush1.bf16.msra.mxu0 %v1255_v63  ;;  %3271 = vmatpush1.bf16.msra.mxu1 %v1257_v2  ;;  %v1400_v63 = vld [vmem:[#allocation4 + $0xd68] sm:$0xff]  ;;  %v1402_v2 = vld [vmem:[#allocation4 + $0xd78] sm:$0xff] }
 0x690   :  { %3108 = vmatprep.subr.bf16.mxu0 %v1272_v3  ;;  %3272 = vmatprep.subr.bf16.mxu1 %v1274_v4  ;;  %v1399_v3 = vld [vmem:[#allocation4 + $0xd60] sm:$0xff]  ;;  %v1401_v4 = vld [vmem:[#allocation4 + $0xd70] sm:$0xff] }
 0x693   :  { %3109 = vmatpush1.bf16.msra.mxu0 %v1271_v5  ;;  %3273 = vmatpush1.bf16.msra.mxu1 %v1273_v8  ;;  %v1416_v5 = vld [vmem:[#allocation4 + $0xde8] sm:$0xff]  ;;  %v1418_v8 = vld [vmem:[#allocation4 + $0xdf8] sm:$0xff] }
 0x694   :  { %3110 = vmatprep.subr.bf16.mxu0 %v1288_v9  ;;  %3274 = vmatprep.subr.bf16.mxu1 %v1290_v14  ;;  %v1415_v9 = vld [vmem:[#allocation4 + $0xde0] sm:$0xff]  ;;  %v1417_v14 = vld [vmem:[#allocation4 + $0xdf0] sm:$0xff] }
 0x697   :  { %3111 = vmatpush1.bf16.msra.mxu0 %v1287_v16  ;;  %3275 = vmatpush1.bf16.msra.mxu1 %v1289_v18  ;;  %v1432_v16 = vld [vmem:[#allocation4 + $0xe68] sm:$0xff]  ;;  %v1434_v18 = vld [vmem:[#allocation4 + $0xe78] sm:$0xff] }
 0x698   :  { %3112 = vmatprep.subr.bf16.mxu0 %v1304_v19  ;;  %3276 = vmatprep.subr.bf16.mxu1 %v1306_v20  ;;  %v1431_v19 = vld [vmem:[#allocation4 + $0xe60] sm:$0xff]  ;;  %v1433_v20 = vld [vmem:[#allocation4 + $0xe70] sm:$0xff] }
 0x69b   :  { %3113 = vmatpush1.bf16.msra.mxu0 %v1303_v21  ;;  %3277 = vmatpush1.bf16.msra.mxu1 %v1305_v15  ;;  %v1448_v21 = vld [vmem:[#allocation4 + $0xee8] sm:$0xff]  ;;  %v1450_v15 = vld [vmem:[#allocation4 + $0xef8] sm:$0xff] }
 0x69c   :  { %3114 = vmatprep.subr.bf16.mxu0 %v1320_v56  ;;  %3278 = vmatprep.subr.bf16.mxu1 %v1322_v24  ;;  %v1447_v56 = vld [vmem:[#allocation4 + $0xee0] sm:$0xff]  ;;  %v1449_v24 = vld [vmem:[#allocation4 + $0xef0] sm:$0xff] }
 0x69f   :  { %3115 = vmatpush1.bf16.msra.mxu0 %v1319_v41  ;;  %3279 = vmatpush1.bf16.msra.mxu1 %v1321_v26  ;;  %v1464_v41 = vld [vmem:[#allocation4 + $0xf68] sm:$0xff]  ;;  %v1466_v26 = vld [vmem:[#allocation4 + $0xf78] sm:$0xff] }
 0x6a0   :  { %3116 = vmatprep.subr.bf16.mxu0 %v1336_v27  ;;  %3280 = vmatprep.subr.bf16.mxu1 %v1338_v33  ;;  %v1463_v27 = vld [vmem:[#allocation4 + $0xf60] sm:$0xff]  ;;  %v1465_v33 = vld [vmem:[#allocation4 + $0xf70] sm:$0xff] }
 0x6a3   :  { %3117 = vmatpush1.bf16.msra.mxu0 %v1335_v17  ;;  %3281 = vmatpush1.bf16.msra.mxu1 %v1337_v40  ;;  %v1480_v17 = vld [vmem:[#allocation4 + $0xfe8] sm:$0xff]  ;;  %v1482_v40 = vld [vmem:[#allocation4 + $0xff8] sm:$0xff] }
 0x6a4   :  { %3118 = vmatprep.subr.bf16.mxu0 %v1352_v22  ;;  %3282 = vmatprep.subr.bf16.mxu1 %v1354_v42  ;;  %v1479_v22 = vld [vmem:[#allocation4 + $0xfe0] sm:$0xff]  ;;  %v1481_v42 = vld [vmem:[#allocation4 + $0xff0] sm:$0xff] }
 0x6a7   :  { %3119 = vmatpush1.bf16.msra.mxu0 %v1351_v44  ;;  %3283 = vmatpush1.bf16.msra.mxu1 %v1353_v32  ;;  %v1496_v44 = vld [vmem:[#allocation4 + $0x1068] sm:$0xff]  ;;  %v1498_v32 = vld [vmem:[#allocation4 + $0x1078] sm:$0xff] }
 0x6a8   :  { %3120 = vmatprep.subr.bf16.mxu0 %v1368_v48  ;;  %3284 = vmatprep.subr.bf16.mxu1 %v1370_v46  ;;  %v1495_v48 = vld [vmem:[#allocation4 + $0x1060] sm:$0xff]  ;;  %v1497_v46 = vld [vmem:[#allocation4 + $0x1070] sm:$0xff] }
 0x6ab   :  { %3121 = vmatpush1.bf16.msra.mxu0 %v1367_v47  ;;  %3285 = vmatpush1.bf16.msra.mxu1 %v1369_v50  ;;  %v1512_v47 = vld [vmem:[#allocation4 + $0x10e8] sm:$0xff]  ;;  %v1514_v50 = vld [vmem:[#allocation4 + $0x10f8] sm:$0xff] }
 0x6ac   :  { %3122 = vmatprep.subr.bf16.mxu0 %v1384_v52  ;;  %3286 = vmatprep.subr.bf16.mxu1 %v1386_v58  ;;  %v1511_v52 = vld [vmem:[#allocation4 + $0x10e0] sm:$0xff]  ;;  %v1513_v58 = vld [vmem:[#allocation4 + $0x10f0] sm:$0xff] }
 0x6af   :  { %3123 = vmatpush1.bf16.msra.mxu0 %v1383_v59  ;;  %3287 = vmatpush1.bf16.msra.mxu1 %v1385_v62  ;;  %v1528_v59 = vld [vmem:[#allocation4 + $0x1168] sm:$0xff]  ;;  %v1530_v62 = vld [vmem:[#allocation4 + $0x1178] sm:$0xff] }
 0x6b0   :  { %3124 = vmatprep.subr.bf16.mxu0 %v1400_v63  ;;  %3288 = vmatprep.subr.bf16.mxu1 %v1402_v2  ;;  %v1527_v63 = vld [vmem:[#allocation4 + $0x1160] sm:$0xff]  ;;  %v1529_v2 = vld [vmem:[#allocation4 + $0x1170] sm:$0xff] }
 0x6b3   :  { %3125 = vmatpush1.bf16.msra.mxu0 %v1399_v3  ;;  %3289 = vmatpush1.bf16.msra.mxu1 %v1401_v4  ;;  %v1544_v3 = vld [vmem:[#allocation4 + $0x11e8] sm:$0xff]  ;;  %v1543_v4 = vld [vmem:[#allocation4 + $0x11e0] sm:$0xff] }
 0x6b4   :  { %3126 = vmatprep.subr.bf16.mxu0 %v1416_v5  ;;  %3290 = vmatprep.subr.bf16.mxu1 %v1418_v8  ;;  %v1545_v5 = vld [vmem:[#allocation4 + $0x11f0] sm:$0xff]  ;;  %v1560_v8 = vld [vmem:[#allocation4 + $0x1268] sm:$0xff] }
 0x6b7   :  { %3127 = vmatpush1.bf16.msra.mxu0 %v1415_v9  ;;  %3291 = vmatpush1.bf16.msra.mxu1 %v1417_v14  ;;  %v1562_v9 = vld [vmem:[#allocation4 + $0x1278] sm:$0xff]  ;;  %v1561_v14 = vld [vmem:[#allocation4 + $0x1270] sm:$0xff] }
 0x6b8   :  { %3128 = vmatprep.subr.bf16.mxu0 %v1432_v16  ;;  %3292 = vmatprep.subr.bf16.mxu1 %v1434_v18  ;;  %v1576_v16 = vld [vmem:[#allocation4 + $0x12e8] sm:$0xff]  ;;  %v1578_v18 = vld [vmem:[#allocation4 + $0x12f8] sm:$0xff] }
 0x6bb   :  { %3129 = vmatpush1.bf16.msra.mxu0 %v1431_v19  ;;  %3293 = vmatpush1.bf16.msra.mxu1 %v1433_v20  ;;  %v1575_v19 = vld [vmem:[#allocation4 + $0x12e0] sm:$0xff]  ;;  %v1577_v20 = vld [vmem:[#allocation4 + $0x12f0] sm:$0xff] }
 0x6bc   :  { %3130 = vmatprep.subr.bf16.mxu0 %v1448_v21  ;;  %3294 = vmatprep.subr.bf16.mxu1 %v1450_v15  ;;  %v1592_v21 = vld [vmem:[#allocation4 + $0x1368] sm:$0xff]  ;;  %v1594_v15 = vld [vmem:[#allocation4 + $0x1378] sm:$0xff] }
 0x6bf   :  { %3131 = vmatpush1.bf16.msra.mxu0 %v1447_v56  ;;  %3295 = vmatpush1.bf16.msra.mxu1 %v1449_v24  ;;  %v1591_v56 = vld [vmem:[#allocation4 + $0x1360] sm:$0xff]  ;;  %v1593_v24 = vld [vmem:[#allocation4 + $0x1370] sm:$0xff] }
 0x6c0   :  { %3132 = vmatprep.subr.bf16.mxu0 %v1464_v41  ;;  %3296 = vmatprep.subr.bf16.mxu1 %v1466_v26  ;;  %v1608_v41 = vld [vmem:[#allocation4 + $0x13e8] sm:$0xff]  ;;  %v1610_v26 = vld [vmem:[#allocation4 + $0x13f8] sm:$0xff] }
 0x6c3   :  { %3133 = vmatpush1.bf16.msra.mxu0 %v1463_v27  ;;  %3297 = vmatpush1.bf16.msra.mxu1 %v1465_v33  ;;  %v1607_v27 = vld [vmem:[#allocation4 + $0x13e0] sm:$0xff]  ;;  %v1609_v33 = vld [vmem:[#allocation4 + $0x13f0] sm:$0xff] }
 0x6c4   :  { %3134 = vmatprep.subr.bf16.mxu0 %v1480_v17  ;;  %3298 = vmatprep.subr.bf16.mxu1 %v1482_v40  ;;  %v1624_v17 = vld [vmem:[#allocation4 + $0x1468] sm:$0xff]  ;;  %v1626_v40 = vld [vmem:[#allocation4 + $0x1478] sm:$0xff] }
 0x6c7   :  { %3135 = vmatpush1.bf16.msra.mxu0 %v1479_v22  ;;  %3299 = vmatpush1.bf16.msra.mxu1 %v1481_v42  ;;  %v1623_v22 = vld [vmem:[#allocation4 + $0x1460] sm:$0xff]  ;;  %v1625_v42 = vld [vmem:[#allocation4 + $0x1470] sm:$0xff] }
 0x6c8   :  { %3145 = vmatprep.subr.bf16.mxu0 %v1496_v44  ;;  %3309 = vmatprep.subr.bf16.mxu1 %v1498_v32  ;;  %v1640_v44 = vld [vmem:[#allocation4 + $0x14e8] sm:$0xff]  ;;  %v1642_v32 = vld [vmem:[#allocation4 + $0x14f8] sm:$0xff] }
 0x6ca   :  { %3137 = vmatmul.mubr.bf16.vlgmr.msra.gmra.mrb[24].mxu0 %v8054_v28  ;;  %3301 = vmatmul.mubr.bf16.vlgmr.msra.gmra.mrb[24].mxu1 %v8054_v28  ;;  %v1546_v28 = vld [vmem:[#allocation4 + $0x11f8] sm:$0xff] }
 0x6cb   :  { %3146 = vmatpush1.bf16.msra.mxu0 %v1495_v48  ;;  %3310 = vmatpush1.bf16.msra.mxu1 %v1497_v46  ;;  %v1639_v48 = vld [vmem:[#allocation4 + $0x14e0] sm:$0xff]  ;;  %v1641_v46 = vld [vmem:[#allocation4 + $0x14f0] sm:$0xff] }
 0x6cc   :  { %3147 = vmatprep.subr.bf16.mxu0 %v1512_v47  ;;  %3311 = vmatprep.subr.bf16.mxu1 %v1514_v50  ;;  %v1656_v47 = vld [vmem:[#allocation4 + $0x1568] sm:$0xff]  ;;  %v1658_v50 = vld [vmem:[#allocation4 + $0x1578] sm:$0xff] }
 0x6cd   :  { %3177 = vmatprep.mubr.bf16.mxu0 %v8059_v34  ;;  %3341 = vmatprep.mubr.bf16.mxu1 %v8059_v34  ;;  %v1559_v34 = vld [vmem:[#allocation4 + $0x1260] sm:$0xff] }
 0x6cf   :  { %3148 = vmatpush1.bf16.msra.mxu0 %v1511_v52  ;;  %3312 = vmatpush1.bf16.msra.mxu1 %v1513_v58  ;;  %v1655_v52 = vld [vmem:[#allocation4 + $0x1560] sm:$0xff]  ;;  %v1657_v58 = vld [vmem:[#allocation4 + $0x1570] sm:$0xff] }
 0x6d0   :  { %3149 = vmatprep.subr.bf16.mxu0 %v1528_v59  ;;  %3313 = vmatprep.subr.bf16.mxu1 %v1530_v62  ;;  %v1672_v59 = vld [vmem:[#allocation4 + $0x15e8] sm:$0xff]  ;;  %v1674_v62 = vld [vmem:[#allocation4 + $0x15f8] sm:$0xff] }
 0x6d3   :  { %3150 = vmatpush1.bf16.msra.mxu0 %v1527_v63  ;;  %3314 = vmatpush1.bf16.msra.mxu1 %v1529_v2  ;;  %v1671_v63 = vld [vmem:[#allocation4 + $0x15e0] sm:$0xff]  ;;  %v1673_v2 = vld [vmem:[#allocation4 + $0x15f0] sm:$0xff] }
 0x6d4   :  { %3151 = vmatprep.subr.bf16.mxu0 %v1544_v3  ;;  %3315 = vmatprep.subr.bf16.mxu1 %v1546_v28  ;;  %v1688_v3 = vld [vmem:[#allocation4 + $0x1668] sm:$0xff]  ;;  %v1690_v28 = vld [vmem:[#allocation4 + $0x1678] sm:$0xff] }
 0x6d7   :  { %3152 = vmatpush1.bf16.msra.mxu0 %v1543_v4  ;;  %3316 = vmatpush1.bf16.msra.mxu1 %v1545_v5  ;;  %v1687_v4 = vld [vmem:[#allocation4 + $0x1660] sm:$0xff]  ;;  %v1689_v5 = vld [vmem:[#allocation4 + $0x1670] sm:$0xff] }
 0x6d8   :  { %3153 = vmatprep.subr.bf16.mxu0 %v1560_v8  ;;  %3317 = vmatprep.subr.bf16.mxu1 %v1562_v9  ;;  %v1704_v8 = vld [vmem:[#allocation4 + $0x16e8] sm:$0xff]  ;;  %v1706_v9 = vld [vmem:[#allocation4 + $0x16f8] sm:$0xff] }
 0x6db   :  { %3154 = vmatpush1.bf16.msra.mxu0 %v1559_v34  ;;  %3318 = vmatpush1.bf16.msra.mxu1 %v1561_v14  ;;  %v1703_v34 = vld [vmem:[#allocation4 + $0x16e0] sm:$0xff]  ;;  %v1705_v14 = vld [vmem:[#allocation4 + $0x16f0] sm:$0xff] }
 0x6dc   :  { %3155 = vmatprep.subr.bf16.mxu0 %v1576_v16  ;;  %3319 = vmatprep.subr.bf16.mxu1 %v1578_v18  ;;  %v1720_v16 = vld [vmem:[#allocation4 + $0x1768] sm:$0xff]  ;;  %v1722_v18 = vld [vmem:[#allocation4 + $0x1778] sm:$0xff] }
 0x6df   :  { %3156 = vmatpush1.bf16.msra.mxu0 %v1575_v19  ;;  %3320 = vmatpush1.bf16.msra.mxu1 %v1577_v20  ;;  %v1719_v19 = vld [vmem:[#allocation4 + $0x1760] sm:$0xff]  ;;  %v1721_v20 = vld [vmem:[#allocation4 + $0x1770] sm:$0xff] }
 0x6e0   :  { %3157 = vmatprep.subr.bf16.mxu0 %v1592_v21  ;;  %3321 = vmatprep.subr.bf16.mxu1 %v1594_v15  ;;  %v1736_v21 = vld [vmem:[#allocation4 + $0x17e8] sm:$0xff]  ;;  %v1738_v15 = vld [vmem:[#allocation4 + $0x17f8] sm:$0xff] }
 0x6e3   :  { %3158 = vmatpush1.bf16.msra.mxu0 %v1591_v56  ;;  %3322 = vmatpush1.bf16.msra.mxu1 %v1593_v24  ;;  %v1735_v56 = vld [vmem:[#allocation4 + $0x17e0] sm:$0xff]  ;;  %v1737_v24 = vld [vmem:[#allocation4 + $0x17f0] sm:$0xff] }
 0x6e4   :  { %3159 = vmatprep.subr.bf16.mxu0 %v1608_v41  ;;  %3323 = vmatprep.subr.bf16.mxu1 %v1610_v26  ;;  %v1752_v41 = vld [vmem:[#allocation4 + $0x1868] sm:$0xff]  ;;  %v1754_v26 = vld [vmem:[#allocation4 + $0x1878] sm:$0xff] }
 0x6e7   :  { %3160 = vmatpush1.bf16.msra.mxu0 %v1607_v27  ;;  %3324 = vmatpush1.bf16.msra.mxu1 %v1609_v33  ;;  %v1751_v27 = vld [vmem:[#allocation4 + $0x1860] sm:$0xff]  ;;  %v1753_v33 = vld [vmem:[#allocation4 + $0x1870] sm:$0xff] }
 0x6e8   :  { %3161 = vmatprep.subr.bf16.mxu0 %v1624_v17  ;;  %3325 = vmatprep.subr.bf16.mxu1 %v1626_v40  ;;  %v1768_v17 = vld [vmem:[#allocation4 + $0x18e8] sm:$0xff]  ;;  %v1770_v40 = vld [vmem:[#allocation4 + $0x18f8] sm:$0xff] }
 0x6eb   :  { %3162 = vmatpush1.bf16.msra.mxu0 %v1623_v22  ;;  %3326 = vmatpush1.bf16.msra.mxu1 %v1625_v42  ;;  %v1767_v22 = vld [vmem:[#allocation4 + $0x18e0] sm:$0xff]  ;;  %v1769_v42 = vld [vmem:[#allocation4 + $0x18f0] sm:$0xff] }
 0x6ec   :  { %3163 = vmatprep.subr.bf16.mxu0 %v1640_v44  ;;  %3327 = vmatprep.subr.bf16.mxu1 %v1642_v32  ;;  %v1784_v44 = vld [vmem:[#allocation4 + $0x1968] sm:$0xff]  ;;  %v1786_v32 = vld [vmem:[#allocation4 + $0x1978] sm:$0xff] }
 0x6ef   :  { %3164 = vmatpush1.bf16.msra.mxu0 %v1639_v48  ;;  %3328 = vmatpush1.bf16.msra.mxu1 %v1641_v46  ;;  %v1783_v48 = vld [vmem:[#allocation4 + $0x1960] sm:$0xff]  ;;  %v1785_v46 = vld [vmem:[#allocation4 + $0x1970] sm:$0xff] }
 0x6f0   :  { %3165 = vmatprep.subr.bf16.mxu0 %v1656_v47  ;;  %3329 = vmatprep.subr.bf16.mxu1 %v1658_v50  ;;  %v1800_v47 = vld [vmem:[#allocation4 + $0x19e8] sm:$0xff]  ;;  %v1799_v50 = vld [vmem:[#allocation4 + $0x19e0] sm:$0xff] }
 0x6f3   :  { %3166 = vmatpush1.bf16.msra.mxu0 %v1655_v52  ;;  %3330 = vmatpush1.bf16.msra.mxu1 %v1657_v58  ;;  %v1801_v52 = vld [vmem:[#allocation4 + $0x19f0] sm:$0xff]  ;;  %v1816_v58 = vld [vmem:[#allocation4 + $0x1a68] sm:$0xff] }
 0x6f4   :  { %3167 = vmatprep.subr.bf16.mxu0 %v1672_v59  ;;  %3331 = vmatprep.subr.bf16.mxu1 %v1674_v62  ;;  %v1818_v59 = vld [vmem:[#allocation4 + $0x1a78] sm:$0xff]  ;;  %v8182_v62 = vld [vmem:[#allocation10 + $0x8] sm:$0xff] }
 0x6f7   :  { %3168 = vmatpush1.bf16.msra.mxu0 %v1671_v63  ;;  %3332 = vmatpush1.bf16.msra.mxu1 %v1673_v2  ;;  %v1817_v63 = vld [vmem:[#allocation4 + $0x1a70] sm:$0xff]  ;;  %v1832_v2 = vld [vmem:[#allocation4 + $0x1ae8] sm:$0xff] }
 0x6f8   :  { %3169 = vmatprep.subr.bf16.mxu0 %v1688_v3  ;;  %3333 = vmatprep.subr.bf16.mxu1 %v1690_v28  ;;  %v1834_v3 = vld [vmem:[#allocation4 + $0x1af8] sm:$0xff]  ;;  %v2034_v28 = vrot.slane %v8182_v62, %v2001_v35 }
 0x6fb   :  { %3170 = vmatpush1.bf16.msra.mxu0 %v1687_v4  ;;  %3334 = vmatpush1.bf16.msra.mxu1 %v1689_v5  ;;  %v2042_v4 = vrot.slane %v8182_v62, %v2009_v36  ;;  %v2038_v5 = vrot.slane %v8182_v62, %v2005_v37 }
 0x6fc   :  { %3171 = vmatprep.subr.bf16.mxu0 %v1704_v8  ;;  %3335 = vmatprep.subr.bf16.mxu1 %v1706_v9  ;;  %v2046_v8 = vrot.slane %v8182_v62, %v2013_v10  ;;  %v1831_v9 = vld [vmem:[#allocation4 + $0x1ae0] sm:$0xff] }
 0x6ff   :  { %3172 = vmatpush1.bf16.msra.mxu0 %v1703_v34  ;;  %3336 = vmatpush1.bf16.msra.mxu1 %v1705_v14  ;;  %v1833_v34 = vld [vmem:[#allocation4 + $0x1af0] sm:$0xff] }
 0x700   :  { %3173 = vmatprep.subr.bf16.mxu0 %v1720_v16  ;;  %3337 = vmatprep.subr.bf16.mxu1 %v1722_v18  ;;  %v1848_v16 = vld [vmem:[#allocation4 + $0x1b68] sm:$0xff]  ;;  %v1850_v18 = vld [vmem:[#allocation4 + $0x1b78] sm:$0xff] }
 0x703   :  { %3174 = vmatpush1.bf16.msra.mxu0 %v1719_v19  ;;  %3338 = vmatpush1.bf16.msra.mxu1 %v1721_v20 }
 0x704   :  { %3175 = vmatprep.subr.bf16.mxu0 %v1736_v21  ;;  %3339 = vmatprep.subr.bf16.mxu1 %v1738_v15 }
 0x707   :  { %3176 = vmatpush1.bf16.msra.mxu0 %v1735_v56  ;;  %3340 = vmatpush1.bf16.msra.mxu1 %v1737_v24 }
 0x708   :  { %3186 = vmatprep.subr.bf16.mxu0 %v1752_v41  ;;  %3350 = vmatprep.subr.bf16.mxu1 %v1754_v26 }
 0x70a   :  { %3178 = vmatmul.mubr.bf16.vlgmr.msra.gmra.mrb[24].mxu0 %v8068_v38  ;;  %3342 = vmatmul.mubr.bf16.vlgmr.msra.gmra.mrb[24].mxu1 %v8068_v38  ;;  %v1802_v38 = vld [vmem:[#allocation4 + $0x19f8] sm:$0xff] }
 0x70b   :  { %3187 = vmatpush1.bf16.msra.mxu0 %v1751_v27  ;;  %3351 = vmatpush1.bf16.msra.mxu1 %v1753_v33  ;;  %v1847_v33 = vld [vmem:[#allocation4 + $0x1b60] sm:$0xff] }
 0x70c   :  { %3188 = vmatprep.subr.bf16.mxu0 %v1768_v17  ;;  %3352 = vmatprep.subr.bf16.mxu1 %v1770_v40  ;;  %v1849_v17 = vld [vmem:[#allocation4 + $0x1b70] sm:$0xff] }
 0x70d   :  { %3218 = vmatprep.mubr.bf16.mxu0 %v8073_v45  ;;  %3382 = vmatprep.mubr.bf16.mxu1 %v8073_v45  ;;  %v1815_v45 = vld [vmem:[#allocation4 + $0x1a60] sm:$0xff] }
 0x70f   :  { %3189 = vmatpush1.bf16.msra.mxu0 %v1767_v22  ;;  %3353 = vmatpush1.bf16.msra.mxu1 %v1769_v42  ;;  %v1864_v42 = vld [vmem:[#allocation4 + $0x1be8] sm:$0xff] }
 0x710   :  { %3190 = vmatprep.subr.bf16.mxu0 %v1784_v44  ;;  %3354 = vmatprep.subr.bf16.mxu1 %v1786_v32  ;;  %v1866_v44 = vld [vmem:[#allocation4 + $0x1bf8] sm:$0xff]  ;;  %v1863_v32 = vld [vmem:[#allocation4 + $0x1be0] sm:$0xff] }
 0x713   :  { %3191 = vmatpush1.bf16.msra.mxu0 %v1783_v48  ;;  %3355 = vmatpush1.bf16.msra.mxu1 %v1785_v46  ;;  %v1865_v48 = vld [vmem:[#allocation4 + $0x1bf0] sm:$0xff]  ;;  %v1880_v46 = vld [vmem:[#allocation4 + $0x1c68] sm:$0xff] }
 0x714   :  { %3192 = vmatprep.subr.bf16.mxu0 %v1800_v47  ;;  %3356 = vmatprep.subr.bf16.mxu1 %v1802_v38  ;;  %v1882_v47 = vld [vmem:[#allocation4 + $0x1c78] sm:$0xff]  ;;  %v1879_v38 = vld [vmem:[#allocation4 + $0x1c60] sm:$0xff] }
 0x717   :  { %3193 = vmatpush1.bf16.msra.mxu0 %v1799_v50  ;;  %3357 = vmatpush1.bf16.msra.mxu1 %v1801_v52  ;;  %v1881_v50 = vld [vmem:[#allocation4 + $0x1c70] sm:$0xff]  ;;  %v1896_v52 = vld [vmem:[#allocation4 + $0x1ce8] sm:$0xff] }
 0x718   :  { %3194 = vmatprep.subr.bf16.mxu0 %v1816_v58  ;;  %3358 = vmatprep.subr.bf16.mxu1 %v1818_v59  ;;  %v1898_v58 = vld [vmem:[#allocation4 + $0x1cf8] sm:$0xff]  ;;  %v1895_v59 = vld [vmem:[#allocation4 + $0x1ce0] sm:$0xff] }
 0x71b   :  { %3195 = vmatpush1.bf16.msra.mxu0 %v1815_v45  ;;  %3359 = vmatpush1.bf16.msra.mxu1 %v1817_v63  ;;  %v1897_v45 = vld [vmem:[#allocation4 + $0x1cf0] sm:$0xff]  ;;  %v1912_v63 = vld [vmem:[#allocation4 + $0x1d68] sm:$0xff] }
 0x71c   :  { %3196 = vmatprep.subr.bf16.mxu0 %v1832_v2  ;;  %3360 = vmatprep.subr.bf16.mxu1 %v1834_v3  ;;  %v1914_v2 = vld [vmem:[#allocation4 + $0x1d78] sm:$0xff]  ;;  %v1911_v3 = vld [vmem:[#allocation4 + $0x1d60] sm:$0xff] }
 0x71d   :  { %v2892_v14 = vpop.f32.mrb[20].mxu0  ;;  %v3056_v35 = vpop.f32.mrb[20].mxu1 }
 0x71e   :  { %v8196_v19 = vadd.f32 %v2892_v14, %v2034_v28  ;;  %v8198_v36 = vadd.f32 %v3056_v35, %v2042_v4  ;;  %v2894_v20 = vpop.f32.mrb[21].mxu0  ;;  %v3058_v21 = vpop.f32.mrb[21].mxu1  ;;  %v1913_v28 = vld [vmem:[#allocation4 + $0x1d70] sm:$0xff]  ;;  %v1928_v4 = vld [vmem:[#allocation4 + $0x1de8] sm:$0xff]  ;;  %v1946_v14 = vld [vmem:[#allocation4 + $0x1e78] sm:$0xff] }
 0x71f   :  { %v8200_v15 = vadd.f32 %v2894_v20, %v2038_v5  ;;  %v8202_v37 = vadd.f32 %v3058_v21, %v2046_v8  ;;  %v2896_v56 = vpop.f32.mrb[22].mxu0  ;;  %v3060_v10 = vpop.f32.mrb[22].mxu1  ;;  %3197 = vmatpush1.bf16.msra.mxu0 %v1831_v9  ;;  %3361 = vmatpush1.bf16.msra.mxu1 %v1833_v34  ;;  %v1930_v5 = vld [vmem:[#allocation4 + $0x1df8] sm:$0xff]  ;;  %v1927_v8 = vld [vmem:[#allocation4 + $0x1de0] sm:$0xff]  ;;  %v1929_v9 = vld [vmem:[#allocation4 + $0x1df0] sm:$0xff] }
 0x720   :  { %v3399_v24 = vmax.f32 %v8196_v19, 0.0  ;;  %v3401_v41 = vmax.f32 %v8198_v36, 0.0  ;;  %v2897_v26 = vpop.f32.mrb[23].mxu0  ;;  %v3061_v27 = vpop.f32.mrb[23].mxu1  ;;  %3198 = vmatprep.subr.bf16.mxu0 %v1848_v16  ;;  %3362 = vmatprep.subr.bf16.mxu1 %v1850_v18  ;;  %v1944_v34 = vld [vmem:[#allocation4 + $0x1e68] sm:$0xff]  ;;  %v1943_v35 = vld [vmem:[#allocation4 + $0x1e60] sm:$0xff] }
 0x721   :  { %v3400_v40 = vmax.f32 %v8200_v15, 0.0  ;;  %v3402_v22 = vmax.f32 %v8202_v37, 0.0  ;;  %v1945_v16 = vld [vmem:[#allocation4 + $0x1e70] sm:$0xff]  ;;  %v1960_v18 = vld [vmem:[#allocation4 + $0x1ee8] sm:$0xff]  ;;  %v1962_v20 = vld [vmem:[#allocation4 + $0x1ef8] sm:$0xff] }
 0x722   :  { %v1959_v21 = vld [vmem:[#allocation4 + $0x1ee0] sm:$0xff]  ;;  %v1961_v56 = vld [vmem:[#allocation4 + $0x1ef0] sm:$0xff]  ;;  %v1976_v10 = vld [vmem:[#allocation4 + $0x1f68] sm:$0xff] }
 0x723   :  { %3199 = vmatpush1.bf16.msra.mxu0 %v1847_v33  ;;  %3363 = vmatpush1.bf16.msra.mxu1 %v1849_v17  ;;  %v1978_v26 = vld [vmem:[#allocation4 + $0x1f78] sm:$0xff]  ;;  %v1975_v27 = vld [vmem:[#allocation4 + $0x1f60] sm:$0xff]  ;;  %v1977_v33 = vld [vmem:[#allocation4 + $0x1f70] sm:$0xff] }
 0x724   :  { %3200 = vmatprep.subr.bf16.mxu0 %v1864_v42  ;;  %3364 = vmatprep.subr.bf16.mxu1 %v1866_v44  ;;  %v1992_v17 = vld [vmem:[#allocation4 + $0x1fe8] sm:$0xff]  ;;  %v1994_v42 = vld [vmem:[#allocation4 + $0x1ff8] sm:$0xff]  ;;  %v1991_v44 = vld [vmem:[#allocation4 + $0x1fe0] sm:$0xff] }
 0x727   :  { %3201 = vmatpush1.bf16.msra.mxu0 %v1863_v32  ;;  %3365 = vmatpush1.bf16.msra.mxu1 %v1865_v48  ;;  %v1993_v32 = vld [vmem:[#allocation4 + $0x1ff0] sm:$0xff]  ;;  %v2050_v48 = vrot.slane %v8182_v62, %v2017_v53 }
 0x728   :  { %3202 = vmatprep.subr.bf16.mxu0 %v1880_v46  ;;  %3366 = vmatprep.subr.bf16.mxu1 %v1882_v47  ;;  %v2058_v46 = vrot.slane %v8182_v62, %v2025_v54  ;;  %v2054_v47 = vrot.slane %v8182_v62, %v2021_v55 }
 0x72b   :  { %3203 = vmatpush1.bf16.msra.mxu0 %v1879_v38  ;;  %3367 = vmatpush1.bf16.msra.mxu1 %v1881_v50  ;;  %v2062_v38 = vrot.slane %v8182_v62, %v2029_v12 }
 0x72c   :  { %3204 = vmatprep.subr.bf16.mxu0 %v1896_v52  ;;  %3368 = vmatprep.subr.bf16.mxu1 %v1898_v58 }
 0x72f   :  { %3205 = vmatpush1.bf16.msra.mxu0 %v1895_v59  ;;  %3369 = vmatpush1.bf16.msra.mxu1 %v1897_v45 }
 0x730   :  { %3206 = vmatprep.subr.bf16.mxu0 %v1912_v63  ;;  %3370 = vmatprep.subr.bf16.mxu1 %v1914_v2 }
 0x733   :  { %3207 = vmatpush1.bf16.msra.mxu0 %v1911_v3  ;;  %3371 = vmatpush1.bf16.msra.mxu1 %v1913_v28 }
 0x734   :  { %3208 = vmatprep.subr.bf16.mxu0 %v1928_v4  ;;  %3372 = vmatprep.subr.bf16.mxu1 %v1930_v5 }
 0x737   :  { %3209 = vmatpush1.bf16.msra.mxu0 %v1927_v8  ;;  %3373 = vmatpush1.bf16.msra.mxu1 %v1929_v9 }
 0x738   :  { %3210 = vmatprep.subr.bf16.mxu0 %v1944_v34  ;;  %3374 = vmatprep.subr.bf16.mxu1 %v1946_v14 }
 0x73b   :  { %3211 = vmatpush1.bf16.msra.mxu0 %v1943_v35  ;;  %3375 = vmatpush1.bf16.msra.mxu1 %v1945_v16 }
 0x73c   :  { %3212 = vmatprep.subr.bf16.mxu0 %v1960_v18  ;;  %3376 = vmatprep.subr.bf16.mxu1 %v1962_v20 }
 0x73f   :  { %3213 = vmatpush1.bf16.msra.mxu0 %v1959_v21  ;;  %3377 = vmatpush1.bf16.msra.mxu1 %v1961_v56 }
 0x740   :  { %3214 = vmatprep.subr.bf16.mxu0 %v1976_v10  ;;  %3378 = vmatprep.subr.bf16.mxu1 %v1978_v26 }
 0x743   :  { %3215 = vmatpush1.bf16.msra.mxu0 %v1975_v27  ;;  %3379 = vmatpush1.bf16.msra.mxu1 %v1977_v33 }
 0x744   :  { %3216 = vmatprep.subr.bf16.mxu0 %v1992_v17  ;;  %3380 = vmatprep.subr.bf16.mxu1 %v1994_v42 }
 0x747   :  { %3217 = vmatpush1.bf16.msra.mxu0 %v1991_v44  ;;  %3381 = vmatpush1.bf16.msra.mxu1 %v1993_v32 }
 0x74a   :  { %3219 = vmatmul.mubr.bf16.vlgmr.msra.gmra.mrb[24].mxu0 %v8082_v51  ;;  %3383 = vmatmul.mubr.bf16.vlgmr.msra.gmra.mrb[24].mxu1 %v8082_v51 }
 0x81d   :  { %v3220_v50 = vpop.f32.mrb[24].mxu0  ;;  %v3384_v52 = vpop.f32.mrb[24].mxu1 }
 0x81e   :  { %v8222_v58 = vadd.f32 %v3220_v50, %v2050_v48  ;;  %v8224_v51 = vadd.f32 %v3384_v52, %v2058_v46  ;;  %v3222_v59 = vpop.f32.mrb[25].mxu0  ;;  %v3386_v53 = vpop.f32.mrb[25].mxu1 }
 0x81f   :  { %v8226_v45 = vadd.f32 %v3222_v59, %v2054_v47  ;;  %v8228_v63 = vadd.f32 %v3386_v53, %v2062_v38  ;;  %v3224_v54 = vpop.f32.mrb[26].mxu0  ;;  %v3388_v2 = vpop.f32.mrb[26].mxu1 }
 0x820   :  { %v3403_v55 = vmax.f32 %v8222_v58, 0.0  ;;  %v3405_v30 = vmax.f32 %v8224_v51, 0.0  ;;  %v3225_v3 = vpop.f32.mrb[27].mxu0  ;;  %v3389_v12 = vpop.f32.mrb[27].mxu1 }
 0x821   :  { %v3404_v62 = vmax.f32 %v8226_v45, 0.0  ;;  %v3406_v28 = vmax.f32 %v8228_v63, 0.0 }
 0x822   :  { %7733 = dma.done.wait [#allocation9 + $0x3], 131072 }
 0x823   :  { %7734 = vsyncadd [#allocation9 + $0x3], 4294836224  ;;  %v8237_v4 = vpack.c.bf16 %v3392_v6, %v3392_v6  ;;  %v3428_v5 = vld [vmem:[#allocation5 + $0x8] sm:$0xff]  ;;  %v3430_v8 = vld [vmem:[#allocation5 + $0x18] sm:$0xff] }
 0x824   :  { %v3427_v9 = vld [vmem:[#allocation5] sm:$0xff]  ;;  %4451 = vmatprep.subr.bf16.mxu0 %v3428_v5  ;;  %4779 = vmatprep.subr.bf16.mxu1 %v3430_v8  ;;  %v3429_v34 = vld [vmem:[#allocation5 + $0x10] sm:$0xff]  ;;  %v3436_v14 = vld [vmem:[#allocation5 + $0x48] sm:$0xff] }
 0x825   :  { %4483 = vmatprep.mubr.bf16.mxu0 %v8237_v4  ;;  %4811 = vmatprep.mubr.bf16.mxu1 %v8237_v4  ;;  %v3438_v35 = vld [vmem:[#allocation5 + $0x58] sm:$0xff]  ;;  %v3435_v60 = vld [vmem:[#allocation5 + $0x40] sm:$0xff]  ;;  %v3437_v16 = vld [vmem:[#allocation5 + $0x50] sm:$0xff] }
 0x826   :  { %4452 = vmatpush1.bf16.msra.mxu0 %v3427_v9  ;;  %4780 = vmatpush1.bf16.msra.mxu1 %v3429_v34  ;;  %v3444_v6 = vld [vmem:[#allocation5 + $0x88] sm:$0xff]  ;;  %v3446_v18 = vld [vmem:[#allocation5 + $0x98] sm:$0xff]  ;;  %v3443_v20 = vld [vmem:[#allocation5 + $0x80] sm:$0xff] }
 0x827   :  { %4453 = vmatprep.subr.bf16.mxu0 %v3436_v14  ;;  %4781 = vmatprep.subr.bf16.mxu1 %v3438_v35  ;;  %v3445_v21 = vld [vmem:[#allocation5 + $0x90] sm:$0xff]  ;;  %v3452_v56 = vld [vmem:[#allocation5 + $0xc8] sm:$0xff]  ;;  %v3454_v10 = vld [vmem:[#allocation5 + $0xd8] sm:$0xff] }
 0x828   :  { %v3451_v26 = vld [vmem:[#allocation5 + $0xc0] sm:$0xff]  ;;  %v3453_v27 = vld [vmem:[#allocation5 + $0xd0] sm:$0xff]  ;;  %v3460_v33 = vld [vmem:[#allocation5 + $0x108] sm:$0xff] }
 0x829   :  { %v3462_v17 = vld [vmem:[#allocation5 + $0x118] sm:$0xff]  ;;  %v3459_v42 = vld [vmem:[#allocation5 + $0x100] sm:$0xff]  ;;  %v3461_v44 = vld [vmem:[#allocation5 + $0x110] sm:$0xff] }
 0x82a   :  { %4454 = vmatpush1.bf16.msra.mxu0 %v3435_v60  ;;  %4782 = vmatpush1.bf16.msra.mxu1 %v3437_v16  ;;  %v3468_v32 = vld [vmem:[#allocation5 + $0x148] sm:$0xff]  ;;  %v3470_v48 = vld [vmem:[#allocation5 + $0x158] sm:$0xff]  ;;  %v3467_v46 = vld [vmem:[#allocation5 + $0x140] sm:$0xff] }
 0x82b   :  { %4455 = vmatprep.subr.bf16.mxu0 %v3444_v6  ;;  %4783 = vmatprep.subr.bf16.mxu1 %v3446_v18  ;;  %v3469_v47 = vld [vmem:[#allocation5 + $0x150] sm:$0xff]  ;;  %v3476_v38 = vld [vmem:[#allocation5 + $0x188] sm:$0xff]  ;;  %v3478_v50 = vld [vmem:[#allocation5 + $0x198] sm:$0xff] }
 0x82c   :  { %v3475_v52 = vld [vmem:[#allocation5 + $0x180] sm:$0xff]  ;;  %v3477_v59 = vld [vmem:[#allocation5 + $0x190] sm:$0xff]  ;;  %v3484_v53 = vld [vmem:[#allocation5 + $0x1c8] sm:$0xff] }
 0x82d   :  { %v3486_v54 = vld [vmem:[#allocation5 + $0x1d8] sm:$0xff]  ;;  %v3483_v2 = vld [vmem:[#allocation5 + $0x1c0] sm:$0xff]  ;;  %v3485_v3 = vld [vmem:[#allocation5 + $0x1d0] sm:$0xff] }
 0x82e   :  { %4456 = vmatpush1.bf16.msra.mxu0 %v3443_v20  ;;  %4784 = vmatpush1.bf16.msra.mxu1 %v3445_v21  ;;  %v3492_v12 = vld [vmem:[#allocation5 + $0x208] sm:$0xff]  ;;  %v3494_v5 = vld [vmem:[#allocation5 + $0x218] sm:$0xff]  ;;  %v3491_v8 = vld [vmem:[#allocation5 + $0x200] sm:$0xff] }
 0x82f   :  { %4457 = vmatprep.subr.bf16.mxu0 %v3452_v56  ;;  %4785 = vmatprep.subr.bf16.mxu1 %v3454_v10  ;;  %v3493_v9 = vld [vmem:[#allocation5 + $0x210] sm:$0xff]  ;;  %v3500_v34 = vld [vmem:[#allocation5 + $0x248] sm:$0xff]  ;;  %v3502_v14 = vld [vmem:[#allocation5 + $0x258] sm:$0xff] }
 0x830   :  { %v3499_v35 = vld [vmem:[#allocation5 + $0x240] sm:$0xff]  ;;  %v3501_v60 = vld [vmem:[#allocation5 + $0x250] sm:$0xff]  ;;  %v3508_v16 = vld [vmem:[#allocation5 + $0x288] sm:$0xff] }
 0x831   :  { %v3510_v6 = vld [vmem:[#allocation5 + $0x298] sm:$0xff]  ;;  %v3507_v18 = vld [vmem:[#allocation5 + $0x280] sm:$0xff]  ;;  %v3509_v20 = vld [vmem:[#allocation5 + $0x290] sm:$0xff] }
 0x832   :  { %4458 = vmatpush1.bf16.msra.mxu0 %v3451_v26  ;;  %4786 = vmatpush1.bf16.msra.mxu1 %v3453_v27  ;;  %v3516_v21 = vld [vmem:[#allocation5 + $0x2c8] sm:$0xff]  ;;  %v3518_v56 = vld [vmem:[#allocation5 + $0x2d8] sm:$0xff]  ;;  %v3515_v10 = vld [vmem:[#allocation5 + $0x2c0] sm:$0xff] }
 0x833   :  { %4459 = vmatprep.subr.bf16.mxu0 %v3460_v33  ;;  %4787 = vmatprep.subr.bf16.mxu1 %v3462_v17  ;;  %v3517_v26 = vld [vmem:[#allocation5 + $0x2d0] sm:$0xff]  ;;  %v3524_v27 = vld [vmem:[#allocation5 + $0x308] sm:$0xff]  ;;  %v3526_v33 = vld [vmem:[#allocation5 + $0x318] sm:$0xff] }
 0x834   :  { %v3523_v17 = vld [vmem:[#allocation5 + $0x300] sm:$0xff] }
 0x835   :  { %v3563_v57 = vld [vmem:[#allocation5 + $0x440] sm:$0xff] }
 0x836   :  { %4460 = vmatpush1.bf16.msra.mxu0 %v3459_v42  ;;  %4788 = vmatpush1.bf16.msra.mxu1 %v3461_v44  ;;  %v3525_v42 = vld [vmem:[#allocation5 + $0x310] sm:$0xff]  ;;  %v3532_v44 = vld [vmem:[#allocation5 + $0x348] sm:$0xff]  ;;  %v3571_v61 = vld [vmem:[#allocation5 + $0x480] sm:$0xff] }
 0x837   :  { %4461 = vmatprep.subr.bf16.mxu0 %v3468_v32  ;;  %4789 = vmatprep.subr.bf16.mxu1 %v3470_v48  ;;  %v3534_v32 = vld [vmem:[#allocation5 + $0x358] sm:$0xff]  ;;  %v3531_v48 = vld [vmem:[#allocation5 + $0x340] sm:$0xff] }
 0x838   :  { %v3691_v49 = vld [vmem:[#allocation5 + $0x840] sm:$0xff] }
 0x839   :  { %v3699_v43 = vld [vmem:[#allocation5 + $0x880] sm:$0xff] }
 0x83a   :  { %4462 = vmatpush1.bf16.msra.mxu0 %v3467_v46  ;;  %4790 = vmatpush1.bf16.msra.mxu1 %v3469_v47  ;;  %v3533_v46 = vld [vmem:[#allocation5 + $0x350] sm:$0xff]  ;;  %v3540_v47 = vld [vmem:[#allocation5 + $0x388] sm:$0xff]  ;;  %v3819_v11 = vld [vmem:[#allocation5 + $0xc40] sm:$0xff] }
 0x83b   :  { %4463 = vmatprep.subr.bf16.mxu0 %v3476_v38  ;;  %4791 = vmatprep.subr.bf16.mxu1 %v3478_v50  ;;  %v3542_v38 = vld [vmem:[#allocation5 + $0x398] sm:$0xff]  ;;  %v3539_v50 = vld [vmem:[#allocation5 + $0x380] sm:$0xff] }
 0x83c   :  { %v3827_v25 = vld [vmem:[#allocation5 + $0xc80] sm:$0xff] }
 0x83d   :  { %v3947_v23 = vld [vmem:[#allocation5 + $0x1040] sm:$0xff] }
 0x83e   :  { %4464 = vmatpush1.bf16.msra.mxu0 %v3475_v52  ;;  %4792 = vmatpush1.bf16.msra.mxu1 %v3477_v59  ;;  %v3541_v52 = vld [vmem:[#allocation5 + $0x390] sm:$0xff]  ;;  %v3548_v59 = vld [vmem:[#allocation5 + $0x3c8] sm:$0xff]  ;;  %v3955_v15 = vld [vmem:[#allocation5 + $0x1080] sm:$0xff] }
 0x83f   :  { %4465 = vmatprep.subr.bf16.mxu0 %v3484_v53  ;;  %4793 = vmatprep.subr.bf16.mxu1 %v3486_v54  ;;  %v3550_v53 = vld [vmem:[#allocation5 + $0x3d8] sm:$0xff]  ;;  %v3547_v54 = vld [vmem:[#allocation5 + $0x3c0] sm:$0xff] }
 0x840   :  { %v4075_v19 = vld [vmem:[#allocation5 + $0x1440] sm:$0xff] }
 0x841   :  { %v4083_v37 = vld [vmem:[#allocation5 + $0x1480] sm:$0xff] }
 0x842   :  { %4466 = vmatpush1.bf16.msra.mxu0 %v3483_v2  ;;  %4794 = vmatpush1.bf16.msra.mxu1 %v3485_v3  ;;  %v3549_v2 = vld [vmem:[#allocation5 + $0x3d0] sm:$0xff]  ;;  %v3556_v3 = vld [vmem:[#allocation5 + $0x408] sm:$0xff]  ;;  %v4203_v36 = vld [vmem:[#allocation5 + $0x1840] sm:$0xff] }
 0x843   :  { %4467 = vmatprep.subr.bf16.mxu0 %v3492_v12  ;;  %4795 = vmatprep.subr.bf16.mxu1 %v3494_v5  ;;  %v3558_v12 = vld [vmem:[#allocation5 + $0x418] sm:$0xff]  ;;  %v8244_v5 = vpack.c.bf16 %v3391_v0, %v3391_v0  ;;  %v3565_v0 = vld [vmem:[#allocation5 + $0x450] sm:$0xff]  ;;  %v4211_v45 = vld [vmem:[#allocation5 + $0x1880] sm:$0xff] }
 0x844   :  { %v4331_v58 = vld [vmem:[#allocation5 + $0x1c40] sm:$0xff] }
 0x845   :  { %v4339_v63 = vld [vmem:[#allocation5 + $0x1c80] sm:$0xff] }
 0x846   :  { %4468 = vmatpush1.bf16.msra.mxu0 %v3491_v8  ;;  %4796 = vmatpush1.bf16.msra.mxu1 %v3493_v9  ;;  %v3555_v8 = vld [vmem:[#allocation5 + $0x400] sm:$0xff]  ;;  %v3557_v9 = vld [vmem:[#allocation5 + $0x410] sm:$0xff] }
 0x847   :  { %4469 = vmatprep.subr.bf16.mxu0 %v3500_v34  ;;  %4797 = vmatprep.subr.bf16.mxu1 %v3502_v14  ;;  %v3564_v34 = vld [vmem:[#allocation5 + $0x448] sm:$0xff]  ;;  %v3566_v14 = vld [vmem:[#allocation5 + $0x458] sm:$0xff]  ;;  %v3439_v51 = vld [vmem:[#allocation5 + $0x60] sm:$0xff] }
 0x84a   :  { %4470 = vmatpush1.bf16.msra.mxu0 %v3499_v35  ;;  %4798 = vmatpush1.bf16.msra.mxu1 %v3501_v60  ;;  %v8249_v35 = vpack.c.bf16 %v3394_v7, %v3394_v7  ;;  %v3572_v60 = vld [vmem:[#allocation5 + $0x488] sm:$0xff]  ;;  %v3573_v7 = vld [vmem:[#allocation5 + $0x490] sm:$0xff] }
 0x84b   :  { %4471 = vmatprep.subr.bf16.mxu0 %v3508_v16  ;;  %4799 = vmatprep.subr.bf16.mxu1 %v3510_v6  ;;  %v3574_v16 = vld [vmem:[#allocation5 + $0x498] sm:$0xff]  ;;  %v3580_v6 = vld [vmem:[#allocation5 + $0x4c8] sm:$0xff] }
 0x84e   :  { %4472 = vmatpush1.bf16.msra.mxu0 %v3507_v18  ;;  %4800 = vmatpush1.bf16.msra.mxu1 %v3509_v20  ;;  %v3582_v18 = vld [vmem:[#allocation5 + $0x4d8] sm:$0xff]  ;;  %v3579_v20 = vld [vmem:[#allocation5 + $0x4c0] sm:$0xff] }
 0x84f   :  { %4473 = vmatprep.subr.bf16.mxu0 %v3516_v21  ;;  %4801 = vmatprep.subr.bf16.mxu1 %v3518_v56  ;;  %v3581_v21 = vld [vmem:[#allocation5 + $0x4d0] sm:$0xff]  ;;  %v3588_v56 = vld [vmem:[#allocation5 + $0x508] sm:$0xff] }
 0x852   :  { %4474 = vmatpush1.bf16.msra.mxu0 %v3515_v10  ;;  %4802 = vmatpush1.bf16.msra.mxu1 %v3517_v26  ;;  %v3590_v10 = vld [vmem:[#allocation5 + $0x518] sm:$0xff]  ;;  %v3587_v26 = vld [vmem:[#allocation5 + $0x500] sm:$0xff] }
 0x853   :  { %4475 = vmatprep.subr.bf16.mxu0 %v3524_v27  ;;  %4803 = vmatprep.subr.bf16.mxu1 %v3526_v33  ;;  %v3589_v27 = vld [vmem:[#allocation5 + $0x510] sm:$0xff]  ;;  %v3596_v33 = vld [vmem:[#allocation5 + $0x548] sm:$0xff] }
 0x856   :  { %4476 = vmatpush1.bf16.msra.mxu0 %v3523_v17  ;;  %4804 = vmatpush1.bf16.msra.mxu1 %v3525_v42  ;;  %v3598_v17 = vld [vmem:[#allocation5 + $0x558] sm:$0xff]  ;;  %v3595_v42 = vld [vmem:[#allocation5 + $0x540] sm:$0xff] }
 0x857   :  { %4477 = vmatprep.subr.bf16.mxu0 %v3532_v44  ;;  %4805 = vmatprep.subr.bf16.mxu1 %v3534_v32  ;;  %v3597_v44 = vld [vmem:[#allocation5 + $0x550] sm:$0xff]  ;;  %v3604_v32 = vld [vmem:[#allocation5 + $0x588] sm:$0xff] }
 0x85a   :  { %4478 = vmatpush1.bf16.msra.mxu0 %v3531_v48  ;;  %4806 = vmatpush1.bf16.msra.mxu1 %v3533_v46  ;;  %v3606_v48 = vld [vmem:[#allocation5 + $0x598] sm:$0xff]  ;;  %v3603_v46 = vld [vmem:[#allocation5 + $0x580] sm:$0xff] }
 0x85b   :  { %4479 = vmatprep.subr.bf16.mxu0 %v3540_v47  ;;  %4807 = vmatprep.subr.bf16.mxu1 %v3542_v38  ;;  %v3605_v47 = vld [vmem:[#allocation5 + $0x590] sm:$0xff]  ;;  %v3612_v38 = vld [vmem:[#allocation5 + $0x5c8] sm:$0xff] }
 0x85e   :  { %4480 = vmatpush1.bf16.msra.mxu0 %v3539_v50  ;;  %4808 = vmatpush1.bf16.msra.mxu1 %v3541_v52  ;;  %v3614_v50 = vld [vmem:[#allocation5 + $0x5d8] sm:$0xff]  ;;  %v3611_v52 = vld [vmem:[#allocation5 + $0x5c0] sm:$0xff] }
 0x85f   :  { %4481 = vmatprep.subr.bf16.mxu0 %v3548_v59  ;;  %4809 = vmatprep.subr.bf16.mxu1 %v3550_v53  ;;  %v3613_v59 = vld [vmem:[#allocation5 + $0x5d0] sm:$0xff]  ;;  %v3620_v53 = vld [vmem:[#allocation5 + $0x608] sm:$0xff] }
 0x862   :  { %4482 = vmatpush1.bf16.msra.mxu0 %v3547_v54  ;;  %4810 = vmatpush1.bf16.msra.mxu1 %v3549_v2  ;;  %v3622_v54 = vld [vmem:[#allocation5 + $0x618] sm:$0xff]  ;;  %v3619_v2 = vld [vmem:[#allocation5 + $0x600] sm:$0xff] }
 0x863   :  { %4492 = vmatprep.subr.bf16.mxu0 %v3556_v3  ;;  %4820 = vmatprep.subr.bf16.mxu1 %v3558_v12  ;;  %v3621_v3 = vld [vmem:[#allocation5 + $0x610] sm:$0xff]  ;;  %v3628_v12 = vld [vmem:[#allocation5 + $0x648] sm:$0xff] }
 0x865   :  { %4484 = vmatmul.mubr.bf16.vlgmr.msra.gmra.mrb[28].mxu0 %v8244_v5  ;;  %4812 = vmatmul.mubr.bf16.vlgmr.msra.gmra.mrb[28].mxu1 %v8244_v5 }
 0x866   :  { %4493 = vmatpush1.bf16.msra.mxu0 %v3555_v8  ;;  %4821 = vmatpush1.bf16.msra.mxu1 %v3557_v9  ;;  %v3630_v8 = vld [vmem:[#allocation5 + $0x658] sm:$0xff]  ;;  %v3627_v9 = vld [vmem:[#allocation5 + $0x640] sm:$0xff] }
 0x867   :  { %4494 = vmatprep.subr.bf16.mxu0 %v3564_v34  ;;  %4822 = vmatprep.subr.bf16.mxu1 %v3566_v14  ;;  %v3629_v34 = vld [vmem:[#allocation5 + $0x650] sm:$0xff]  ;;  %v3636_v14 = vld [vmem:[#allocation5 + $0x688] sm:$0xff] }
 0x868   :  { %4524 = vmatprep.mubr.bf16.mxu0 %v8249_v35  ;;  %4852 = vmatprep.mubr.bf16.mxu1 %v8249_v35 }
 0x86a   :  { %4495 = vmatpush1.bf16.msra.mxu0 %v3563_v57  ;;  %4823 = vmatpush1.bf16.msra.mxu1 %v3565_v0  ;;  %v3638_v57 = vld [vmem:[#allocation5 + $0x698] sm:$0xff]  ;;  %v3635_v0 = vld [vmem:[#allocation5 + $0x680] sm:$0xff] }
 0x86b   :  { %4496 = vmatprep.subr.bf16.mxu0 %v3572_v60  ;;  %4824 = vmatprep.subr.bf16.mxu1 %v3574_v16  ;;  %v3637_v60 = vld [vmem:[#allocation5 + $0x690] sm:$0xff]  ;;  %v3644_v16 = vld [vmem:[#allocation5 + $0x6c8] sm:$0xff] }
 0x86e   :  { %4497 = vmatpush1.bf16.msra.mxu0 %v3571_v61  ;;  %4825 = vmatpush1.bf16.msra.mxu1 %v3573_v7  ;;  %v3646_v61 = vld [vmem:[#allocation5 + $0x6d8] sm:$0xff]  ;;  %v3643_v7 = vld [vmem:[#allocation5 + $0x6c0] sm:$0xff] }
 0x86f   :  { %4498 = vmatprep.subr.bf16.mxu0 %v3580_v6  ;;  %4826 = vmatprep.subr.bf16.mxu1 %v3582_v18  ;;  %v3645_v6 = vld [vmem:[#allocation5 + $0x6d0] sm:$0xff]  ;;  %v3652_v18 = vld [vmem:[#allocation5 + $0x708] sm:$0xff] }
 0x872   :  { %4499 = vmatpush1.bf16.msra.mxu0 %v3579_v20  ;;  %4827 = vmatpush1.bf16.msra.mxu1 %v3581_v21  ;;  %v3654_v20 = vld [vmem:[#allocation5 + $0x718] sm:$0xff]  ;;  %v3651_v21 = vld [vmem:[#allocation5 + $0x700] sm:$0xff] }
 0x873   :  { %4500 = vmatprep.subr.bf16.mxu0 %v3588_v56  ;;  %4828 = vmatprep.subr.bf16.mxu1 %v3590_v10  ;;  %v3653_v56 = vld [vmem:[#allocation5 + $0x710] sm:$0xff]  ;;  %v3660_v10 = vld [vmem:[#allocation5 + $0x748] sm:$0xff] }
 0x876   :  { %4501 = vmatpush1.bf16.msra.mxu0 %v3587_v26  ;;  %4829 = vmatpush1.bf16.msra.mxu1 %v3589_v27  ;;  %v3662_v26 = vld [vmem:[#allocation5 + $0x758] sm:$0xff]  ;;  %v3659_v27 = vld [vmem:[#allocation5 + $0x740] sm:$0xff] }
 0x877   :  { %4502 = vmatprep.subr.bf16.mxu0 %v3596_v33  ;;  %4830 = vmatprep.subr.bf16.mxu1 %v3598_v17  ;;  %v3661_v33 = vld [vmem:[#allocation5 + $0x750] sm:$0xff]  ;;  %v3668_v17 = vld [vmem:[#allocation5 + $0x788] sm:$0xff] }
 0x87a   :  { %4503 = vmatpush1.bf16.msra.mxu0 %v3595_v42  ;;  %4831 = vmatpush1.bf16.msra.mxu1 %v3597_v44  ;;  %v3670_v42 = vld [vmem:[#allocation5 + $0x798] sm:$0xff]  ;;  %v3667_v44 = vld [vmem:[#allocation5 + $0x780] sm:$0xff] }
 0x87b   :  { %4504 = vmatprep.subr.bf16.mxu0 %v3604_v32  ;;  %4832 = vmatprep.subr.bf16.mxu1 %v3606_v48  ;;  %v3669_v32 = vld [vmem:[#allocation5 + $0x790] sm:$0xff]  ;;  %v3676_v48 = vld [vmem:[#allocation5 + $0x7c8] sm:$0xff] }
 0x87e   :  { %4505 = vmatpush1.bf16.msra.mxu0 %v3603_v46  ;;  %4833 = vmatpush1.bf16.msra.mxu1 %v3605_v47  ;;  %v3678_v46 = vld [vmem:[#allocation5 + $0x7d8] sm:$0xff]  ;;  %v3675_v47 = vld [vmem:[#allocation5 + $0x7c0] sm:$0xff] }
 0x87f   :  { %4506 = vmatprep.subr.bf16.mxu0 %v3612_v38  ;;  %4834 = vmatprep.subr.bf16.mxu1 %v3614_v50  ;;  %v3677_v38 = vld [vmem:[#allocation5 + $0x7d0] sm:$0xff]  ;;  %v3684_v50 = vld [vmem:[#allocation5 + $0x808] sm:$0xff] }
 0x882   :  { %4507 = vmatpush1.bf16.msra.mxu0 %v3611_v52  ;;  %4835 = vmatpush1.bf16.msra.mxu1 %v3613_v59  ;;  %v3686_v52 = vld [vmem:[#allocation5 + $0x818] sm:$0xff]  ;;  %v8258_v59 = vpack.c.bf16 %v3393_v1, %v3393_v1  ;;  %v3693_v1 = vld [vmem:[#allocation5 + $0x850] sm:$0xff] }
 0x883   :  { %4508 = vmatprep.subr.bf16.mxu0 %v3620_v53  ;;  %4836 = vmatprep.subr.bf16.mxu1 %v3622_v54  ;;  %v3683_v53 = vld [vmem:[#allocation5 + $0x800] sm:$0xff]  ;;  %v3685_v54 = vld [vmem:[#allocation5 + $0x810] sm:$0xff] }
 0x886   :  { %4509 = vmatpush1.bf16.msra.mxu0 %v3619_v2  ;;  %4837 = vmatpush1.bf16.msra.mxu1 %v3621_v3  ;;  %v3692_v2 = vld [vmem:[#allocation5 + $0x848] sm:$0xff]  ;;  %v3694_v3 = vld [vmem:[#allocation5 + $0x858] sm:$0xff] }
 0x887   :  { %4510 = vmatprep.subr.bf16.mxu0 %v3628_v12  ;;  %4838 = vmatprep.subr.bf16.mxu1 %v3630_v8  ;;  %v8263_v12 = vpack.c.bf16 %v3396_v39, %v3396_v39  ;;  %v3700_v8 = vld [vmem:[#allocation5 + $0x888] sm:$0xff]  ;;  %v3701_v39 = vld [vmem:[#allocation5 + $0x890] sm:$0xff] }
 0x88a   :  { %4511 = vmatpush1.bf16.msra.mxu0 %v3627_v9  ;;  %4839 = vmatpush1.bf16.msra.mxu1 %v3629_v34  ;;  %v3702_v9 = vld [vmem:[#allocation5 + $0x898] sm:$0xff]  ;;  %v3708_v34 = vld [vmem:[#allocation5 + $0x8c8] sm:$0xff] }
 0x88b   :  { %4512 = vmatprep.subr.bf16.mxu0 %v3636_v14  ;;  %4840 = vmatprep.subr.bf16.mxu1 %v3638_v57  ;;  %v3710_v14 = vld [vmem:[#allocation5 + $0x8d8] sm:$0xff]  ;;  %v3707_v57 = vld [vmem:[#allocation5 + $0x8c0] sm:$0xff] }
 0x88e   :  { %4513 = vmatpush1.bf16.msra.mxu0 %v3635_v0  ;;  %4841 = vmatpush1.bf16.msra.mxu1 %v3637_v60  ;;  %v3709_v0 = vld [vmem:[#allocation5 + $0x8d0] sm:$0xff]  ;;  %v3716_v60 = vld [vmem:[#allocation5 + $0x908] sm:$0xff] }
 0x88f   :  { %4514 = vmatprep.subr.bf16.mxu0 %v3644_v16  ;;  %4842 = vmatprep.subr.bf16.mxu1 %v3646_v61  ;;  %v3718_v16 = vld [vmem:[#allocation5 + $0x918] sm:$0xff]  ;;  %v3715_v61 = vld [vmem:[#allocation5 + $0x900] sm:$0xff] }
 0x892   :  { %4515 = vmatpush1.bf16.msra.mxu0 %v3643_v7  ;;  %4843 = vmatpush1.bf16.msra.mxu1 %v3645_v6  ;;  %v3717_v7 = vld [vmem:[#allocation5 + $0x910] sm:$0xff]  ;;  %v3724_v6 = vld [vmem:[#allocation5 + $0x948] sm:$0xff] }
 0x893   :  { %4516 = vmatprep.subr.bf16.mxu0 %v3652_v18  ;;  %4844 = vmatprep.subr.bf16.mxu1 %v3654_v20  ;;  %v3726_v18 = vld [vmem:[#allocation5 + $0x958] sm:$0xff]  ;;  %v3723_v20 = vld [vmem:[#allocation5 + $0x940] sm:$0xff] }
 0x896   :  { %4517 = vmatpush1.bf16.msra.mxu0 %v3651_v21  ;;  %4845 = vmatpush1.bf16.msra.mxu1 %v3653_v56  ;;  %v3725_v21 = vld [vmem:[#allocation5 + $0x950] sm:$0xff]  ;;  %v3732_v56 = vld [vmem:[#allocation5 + $0x988] sm:$0xff] }
 0x897   :  { %4518 = vmatprep.subr.bf16.mxu0 %v3660_v10  ;;  %4846 = vmatprep.subr.bf16.mxu1 %v3662_v26  ;;  %v3734_v10 = vld [vmem:[#allocation5 + $0x998] sm:$0xff]  ;;  %v3731_v26 = vld [vmem:[#allocation5 + $0x980] sm:$0xff] }
 0x89a   :  { %4519 = vmatpush1.bf16.msra.mxu0 %v3659_v27  ;;  %4847 = vmatpush1.bf16.msra.mxu1 %v3661_v33  ;;  %v3733_v27 = vld [vmem:[#allocation5 + $0x990] sm:$0xff]  ;;  %v3740_v33 = vld [vmem:[#allocation5 + $0x9c8] sm:$0xff] }
 0x89b   :  { %4520 = vmatprep.subr.bf16.mxu0 %v3668_v17  ;;  %4848 = vmatprep.subr.bf16.mxu1 %v3670_v42  ;;  %v3742_v17 = vld [vmem:[#allocation5 + $0x9d8] sm:$0xff]  ;;  %v3739_v42 = vld [vmem:[#allocation5 + $0x9c0] sm:$0xff] }
 0x89e   :  { %4521 = vmatpush1.bf16.msra.mxu0 %v3667_v44  ;;  %4849 = vmatpush1.bf16.msra.mxu1 %v3669_v32  ;;  %v3741_v44 = vld [vmem:[#allocation5 + $0x9d0] sm:$0xff]  ;;  %v3748_v32 = vld [vmem:[#allocation5 + $0xa08] sm:$0xff] }
 0x89f   :  { %4522 = vmatprep.subr.bf16.mxu0 %v3676_v48  ;;  %4850 = vmatprep.subr.bf16.mxu1 %v3678_v46  ;;  %v3750_v48 = vld [vmem:[#allocation5 + $0xa18] sm:$0xff]  ;;  %v3747_v46 = vld [vmem:[#allocation5 + $0xa00] sm:$0xff] }
 0x8a2   :  { %4523 = vmatpush1.bf16.msra.mxu0 %v3675_v47  ;;  %4851 = vmatpush1.bf16.msra.mxu1 %v3677_v38  ;;  %v3749_v47 = vld [vmem:[#allocation5 + $0xa10] sm:$0xff]  ;;  %v3756_v38 = vld [vmem:[#allocation5 + $0xa48] sm:$0xff] }
 0x8a3   :  { %4533 = vmatprep.subr.bf16.mxu0 %v3684_v50  ;;  %4861 = vmatprep.subr.bf16.mxu1 %v3686_v52  ;;  %v3758_v50 = vld [vmem:[#allocation5 + $0xa58] sm:$0xff]  ;;  %v3755_v52 = vld [vmem:[#allocation5 + $0xa40] sm:$0xff] }
 0x8a5   :  { %4525 = vmatmul.mubr.bf16.vlgmr.msra.gmra.mrb[28].mxu0 %v8258_v59  ;;  %4853 = vmatmul.mubr.bf16.vlgmr.msra.gmra.mrb[28].mxu1 %v8258_v59 }
 0x8a6   :  { %4534 = vmatpush1.bf16.msra.mxu0 %v3683_v53  ;;  %4862 = vmatpush1.bf16.msra.mxu1 %v3685_v54  ;;  %v3757_v53 = vld [vmem:[#allocation5 + $0xa50] sm:$0xff]  ;;  %v3764_v54 = vld [vmem:[#allocation5 + $0xa88] sm:$0xff] }
 0x8a7   :  { %4535 = vmatprep.subr.bf16.mxu0 %v3692_v2  ;;  %4863 = vmatprep.subr.bf16.mxu1 %v3694_v3  ;;  %v3766_v2 = vld [vmem:[#allocation5 + $0xa98] sm:$0xff]  ;;  %v3763_v3 = vld [vmem:[#allocation5 + $0xa80] sm:$0xff] }
 0x8a8   :  { %4565 = vmatprep.mubr.bf16.mxu0 %v8263_v12  ;;  %4893 = vmatprep.mubr.bf16.mxu1 %v8263_v12 }
 0x8aa   :  { %4536 = vmatpush1.bf16.msra.mxu0 %v3691_v49  ;;  %4864 = vmatpush1.bf16.msra.mxu1 %v3693_v1  ;;  %v3765_v49 = vld [vmem:[#allocation5 + $0xa90] sm:$0xff]  ;;  %v3772_v1 = vld [vmem:[#allocation5 + $0xac8] sm:$0xff] }
 0x8ab   :  { %4537 = vmatprep.subr.bf16.mxu0 %v3700_v8  ;;  %4865 = vmatprep.subr.bf16.mxu1 %v3702_v9  ;;  %v3774_v8 = vld [vmem:[#allocation5 + $0xad8] sm:$0xff]  ;;  %v3771_v9 = vld [vmem:[#allocation5 + $0xac0] sm:$0xff] }
 0x8ae   :  { %4538 = vmatpush1.bf16.msra.mxu0 %v3699_v43  ;;  %4866 = vmatpush1.bf16.msra.mxu1 %v3701_v39  ;;  %v3773_v43 = vld [vmem:[#allocation5 + $0xad0] sm:$0xff]  ;;  %v3780_v39 = vld [vmem:[#allocation5 + $0xb08] sm:$0xff] }
 0x8af   :  { %4539 = vmatprep.subr.bf16.mxu0 %v3708_v34  ;;  %4867 = vmatprep.subr.bf16.mxu1 %v3710_v14  ;;  %v3782_v34 = vld [vmem:[#allocation5 + $0xb18] sm:$0xff]  ;;  %v3779_v14 = vld [vmem:[#allocation5 + $0xb00] sm:$0xff] }
 0x8b2   :  { %4540 = vmatpush1.bf16.msra.mxu0 %v3707_v57  ;;  %4868 = vmatpush1.bf16.msra.mxu1 %v3709_v0  ;;  %v3781_v57 = vld [vmem:[#allocation5 + $0xb10] sm:$0xff]  ;;  %v3788_v0 = vld [vmem:[#allocation5 + $0xb48] sm:$0xff] }
 0x8b3   :  { %4541 = vmatprep.subr.bf16.mxu0 %v3716_v60  ;;  %4869 = vmatprep.subr.bf16.mxu1 %v3718_v16  ;;  %v3790_v60 = vld [vmem:[#allocation5 + $0xb58] sm:$0xff]  ;;  %v3787_v16 = vld [vmem:[#allocation5 + $0xb40] sm:$0xff] }
 0x8b6   :  { %4542 = vmatpush1.bf16.msra.mxu0 %v3715_v61  ;;  %4870 = vmatpush1.bf16.msra.mxu1 %v3717_v7  ;;  %v3789_v61 = vld [vmem:[#allocation5 + $0xb50] sm:$0xff]  ;;  %v3796_v7 = vld [vmem:[#allocation5 + $0xb88] sm:$0xff] }
 0x8b7   :  { %4543 = vmatprep.subr.bf16.mxu0 %v3724_v6  ;;  %4871 = vmatprep.subr.bf16.mxu1 %v3726_v18  ;;  %v3798_v6 = vld [vmem:[#allocation5 + $0xb98] sm:$0xff]  ;;  %v3795_v18 = vld [vmem:[#allocation5 + $0xb80] sm:$0xff] }
 0x8ba   :  { %4544 = vmatpush1.bf16.msra.mxu0 %v3723_v20  ;;  %4872 = vmatpush1.bf16.msra.mxu1 %v3725_v21  ;;  %v3797_v20 = vld [vmem:[#allocation5 + $0xb90] sm:$0xff]  ;;  %v3804_v21 = vld [vmem:[#allocation5 + $0xbc8] sm:$0xff] }
 0x8bb   :  { %4545 = vmatprep.subr.bf16.mxu0 %v3732_v56  ;;  %4873 = vmatprep.subr.bf16.mxu1 %v3734_v10  ;;  %v3806_v56 = vld [vmem:[#allocation5 + $0xbd8] sm:$0xff]  ;;  %v3803_v10 = vld [vmem:[#allocation5 + $0xbc0] sm:$0xff] }
 0x8be   :  { %4546 = vmatpush1.bf16.msra.mxu0 %v3731_v26  ;;  %4874 = vmatpush1.bf16.msra.mxu1 %v3733_v27  ;;  %v3805_v26 = vld [vmem:[#allocation5 + $0xbd0] sm:$0xff]  ;;  %v3812_v27 = vld [vmem:[#allocation5 + $0xc08] sm:$0xff] }
 0x8bf   :  { %4547 = vmatprep.subr.bf16.mxu0 %v3740_v33  ;;  %4875 = vmatprep.subr.bf16.mxu1 %v3742_v17  ;;  %v3814_v33 = vld [vmem:[#allocation5 + $0xc18] sm:$0xff]  ;;  %v8272_v17 = vpack.c.bf16 %v3395_v29, %v3395_v29  ;;  %v3821_v29 = vld [vmem:[#allocation5 + $0xc50] sm:$0xff] }
 0x8c2   :  { %4548 = vmatpush1.bf16.msra.mxu0 %v3739_v42  ;;  %4876 = vmatpush1.bf16.msra.mxu1 %v3741_v44  ;;  %v3811_v42 = vld [vmem:[#allocation5 + $0xc00] sm:$0xff]  ;;  %v3813_v44 = vld [vmem:[#allocation5 + $0xc10] sm:$0xff] }
 0x8c3   :  { %4549 = vmatprep.subr.bf16.mxu0 %v3748_v32  ;;  %4877 = vmatprep.subr.bf16.mxu1 %v3750_v48  ;;  %v3820_v32 = vld [vmem:[#allocation5 + $0xc48] sm:$0xff]  ;;  %v3822_v48 = vld [vmem:[#allocation5 + $0xc58] sm:$0xff] }
 0x8c6   :  { %4550 = vmatpush1.bf16.msra.mxu0 %v3747_v46  ;;  %4878 = vmatpush1.bf16.msra.mxu1 %v3749_v47  ;;  %v8277_v46 = vpack.c.bf16 %v3398_v13, %v3398_v13  ;;  %v3828_v47 = vld [vmem:[#allocation5 + $0xc88] sm:$0xff]  ;;  %v3829_v13 = vld [vmem:[#allocation5 + $0xc90] sm:$0xff] }
 0x8c7   :  { %4551 = vmatprep.subr.bf16.mxu0 %v3756_v38  ;;  %4879 = vmatprep.subr.bf16.mxu1 %v3758_v50  ;;  %v3830_v38 = vld [vmem:[#allocation5 + $0xc98] sm:$0xff]  ;;  %v3836_v50 = vld [vmem:[#allocation5 + $0xcc8] sm:$0xff] }
 0x8ca   :  { %4552 = vmatpush1.bf16.msra.mxu0 %v3755_v52  ;;  %4880 = vmatpush1.bf16.msra.mxu1 %v3757_v53  ;;  %v3838_v52 = vld [vmem:[#allocation5 + $0xcd8] sm:$0xff]  ;;  %v3835_v53 = vld [vmem:[#allocation5 + $0xcc0] sm:$0xff] }
 0x8cb   :  { %4553 = vmatprep.subr.bf16.mxu0 %v3764_v54  ;;  %4881 = vmatprep.subr.bf16.mxu1 %v3766_v2  ;;  %v3837_v54 = vld [vmem:[#allocation5 + $0xcd0] sm:$0xff]  ;;  %v3844_v2 = vld [vmem:[#allocation5 + $0xd08] sm:$0xff] }
 0x8ce   :  { %4554 = vmatpush1.bf16.msra.mxu0 %v3763_v3  ;;  %4882 = vmatpush1.bf16.msra.mxu1 %v3765_v49  ;;  %v3846_v3 = vld [vmem:[#allocation5 + $0xd18] sm:$0xff]  ;;  %v3843_v49 = vld [vmem:[#allocation5 + $0xd00] sm:$0xff] }
 0x8cf   :  { %4555 = vmatprep.subr.bf16.mxu0 %v3772_v1  ;;  %4883 = vmatprep.subr.bf16.mxu1 %v3774_v8  ;;  %v3845_v1 = vld [vmem:[#allocation5 + $0xd10] sm:$0xff]  ;;  %v3852_v8 = vld [vmem:[#allocation5 + $0xd48] sm:$0xff] }
 0x8d2   :  { %4556 = vmatpush1.bf16.msra.mxu0 %v3771_v9  ;;  %4884 = vmatpush1.bf16.msra.mxu1 %v3773_v43  ;;  %v3854_v9 = vld [vmem:[#allocation5 + $0xd58] sm:$0xff]  ;;  %v3851_v43 = vld [vmem:[#allocation5 + $0xd40] sm:$0xff] }
 0x8d3   :  { %4557 = vmatprep.subr.bf16.mxu0 %v3780_v39  ;;  %4885 = vmatprep.subr.bf16.mxu1 %v3782_v34  ;;  %v3853_v39 = vld [vmem:[#allocation5 + $0xd50] sm:$0xff]  ;;  %v3860_v34 = vld [vmem:[#allocation5 + $0xd88] sm:$0xff] }
 0x8d6   :  { %4558 = vmatpush1.bf16.msra.mxu0 %v3779_v14  ;;  %4886 = vmatpush1.bf16.msra.mxu1 %v3781_v57  ;;  %v3862_v14 = vld [vmem:[#allocation5 + $0xd98] sm:$0xff]  ;;  %v3859_v57 = vld [vmem:[#allocation5 + $0xd80] sm:$0xff] }
 0x8d7   :  { %4559 = vmatprep.subr.bf16.mxu0 %v3788_v0  ;;  %4887 = vmatprep.subr.bf16.mxu1 %v3790_v60  ;;  %v3861_v0 = vld [vmem:[#allocation5 + $0xd90] sm:$0xff]  ;;  %v3868_v60 = vld [vmem:[#allocation5 + $0xdc8] sm:$0xff] }
 0x8da   :  { %4560 = vmatpush1.bf16.msra.mxu0 %v3787_v16  ;;  %4888 = vmatpush1.bf16.msra.mxu1 %v3789_v61  ;;  %v3870_v16 = vld [vmem:[#allocation5 + $0xdd8] sm:$0xff]  ;;  %v3867_v61 = vld [vmem:[#allocation5 + $0xdc0] sm:$0xff] }
 0x8db   :  { %4561 = vmatprep.subr.bf16.mxu0 %v3796_v7  ;;  %4889 = vmatprep.subr.bf16.mxu1 %v3798_v6  ;;  %v3869_v7 = vld [vmem:[#allocation5 + $0xdd0] sm:$0xff]  ;;  %v3876_v6 = vld [vmem:[#allocation5 + $0xe08] sm:$0xff] }
 0x8de   :  { %4562 = vmatpush1.bf16.msra.mxu0 %v3795_v18  ;;  %4890 = vmatpush1.bf16.msra.mxu1 %v3797_v20  ;;  %v3878_v18 = vld [vmem:[#allocation5 + $0xe18] sm:$0xff]  ;;  %v3875_v20 = vld [vmem:[#allocation5 + $0xe00] sm:$0xff] }
 0x8df   :  { %4563 = vmatprep.subr.bf16.mxu0 %v3804_v21  ;;  %4891 = vmatprep.subr.bf16.mxu1 %v3806_v56  ;;  %v3877_v21 = vld [vmem:[#allocation5 + $0xe10] sm:$0xff]  ;;  %v3884_v56 = vld [vmem:[#allocation5 + $0xe48] sm:$0xff] }
 0x8e2   :  { %4564 = vmatpush1.bf16.msra.mxu0 %v3803_v10  ;;  %4892 = vmatpush1.bf16.msra.mxu1 %v3805_v26  ;;  %v3886_v10 = vld [vmem:[#allocation5 + $0xe58] sm:$0xff]  ;;  %v3883_v26 = vld [vmem:[#allocation5 + $0xe40] sm:$0xff] }
 0x8e3   :  { %4574 = vmatprep.subr.bf16.mxu0 %v3812_v27  ;;  %4902 = vmatprep.subr.bf16.mxu1 %v3814_v33  ;;  %v3885_v27 = vld [vmem:[#allocation5 + $0xe50] sm:$0xff]  ;;  %v3892_v33 = vld [vmem:[#allocation5 + $0xe88] sm:$0xff] }
 0x8e5   :  { %4566 = vmatmul.mubr.bf16.vlgmr.msra.gmra.mrb[28].mxu0 %v8272_v17  ;;  %4894 = vmatmul.mubr.bf16.vlgmr.msra.gmra.mrb[28].mxu1 %v8272_v17 }
 0x8e6   :  { %4575 = vmatpush1.bf16.msra.mxu0 %v3811_v42  ;;  %4903 = vmatpush1.bf16.msra.mxu1 %v3813_v44  ;;  %v3894_v42 = vld [vmem:[#allocation5 + $0xe98] sm:$0xff]  ;;  %v3891_v44 = vld [vmem:[#allocation5 + $0xe80] sm:$0xff] }
 0x8e7   :  { %4576 = vmatprep.subr.bf16.mxu0 %v3820_v32  ;;  %4904 = vmatprep.subr.bf16.mxu1 %v3822_v48  ;;  %v3893_v32 = vld [vmem:[#allocation5 + $0xe90] sm:$0xff]  ;;  %v3900_v48 = vld [vmem:[#allocation5 + $0xec8] sm:$0xff] }
 0x8e8   :  { %4606 = vmatprep.mubr.bf16.mxu0 %v8277_v46  ;;  %4934 = vmatprep.mubr.bf16.mxu1 %v8277_v46 }
 0x8ea   :  { %4577 = vmatpush1.bf16.msra.mxu0 %v3819_v11  ;;  %4905 = vmatpush1.bf16.msra.mxu1 %v3821_v29  ;;  %v3902_v11 = vld [vmem:[#allocation5 + $0xed8] sm:$0xff]  ;;  %v3899_v29 = vld [vmem:[#allocation5 + $0xec0] sm:$0xff] }
 0x8eb   :  { %4578 = vmatprep.subr.bf16.mxu0 %v3828_v47  ;;  %4906 = vmatprep.subr.bf16.mxu1 %v3830_v38  ;;  %v3901_v47 = vld [vmem:[#allocation5 + $0xed0] sm:$0xff]  ;;  %v3908_v38 = vld [vmem:[#allocation5 + $0xf08] sm:$0xff] }
 0x8ee   :  { %4579 = vmatpush1.bf16.msra.mxu0 %v3827_v25  ;;  %4907 = vmatpush1.bf16.msra.mxu1 %v3829_v13  ;;  %v3910_v25 = vld [vmem:[#allocation5 + $0xf18] sm:$0xff]  ;;  %v3907_v13 = vld [vmem:[#allocation5 + $0xf00] sm:$0xff] }
 0x8ef   :  { %4580 = vmatprep.subr.bf16.mxu0 %v3836_v50  ;;  %4908 = vmatprep.subr.bf16.mxu1 %v3838_v52  ;;  %v3909_v50 = vld [vmem:[#allocation5 + $0xf10] sm:$0xff]  ;;  %v3916_v52 = vld [vmem:[#allocation5 + $0xf48] sm:$0xff] }
 0x8f2   :  { %4581 = vmatpush1.bf16.msra.mxu0 %v3835_v53  ;;  %4909 = vmatpush1.bf16.msra.mxu1 %v3837_v54  ;;  %v3918_v53 = vld [vmem:[#allocation5 + $0xf58] sm:$0xff]  ;;  %v3915_v54 = vld [vmem:[#allocation5 + $0xf40] sm:$0xff] }
 0x8f3   :  { %4582 = vmatprep.subr.bf16.mxu0 %v3844_v2  ;;  %4910 = vmatprep.subr.bf16.mxu1 %v3846_v3  ;;  %v3917_v2 = vld [vmem:[#allocation5 + $0xf50] sm:$0xff]  ;;  %v3924_v3 = vld [vmem:[#allocation5 + $0xf88] sm:$0xff] }
 0x8f6   :  { %4583 = vmatpush1.bf16.msra.mxu0 %v3843_v49  ;;  %4911 = vmatpush1.bf16.msra.mxu1 %v3845_v1  ;;  %v3926_v49 = vld [vmem:[#allocation5 + $0xf98] sm:$0xff]  ;;  %v3923_v1 = vld [vmem:[#allocation5 + $0xf80] sm:$0xff] }
 0x8f7   :  { %4584 = vmatprep.subr.bf16.mxu0 %v3852_v8  ;;  %4912 = vmatprep.subr.bf16.mxu1 %v3854_v9  ;;  %v3925_v8 = vld [vmem:[#allocation5 + $0xf90] sm:$0xff]  ;;  %v3932_v9 = vld [vmem:[#allocation5 + $0xfc8] sm:$0xff] }
 0x8fa   :  { %4585 = vmatpush1.bf16.msra.mxu0 %v3851_v43  ;;  %4913 = vmatpush1.bf16.msra.mxu1 %v3853_v39  ;;  %v3934_v43 = vld [vmem:[#allocation5 + $0xfd8] sm:$0xff]  ;;  %v3931_v39 = vld [vmem:[#allocation5 + $0xfc0] sm:$0xff] }
 0x8fb   :  { %4586 = vmatprep.subr.bf16.mxu0 %v3860_v34  ;;  %4914 = vmatprep.subr.bf16.mxu1 %v3862_v14  ;;  %v3933_v34 = vld [vmem:[#allocation5 + $0xfd0] sm:$0xff]  ;;  %v3940_v14 = vld [vmem:[#allocation5 + $0x1008] sm:$0xff] }
 0x8fe   :  { %4587 = vmatpush1.bf16.msra.mxu0 %v3859_v57  ;;  %4915 = vmatpush1.bf16.msra.mxu1 %v3861_v0  ;;  %v3942_v57 = vld [vmem:[#allocation5 + $0x1018] sm:$0xff]  ;;  %v8286_v0 = vpack.c.bf16 %v3397_v31, %v3397_v31  ;;  %v3949_v31 = vld [vmem:[#allocation5 + $0x1050] sm:$0xff] }
 0x8ff   :  { %4588 = vmatprep.subr.bf16.mxu0 %v3868_v60  ;;  %4916 = vmatprep.subr.bf16.mxu1 %v3870_v16  ;;  %v3939_v60 = vld [vmem:[#allocation5 + $0x1000] sm:$0xff]  ;;  %v3941_v16 = vld [vmem:[#allocation5 + $0x1010] sm:$0xff] }
 0x902   :  { %4589 = vmatpush1.bf16.msra.mxu0 %v3867_v61  ;;  %4917 = vmatpush1.bf16.msra.mxu1 %v3869_v7  ;;  %v3948_v61 = vld [vmem:[#allocation5 + $0x1048] sm:$0xff]  ;;  %v3950_v7 = vld [vmem:[#allocation5 + $0x1058] sm:$0xff] }
 0x903   :  { %4590 = vmatprep.subr.bf16.mxu0 %v3876_v6  ;;  %4918 = vmatprep.subr.bf16.mxu1 %v3878_v18  ;;  %v8291_v6 = vpack.c.bf16 %v3400_v40, %v3400_v40  ;;  %v3956_v18 = vld [vmem:[#allocation5 + $0x1088] sm:$0xff]  ;;  %v3957_v40 = vld [vmem:[#allocation5 + $0x1090] sm:$0xff] }
 0x906   :  { %4591 = vmatpush1.bf16.msra.mxu0 %v3875_v20  ;;  %4919 = vmatpush1.bf16.msra.mxu1 %v3877_v21  ;;  %v3958_v20 = vld [vmem:[#allocation5 + $0x1098] sm:$0xff]  ;;  %v3964_v21 = vld [vmem:[#allocation5 + $0x10c8] sm:$0xff] }
 0x907   :  { %4592 = vmatprep.subr.bf16.mxu0 %v3884_v56  ;;  %4920 = vmatprep.subr.bf16.mxu1 %v3886_v10  ;;  %v3966_v56 = vld [vmem:[#allocation5 + $0x10d8] sm:$0xff]  ;;  %v3963_v10 = vld [vmem:[#allocation5 + $0x10c0] sm:$0xff] }
 0x90a   :  { %4593 = vmatpush1.bf16.msra.mxu0 %v3883_v26  ;;  %4921 = vmatpush1.bf16.msra.mxu1 %v3885_v27  ;;  %v3965_v26 = vld [vmem:[#allocation5 + $0x10d0] sm:$0xff]  ;;  %v3972_v27 = vld [vmem:[#allocation5 + $0x1108] sm:$0xff] }
 0x90b   :  { %4594 = vmatprep.subr.bf16.mxu0 %v3892_v33  ;;  %4922 = vmatprep.subr.bf16.mxu1 %v3894_v42  ;;  %v3974_v33 = vld [vmem:[#allocation5 + $0x1118] sm:$0xff]  ;;  %v3971_v42 = vld [vmem:[#allocation5 + $0x1100] sm:$0xff] }
 0x90e   :  { %4595 = vmatpush1.bf16.msra.mxu0 %v3891_v44  ;;  %4923 = vmatpush1.bf16.msra.mxu1 %v3893_v32  ;;  %v3973_v44 = vld [vmem:[#allocation5 + $0x1110] sm:$0xff]  ;;  %v3980_v32 = vld [vmem:[#allocation5 + $0x1148] sm:$0xff] }
 0x90f   :  { %4596 = vmatprep.subr.bf16.mxu0 %v3900_v48  ;;  %4924 = vmatprep.subr.bf16.mxu1 %v3902_v11  ;;  %v3982_v48 = vld [vmem:[#allocation5 + $0x1158] sm:$0xff]  ;;  %v3979_v11 = vld [vmem:[#allocation5 + $0x1140] sm:$0xff] }
 0x912   :  { %4597 = vmatpush1.bf16.msra.mxu0 %v3899_v29  ;;  %4925 = vmatpush1.bf16.msra.mxu1 %v3901_v47  ;;  %v3981_v29 = vld [vmem:[#allocation5 + $0x1150] sm:$0xff]  ;;  %v3988_v47 = vld [vmem:[#allocation5 + $0x1188] sm:$0xff] }
 0x913   :  { %4598 = vmatprep.subr.bf16.mxu0 %v3908_v38  ;;  %4926 = vmatprep.subr.bf16.mxu1 %v3910_v25  ;;  %v3990_v38 = vld [vmem:[#allocation5 + $0x1198] sm:$0xff]  ;;  %v3987_v25 = vld [vmem:[#allocation5 + $0x1180] sm:$0xff] }
 0x916   :  { %4599 = vmatpush1.bf16.msra.mxu0 %v3907_v13  ;;  %4927 = vmatpush1.bf16.msra.mxu1 %v3909_v50  ;;  %v3989_v13 = vld [vmem:[#allocation5 + $0x1190] sm:$0xff]  ;;  %v3996_v50 = vld [vmem:[#allocation5 + $0x11c8] sm:$0xff] }
 0x917   :  { %4600 = vmatprep.subr.bf16.mxu0 %v3916_v52  ;;  %4928 = vmatprep.subr.bf16.mxu1 %v3918_v53  ;;  %v3998_v52 = vld [vmem:[#allocation5 + $0x11d8] sm:$0xff]  ;;  %v3995_v53 = vld [vmem:[#allocation5 + $0x11c0] sm:$0xff] }
 0x91a   :  { %4601 = vmatpush1.bf16.msra.mxu0 %v3915_v54  ;;  %4929 = vmatpush1.bf16.msra.mxu1 %v3917_v2  ;;  %v3997_v54 = vld [vmem:[#allocation5 + $0x11d0] sm:$0xff]  ;;  %v4004_v2 = vld [vmem:[#allocation5 + $0x1208] sm:$0xff] }
 0x91b   :  { %4602 = vmatprep.subr.bf16.mxu0 %v3924_v3  ;;  %4930 = vmatprep.subr.bf16.mxu1 %v3926_v49  ;;  %v4006_v3 = vld [vmem:[#allocation5 + $0x1218] sm:$0xff]  ;;  %v4003_v49 = vld [vmem:[#allocation5 + $0x1200] sm:$0xff] }
 0x91e   :  { %4603 = vmatpush1.bf16.msra.mxu0 %v3923_v1  ;;  %4931 = vmatpush1.bf16.msra.mxu1 %v3925_v8  ;;  %v4005_v1 = vld [vmem:[#allocation5 + $0x1210] sm:$0xff]  ;;  %v4012_v8 = vld [vmem:[#allocation5 + $0x1248] sm:$0xff] }
 0x91f   :  { %4604 = vmatprep.subr.bf16.mxu0 %v3932_v9  ;;  %4932 = vmatprep.subr.bf16.mxu1 %v3934_v43  ;;  %v4014_v9 = vld [vmem:[#allocation5 + $0x1258] sm:$0xff]  ;;  %v4011_v43 = vld [vmem:[#allocation5 + $0x1240] sm:$0xff] }
 0x922   :  { %4605 = vmatpush1.bf16.msra.mxu0 %v3931_v39  ;;  %4933 = vmatpush1.bf16.msra.mxu1 %v3933_v34  ;;  %v4013_v39 = vld [vmem:[#allocation5 + $0x1250] sm:$0xff]  ;;  %v4020_v34 = vld [vmem:[#allocation5 + $0x1288] sm:$0xff] }
 0x923   :  { %4615 = vmatprep.subr.bf16.mxu0 %v3940_v14  ;;  %4943 = vmatprep.subr.bf16.mxu1 %v3942_v57  ;;  %v4022_v14 = vld [vmem:[#allocation5 + $0x1298] sm:$0xff]  ;;  %v4019_v57 = vld [vmem:[#allocation5 + $0x1280] sm:$0xff] }
 0x925   :  { %4607 = vmatmul.mubr.bf16.vlgmr.msra.gmra.mrb[28].mxu0 %v8286_v0  ;;  %4935 = vmatmul.mubr.bf16.vlgmr.msra.gmra.mrb[28].mxu1 %v8286_v0 }
 0x926   :  { %4616 = vmatpush1.bf16.msra.mxu0 %v3939_v60  ;;  %4944 = vmatpush1.bf16.msra.mxu1 %v3941_v16  ;;  %v4021_v60 = vld [vmem:[#allocation5 + $0x1290] sm:$0xff]  ;;  %v4028_v16 = vld [vmem:[#allocation5 + $0x12c8] sm:$0xff] }
 0x927   :  { %4617 = vmatprep.subr.bf16.mxu0 %v3948_v61  ;;  %4945 = vmatprep.subr.bf16.mxu1 %v3950_v7  ;;  %v4030_v61 = vld [vmem:[#allocation5 + $0x12d8] sm:$0xff]  ;;  %v4027_v7 = vld [vmem:[#allocation5 + $0x12c0] sm:$0xff] }
 0x928   :  { %4647 = vmatprep.mubr.bf16.mxu0 %v8291_v6  ;;  %4975 = vmatprep.mubr.bf16.mxu1 %v8291_v6 }
 0x92a   :  { %4618 = vmatpush1.bf16.msra.mxu0 %v3947_v23  ;;  %4946 = vmatpush1.bf16.msra.mxu1 %v3949_v31  ;;  %v4029_v23 = vld [vmem:[#allocation5 + $0x12d0] sm:$0xff]  ;;  %v4036_v31 = vld [vmem:[#allocation5 + $0x1308] sm:$0xff] }
 0x92b   :  { %4619 = vmatprep.subr.bf16.mxu0 %v3956_v18  ;;  %4947 = vmatprep.subr.bf16.mxu1 %v3958_v20  ;;  %v4038_v18 = vld [vmem:[#allocation5 + $0x1318] sm:$0xff]  ;;  %v4035_v20 = vld [vmem:[#allocation5 + $0x1300] sm:$0xff] }
 0x92e   :  { %4620 = vmatpush1.bf16.msra.mxu0 %v3955_v15  ;;  %4948 = vmatpush1.bf16.msra.mxu1 %v3957_v40  ;;  %v4037_v15 = vld [vmem:[#allocation5 + $0x1310] sm:$0xff]  ;;  %v4044_v40 = vld [vmem:[#allocation5 + $0x1348] sm:$0xff] }
 0x92f   :  { %4621 = vmatprep.subr.bf16.mxu0 %v3964_v21  ;;  %4949 = vmatprep.subr.bf16.mxu1 %v3966_v56  ;;  %v4046_v21 = vld [vmem:[#allocation5 + $0x1358] sm:$0xff]  ;;  %v4043_v56 = vld [vmem:[#allocation5 + $0x1340] sm:$0xff] }
 0x932   :  { %4622 = vmatpush1.bf16.msra.mxu0 %v3963_v10  ;;  %4950 = vmatpush1.bf16.msra.mxu1 %v3965_v26  ;;  %v4045_v10 = vld [vmem:[#allocation5 + $0x1350] sm:$0xff]  ;;  %v4052_v26 = vld [vmem:[#allocation5 + $0x1388] sm:$0xff] }
 0x933   :  { %4623 = vmatprep.subr.bf16.mxu0 %v3972_v27  ;;  %4951 = vmatprep.subr.bf16.mxu1 %v3974_v33  ;;  %v4054_v27 = vld [vmem:[#allocation5 + $0x1398] sm:$0xff]  ;;  %v4051_v33 = vld [vmem:[#allocation5 + $0x1380] sm:$0xff] }
 0x936   :  { %4624 = vmatpush1.bf16.msra.mxu0 %v3971_v42  ;;  %4952 = vmatpush1.bf16.msra.mxu1 %v3973_v44  ;;  %v4053_v42 = vld [vmem:[#allocation5 + $0x1390] sm:$0xff]  ;;  %v4060_v44 = vld [vmem:[#allocation5 + $0x13c8] sm:$0xff] }
 0x937   :  { %4625 = vmatprep.subr.bf16.mxu0 %v3980_v32  ;;  %4953 = vmatprep.subr.bf16.mxu1 %v3982_v48  ;;  %v4062_v32 = vld [vmem:[#allocation5 + $0x13d8] sm:$0xff]  ;;  %v4059_v48 = vld [vmem:[#allocation5 + $0x13c0] sm:$0xff] }
 0x93a   :  { %4626 = vmatpush1.bf16.msra.mxu0 %v3979_v11  ;;  %4954 = vmatpush1.bf16.msra.mxu1 %v3981_v29  ;;  %v4061_v11 = vld [vmem:[#allocation5 + $0x13d0] sm:$0xff]  ;;  %v4068_v29 = vld [vmem:[#allocation5 + $0x1408] sm:$0xff] }
 0x93b   :  { %4627 = vmatprep.subr.bf16.mxu0 %v3988_v47  ;;  %4955 = vmatprep.subr.bf16.mxu1 %v3990_v38  ;;  %v4070_v47 = vld [vmem:[#allocation5 + $0x1418] sm:$0xff]  ;;  %v8300_v38 = vpack.c.bf16 %v3399_v24, %v3399_v24  ;;  %v4077_v24 = vld [vmem:[#allocation5 + $0x1450] sm:$0xff] }
 0x93e   :  { %4628 = vmatpush1.bf16.msra.mxu0 %v3987_v25  ;;  %4956 = vmatpush1.bf16.msra.mxu1 %v3989_v13  ;;  %v4067_v25 = vld [vmem:[#allocation5 + $0x1400] sm:$0xff]  ;;  %v4069_v13 = vld [vmem:[#allocation5 + $0x1410] sm:$0xff] }
 0x93f   :  { %4629 = vmatprep.subr.bf16.mxu0 %v3996_v50  ;;  %4957 = vmatprep.subr.bf16.mxu1 %v3998_v52  ;;  %v4076_v50 = vld [vmem:[#allocation5 + $0x1448] sm:$0xff]  ;;  %v4078_v52 = vld [vmem:[#allocation5 + $0x1458] sm:$0xff] }
 0x942   :  { %4630 = vmatpush1.bf16.msra.mxu0 %v3995_v53  ;;  %4958 = vmatpush1.bf16.msra.mxu1 %v3997_v54  ;;  %v8305_v53 = vpack.c.bf16 %v3402_v22, %v3402_v22  ;;  %v4084_v54 = vld [vmem:[#allocation5 + $0x1488] sm:$0xff]  ;;  %v4085_v22 = vld [vmem:[#allocation5 + $0x1490] sm:$0xff] }
 0x943   :  { %4631 = vmatprep.subr.bf16.mxu0 %v4004_v2  ;;  %4959 = vmatprep.subr.bf16.mxu1 %v4006_v3  ;;  %v4086_v2 = vld [vmem:[#allocation5 + $0x1498] sm:$0xff]  ;;  %v4092_v3 = vld [vmem:[#allocation5 + $0x14c8] sm:$0xff] }
 0x946   :  { %4632 = vmatpush1.bf16.msra.mxu0 %v4003_v49  ;;  %4960 = vmatpush1.bf16.msra.mxu1 %v4005_v1  ;;  %v4094_v49 = vld [vmem:[#allocation5 + $0x14d8] sm:$0xff]  ;;  %v4091_v1 = vld [vmem:[#allocation5 + $0x14c0] sm:$0xff] }
 0x947   :  { %4633 = vmatprep.subr.bf16.mxu0 %v4012_v8  ;;  %4961 = vmatprep.subr.bf16.mxu1 %v4014_v9  ;;  %v4093_v8 = vld [vmem:[#allocation5 + $0x14d0] sm:$0xff]  ;;  %v4100_v9 = vld [vmem:[#allocation5 + $0x1508] sm:$0xff] }
 0x94a   :  { %4634 = vmatpush1.bf16.msra.mxu0 %v4011_v43  ;;  %4962 = vmatpush1.bf16.msra.mxu1 %v4013_v39  ;;  %v4102_v43 = vld [vmem:[#allocation5 + $0x1518] sm:$0xff]  ;;  %v4099_v39 = vld [vmem:[#allocation5 + $0x1500] sm:$0xff] }
 0x94b   :  { %4635 = vmatprep.subr.bf16.mxu0 %v4020_v34  ;;  %4963 = vmatprep.subr.bf16.mxu1 %v4022_v14  ;;  %v4101_v34 = vld [vmem:[#allocation5 + $0x1510] sm:$0xff]  ;;  %v4108_v14 = vld [vmem:[#allocation5 + $0x1548] sm:$0xff] }
 0x94e   :  { %4636 = vmatpush1.bf16.msra.mxu0 %v4019_v57  ;;  %4964 = vmatpush1.bf16.msra.mxu1 %v4021_v60  ;;  %v4110_v57 = vld [vmem:[#allocation5 + $0x1558] sm:$0xff]  ;;  %v4107_v60 = vld [vmem:[#allocation5 + $0x1540] sm:$0xff] }
 0x94f   :  { %4637 = vmatprep.subr.bf16.mxu0 %v4028_v16  ;;  %4965 = vmatprep.subr.bf16.mxu1 %v4030_v61  ;;  %v4109_v16 = vld [vmem:[#allocation5 + $0x1550] sm:$0xff]  ;;  %v4116_v61 = vld [vmem:[#allocation5 + $0x1588] sm:$0xff] }
 0x952   :  { %4638 = vmatpush1.bf16.msra.mxu0 %v4027_v7  ;;  %4966 = vmatpush1.bf16.msra.mxu1 %v4029_v23  ;;  %v4118_v7 = vld [vmem:[#allocation5 + $0x1598] sm:$0xff]  ;;  %v4115_v23 = vld [vmem:[#allocation5 + $0x1580] sm:$0xff] }
 0x953   :  { %4639 = vmatprep.subr.bf16.mxu0 %v4036_v31  ;;  %4967 = vmatprep.subr.bf16.mxu1 %v4038_v18  ;;  %v4117_v31 = vld [vmem:[#allocation5 + $0x1590] sm:$0xff]  ;;  %v4124_v18 = vld [vmem:[#allocation5 + $0x15c8] sm:$0xff] }
 0x956   :  { %4640 = vmatpush1.bf16.msra.mxu0 %v4035_v20  ;;  %4968 = vmatpush1.bf16.msra.mxu1 %v4037_v15  ;;  %v4126_v20 = vld [vmem:[#allocation5 + $0x15d8] sm:$0xff]  ;;  %v4123_v15 = vld [vmem:[#allocation5 + $0x15c0] sm:$0xff] }
 0x957   :  { %4641 = vmatprep.subr.bf16.mxu0 %v4044_v40  ;;  %4969 = vmatprep.subr.bf16.mxu1 %v4046_v21  ;;  %v4125_v40 = vld [vmem:[#allocation5 + $0x15d0] sm:$0xff]  ;;  %v4132_v21 = vld [vmem:[#allocation5 + $0x1608] sm:$0xff] }
 0x95a   :  { %4642 = vmatpush1.bf16.msra.mxu0 %v4043_v56  ;;  %4970 = vmatpush1.bf16.msra.mxu1 %v4045_v10  ;;  %v4134_v56 = vld [vmem:[#allocation5 + $0x1618] sm:$0xff]  ;;  %v4131_v10 = vld [vmem:[#allocation5 + $0x1600] sm:$0xff] }
 0x95b   :  { %4643 = vmatprep.subr.bf16.mxu0 %v4052_v26  ;;  %4971 = vmatprep.subr.bf16.mxu1 %v4054_v27  ;;  %v4133_v26 = vld [vmem:[#allocation5 + $0x1610] sm:$0xff]  ;;  %v4140_v27 = vld [vmem:[#allocation5 + $0x1648] sm:$0xff] }
 0x95e   :  { %4644 = vmatpush1.bf16.msra.mxu0 %v4051_v33  ;;  %4972 = vmatpush1.bf16.msra.mxu1 %v4053_v42  ;;  %v4142_v33 = vld [vmem:[#allocation5 + $0x1658] sm:$0xff]  ;;  %v4139_v42 = vld [vmem:[#allocation5 + $0x1640] sm:$0xff] }
 0x95f   :  { %4645 = vmatprep.subr.bf16.mxu0 %v4060_v44  ;;  %4973 = vmatprep.subr.bf16.mxu1 %v4062_v32  ;;  %v4141_v44 = vld [vmem:[#allocation5 + $0x1650] sm:$0xff]  ;;  %v4148_v32 = vld [vmem:[#allocation5 + $0x1688] sm:$0xff] }
 0x962   :  { %4646 = vmatpush1.bf16.msra.mxu0 %v4059_v48  ;;  %4974 = vmatpush1.bf16.msra.mxu1 %v4061_v11  ;;  %v4150_v48 = vld [vmem:[#allocation5 + $0x1698] sm:$0xff]  ;;  %v4147_v11 = vld [vmem:[#allocation5 + $0x1680] sm:$0xff] }
 0x963   :  { %4656 = vmatprep.subr.bf16.mxu0 %v4068_v29  ;;  %4984 = vmatprep.subr.bf16.mxu1 %v4070_v47  ;;  %v4149_v29 = vld [vmem:[#allocation5 + $0x1690] sm:$0xff]  ;;  %v4156_v47 = vld [vmem:[#allocation5 + $0x16c8] sm:$0xff] }
 0x965   :  { %4648 = vmatmul.mubr.bf16.vlgmr.msra.gmra.mrb[28].mxu0 %v8300_v38  ;;  %4976 = vmatmul.mubr.bf16.vlgmr.msra.gmra.mrb[28].mxu1 %v8300_v38 }
 0x966   :  { %4657 = vmatpush1.bf16.msra.mxu0 %v4067_v25  ;;  %4985 = vmatpush1.bf16.msra.mxu1 %v4069_v13  ;;  %v4158_v25 = vld [vmem:[#allocation5 + $0x16d8] sm:$0xff]  ;;  %v4155_v13 = vld [vmem:[#allocation5 + $0x16c0] sm:$0xff] }
 0x967   :  { %4658 = vmatprep.subr.bf16.mxu0 %v4076_v50  ;;  %4986 = vmatprep.subr.bf16.mxu1 %v4078_v52  ;;  %v4157_v50 = vld [vmem:[#allocation5 + $0x16d0] sm:$0xff]  ;;  %v4164_v52 = vld [vmem:[#allocation5 + $0x1708] sm:$0xff] }
 0x968   :  { %4688 = vmatprep.mubr.bf16.mxu0 %v8305_v53  ;;  %5016 = vmatprep.mubr.bf16.mxu1 %v8305_v53 }
 0x96a   :  { %4659 = vmatpush1.bf16.msra.mxu0 %v4075_v19  ;;  %4987 = vmatpush1.bf16.msra.mxu1 %v4077_v24  ;;  %v4166_v19 = vld [vmem:[#allocation5 + $0x1718] sm:$0xff]  ;;  %v4163_v24 = vld [vmem:[#allocation5 + $0x1700] sm:$0xff] }
 0x96b   :  { %4660 = vmatprep.subr.bf16.mxu0 %v4084_v54  ;;  %4988 = vmatprep.subr.bf16.mxu1 %v4086_v2  ;;  %v4165_v54 = vld [vmem:[#allocation5 + $0x1710] sm:$0xff]  ;;  %v4172_v2 = vld [vmem:[#allocation5 + $0x1748] sm:$0xff] }
 0x96e   :  { %4661 = vmatpush1.bf16.msra.mxu0 %v4083_v37  ;;  %4989 = vmatpush1.bf16.msra.mxu1 %v4085_v22  ;;  %v4174_v37 = vld [vmem:[#allocation5 + $0x1758] sm:$0xff]  ;;  %v4171_v22 = vld [vmem:[#allocation5 + $0x1740] sm:$0xff] }
 0x96f   :  { %4662 = vmatprep.subr.bf16.mxu0 %v4092_v3  ;;  %4990 = vmatprep.subr.bf16.mxu1 %v4094_v49  ;;  %v4173_v3 = vld [vmem:[#allocation5 + $0x1750] sm:$0xff]  ;;  %v4180_v49 = vld [vmem:[#allocation5 + $0x1788] sm:$0xff] }
 0x972   :  { %4663 = vmatpush1.bf16.msra.mxu0 %v4091_v1  ;;  %4991 = vmatpush1.bf16.msra.mxu1 %v4093_v8  ;;  %v4182_v1 = vld [vmem:[#allocation5 + $0x1798] sm:$0xff]  ;;  %v4179_v8 = vld [vmem:[#allocation5 + $0x1780] sm:$0xff] }
 0x973   :  { %4664 = vmatprep.subr.bf16.mxu0 %v4100_v9  ;;  %4992 = vmatprep.subr.bf16.mxu1 %v4102_v43  ;;  %v4181_v9 = vld [vmem:[#allocation5 + $0x1790] sm:$0xff]  ;;  %v4188_v43 = vld [vmem:[#allocation5 + $0x17c8] sm:$0xff] }
 0x976   :  { %4665 = vmatpush1.bf16.msra.mxu0 %v4099_v39  ;;  %4993 = vmatpush1.bf16.msra.mxu1 %v4101_v34  ;;  %v4190_v39 = vld [vmem:[#allocation5 + $0x17d8] sm:$0xff]  ;;  %v4187_v34 = vld [vmem:[#allocation5 + $0x17c0] sm:$0xff] }
 0x977   :  { %4666 = vmatprep.subr.bf16.mxu0 %v4108_v14  ;;  %4994 = vmatprep.subr.bf16.mxu1 %v4110_v57  ;;  %v4189_v14 = vld [vmem:[#allocation5 + $0x17d0] sm:$0xff]  ;;  %v4196_v57 = vld [vmem:[#allocation5 + $0x1808] sm:$0xff] }
 0x97a   :  { %4667 = vmatpush1.bf16.msra.mxu0 %v4107_v60  ;;  %4995 = vmatpush1.bf16.msra.mxu1 %v4109_v16  ;;  %v4198_v60 = vld [vmem:[#allocation5 + $0x1818] sm:$0xff]  ;;  %v8314_v16 = vpack.c.bf16 %v3401_v41, %v3401_v41  ;;  %v4205_v41 = vld [vmem:[#allocation5 + $0x1850] sm:$0xff] }
 0x97b   :  { %4668 = vmatprep.subr.bf16.mxu0 %v4116_v61  ;;  %4996 = vmatprep.subr.bf16.mxu1 %v4118_v7  ;;  %v4195_v61 = vld [vmem:[#allocation5 + $0x1800] sm:$0xff]  ;;  %v4197_v7 = vld [vmem:[#allocation5 + $0x1810] sm:$0xff] }
 0x97e   :  { %4669 = vmatpush1.bf16.msra.mxu0 %v4115_v23  ;;  %4997 = vmatpush1.bf16.msra.mxu1 %v4117_v31  ;;  %v4204_v23 = vld [vmem:[#allocation5 + $0x1848] sm:$0xff]  ;;  %v4206_v31 = vld [vmem:[#allocation5 + $0x1858] sm:$0xff] }
 0x97f   :  { %4670 = vmatprep.subr.bf16.mxu0 %v4124_v18  ;;  %4998 = vmatprep.subr.bf16.mxu1 %v4126_v20  ;;  %v8319_v18 = vpack.c.bf16 %v3404_v62, %v3404_v62  ;;  %v4212_v20 = vld [vmem:[#allocation5 + $0x1888] sm:$0xff]  ;;  %v4213_v62 = vld [vmem:[#allocation5 + $0x1890] sm:$0xff] }
 0x982   :  { %4671 = vmatpush1.bf16.msra.mxu0 %v4123_v15  ;;  %4999 = vmatpush1.bf16.msra.mxu1 %v4125_v40  ;;  %v4214_v15 = vld [vmem:[#allocation5 + $0x1898] sm:$0xff]  ;;  %v4220_v40 = vld [vmem:[#allocation5 + $0x18c8] sm:$0xff] }
 0x983   :  { %4672 = vmatprep.subr.bf16.mxu0 %v4132_v21  ;;  %5000 = vmatprep.subr.bf16.mxu1 %v4134_v56  ;;  %v4222_v21 = vld [vmem:[#allocation5 + $0x18d8] sm:$0xff]  ;;  %v4219_v56 = vld [vmem:[#allocation5 + $0x18c0] sm:$0xff] }
 0x986   :  { %4673 = vmatpush1.bf16.msra.mxu0 %v4131_v10  ;;  %5001 = vmatpush1.bf16.msra.mxu1 %v4133_v26  ;;  %v4221_v10 = vld [vmem:[#allocation5 + $0x18d0] sm:$0xff]  ;;  %v4228_v26 = vld [vmem:[#allocation5 + $0x1908] sm:$0xff] }
 0x987   :  { %4674 = vmatprep.subr.bf16.mxu0 %v4140_v27  ;;  %5002 = vmatprep.subr.bf16.mxu1 %v4142_v33  ;;  %v4230_v27 = vld [vmem:[#allocation5 + $0x1918] sm:$0xff]  ;;  %v4227_v33 = vld [vmem:[#allocation5 + $0x1900] sm:$0xff] }
 0x98a   :  { %4675 = vmatpush1.bf16.msra.mxu0 %v4139_v42  ;;  %5003 = vmatpush1.bf16.msra.mxu1 %v4141_v44  ;;  %v4229_v42 = vld [vmem:[#allocation5 + $0x1910] sm:$0xff]  ;;  %v4236_v44 = vld [vmem:[#allocation5 + $0x1948] sm:$0xff] }
 0x98b   :  { %4676 = vmatprep.subr.bf16.mxu0 %v4148_v32  ;;  %5004 = vmatprep.subr.bf16.mxu1 %v4150_v48  ;;  %v4238_v32 = vld [vmem:[#allocation5 + $0x1958] sm:$0xff]  ;;  %v4235_v48 = vld [vmem:[#allocation5 + $0x1940] sm:$0xff] }
 0x98e   :  { %4677 = vmatpush1.bf16.msra.mxu0 %v4147_v11  ;;  %5005 = vmatpush1.bf16.msra.mxu1 %v4149_v29  ;;  %v4237_v11 = vld [vmem:[#allocation5 + $0x1950] sm:$0xff]  ;;  %v4244_v29 = vld [vmem:[#allocation5 + $0x1988] sm:$0xff] }
 0x98f   :  { %4678 = vmatprep.subr.bf16.mxu0 %v4156_v47  ;;  %5006 = vmatprep.subr.bf16.mxu1 %v4158_v25  ;;  %v4246_v47 = vld [vmem:[#allocation5 + $0x1998] sm:$0xff]  ;;  %v4243_v25 = vld [vmem:[#allocation5 + $0x1980] sm:$0xff] }
 0x992   :  { %4679 = vmatpush1.bf16.msra.mxu0 %v4155_v13  ;;  %5007 = vmatpush1.bf16.msra.mxu1 %v4157_v50  ;;  %v4245_v13 = vld [vmem:[#allocation5 + $0x1990] sm:$0xff]  ;;  %v4252_v50 = vld [vmem:[#allocation5 + $0x19c8] sm:$0xff] }
 0x993   :  { %4680 = vmatprep.subr.bf16.mxu0 %v4164_v52  ;;  %5008 = vmatprep.subr.bf16.mxu1 %v4166_v19  ;;  %v4254_v52 = vld [vmem:[#allocation5 + $0x19d8] sm:$0xff]  ;;  %v4251_v19 = vld [vmem:[#allocation5 + $0x19c0] sm:$0xff] }
 0x996   :  { %4681 = vmatpush1.bf16.msra.mxu0 %v4163_v24  ;;  %5009 = vmatpush1.bf16.msra.mxu1 %v4165_v54  ;;  %v4253_v24 = vld [vmem:[#allocation5 + $0x19d0] sm:$0xff]  ;;  %v4260_v54 = vld [vmem:[#allocation5 + $0x1a08] sm:$0xff] }
 0x997   :  { %4682 = vmatprep.subr.bf16.mxu0 %v4172_v2  ;;  %5010 = vmatprep.subr.bf16.mxu1 %v4174_v37  ;;  %v4262_v2 = vld [vmem:[#allocation5 + $0x1a18] sm:$0xff]  ;;  %v4259_v37 = vld [vmem:[#allocation5 + $0x1a00] sm:$0xff] }
 0x99a   :  { %4683 = vmatpush1.bf16.msra.mxu0 %v4171_v22  ;;  %5011 = vmatpush1.bf16.msra.mxu1 %v4173_v3  ;;  %v4261_v22 = vld [vmem:[#allocation5 + $0x1a10] sm:$0xff]  ;;  %v4268_v3 = vld [vmem:[#allocation5 + $0x1a48] sm:$0xff] }
 0x99b   :  { %4684 = vmatprep.subr.bf16.mxu0 %v4180_v49  ;;  %5012 = vmatprep.subr.bf16.mxu1 %v4182_v1  ;;  %v4270_v49 = vld [vmem:[#allocation5 + $0x1a58] sm:$0xff]  ;;  %v4267_v1 = vld [vmem:[#allocation5 + $0x1a40] sm:$0xff] }
 0x99e   :  { %4685 = vmatpush1.bf16.msra.mxu0 %v4179_v8  ;;  %5013 = vmatpush1.bf16.msra.mxu1 %v4181_v9  ;;  %v4269_v8 = vld [vmem:[#allocation5 + $0x1a50] sm:$0xff]  ;;  %v4276_v9 = vld [vmem:[#allocation5 + $0x1a88] sm:$0xff] }
 0x99f   :  { %4686 = vmatprep.subr.bf16.mxu0 %v4188_v43  ;;  %5014 = vmatprep.subr.bf16.mxu1 %v4190_v39  ;;  %v4278_v43 = vld [vmem:[#allocation5 + $0x1a98] sm:$0xff]  ;;  %v4275_v39 = vld [vmem:[#allocation5 + $0x1a80] sm:$0xff] }
 0x9a2   :  { %4687 = vmatpush1.bf16.msra.mxu0 %v4187_v34  ;;  %5015 = vmatpush1.bf16.msra.mxu1 %v4189_v14  ;;  %v4277_v34 = vld [vmem:[#allocation5 + $0x1a90] sm:$0xff]  ;;  %v4284_v14 = vld [vmem:[#allocation5 + $0x1ac8] sm:$0xff] }
 0x9a3   :  { %4697 = vmatprep.subr.bf16.mxu0 %v4196_v57  ;;  %5025 = vmatprep.subr.bf16.mxu1 %v4198_v60  ;;  %v4286_v57 = vld [vmem:[#allocation5 + $0x1ad8] sm:$0xff]  ;;  %v4283_v60 = vld [vmem:[#allocation5 + $0x1ac0] sm:$0xff] }
 0x9a5   :  { %4689 = vmatmul.mubr.bf16.vlgmr.msra.gmra.mrb[28].mxu0 %v8314_v16  ;;  %5017 = vmatmul.mubr.bf16.vlgmr.msra.gmra.mrb[28].mxu1 %v8314_v16 }
 0x9a6   :  { %4698 = vmatpush1.bf16.msra.mxu0 %v4195_v61  ;;  %5026 = vmatpush1.bf16.msra.mxu1 %v4197_v7  ;;  %v4285_v61 = vld [vmem:[#allocation5 + $0x1ad0] sm:$0xff]  ;;  %v4292_v7 = vld [vmem:[#allocation5 + $0x1b08] sm:$0xff] }
 0x9a7   :  { %4699 = vmatprep.subr.bf16.mxu0 %v4204_v23  ;;  %5027 = vmatprep.subr.bf16.mxu1 %v4206_v31  ;;  %v4294_v23 = vld [vmem:[#allocation5 + $0x1b18] sm:$0xff]  ;;  %v4291_v31 = vld [vmem:[#allocation5 + $0x1b00] sm:$0xff] }
 0x9a8   :  { %4729 = vmatprep.mubr.bf16.mxu0 %v8319_v18  ;;  %5057 = vmatprep.mubr.bf16.mxu1 %v8319_v18 }
 0x9aa   :  { %4700 = vmatpush1.bf16.msra.mxu0 %v4203_v36  ;;  %5028 = vmatpush1.bf16.msra.mxu1 %v4205_v41  ;;  %v4293_v36 = vld [vmem:[#allocation5 + $0x1b10] sm:$0xff]  ;;  %v4300_v41 = vld [vmem:[#allocation5 + $0x1b48] sm:$0xff] }
 0x9ab   :  { %4701 = vmatprep.subr.bf16.mxu0 %v4212_v20  ;;  %5029 = vmatprep.subr.bf16.mxu1 %v4214_v15  ;;  %v4302_v20 = vld [vmem:[#allocation5 + $0x1b58] sm:$0xff]  ;;  %v4299_v15 = vld [vmem:[#allocation5 + $0x1b40] sm:$0xff] }
 0x9ae   :  { %4702 = vmatpush1.bf16.msra.mxu0 %v4211_v45  ;;  %5030 = vmatpush1.bf16.msra.mxu1 %v4213_v62  ;;  %v4301_v45 = vld [vmem:[#allocation5 + $0x1b50] sm:$0xff]  ;;  %v4308_v62 = vld [vmem:[#allocation5 + $0x1b88] sm:$0xff] }
 0x9af   :  { %4703 = vmatprep.subr.bf16.mxu0 %v4220_v40  ;;  %5031 = vmatprep.subr.bf16.mxu1 %v4222_v21  ;;  %v4310_v40 = vld [vmem:[#allocation5 + $0x1b98] sm:$0xff]  ;;  %v4307_v21 = vld [vmem:[#allocation5 + $0x1b80] sm:$0xff] }
 0x9b2   :  { %4704 = vmatpush1.bf16.msra.mxu0 %v4219_v56  ;;  %5032 = vmatpush1.bf16.msra.mxu1 %v4221_v10  ;;  %v4309_v56 = vld [vmem:[#allocation5 + $0x1b90] sm:$0xff]  ;;  %v4316_v10 = vld [vmem:[#allocation5 + $0x1bc8] sm:$0xff] }
 0x9b3   :  { %4705 = vmatprep.subr.bf16.mxu0 %v4228_v26  ;;  %5033 = vmatprep.subr.bf16.mxu1 %v4230_v27  ;;  %v4318_v26 = vld [vmem:[#allocation5 + $0x1bd8] sm:$0xff]  ;;  %v4315_v27 = vld [vmem:[#allocation5 + $0x1bc0] sm:$0xff] }
 0x9b6   :  { %4706 = vmatpush1.bf16.msra.mxu0 %v4227_v33  ;;  %5034 = vmatpush1.bf16.msra.mxu1 %v4229_v42  ;;  %v4317_v33 = vld [vmem:[#allocation5 + $0x1bd0] sm:$0xff]  ;;  %v4324_v42 = vld [vmem:[#allocation5 + $0x1c08] sm:$0xff] }
 0x9b7   :  { %4707 = vmatprep.subr.bf16.mxu0 %v4236_v44  ;;  %5035 = vmatprep.subr.bf16.mxu1 %v4238_v32  ;;  %v4326_v44 = vld [vmem:[#allocation5 + $0x1c18] sm:$0xff]  ;;  %v8328_v32 = vpack.c.bf16 %v3403_v55, %v3403_v55  ;;  %v4333_v55 = vld [vmem:[#allocation5 + $0x1c50] sm:$0xff] }
 0x9ba   :  { %4708 = vmatpush1.bf16.msra.mxu0 %v4235_v48  ;;  %5036 = vmatpush1.bf16.msra.mxu1 %v4237_v11  ;;  %v4323_v48 = vld [vmem:[#allocation5 + $0x1c00] sm:$0xff]  ;;  %v4325_v11 = vld [vmem:[#allocation5 + $0x1c10] sm:$0xff] }
 0x9bb   :  { %4709 = vmatprep.subr.bf16.mxu0 %v4244_v29  ;;  %5037 = vmatprep.subr.bf16.mxu1 %v4246_v47  ;;  %v4332_v29 = vld [vmem:[#allocation5 + $0x1c48] sm:$0xff]  ;;  %v4334_v47 = vld [vmem:[#allocation5 + $0x1c58] sm:$0xff] }
 0x9be   :  { %4710 = vmatpush1.bf16.msra.mxu0 %v4243_v25  ;;  %5038 = vmatpush1.bf16.msra.mxu1 %v4245_v13  ;;  %v8333_v25 = vpack.c.bf16 %v3406_v28, %v3406_v28  ;;  %v4340_v13 = vld [vmem:[#allocation5 + $0x1c88] sm:$0xff]  ;;  %v4341_v28 = vld [vmem:[#allocation5 + $0x1c90] sm:$0xff] }
 0x9bf   :  { %4711 = vmatprep.subr.bf16.mxu0 %v4252_v50  ;;  %5039 = vmatprep.subr.bf16.mxu1 %v4254_v52  ;;  %v4342_v50 = vld [vmem:[#allocation5 + $0x1c98] sm:$0xff]  ;;  %v4348_v52 = vld [vmem:[#allocation5 + $0x1cc8] sm:$0xff] }
 0x9c2   :  { %4712 = vmatpush1.bf16.msra.mxu0 %v4251_v19  ;;  %5040 = vmatpush1.bf16.msra.mxu1 %v4253_v24  ;;  %v4350_v19 = vld [vmem:[#allocation5 + $0x1cd8] sm:$0xff]  ;;  %v4347_v24 = vld [vmem:[#allocation5 + $0x1cc0] sm:$0xff] }
 0x9c3   :  { %4713 = vmatprep.subr.bf16.mxu0 %v4260_v54  ;;  %5041 = vmatprep.subr.bf16.mxu1 %v4262_v2  ;;  %v4349_v54 = vld [vmem:[#allocation5 + $0x1cd0] sm:$0xff]  ;;  %v4356_v2 = vld [vmem:[#allocation5 + $0x1d08] sm:$0xff] }
 0x9c6   :  { %4714 = vmatpush1.bf16.msra.mxu0 %v4259_v37  ;;  %5042 = vmatpush1.bf16.msra.mxu1 %v4261_v22  ;;  %v4358_v37 = vld [vmem:[#allocation5 + $0x1d18] sm:$0xff]  ;;  %v4355_v22 = vld [vmem:[#allocation5 + $0x1d00] sm:$0xff] }
 0x9c7   :  { %4715 = vmatprep.subr.bf16.mxu0 %v4268_v3  ;;  %5043 = vmatprep.subr.bf16.mxu1 %v4270_v49  ;;  %v4357_v3 = vld [vmem:[#allocation5 + $0x1d10] sm:$0xff]  ;;  %v4364_v49 = vld [vmem:[#allocation5 + $0x1d48] sm:$0xff] }
 0x9ca   :  { %4716 = vmatpush1.bf16.msra.mxu0 %v4267_v1  ;;  %5044 = vmatpush1.bf16.msra.mxu1 %v4269_v8  ;;  %v4366_v1 = vld [vmem:[#allocation5 + $0x1d58] sm:$0xff]  ;;  %v4363_v8 = vld [vmem:[#allocation5 + $0x1d40] sm:$0xff] }
 0x9cb   :  { %4717 = vmatprep.subr.bf16.mxu0 %v4276_v9  ;;  %5045 = vmatprep.subr.bf16.mxu1 %v4278_v43  ;;  %v4365_v9 = vld [vmem:[#allocation5 + $0x1d50] sm:$0xff]  ;;  %v4372_v43 = vld [vmem:[#allocation5 + $0x1d88] sm:$0xff] }
 0x9ce   :  { %4718 = vmatpush1.bf16.msra.mxu0 %v4275_v39  ;;  %5046 = vmatpush1.bf16.msra.mxu1 %v4277_v34  ;;  %v4374_v39 = vld [vmem:[#allocation5 + $0x1d98] sm:$0xff]  ;;  %v4371_v34 = vld [vmem:[#allocation5 + $0x1d80] sm:$0xff] }
 0x9cf   :  { %4719 = vmatprep.subr.bf16.mxu0 %v4284_v14  ;;  %5047 = vmatprep.subr.bf16.mxu1 %v4286_v57  ;;  %v4373_v14 = vld [vmem:[#allocation5 + $0x1d90] sm:$0xff]  ;;  %v4380_v57 = vld [vmem:[#allocation5 + $0x1dc8] sm:$0xff] }
 0x9d2   :  { %4720 = vmatpush1.bf16.msra.mxu0 %v4283_v60  ;;  %5048 = vmatpush1.bf16.msra.mxu1 %v4285_v61  ;;  %v4382_v60 = vld [vmem:[#allocation5 + $0x1dd8] sm:$0xff]  ;;  %v4379_v61 = vld [vmem:[#allocation5 + $0x1dc0] sm:$0xff] }
 0x9d3   :  { %4721 = vmatprep.subr.bf16.mxu0 %v4292_v7  ;;  %5049 = vmatprep.subr.bf16.mxu1 %v4294_v23  ;;  %v4381_v7 = vld [vmem:[#allocation5 + $0x1dd0] sm:$0xff]  ;;  %v4388_v23 = vld [vmem:[#allocation5 + $0x1e08] sm:$0xff] }
 0x9d6   :  { %4722 = vmatpush1.bf16.msra.mxu0 %v4291_v31  ;;  %5050 = vmatpush1.bf16.msra.mxu1 %v4293_v36  ;;  %v4390_v31 = vld [vmem:[#allocation5 + $0x1e18] sm:$0xff]  ;;  %v4387_v36 = vld [vmem:[#allocation5 + $0x1e00] sm:$0xff] }
 0x9d7   :  { %4723 = vmatprep.subr.bf16.mxu0 %v4300_v41  ;;  %5051 = vmatprep.subr.bf16.mxu1 %v4302_v20  ;;  %v4389_v41 = vld [vmem:[#allocation5 + $0x1e10] sm:$0xff]  ;;  %v4396_v20 = vld [vmem:[#allocation5 + $0x1e48] sm:$0xff] }
 0x9da   :  { %4724 = vmatpush1.bf16.msra.mxu0 %v4299_v15  ;;  %5052 = vmatpush1.bf16.msra.mxu1 %v4301_v45  ;;  %v4398_v15 = vld [vmem:[#allocation5 + $0x1e58] sm:$0xff]  ;;  %v4395_v45 = vld [vmem:[#allocation5 + $0x1e40] sm:$0xff] }
 0x9db   :  { %4725 = vmatprep.subr.bf16.mxu0 %v4308_v62  ;;  %5053 = vmatprep.subr.bf16.mxu1 %v4310_v40  ;;  %v4397_v62 = vld [vmem:[#allocation5 + $0x1e50] sm:$0xff]  ;;  %v4404_v40 = vld [vmem:[#allocation5 + $0x1e88] sm:$0xff] }
 0x9de   :  { %4726 = vmatpush1.bf16.msra.mxu0 %v4307_v21  ;;  %5054 = vmatpush1.bf16.msra.mxu1 %v4309_v56  ;;  %v4406_v21 = vld [vmem:[#allocation5 + $0x1e98] sm:$0xff]  ;;  %v4403_v56 = vld [vmem:[#allocation5 + $0x1e80] sm:$0xff] }
 0x9df   :  { %4727 = vmatprep.subr.bf16.mxu0 %v4316_v10  ;;  %5055 = vmatprep.subr.bf16.mxu1 %v4318_v26  ;;  %v4405_v10 = vld [vmem:[#allocation5 + $0x1e90] sm:$0xff]  ;;  %v4412_v26 = vld [vmem:[#allocation5 + $0x1ec8] sm:$0xff] }
 0x9e2   :  { %4728 = vmatpush1.bf16.msra.mxu0 %v4315_v27  ;;  %5056 = vmatpush1.bf16.msra.mxu1 %v4317_v33  ;;  %v4414_v27 = vld [vmem:[#allocation5 + $0x1ed8] sm:$0xff]  ;;  %v4411_v33 = vld [vmem:[#allocation5 + $0x1ec0] sm:$0xff] }
 0x9e3   :  { %4738 = vmatprep.subr.bf16.mxu0 %v4324_v42  ;;  %5066 = vmatprep.subr.bf16.mxu1 %v4326_v44  ;;  %v4413_v42 = vld [vmem:[#allocation5 + $0x1ed0] sm:$0xff]  ;;  %v4420_v44 = vld [vmem:[#allocation5 + $0x1f08] sm:$0xff] }
 0x9e5   :  { %4730 = vmatmul.mubr.bf16.vlgmr.msra.gmra.mrb[28].mxu0 %v8328_v32  ;;  %5058 = vmatmul.mubr.bf16.vlgmr.msra.gmra.mrb[28].mxu1 %v8328_v32 }
 0x9e6   :  { %4739 = vmatpush1.bf16.msra.mxu0 %v4323_v48  ;;  %5067 = vmatpush1.bf16.msra.mxu1 %v4325_v11  ;;  %v4422_v48 = vld [vmem:[#allocation5 + $0x1f18] sm:$0xff]  ;;  %v4419_v11 = vld [vmem:[#allocation5 + $0x1f00] sm:$0xff] }
 0x9e7   :  { %4740 = vmatprep.subr.bf16.mxu0 %v4332_v29  ;;  %5068 = vmatprep.subr.bf16.mxu1 %v4334_v47  ;;  %v4421_v29 = vld [vmem:[#allocation5 + $0x1f10] sm:$0xff]  ;;  %v4428_v47 = vld [vmem:[#allocation5 + $0x1f48] sm:$0xff] }
 0x9e8   :  { %4770 = vmatprep.mubr.bf16.mxu0 %v8333_v25  ;;  %5098 = vmatprep.mubr.bf16.mxu1 %v8333_v25 }
 0x9ea   :  { %4741 = vmatpush1.bf16.msra.mxu0 %v4331_v58  ;;  %5069 = vmatpush1.bf16.msra.mxu1 %v4333_v55  ;;  %v4430_v58 = vld [vmem:[#allocation5 + $0x1f58] sm:$0xff]  ;;  %v4427_v55 = vld [vmem:[#allocation5 + $0x1f40] sm:$0xff] }
 0x9eb   :  { %4742 = vmatprep.subr.bf16.mxu0 %v4340_v13  ;;  %5070 = vmatprep.subr.bf16.mxu1 %v4342_v50  ;;  %v4429_v13 = vld [vmem:[#allocation5 + $0x1f50] sm:$0xff]  ;;  %v4436_v50 = vld [vmem:[#allocation5 + $0x1f88] sm:$0xff] }
 0x9ee   :  { %4743 = vmatpush1.bf16.msra.mxu0 %v4339_v63  ;;  %5071 = vmatpush1.bf16.msra.mxu1 %v4341_v28  ;;  %v4438_v63 = vld [vmem:[#allocation5 + $0x1f98] sm:$0xff]  ;;  %v4435_v28 = vld [vmem:[#allocation5 + $0x1f80] sm:$0xff] }
 0x9ef   :  { %4744 = vmatprep.subr.bf16.mxu0 %v4348_v52  ;;  %5072 = vmatprep.subr.bf16.mxu1 %v4350_v19  ;;  %v4437_v52 = vld [vmem:[#allocation5 + $0x1f90] sm:$0xff]  ;;  %v4444_v19 = vld [vmem:[#allocation5 + $0x1fc8] sm:$0xff] }
 0x9f2   :  { %4745 = vmatpush1.bf16.msra.mxu0 %v4347_v24  ;;  %5073 = vmatpush1.bf16.msra.mxu1 %v4349_v54  ;;  %v4446_v24 = vld [vmem:[#allocation5 + $0x1fd8] sm:$0xff]  ;;  %v4443_v54 = vld [vmem:[#allocation5 + $0x1fc0] sm:$0xff] }
 0x9f3   :  { %4746 = vmatprep.subr.bf16.mxu0 %v4356_v2  ;;  %5074 = vmatprep.subr.bf16.mxu1 %v4358_v37  ;;  %v4445_v2 = vld [vmem:[#allocation5 + $0x1fd0] sm:$0xff]  ;;  %v3432_v37 = vld [vmem:[#allocation5 + $0x28] sm:$0xff] }
 0x9f6   :  { %4747 = vmatpush1.bf16.msra.mxu0 %v4355_v22  ;;  %5075 = vmatpush1.bf16.msra.mxu1 %v4357_v3  ;;  %v3434_v22 = vld [vmem:[#allocation5 + $0x38] sm:$0xff]  ;;  %v8342_v3 = vpack.c.bf16 %v3405_v30, %v3405_v30  ;;  %v3448_v30 = vld [vmem:[#allocation5 + $0xa8] sm:$0xff] }
 0x9f7   :  { %4748 = vmatprep.subr.bf16.mxu0 %v4364_v49  ;;  %5076 = vmatprep.subr.bf16.mxu1 %v4366_v1  ;;  %v3431_v49 = vld [vmem:[#allocation5 + $0x20] sm:$0xff]  ;;  %v3433_v1 = vld [vmem:[#allocation5 + $0x30] sm:$0xff] }
 0x9fa   :  { %4749 = vmatpush1.bf16.msra.mxu0 %v4363_v8  ;;  %5077 = vmatpush1.bf16.msra.mxu1 %v4365_v9  ;;  %v3440_v8 = vld [vmem:[#allocation5 + $0x68] sm:$0xff]  ;;  %v3442_v9 = vld [vmem:[#allocation5 + $0x78] sm:$0xff] }
 0x9fb   :  { %4750 = vmatprep.subr.bf16.mxu0 %v4372_v43  ;;  %5078 = vmatprep.subr.bf16.mxu1 %v4374_v39  ;;  %v3441_v43 = vld [vmem:[#allocation5 + $0x70] sm:$0xff]  ;;  %v3450_v39 = vld [vmem:[#allocation5 + $0xb8] sm:$0xff] }
 0x9fe   :  { %4751 = vmatpush1.bf16.msra.mxu0 %v4371_v34  ;;  %5079 = vmatpush1.bf16.msra.mxu1 %v4373_v14  ;;  %v3447_v34 = vld [vmem:[#allocation5 + $0xa0] sm:$0xff]  ;;  %v3449_v14 = vld [vmem:[#allocation5 + $0xb0] sm:$0xff] }
 0x9ff   :  { %4752 = vmatprep.subr.bf16.mxu0 %v4380_v57  ;;  %5080 = vmatprep.subr.bf16.mxu1 %v4382_v60  ;;  %v3456_v57 = vld [vmem:[#allocation5 + $0xe8] sm:$0xff]  ;;  %v3458_v60 = vld [vmem:[#allocation5 + $0xf8] sm:$0xff] }
 0xa02   :  { %4753 = vmatpush1.bf16.msra.mxu0 %v4379_v61  ;;  %5081 = vmatpush1.bf16.msra.mxu1 %v4381_v7  ;;  %v3455_v61 = vld [vmem:[#allocation5 + $0xe0] sm:$0xff]  ;;  %v3457_v7 = vld [vmem:[#allocation5 + $0xf0] sm:$0xff] }
 0xa03   :  { %4754 = vmatprep.subr.bf16.mxu0 %v4388_v23  ;;  %5082 = vmatprep.subr.bf16.mxu1 %v4390_v31  ;;  %v3464_v23 = vld [vmem:[#allocation5 + $0x128] sm:$0xff]  ;;  %v3466_v31 = vld [vmem:[#allocation5 + $0x138] sm:$0xff] }
 0xa06   :  { %4755 = vmatpush1.bf16.msra.mxu0 %v4387_v36  ;;  %5083 = vmatpush1.bf16.msra.mxu1 %v4389_v41  ;;  %v3463_v36 = vld [vmem:[#allocation5 + $0x120] sm:$0xff]  ;;  %v3465_v41 = vld [vmem:[#allocation5 + $0x130] sm:$0xff] }
 0xa07   :  { %4756 = vmatprep.subr.bf16.mxu0 %v4396_v20  ;;  %5084 = vmatprep.subr.bf16.mxu1 %v4398_v15  ;;  %v3472_v20 = vld [vmem:[#allocation5 + $0x168] sm:$0xff]  ;;  %v3474_v15 = vld [vmem:[#allocation5 + $0x178] sm:$0xff] }
 0xa0a   :  { %4757 = vmatpush1.bf16.msra.mxu0 %v4395_v45  ;;  %5085 = vmatpush1.bf16.msra.mxu1 %v4397_v62  ;;  %v3471_v45 = vld [vmem:[#allocation5 + $0x160] sm:$0xff]  ;;  %v3473_v62 = vld [vmem:[#allocation5 + $0x170] sm:$0xff] }
 0xa0b   :  { %4758 = vmatprep.subr.bf16.mxu0 %v4404_v40  ;;  %5086 = vmatprep.subr.bf16.mxu1 %v4406_v21  ;;  %v3480_v40 = vld [vmem:[#allocation5 + $0x1a8] sm:$0xff]  ;;  %v3482_v21 = vld [vmem:[#allocation5 + $0x1b8] sm:$0xff] }
 0xa0e   :  { %4759 = vmatpush1.bf16.msra.mxu0 %v4403_v56  ;;  %5087 = vmatpush1.bf16.msra.mxu1 %v4405_v10  ;;  %v3479_v56 = vld [vmem:[#allocation5 + $0x1a0] sm:$0xff]  ;;  %v3481_v10 = vld [vmem:[#allocation5 + $0x1b0] sm:$0xff] }
 0xa0f   :  { %4760 = vmatprep.subr.bf16.mxu0 %v4412_v26  ;;  %5088 = vmatprep.subr.bf16.mxu1 %v4414_v27  ;;  %v3488_v26 = vld [vmem:[#allocation5 + $0x1e8] sm:$0xff]  ;;  %v3490_v27 = vld [vmem:[#allocation5 + $0x1f8] sm:$0xff] }
 0xa12   :  { %4761 = vmatpush1.bf16.msra.mxu0 %v4411_v33  ;;  %5089 = vmatpush1.bf16.msra.mxu1 %v4413_v42  ;;  %v3487_v33 = vld [vmem:[#allocation5 + $0x1e0] sm:$0xff]  ;;  %v3489_v42 = vld [vmem:[#allocation5 + $0x1f0] sm:$0xff] }
 0xa13   :  { %4762 = vmatprep.subr.bf16.mxu0 %v4420_v44  ;;  %5090 = vmatprep.subr.bf16.mxu1 %v4422_v48  ;;  %v3496_v44 = vld [vmem:[#allocation5 + $0x228] sm:$0xff]  ;;  %v3498_v48 = vld [vmem:[#allocation5 + $0x238] sm:$0xff] }
 0xa16   :  { %4763 = vmatpush1.bf16.msra.mxu0 %v4419_v11  ;;  %5091 = vmatpush1.bf16.msra.mxu1 %v4421_v29  ;;  %v3495_v11 = vld [vmem:[#allocation5 + $0x220] sm:$0xff]  ;;  %v3497_v29 = vld [vmem:[#allocation5 + $0x230] sm:$0xff] }
 0xa17   :  { %4764 = vmatprep.subr.bf16.mxu0 %v4428_v47  ;;  %5092 = vmatprep.subr.bf16.mxu1 %v4430_v58  ;;  %v3504_v47 = vld [vmem:[#allocation5 + $0x268] sm:$0xff]  ;;  %v3506_v58 = vld [vmem:[#allocation5 + $0x278] sm:$0xff] }
 0xa1a   :  { %4765 = vmatpush1.bf16.msra.mxu0 %v4427_v55  ;;  %5093 = vmatpush1.bf16.msra.mxu1 %v4429_v13  ;;  %v3503_v55 = vld [vmem:[#allocation5 + $0x260] sm:$0xff]  ;;  %v3505_v13 = vld [vmem:[#allocation5 + $0x270] sm:$0xff] }
 0xa1b   :  { %4766 = vmatprep.subr.bf16.mxu0 %v4436_v50  ;;  %5094 = vmatprep.subr.bf16.mxu1 %v4438_v63  ;;  %v3512_v50 = vld [vmem:[#allocation5 + $0x2a8] sm:$0xff]  ;;  %v3514_v63 = vld [vmem:[#allocation5 + $0x2b8] sm:$0xff] }
 0xa1e   :  { %4767 = vmatpush1.bf16.msra.mxu0 %v4435_v28  ;;  %5095 = vmatpush1.bf16.msra.mxu1 %v4437_v52  ;;  %v3511_v28 = vld [vmem:[#allocation5 + $0x2a0] sm:$0xff]  ;;  %v3513_v52 = vld [vmem:[#allocation5 + $0x2b0] sm:$0xff] }
 0xa1f   :  { %4768 = vmatprep.subr.bf16.mxu0 %v4444_v19  ;;  %5096 = vmatprep.subr.bf16.mxu1 %v4446_v24  ;;  %v3520_v19 = vld [vmem:[#allocation5 + $0x2e8] sm:$0xff]  ;;  %v3522_v24 = vld [vmem:[#allocation5 + $0x2f8] sm:$0xff] }
 0xa22   :  { %4769 = vmatpush1.bf16.msra.mxu0 %v4443_v54  ;;  %5097 = vmatpush1.bf16.msra.mxu1 %v4445_v2  ;;  %v3519_v54 = vld [vmem:[#allocation5 + $0x2e0] sm:$0xff]  ;;  %v3521_v2 = vld [vmem:[#allocation5 + $0x2f0] sm:$0xff] }
 0xa23   :  { %5107 = vmatprep.subr.bf16.mxu0 %v3432_v37  ;;  %5435 = vmatprep.subr.bf16.mxu1 %v3434_v22  ;;  %v3528_v37 = vld [vmem:[#allocation5 + $0x328] sm:$0xff]  ;;  %v3530_v22 = vld [vmem:[#allocation5 + $0x338] sm:$0xff] }
 0xa25   :  { %4771 = vmatmul.mubr.bf16.vlgmr.msra.gmra.mrb[28].mxu0 %v8342_v3  ;;  %5099 = vmatmul.mubr.bf16.vlgmr.msra.gmra.mrb[28].mxu1 %v8342_v3 }
 0xa26   :  { %5108 = vmatpush1.bf16.msra.mxu0 %v3431_v49  ;;  %5436 = vmatpush1.bf16.msra.mxu1 %v3433_v1  ;;  %v3527_v49 = vld [vmem:[#allocation5 + $0x320] sm:$0xff]  ;;  %v3529_v1 = vld [vmem:[#allocation5 + $0x330] sm:$0xff] }
 0xa27   :  { %5109 = vmatprep.subr.bf16.mxu0 %v3440_v8  ;;  %5437 = vmatprep.subr.bf16.mxu1 %v3442_v9  ;;  %v3536_v8 = vld [vmem:[#allocation5 + $0x368] sm:$0xff]  ;;  %v3538_v9 = vld [vmem:[#allocation5 + $0x378] sm:$0xff] }
 0xa28   :  { %5139 = vmatprep.mubr.bf16.mxu0 %v8237_v4  ;;  %5467 = vmatprep.mubr.bf16.mxu1 %v8237_v4 }
 0xa2a   :  { %5110 = vmatpush1.bf16.msra.mxu0 %v3439_v51  ;;  %5438 = vmatpush1.bf16.msra.mxu1 %v3441_v43  ;;  %v3535_v51 = vld [vmem:[#allocation5 + $0x360] sm:$0xff]  ;;  %v3537_v43 = vld [vmem:[#allocation5 + $0x370] sm:$0xff] }
 0xa2b   :  { %5111 = vmatprep.subr.bf16.mxu0 %v3448_v30  ;;  %5439 = vmatprep.subr.bf16.mxu1 %v3450_v39  ;;  %v3544_v30 = vld [vmem:[#allocation5 + $0x3a8] sm:$0xff]  ;;  %v3546_v39 = vld [vmem:[#allocation5 + $0x3b8] sm:$0xff] }
 0xa2e   :  { %5112 = vmatpush1.bf16.msra.mxu0 %v3447_v34  ;;  %5440 = vmatpush1.bf16.msra.mxu1 %v3449_v14  ;;  %v3543_v34 = vld [vmem:[#allocation5 + $0x3a0] sm:$0xff]  ;;  %v3545_v14 = vld [vmem:[#allocation5 + $0x3b0] sm:$0xff] }
 0xa2f   :  { %5113 = vmatprep.subr.bf16.mxu0 %v3456_v57  ;;  %5441 = vmatprep.subr.bf16.mxu1 %v3458_v60  ;;  %v3552_v57 = vld [vmem:[#allocation5 + $0x3e8] sm:$0xff]  ;;  %v3554_v60 = vld [vmem:[#allocation5 + $0x3f8] sm:$0xff] }
 0xa32   :  { %5114 = vmatpush1.bf16.msra.mxu0 %v3455_v61  ;;  %5442 = vmatpush1.bf16.msra.mxu1 %v3457_v7  ;;  %v3551_v61 = vld [vmem:[#allocation5 + $0x3e0] sm:$0xff]  ;;  %v3553_v7 = vld [vmem:[#allocation5 + $0x3f0] sm:$0xff] }
 0xa33   :  { %5115 = vmatprep.subr.bf16.mxu0 %v3464_v23  ;;  %5443 = vmatprep.subr.bf16.mxu1 %v3466_v31  ;;  %v3560_v23 = vld [vmem:[#allocation5 + $0x428] sm:$0xff]  ;;  %v3562_v31 = vld [vmem:[#allocation5 + $0x438] sm:$0xff] }
 0xa36   :  { %5116 = vmatpush1.bf16.msra.mxu0 %v3463_v36  ;;  %5444 = vmatpush1.bf16.msra.mxu1 %v3465_v41  ;;  %v3559_v36 = vld [vmem:[#allocation5 + $0x420] sm:$0xff]  ;;  %v3561_v41 = vld [vmem:[#allocation5 + $0x430] sm:$0xff] }
 0xa37   :  { %5117 = vmatprep.subr.bf16.mxu0 %v3472_v20  ;;  %5445 = vmatprep.subr.bf16.mxu1 %v3474_v15  ;;  %v3568_v20 = vld [vmem:[#allocation5 + $0x468] sm:$0xff]  ;;  %v3570_v15 = vld [vmem:[#allocation5 + $0x478] sm:$0xff] }
 0xa3a   :  { %5118 = vmatpush1.bf16.msra.mxu0 %v3471_v45  ;;  %5446 = vmatpush1.bf16.msra.mxu1 %v3473_v62  ;;  %v3567_v45 = vld [vmem:[#allocation5 + $0x460] sm:$0xff]  ;;  %v3569_v62 = vld [vmem:[#allocation5 + $0x470] sm:$0xff] }
 0xa3b   :  { %5119 = vmatprep.subr.bf16.mxu0 %v3480_v40  ;;  %5447 = vmatprep.subr.bf16.mxu1 %v3482_v21  ;;  %v3576_v40 = vld [vmem:[#allocation5 + $0x4a8] sm:$0xff]  ;;  %v3578_v21 = vld [vmem:[#allocation5 + $0x4b8] sm:$0xff] }
 0xa3e   :  { %5120 = vmatpush1.bf16.msra.mxu0 %v3479_v56  ;;  %5448 = vmatpush1.bf16.msra.mxu1 %v3481_v10  ;;  %v3575_v56 = vld [vmem:[#allocation5 + $0x4a0] sm:$0xff]  ;;  %v3577_v10 = vld [vmem:[#allocation5 + $0x4b0] sm:$0xff] }
 0xa3f   :  { %5121 = vmatprep.subr.bf16.mxu0 %v3488_v26  ;;  %5449 = vmatprep.subr.bf16.mxu1 %v3490_v27  ;;  %v3584_v26 = vld [vmem:[#allocation5 + $0x4e8] sm:$0xff]  ;;  %v3586_v27 = vld [vmem:[#allocation5 + $0x4f8] sm:$0xff] }
 0xa42   :  { %5122 = vmatpush1.bf16.msra.mxu0 %v3487_v33  ;;  %5450 = vmatpush1.bf16.msra.mxu1 %v3489_v42  ;;  %v3583_v33 = vld [vmem:[#allocation5 + $0x4e0] sm:$0xff]  ;;  %v3585_v42 = vld [vmem:[#allocation5 + $0x4f0] sm:$0xff] }
 0xa43   :  { %5123 = vmatprep.subr.bf16.mxu0 %v3496_v44  ;;  %5451 = vmatprep.subr.bf16.mxu1 %v3498_v48  ;;  %v3592_v44 = vld [vmem:[#allocation5 + $0x528] sm:$0xff]  ;;  %v3594_v48 = vld [vmem:[#allocation5 + $0x538] sm:$0xff] }
 0xa46   :  { %5124 = vmatpush1.bf16.msra.mxu0 %v3495_v11  ;;  %5452 = vmatpush1.bf16.msra.mxu1 %v3497_v29  ;;  %v3591_v11 = vld [vmem:[#allocation5 + $0x520] sm:$0xff]  ;;  %v3593_v29 = vld [vmem:[#allocation5 + $0x530] sm:$0xff] }
 0xa47   :  { %5125 = vmatprep.subr.bf16.mxu0 %v3504_v47  ;;  %5453 = vmatprep.subr.bf16.mxu1 %v3506_v58  ;;  %v3600_v47 = vld [vmem:[#allocation5 + $0x568] sm:$0xff]  ;;  %v3602_v58 = vld [vmem:[#allocation5 + $0x578] sm:$0xff] }
 0xa4a   :  { %5126 = vmatpush1.bf16.msra.mxu0 %v3503_v55  ;;  %5454 = vmatpush1.bf16.msra.mxu1 %v3505_v13  ;;  %v3599_v55 = vld [vmem:[#allocation5 + $0x560] sm:$0xff]  ;;  %v3601_v13 = vld [vmem:[#allocation5 + $0x570] sm:$0xff] }
 0xa4b   :  { %5127 = vmatprep.subr.bf16.mxu0 %v3512_v50  ;;  %5455 = vmatprep.subr.bf16.mxu1 %v3514_v63  ;;  %v3608_v50 = vld [vmem:[#allocation5 + $0x5a8] sm:$0xff]  ;;  %v3610_v63 = vld [vmem:[#allocation5 + $0x5b8] sm:$0xff] }
 0xa4e   :  { %5128 = vmatpush1.bf16.msra.mxu0 %v3511_v28  ;;  %5456 = vmatpush1.bf16.msra.mxu1 %v3513_v52  ;;  %v3607_v28 = vld [vmem:[#allocation5 + $0x5a0] sm:$0xff]  ;;  %v3609_v52 = vld [vmem:[#allocation5 + $0x5b0] sm:$0xff] }
 0xa4f   :  { %5129 = vmatprep.subr.bf16.mxu0 %v3520_v19  ;;  %5457 = vmatprep.subr.bf16.mxu1 %v3522_v24  ;;  %v3616_v19 = vld [vmem:[#allocation5 + $0x5e8] sm:$0xff]  ;;  %v3618_v24 = vld [vmem:[#allocation5 + $0x5f8] sm:$0xff] }
 0xa52   :  { %5130 = vmatpush1.bf16.msra.mxu0 %v3519_v54  ;;  %5458 = vmatpush1.bf16.msra.mxu1 %v3521_v2  ;;  %v3615_v54 = vld [vmem:[#allocation5 + $0x5e0] sm:$0xff]  ;;  %v3617_v2 = vld [vmem:[#allocation5 + $0x5f0] sm:$0xff] }
 0xa53   :  { %5131 = vmatprep.subr.bf16.mxu0 %v3528_v37  ;;  %5459 = vmatprep.subr.bf16.mxu1 %v3530_v22  ;;  %v3624_v37 = vld [vmem:[#allocation5 + $0x628] sm:$0xff]  ;;  %v3626_v22 = vld [vmem:[#allocation5 + $0x638] sm:$0xff] }
 0xa56   :  { %5132 = vmatpush1.bf16.msra.mxu0 %v3527_v49  ;;  %5460 = vmatpush1.bf16.msra.mxu1 %v3529_v1  ;;  %v3623_v49 = vld [vmem:[#allocation5 + $0x620] sm:$0xff]  ;;  %v3625_v1 = vld [vmem:[#allocation5 + $0x630] sm:$0xff] }
 0xa57   :  { %5133 = vmatprep.subr.bf16.mxu0 %v3536_v8  ;;  %5461 = vmatprep.subr.bf16.mxu1 %v3538_v9  ;;  %v3632_v8 = vld [vmem:[#allocation5 + $0x668] sm:$0xff]  ;;  %v3634_v9 = vld [vmem:[#allocation5 + $0x678] sm:$0xff] }
 0xa5a   :  { %5134 = vmatpush1.bf16.msra.mxu0 %v3535_v51  ;;  %5462 = vmatpush1.bf16.msra.mxu1 %v3537_v43  ;;  %v3631_v51 = vld [vmem:[#allocation5 + $0x660] sm:$0xff]  ;;  %v3633_v43 = vld [vmem:[#allocation5 + $0x670] sm:$0xff] }
 0xa5b   :  { %5135 = vmatprep.subr.bf16.mxu0 %v3544_v30  ;;  %5463 = vmatprep.subr.bf16.mxu1 %v3546_v39  ;;  %v3640_v30 = vld [vmem:[#allocation5 + $0x6a8] sm:$0xff]  ;;  %v3642_v39 = vld [vmem:[#allocation5 + $0x6b8] sm:$0xff] }
 0xa5e   :  { %5136 = vmatpush1.bf16.msra.mxu0 %v3543_v34  ;;  %5464 = vmatpush1.bf16.msra.mxu1 %v3545_v14  ;;  %v3639_v34 = vld [vmem:[#allocation5 + $0x6a0] sm:$0xff]  ;;  %v3641_v14 = vld [vmem:[#allocation5 + $0x6b0] sm:$0xff] }
 0xa5f   :  { %5137 = vmatprep.subr.bf16.mxu0 %v3552_v57  ;;  %5465 = vmatprep.subr.bf16.mxu1 %v3554_v60  ;;  %v3648_v57 = vld [vmem:[#allocation5 + $0x6e8] sm:$0xff]  ;;  %v3650_v60 = vld [vmem:[#allocation5 + $0x6f8] sm:$0xff] }
 0xa62   :  { %5138 = vmatpush1.bf16.msra.mxu0 %v3551_v61  ;;  %5466 = vmatpush1.bf16.msra.mxu1 %v3553_v7  ;;  %v3647_v61 = vld [vmem:[#allocation5 + $0x6e0] sm:$0xff]  ;;  %v3649_v7 = vld [vmem:[#allocation5 + $0x6f0] sm:$0xff] }
 0xa63   :  { %5148 = vmatprep.subr.bf16.mxu0 %v3560_v23  ;;  %5476 = vmatprep.subr.bf16.mxu1 %v3562_v31  ;;  %v3656_v23 = vld [vmem:[#allocation5 + $0x728] sm:$0xff]  ;;  %v3658_v31 = vld [vmem:[#allocation5 + $0x738] sm:$0xff] }
 0xa65   :  { %5140 = vmatmul.mubr.bf16.vlgmr.msra.gmra.mrb[32].mxu0 %v8244_v5  ;;  %5468 = vmatmul.mubr.bf16.vlgmr.msra.gmra.mrb[32].mxu1 %v8244_v5 }
 0xa66   :  { %5149 = vmatpush1.bf16.msra.mxu0 %v3559_v36  ;;  %5477 = vmatpush1.bf16.msra.mxu1 %v3561_v41  ;;  %v3655_v36 = vld [vmem:[#allocation5 + $0x720] sm:$0xff]  ;;  %v3657_v41 = vld [vmem:[#allocation5 + $0x730] sm:$0xff] }
 0xa67   :  { %5150 = vmatprep.subr.bf16.mxu0 %v3568_v20  ;;  %5478 = vmatprep.subr.bf16.mxu1 %v3570_v15  ;;  %v3664_v20 = vld [vmem:[#allocation5 + $0x768] sm:$0xff]  ;;  %v3666_v15 = vld [vmem:[#allocation5 + $0x778] sm:$0xff] }
 0xa68   :  { %5180 = vmatprep.mubr.bf16.mxu0 %v8249_v35  ;;  %5508 = vmatprep.mubr.bf16.mxu1 %v8249_v35 }
 0xa6a   :  { %5151 = vmatpush1.bf16.msra.mxu0 %v3567_v45  ;;  %5479 = vmatpush1.bf16.msra.mxu1 %v3569_v62  ;;  %v3663_v45 = vld [vmem:[#allocation5 + $0x760] sm:$0xff]  ;;  %v3665_v62 = vld [vmem:[#allocation5 + $0x770] sm:$0xff] }
 0xa6b   :  { %5152 = vmatprep.subr.bf16.mxu0 %v3576_v40  ;;  %5480 = vmatprep.subr.bf16.mxu1 %v3578_v21  ;;  %v3672_v40 = vld [vmem:[#allocation5 + $0x7a8] sm:$0xff]  ;;  %v3674_v21 = vld [vmem:[#allocation5 + $0x7b8] sm:$0xff] }
 0xa6e   :  { %5153 = vmatpush1.bf16.msra.mxu0 %v3575_v56  ;;  %5481 = vmatpush1.bf16.msra.mxu1 %v3577_v10  ;;  %v3671_v56 = vld [vmem:[#allocation5 + $0x7a0] sm:$0xff]  ;;  %v3673_v10 = vld [vmem:[#allocation5 + $0x7b0] sm:$0xff] }
 0xa6f   :  { %5154 = vmatprep.subr.bf16.mxu0 %v3584_v26  ;;  %5482 = vmatprep.subr.bf16.mxu1 %v3586_v27  ;;  %v3680_v26 = vld [vmem:[#allocation5 + $0x7e8] sm:$0xff]  ;;  %v3682_v27 = vld [vmem:[#allocation5 + $0x7f8] sm:$0xff] }
 0xa72   :  { %5155 = vmatpush1.bf16.msra.mxu0 %v3583_v33  ;;  %5483 = vmatpush1.bf16.msra.mxu1 %v3585_v42  ;;  %v3679_v33 = vld [vmem:[#allocation5 + $0x7e0] sm:$0xff]  ;;  %v3681_v42 = vld [vmem:[#allocation5 + $0x7f0] sm:$0xff] }
 0xa73   :  { %5156 = vmatprep.subr.bf16.mxu0 %v3592_v44  ;;  %5484 = vmatprep.subr.bf16.mxu1 %v3594_v48  ;;  %v3688_v44 = vld [vmem:[#allocation5 + $0x828] sm:$0xff]  ;;  %v3690_v48 = vld [vmem:[#allocation5 + $0x838] sm:$0xff] }
 0xa76   :  { %5157 = vmatpush1.bf16.msra.mxu0 %v3591_v11  ;;  %5485 = vmatpush1.bf16.msra.mxu1 %v3593_v29  ;;  %v3687_v11 = vld [vmem:[#allocation5 + $0x820] sm:$0xff]  ;;  %v3689_v29 = vld [vmem:[#allocation5 + $0x830] sm:$0xff] }
 0xa77   :  { %5158 = vmatprep.subr.bf16.mxu0 %v3600_v47  ;;  %5486 = vmatprep.subr.bf16.mxu1 %v3602_v58  ;;  %v3696_v47 = vld [vmem:[#allocation5 + $0x868] sm:$0xff]  ;;  %v3698_v58 = vld [vmem:[#allocation5 + $0x878] sm:$0xff] }
 0xa7a   :  { %5159 = vmatpush1.bf16.msra.mxu0 %v3599_v55  ;;  %5487 = vmatpush1.bf16.msra.mxu1 %v3601_v13  ;;  %v3695_v55 = vld [vmem:[#allocation5 + $0x860] sm:$0xff]  ;;  %v3697_v13 = vld [vmem:[#allocation5 + $0x870] sm:$0xff] }
 0xa7b   :  { %5160 = vmatprep.subr.bf16.mxu0 %v3608_v50  ;;  %5488 = vmatprep.subr.bf16.mxu1 %v3610_v63  ;;  %v3704_v50 = vld [vmem:[#allocation5 + $0x8a8] sm:$0xff]  ;;  %v3706_v63 = vld [vmem:[#allocation5 + $0x8b8] sm:$0xff] }
 0xa7e   :  { %5161 = vmatpush1.bf16.msra.mxu0 %v3607_v28  ;;  %5489 = vmatpush1.bf16.msra.mxu1 %v3609_v52  ;;  %v3703_v28 = vld [vmem:[#allocation5 + $0x8a0] sm:$0xff]  ;;  %v3705_v52 = vld [vmem:[#allocation5 + $0x8b0] sm:$0xff] }
 0xa7f   :  { %5162 = vmatprep.subr.bf16.mxu0 %v3616_v19  ;;  %5490 = vmatprep.subr.bf16.mxu1 %v3618_v24  ;;  %v3712_v19 = vld [vmem:[#allocation5 + $0x8e8] sm:$0xff]  ;;  %v3714_v24 = vld [vmem:[#allocation5 + $0x8f8] sm:$0xff] }
 0xa82   :  { %5163 = vmatpush1.bf16.msra.mxu0 %v3615_v54  ;;  %5491 = vmatpush1.bf16.msra.mxu1 %v3617_v2  ;;  %v3711_v54 = vld [vmem:[#allocation5 + $0x8e0] sm:$0xff]  ;;  %v3713_v2 = vld [vmem:[#allocation5 + $0x8f0] sm:$0xff] }
 0xa83   :  { %5164 = vmatprep.subr.bf16.mxu0 %v3624_v37  ;;  %5492 = vmatprep.subr.bf16.mxu1 %v3626_v22  ;;  %v3720_v37 = vld [vmem:[#allocation5 + $0x928] sm:$0xff]  ;;  %v3722_v22 = vld [vmem:[#allocation5 + $0x938] sm:$0xff] }
 0xa86   :  { %5165 = vmatpush1.bf16.msra.mxu0 %v3623_v49  ;;  %5493 = vmatpush1.bf16.msra.mxu1 %v3625_v1  ;;  %v3719_v49 = vld [vmem:[#allocation5 + $0x920] sm:$0xff]  ;;  %v3721_v1 = vld [vmem:[#allocation5 + $0x930] sm:$0xff] }
 0xa87   :  { %5166 = vmatprep.subr.bf16.mxu0 %v3632_v8  ;;  %5494 = vmatprep.subr.bf16.mxu1 %v3634_v9  ;;  %v3728_v8 = vld [vmem:[#allocation5 + $0x968] sm:$0xff]  ;;  %v3730_v9 = vld [vmem:[#allocation5 + $0x978] sm:$0xff] }
 0xa8a   :  { %5167 = vmatpush1.bf16.msra.mxu0 %v3631_v51  ;;  %5495 = vmatpush1.bf16.msra.mxu1 %v3633_v43  ;;  %v3727_v51 = vld [vmem:[#allocation5 + $0x960] sm:$0xff]  ;;  %v3729_v43 = vld [vmem:[#allocation5 + $0x970] sm:$0xff] }
 0xa8b   :  { %5168 = vmatprep.subr.bf16.mxu0 %v3640_v30  ;;  %5496 = vmatprep.subr.bf16.mxu1 %v3642_v39  ;;  %v3736_v30 = vld [vmem:[#allocation5 + $0x9a8] sm:$0xff]  ;;  %v3738_v39 = vld [vmem:[#allocation5 + $0x9b8] sm:$0xff] }
 0xa8e   :  { %5169 = vmatpush1.bf16.msra.mxu0 %v3639_v34  ;;  %5497 = vmatpush1.bf16.msra.mxu1 %v3641_v14  ;;  %v3735_v34 = vld [vmem:[#allocation5 + $0x9a0] sm:$0xff]  ;;  %v3737_v14 = vld [vmem:[#allocation5 + $0x9b0] sm:$0xff] }
 0xa8f   :  { %5170 = vmatprep.subr.bf16.mxu0 %v3648_v57  ;;  %5498 = vmatprep.subr.bf16.mxu1 %v3650_v60  ;;  %v3744_v57 = vld [vmem:[#allocation5 + $0x9e8] sm:$0xff]  ;;  %v3746_v60 = vld [vmem:[#allocation5 + $0x9f8] sm:$0xff] }
 0xa92   :  { %5171 = vmatpush1.bf16.msra.mxu0 %v3647_v61  ;;  %5499 = vmatpush1.bf16.msra.mxu1 %v3649_v7  ;;  %v3743_v61 = vld [vmem:[#allocation5 + $0x9e0] sm:$0xff]  ;;  %v3745_v7 = vld [vmem:[#allocation5 + $0x9f0] sm:$0xff] }
 0xa93   :  { %5172 = vmatprep.subr.bf16.mxu0 %v3656_v23  ;;  %5500 = vmatprep.subr.bf16.mxu1 %v3658_v31  ;;  %v3752_v23 = vld [vmem:[#allocation5 + $0xa28] sm:$0xff]  ;;  %v3754_v31 = vld [vmem:[#allocation5 + $0xa38] sm:$0xff] }
 0xa96   :  { %5173 = vmatpush1.bf16.msra.mxu0 %v3655_v36  ;;  %5501 = vmatpush1.bf16.msra.mxu1 %v3657_v41  ;;  %v3751_v36 = vld [vmem:[#allocation5 + $0xa20] sm:$0xff]  ;;  %v3753_v41 = vld [vmem:[#allocation5 + $0xa30] sm:$0xff] }
 0xa97   :  { %5174 = vmatprep.subr.bf16.mxu0 %v3664_v20  ;;  %5502 = vmatprep.subr.bf16.mxu1 %v3666_v15  ;;  %v3760_v20 = vld [vmem:[#allocation5 + $0xa68] sm:$0xff]  ;;  %v3762_v15 = vld [vmem:[#allocation5 + $0xa78] sm:$0xff] }
 0xa9a   :  { %5175 = vmatpush1.bf16.msra.mxu0 %v3663_v45  ;;  %5503 = vmatpush1.bf16.msra.mxu1 %v3665_v62  ;;  %v3759_v45 = vld [vmem:[#allocation5 + $0xa60] sm:$0xff]  ;;  %v3761_v62 = vld [vmem:[#allocation5 + $0xa70] sm:$0xff] }
 0xa9b   :  { %5176 = vmatprep.subr.bf16.mxu0 %v3672_v40  ;;  %5504 = vmatprep.subr.bf16.mxu1 %v3674_v21  ;;  %v3768_v40 = vld [vmem:[#allocation5 + $0xaa8] sm:$0xff]  ;;  %v3770_v21 = vld [vmem:[#allocation5 + $0xab8] sm:$0xff] }
 0xa9e   :  { %5177 = vmatpush1.bf16.msra.mxu0 %v3671_v56  ;;  %5505 = vmatpush1.bf16.msra.mxu1 %v3673_v10  ;;  %v3767_v56 = vld [vmem:[#allocation5 + $0xaa0] sm:$0xff]  ;;  %v3769_v10 = vld [vmem:[#allocation5 + $0xab0] sm:$0xff] }
 0xa9f   :  { %5178 = vmatprep.subr.bf16.mxu0 %v3680_v26  ;;  %5506 = vmatprep.subr.bf16.mxu1 %v3682_v27  ;;  %v3776_v26 = vld [vmem:[#allocation5 + $0xae8] sm:$0xff]  ;;  %v3778_v27 = vld [vmem:[#allocation5 + $0xaf8] sm:$0xff] }
 0xaa2   :  { %5179 = vmatpush1.bf16.msra.mxu0 %v3679_v33  ;;  %5507 = vmatpush1.bf16.msra.mxu1 %v3681_v42  ;;  %v3775_v33 = vld [vmem:[#allocation5 + $0xae0] sm:$0xff]  ;;  %v3777_v42 = vld [vmem:[#allocation5 + $0xaf0] sm:$0xff] }
 0xaa3   :  { %5189 = vmatprep.subr.bf16.mxu0 %v3688_v44  ;;  %5517 = vmatprep.subr.bf16.mxu1 %v3690_v48  ;;  %v3784_v44 = vld [vmem:[#allocation5 + $0xb28] sm:$0xff]  ;;  %v3786_v48 = vld [vmem:[#allocation5 + $0xb38] sm:$0xff] }
 0xaa5   :  { %5181 = vmatmul.mubr.bf16.vlgmr.msra.gmra.mrb[32].mxu0 %v8258_v59  ;;  %5509 = vmatmul.mubr.bf16.vlgmr.msra.gmra.mrb[32].mxu1 %v8258_v59 }
 0xaa6   :  { %5190 = vmatpush1.bf16.msra.mxu0 %v3687_v11  ;;  %5518 = vmatpush1.bf16.msra.mxu1 %v3689_v29  ;;  %v3783_v11 = vld [vmem:[#allocation5 + $0xb20] sm:$0xff]  ;;  %v3785_v29 = vld [vmem:[#allocation5 + $0xb30] sm:$0xff] }
 0xaa7   :  { %5191 = vmatprep.subr.bf16.mxu0 %v3696_v47  ;;  %5519 = vmatprep.subr.bf16.mxu1 %v3698_v58  ;;  %v3792_v47 = vld [vmem:[#allocation5 + $0xb68] sm:$0xff]  ;;  %v3794_v58 = vld [vmem:[#allocation5 + $0xb78] sm:$0xff] }
 0xaa8   :  { %5221 = vmatprep.mubr.bf16.mxu0 %v8263_v12  ;;  %5549 = vmatprep.mubr.bf16.mxu1 %v8263_v12 }
 0xaaa   :  { %5192 = vmatpush1.bf16.msra.mxu0 %v3695_v55  ;;  %5520 = vmatpush1.bf16.msra.mxu1 %v3697_v13  ;;  %v3791_v55 = vld [vmem:[#allocation5 + $0xb60] sm:$0xff]  ;;  %v3793_v13 = vld [vmem:[#allocation5 + $0xb70] sm:$0xff] }
 0xaab   :  { %5193 = vmatprep.subr.bf16.mxu0 %v3704_v50  ;;  %5521 = vmatprep.subr.bf16.mxu1 %v3706_v63  ;;  %v3800_v50 = vld [vmem:[#allocation5 + $0xba8] sm:$0xff]  ;;  %v3802_v63 = vld [vmem:[#allocation5 + $0xbb8] sm:$0xff] }
 0xaae   :  { %5194 = vmatpush1.bf16.msra.mxu0 %v3703_v28  ;;  %5522 = vmatpush1.bf16.msra.mxu1 %v3705_v52  ;;  %v3799_v28 = vld [vmem:[#allocation5 + $0xba0] sm:$0xff]  ;;  %v3801_v52 = vld [vmem:[#allocation5 + $0xbb0] sm:$0xff] }
 0xaaf   :  { %5195 = vmatprep.subr.bf16.mxu0 %v3712_v19  ;;  %5523 = vmatprep.subr.bf16.mxu1 %v3714_v24  ;;  %v3808_v19 = vld [vmem:[#allocation5 + $0xbe8] sm:$0xff]  ;;  %v3810_v24 = vld [vmem:[#allocation5 + $0xbf8] sm:$0xff] }
 0xab2   :  { %5196 = vmatpush1.bf16.msra.mxu0 %v3711_v54  ;;  %5524 = vmatpush1.bf16.msra.mxu1 %v3713_v2  ;;  %v3807_v54 = vld [vmem:[#allocation5 + $0xbe0] sm:$0xff]  ;;  %v3809_v2 = vld [vmem:[#allocation5 + $0xbf0] sm:$0xff] }
 0xab3   :  { %5197 = vmatprep.subr.bf16.mxu0 %v3720_v37  ;;  %5525 = vmatprep.subr.bf16.mxu1 %v3722_v22  ;;  %v3816_v37 = vld [vmem:[#allocation5 + $0xc28] sm:$0xff]  ;;  %v3818_v22 = vld [vmem:[#allocation5 + $0xc38] sm:$0xff] }
 0xab6   :  { %5198 = vmatpush1.bf16.msra.mxu0 %v3719_v49  ;;  %5526 = vmatpush1.bf16.msra.mxu1 %v3721_v1  ;;  %v3815_v49 = vld [vmem:[#allocation5 + $0xc20] sm:$0xff]  ;;  %v3817_v1 = vld [vmem:[#allocation5 + $0xc30] sm:$0xff] }
 0xab7   :  { %5199 = vmatprep.subr.bf16.mxu0 %v3728_v8  ;;  %5527 = vmatprep.subr.bf16.mxu1 %v3730_v9  ;;  %v3824_v8 = vld [vmem:[#allocation5 + $0xc68] sm:$0xff]  ;;  %v3826_v9 = vld [vmem:[#allocation5 + $0xc78] sm:$0xff] }
 0xaba   :  { %5200 = vmatpush1.bf16.msra.mxu0 %v3727_v51  ;;  %5528 = vmatpush1.bf16.msra.mxu1 %v3729_v43  ;;  %v3823_v51 = vld [vmem:[#allocation5 + $0xc60] sm:$0xff]  ;;  %v3825_v43 = vld [vmem:[#allocation5 + $0xc70] sm:$0xff] }
 0xabb   :  { %5201 = vmatprep.subr.bf16.mxu0 %v3736_v30  ;;  %5529 = vmatprep.subr.bf16.mxu1 %v3738_v39  ;;  %v3832_v30 = vld [vmem:[#allocation5 + $0xca8] sm:$0xff]  ;;  %v3834_v39 = vld [vmem:[#allocation5 + $0xcb8] sm:$0xff] }
 0xabe   :  { %5202 = vmatpush1.bf16.msra.mxu0 %v3735_v34  ;;  %5530 = vmatpush1.bf16.msra.mxu1 %v3737_v14  ;;  %v3831_v34 = vld [vmem:[#allocation5 + $0xca0] sm:$0xff]  ;;  %v3833_v14 = vld [vmem:[#allocation5 + $0xcb0] sm:$0xff] }
 0xabf   :  { %5203 = vmatprep.subr.bf16.mxu0 %v3744_v57  ;;  %5531 = vmatprep.subr.bf16.mxu1 %v3746_v60  ;;  %v3840_v57 = vld [vmem:[#allocation5 + $0xce8] sm:$0xff]  ;;  %v3842_v60 = vld [vmem:[#allocation5 + $0xcf8] sm:$0xff] }
 0xac2   :  { %5204 = vmatpush1.bf16.msra.mxu0 %v3743_v61  ;;  %5532 = vmatpush1.bf16.msra.mxu1 %v3745_v7  ;;  %v3839_v61 = vld [vmem:[#allocation5 + $0xce0] sm:$0xff]  ;;  %v3841_v7 = vld [vmem:[#allocation5 + $0xcf0] sm:$0xff] }
 0xac3   :  { %5205 = vmatprep.subr.bf16.mxu0 %v3752_v23  ;;  %5533 = vmatprep.subr.bf16.mxu1 %v3754_v31  ;;  %v3848_v23 = vld [vmem:[#allocation5 + $0xd28] sm:$0xff]  ;;  %v3850_v31 = vld [vmem:[#allocation5 + $0xd38] sm:$0xff] }
 0xac6   :  { %5206 = vmatpush1.bf16.msra.mxu0 %v3751_v36  ;;  %5534 = vmatpush1.bf16.msra.mxu1 %v3753_v41  ;;  %v3847_v36 = vld [vmem:[#allocation5 + $0xd20] sm:$0xff]  ;;  %v3849_v41 = vld [vmem:[#allocation5 + $0xd30] sm:$0xff] }
 0xac7   :  { %5207 = vmatprep.subr.bf16.mxu0 %v3760_v20  ;;  %5535 = vmatprep.subr.bf16.mxu1 %v3762_v15  ;;  %v3856_v20 = vld [vmem:[#allocation5 + $0xd68] sm:$0xff]  ;;  %v3858_v15 = vld [vmem:[#allocation5 + $0xd78] sm:$0xff] }
 0xaca   :  { %5208 = vmatpush1.bf16.msra.mxu0 %v3759_v45  ;;  %5536 = vmatpush1.bf16.msra.mxu1 %v3761_v62  ;;  %v3855_v45 = vld [vmem:[#allocation5 + $0xd60] sm:$0xff]  ;;  %v3857_v62 = vld [vmem:[#allocation5 + $0xd70] sm:$0xff] }
 0xacb   :  { %5209 = vmatprep.subr.bf16.mxu0 %v3768_v40  ;;  %5537 = vmatprep.subr.bf16.mxu1 %v3770_v21 }
 0xace   :  { %5210 = vmatpush1.bf16.msra.mxu0 %v3767_v56  ;;  %5538 = vmatpush1.bf16.msra.mxu1 %v3769_v10  ;;  %v3864_v56 = vld [vmem:[#allocation5 + $0xda8] sm:$0xff]  ;;  %v3866_v10 = vld [vmem:[#allocation5 + $0xdb8] sm:$0xff] }
 0xacf   :  { %5211 = vmatprep.subr.bf16.mxu0 %v3776_v26  ;;  %5539 = vmatprep.subr.bf16.mxu1 %v3778_v27 }
 0xad2   :  { %5212 = vmatpush1.bf16.msra.mxu0 %v3775_v33  ;;  %5540 = vmatpush1.bf16.msra.mxu1 %v3777_v42 }
 0xad3   :  { %5213 = vmatprep.subr.bf16.mxu0 %v3784_v44  ;;  %5541 = vmatprep.subr.bf16.mxu1 %v3786_v48 }
 0xad6   :  { %5214 = vmatpush1.bf16.msra.mxu0 %v3783_v11  ;;  %5542 = vmatpush1.bf16.msra.mxu1 %v3785_v29 }
 0xad7   :  { %5215 = vmatprep.subr.bf16.mxu0 %v3792_v47  ;;  %5543 = vmatprep.subr.bf16.mxu1 %v3794_v58 }
 0xada   :  { %5216 = vmatpush1.bf16.msra.mxu0 %v3791_v55  ;;  %5544 = vmatpush1.bf16.msra.mxu1 %v3793_v13  ;;  %v3863_v55 = vld [vmem:[#allocation5 + $0xda0] sm:$0xff]  ;;  %v3865_v13 = vld [vmem:[#allocation5 + $0xdb0] sm:$0xff] }
 0xadb   :  { %5217 = vmatprep.subr.bf16.mxu0 %v3800_v50  ;;  %5545 = vmatprep.subr.bf16.mxu1 %v3802_v63  ;;  %v3872_v50 = vld [vmem:[#allocation5 + $0xde8] sm:$0xff]  ;;  %v3874_v63 = vld [vmem:[#allocation5 + $0xdf8] sm:$0xff] }
 0xade   :  { %5218 = vmatpush1.bf16.msra.mxu0 %v3799_v28  ;;  %5546 = vmatpush1.bf16.msra.mxu1 %v3801_v52  ;;  %v3871_v28 = vld [vmem:[#allocation5 + $0xde0] sm:$0xff]  ;;  %v3873_v52 = vld [vmem:[#allocation5 + $0xdf0] sm:$0xff] }
 0xadf   :  { %5219 = vmatprep.subr.bf16.mxu0 %v3808_v19  ;;  %5547 = vmatprep.subr.bf16.mxu1 %v3810_v24  ;;  %v3880_v19 = vld [vmem:[#allocation5 + $0xe28] sm:$0xff]  ;;  %v3882_v24 = vld [vmem:[#allocation5 + $0xe38] sm:$0xff] }
 0xae2   :  { %5220 = vmatpush1.bf16.msra.mxu0 %v3807_v54  ;;  %5548 = vmatpush1.bf16.msra.mxu1 %v3809_v2  ;;  %v3879_v54 = vld [vmem:[#allocation5 + $0xe20] sm:$0xff]  ;;  %v3881_v2 = vld [vmem:[#allocation5 + $0xe30] sm:$0xff] }
 0xae3   :  { %5230 = vmatprep.subr.bf16.mxu0 %v3816_v37  ;;  %5558 = vmatprep.subr.bf16.mxu1 %v3818_v22  ;;  %v3888_v37 = vld [vmem:[#allocation5 + $0xe68] sm:$0xff]  ;;  %v3890_v22 = vld [vmem:[#allocation5 + $0xe78] sm:$0xff] }
 0xae5   :  { %5222 = vmatmul.mubr.bf16.vlgmr.msra.gmra.mrb[32].mxu0 %v8272_v17  ;;  %5550 = vmatmul.mubr.bf16.vlgmr.msra.gmra.mrb[32].mxu1 %v8272_v17 }
 0xae6   :  { %5231 = vmatpush1.bf16.msra.mxu0 %v3815_v49  ;;  %5559 = vmatpush1.bf16.msra.mxu1 %v3817_v1  ;;  %v3887_v49 = vld [vmem:[#allocation5 + $0xe60] sm:$0xff]  ;;  %v3889_v1 = vld [vmem:[#allocation5 + $0xe70] sm:$0xff] }
 0xae7   :  { %5232 = vmatprep.subr.bf16.mxu0 %v3824_v8  ;;  %5560 = vmatprep.subr.bf16.mxu1 %v3826_v9  ;;  %v3896_v8 = vld [vmem:[#allocation5 + $0xea8] sm:$0xff]  ;;  %v3898_v9 = vld [vmem:[#allocation5 + $0xeb8] sm:$0xff] }
 0xae8   :  { %5262 = vmatprep.mubr.bf16.mxu0 %v8277_v46  ;;  %5590 = vmatprep.mubr.bf16.mxu1 %v8277_v46 }
 0xaea   :  { %5233 = vmatpush1.bf16.msra.mxu0 %v3823_v51  ;;  %5561 = vmatpush1.bf16.msra.mxu1 %v3825_v43  ;;  %v3895_v51 = vld [vmem:[#allocation5 + $0xea0] sm:$0xff]  ;;  %v3897_v43 = vld [vmem:[#allocation5 + $0xeb0] sm:$0xff] }
 0xaeb   :  { %5234 = vmatprep.subr.bf16.mxu0 %v3832_v30  ;;  %5562 = vmatprep.subr.bf16.mxu1 %v3834_v39  ;;  %v3904_v30 = vld [vmem:[#allocation5 + $0xee8] sm:$0xff]  ;;  %v3906_v39 = vld [vmem:[#allocation5 + $0xef8] sm:$0xff] }
 0xaee   :  { %5235 = vmatpush1.bf16.msra.mxu0 %v3831_v34  ;;  %5563 = vmatpush1.bf16.msra.mxu1 %v3833_v14  ;;  %v3903_v34 = vld [vmem:[#allocation5 + $0xee0] sm:$0xff]  ;;  %v3905_v14 = vld [vmem:[#allocation5 + $0xef0] sm:$0xff] }
 0xaef   :  { %5236 = vmatprep.subr.bf16.mxu0 %v3840_v57  ;;  %5564 = vmatprep.subr.bf16.mxu1 %v3842_v60  ;;  %v3912_v57 = vld [vmem:[#allocation5 + $0xf28] sm:$0xff]  ;;  %v3914_v60 = vld [vmem:[#allocation5 + $0xf38] sm:$0xff] }
 0xaf2   :  { %5237 = vmatpush1.bf16.msra.mxu0 %v3839_v61  ;;  %5565 = vmatpush1.bf16.msra.mxu1 %v3841_v7  ;;  %v3911_v61 = vld [vmem:[#allocation5 + $0xf20] sm:$0xff]  ;;  %v3913_v7 = vld [vmem:[#allocation5 + $0xf30] sm:$0xff] }
 0xaf3   :  { %5238 = vmatprep.subr.bf16.mxu0 %v3848_v23  ;;  %5566 = vmatprep.subr.bf16.mxu1 %v3850_v31  ;;  %v3920_v23 = vld [vmem:[#allocation5 + $0xf68] sm:$0xff]  ;;  %v3922_v31 = vld [vmem:[#allocation5 + $0xf78] sm:$0xff] }
 0xaf6   :  { %5239 = vmatpush1.bf16.msra.mxu0 %v3847_v36  ;;  %5567 = vmatpush1.bf16.msra.mxu1 %v3849_v41  ;;  %v3919_v36 = vld [vmem:[#allocation5 + $0xf60] sm:$0xff]  ;;  %v3921_v41 = vld [vmem:[#allocation5 + $0xf70] sm:$0xff] }
 0xaf7   :  { %5240 = vmatprep.subr.bf16.mxu0 %v3856_v20  ;;  %5568 = vmatprep.subr.bf16.mxu1 %v3858_v15  ;;  %v3928_v20 = vld [vmem:[#allocation5 + $0xfa8] sm:$0xff]  ;;  %v3930_v15 = vld [vmem:[#allocation5 + $0xfb8] sm:$0xff] }
 0xaf8   :  { %v8360_v40 = vpop.f32.mrb[28].mxu0  ;;  %v8362_v21 = vpop.f32.mrb[28].mxu1 }
 0xaf9   :  { %v5763_v26 = vmax.f32 %v8360_v40, 0.0  ;;  %v5765_v27 = vmax.f32 %v8362_v21, 0.0  ;;  %v8366_v33 = vpop.f32.mrb[29].mxu0  ;;  %v8368_v42 = vpop.f32.mrb[29].mxu1 }
 0xafa   :  { %v5764_v44 = vmax.f32 %v8366_v33, 0.0  ;;  %v5766_v48 = vmax.f32 %v8368_v42, 0.0  ;;  %v4776_v11 = vpop.f32.mrb[30].mxu0  ;;  %v5104_v29 = vpop.f32.mrb[30].mxu1  ;;  %5241 = vmatpush1.bf16.msra.mxu0 %v3855_v45  ;;  %5569 = vmatpush1.bf16.msra.mxu1 %v3857_v62  ;;  %v3927_v45 = vld [vmem:[#allocation5 + $0xfa0] sm:$0xff]  ;;  %v3929_v62 = vld [vmem:[#allocation5 + $0xfb0] sm:$0xff] }
 0xafb   :  { %v4777_v47 = vpop.f32.mrb[31].mxu0  ;;  %v5105_v58 = vpop.f32.mrb[31].mxu1  ;;  %5242 = vmatprep.subr.bf16.mxu0 %v3864_v56  ;;  %5570 = vmatprep.subr.bf16.mxu1 %v3866_v10  ;;  %v3936_v56 = vld [vmem:[#allocation5 + $0xfe8] sm:$0xff]  ;;  %v3938_v10 = vld [vmem:[#allocation5 + $0xff8] sm:$0xff]  ;;  %v3935_v11 = vld [vmem:[#allocation5 + $0xfe0] sm:$0xff] }
 0xafc   :  { %v3937_v29 = vld [vmem:[#allocation5 + $0xff0] sm:$0xff]  ;;  %v3944_v47 = vld [vmem:[#allocation5 + $0x1028] sm:$0xff]  ;;  %v3946_v58 = vld [vmem:[#allocation5 + $0x1038] sm:$0xff] }
 0xafe   :  { %5243 = vmatpush1.bf16.msra.mxu0 %v3863_v55  ;;  %5571 = vmatpush1.bf16.msra.mxu1 %v3865_v13  ;;  %v3943_v55 = vld [vmem:[#allocation5 + $0x1020] sm:$0xff]  ;;  %v3945_v13 = vld [vmem:[#allocation5 + $0x1030] sm:$0xff] }
 0xaff   :  { %5244 = vmatprep.subr.bf16.mxu0 %v3872_v50  ;;  %5572 = vmatprep.subr.bf16.mxu1 %v3874_v63  ;;  %v3952_v50 = vld [vmem:[#allocation5 + $0x1068] sm:$0xff]  ;;  %v3954_v63 = vld [vmem:[#allocation5 + $0x1078] sm:$0xff] }
 0xb02   :  { %5245 = vmatpush1.bf16.msra.mxu0 %v3871_v28  ;;  %5573 = vmatpush1.bf16.msra.mxu1 %v3873_v52  ;;  %v3951_v28 = vld [vmem:[#allocation5 + $0x1060] sm:$0xff]  ;;  %v3953_v52 = vld [vmem:[#allocation5 + $0x1070] sm:$0xff] }
 0xb03   :  { %5246 = vmatprep.subr.bf16.mxu0 %v3880_v19  ;;  %5574 = vmatprep.subr.bf16.mxu1 %v3882_v24  ;;  %v3960_v19 = vld [vmem:[#allocation5 + $0x10a8] sm:$0xff]  ;;  %v3962_v24 = vld [vmem:[#allocation5 + $0x10b8] sm:$0xff] }
 0xb06   :  { %5247 = vmatpush1.bf16.msra.mxu0 %v3879_v54  ;;  %5575 = vmatpush1.bf16.msra.mxu1 %v3881_v2  ;;  %v3959_v54 = vld [vmem:[#allocation5 + $0x10a0] sm:$0xff]  ;;  %v3961_v2 = vld [vmem:[#allocation5 + $0x10b0] sm:$0xff] }
 0xb07   :  { %5248 = vmatprep.subr.bf16.mxu0 %v3888_v37  ;;  %5576 = vmatprep.subr.bf16.mxu1 %v3890_v22  ;;  %v3968_v37 = vld [vmem:[#allocation5 + $0x10e8] sm:$0xff]  ;;  %v3970_v22 = vld [vmem:[#allocation5 + $0x10f8] sm:$0xff] }
 0xb0a   :  { %5249 = vmatpush1.bf16.msra.mxu0 %v3887_v49  ;;  %5577 = vmatpush1.bf16.msra.mxu1 %v3889_v1  ;;  %v3967_v49 = vld [vmem:[#allocation5 + $0x10e0] sm:$0xff]  ;;  %v3969_v1 = vld [vmem:[#allocation5 + $0x10f0] sm:$0xff] }
 0xb0b   :  { %5250 = vmatprep.subr.bf16.mxu0 %v3896_v8  ;;  %5578 = vmatprep.subr.bf16.mxu1 %v3898_v9  ;;  %v3976_v8 = vld [vmem:[#allocation5 + $0x1128] sm:$0xff]  ;;  %v3978_v9 = vld [vmem:[#allocation5 + $0x1138] sm:$0xff] }
 0xb0e   :  { %5251 = vmatpush1.bf16.msra.mxu0 %v3895_v51  ;;  %5579 = vmatpush1.bf16.msra.mxu1 %v3897_v43  ;;  %v3975_v51 = vld [vmem:[#allocation5 + $0x1120] sm:$0xff]  ;;  %v3977_v43 = vld [vmem:[#allocation5 + $0x1130] sm:$0xff] }
 0xb0f   :  { %5252 = vmatprep.subr.bf16.mxu0 %v3904_v30  ;;  %5580 = vmatprep.subr.bf16.mxu1 %v3906_v39  ;;  %v3984_v30 = vld [vmem:[#allocation5 + $0x1168] sm:$0xff]  ;;  %v3986_v39 = vld [vmem:[#allocation5 + $0x1178] sm:$0xff] }
 0xb12   :  { %5253 = vmatpush1.bf16.msra.mxu0 %v3903_v34  ;;  %5581 = vmatpush1.bf16.msra.mxu1 %v3905_v14  ;;  %v3983_v34 = vld [vmem:[#allocation5 + $0x1160] sm:$0xff]  ;;  %v3985_v14 = vld [vmem:[#allocation5 + $0x1170] sm:$0xff] }
 0xb13   :  { %5254 = vmatprep.subr.bf16.mxu0 %v3912_v57  ;;  %5582 = vmatprep.subr.bf16.mxu1 %v3914_v60  ;;  %v3992_v57 = vld [vmem:[#allocation5 + $0x11a8] sm:$0xff]  ;;  %v3994_v60 = vld [vmem:[#allocation5 + $0x11b8] sm:$0xff] }
 0xb16   :  { %5255 = vmatpush1.bf16.msra.mxu0 %v3911_v61  ;;  %5583 = vmatpush1.bf16.msra.mxu1 %v3913_v7  ;;  %v3991_v61 = vld [vmem:[#allocation5 + $0x11a0] sm:$0xff]  ;;  %v3993_v7 = vld [vmem:[#allocation5 + $0x11b0] sm:$0xff] }
 0xb17   :  { %5256 = vmatprep.subr.bf16.mxu0 %v3920_v23  ;;  %5584 = vmatprep.subr.bf16.mxu1 %v3922_v31  ;;  %v4000_v23 = vld [vmem:[#allocation5 + $0x11e8] sm:$0xff]  ;;  %v4002_v31 = vld [vmem:[#allocation5 + $0x11f8] sm:$0xff] }
 0xb1a   :  { %5257 = vmatpush1.bf16.msra.mxu0 %v3919_v36  ;;  %5585 = vmatpush1.bf16.msra.mxu1 %v3921_v41  ;;  %v3999_v36 = vld [vmem:[#allocation5 + $0x11e0] sm:$0xff]  ;;  %v4001_v41 = vld [vmem:[#allocation5 + $0x11f0] sm:$0xff] }
 0xb1b   :  { %5258 = vmatprep.subr.bf16.mxu0 %v3928_v20  ;;  %5586 = vmatprep.subr.bf16.mxu1 %v3930_v15  ;;  %v4008_v20 = vld [vmem:[#allocation5 + $0x1228] sm:$0xff]  ;;  %v4010_v15 = vld [vmem:[#allocation5 + $0x1238] sm:$0xff] }
 0xb1e   :  { %5259 = vmatpush1.bf16.msra.mxu0 %v3927_v45  ;;  %5587 = vmatpush1.bf16.msra.mxu1 %v3929_v62  ;;  %v4007_v45 = vld [vmem:[#allocation5 + $0x1220] sm:$0xff]  ;;  %v4009_v62 = vld [vmem:[#allocation5 + $0x1230] sm:$0xff] }
 0xb1f   :  { %5260 = vmatprep.subr.bf16.mxu0 %v3936_v56  ;;  %5588 = vmatprep.subr.bf16.mxu1 %v3938_v10  ;;  %v4016_v56 = vld [vmem:[#allocation5 + $0x1268] sm:$0xff]  ;;  %v4018_v10 = vld [vmem:[#allocation5 + $0x1278] sm:$0xff] }
 0xb22   :  { %5261 = vmatpush1.bf16.msra.mxu0 %v3935_v11  ;;  %5589 = vmatpush1.bf16.msra.mxu1 %v3937_v29  ;;  %v4015_v11 = vld [vmem:[#allocation5 + $0x1260] sm:$0xff]  ;;  %v4017_v29 = vld [vmem:[#allocation5 + $0x1270] sm:$0xff] }
 0xb23   :  { %5271 = vmatprep.subr.bf16.mxu0 %v3944_v47  ;;  %5599 = vmatprep.subr.bf16.mxu1 %v3946_v58  ;;  %v4024_v47 = vld [vmem:[#allocation5 + $0x12a8] sm:$0xff]  ;;  %v4026_v58 = vld [vmem:[#allocation5 + $0x12b8] sm:$0xff] }
 0xb25   :  { %5263 = vmatmul.mubr.bf16.vlgmr.msra.gmra.mrb[32].mxu0 %v8286_v0  ;;  %5591 = vmatmul.mubr.bf16.vlgmr.msra.gmra.mrb[32].mxu1 %v8286_v0 }
 0xb26   :  { %5272 = vmatpush1.bf16.msra.mxu0 %v3943_v55  ;;  %5600 = vmatpush1.bf16.msra.mxu1 %v3945_v13  ;;  %v4023_v55 = vld [vmem:[#allocation5 + $0x12a0] sm:$0xff]  ;;  %v4025_v13 = vld [vmem:[#allocation5 + $0x12b0] sm:$0xff] }
 0xb27   :  { %5273 = vmatprep.subr.bf16.mxu0 %v3952_v50  ;;  %5601 = vmatprep.subr.bf16.mxu1 %v3954_v63  ;;  %v4032_v50 = vld [vmem:[#allocation5 + $0x12e8] sm:$0xff]  ;;  %v4034_v63 = vld [vmem:[#allocation5 + $0x12f8] sm:$0xff] }
 0xb28   :  { %5303 = vmatprep.mubr.bf16.mxu0 %v8291_v6  ;;  %5631 = vmatprep.mubr.bf16.mxu1 %v8291_v6 }
 0xb2a   :  { %5274 = vmatpush1.bf16.msra.mxu0 %v3951_v28  ;;  %5602 = vmatpush1.bf16.msra.mxu1 %v3953_v52  ;;  %v4031_v28 = vld [vmem:[#allocation5 + $0x12e0] sm:$0xff]  ;;  %v4033_v52 = vld [vmem:[#allocation5 + $0x12f0] sm:$0xff] }
 0xb2b   :  { %5275 = vmatprep.subr.bf16.mxu0 %v3960_v19  ;;  %5603 = vmatprep.subr.bf16.mxu1 %v3962_v24  ;;  %v4040_v19 = vld [vmem:[#allocation5 + $0x1328] sm:$0xff]  ;;  %v4042_v24 = vld [vmem:[#allocation5 + $0x1338] sm:$0xff] }
 0xb2e   :  { %5276 = vmatpush1.bf16.msra.mxu0 %v3959_v54  ;;  %5604 = vmatpush1.bf16.msra.mxu1 %v3961_v2  ;;  %v4039_v54 = vld [vmem:[#allocation5 + $0x1320] sm:$0xff]  ;;  %v4041_v2 = vld [vmem:[#allocation5 + $0x1330] sm:$0xff] }
 0xb2f   :  { %5277 = vmatprep.subr.bf16.mxu0 %v3968_v37  ;;  %5605 = vmatprep.subr.bf16.mxu1 %v3970_v22  ;;  %v4048_v37 = vld [vmem:[#allocation5 + $0x1368] sm:$0xff]  ;;  %v4050_v22 = vld [vmem:[#allocation5 + $0x1378] sm:$0xff] }
 0xb32   :  { %5278 = vmatpush1.bf16.msra.mxu0 %v3967_v49  ;;  %5606 = vmatpush1.bf16.msra.mxu1 %v3969_v1  ;;  %v4047_v49 = vld [vmem:[#allocation5 + $0x1360] sm:$0xff]  ;;  %v4049_v1 = vld [vmem:[#allocation5 + $0x1370] sm:$0xff] }
 0xb33   :  { %5279 = vmatprep.subr.bf16.mxu0 %v3976_v8  ;;  %5607 = vmatprep.subr.bf16.mxu1 %v3978_v9  ;;  %v4056_v8 = vld [vmem:[#allocation5 + $0x13a8] sm:$0xff]  ;;  %v4058_v9 = vld [vmem:[#allocation5 + $0x13b8] sm:$0xff] }
 0xb36   :  { %5280 = vmatpush1.bf16.msra.mxu0 %v3975_v51  ;;  %5608 = vmatpush1.bf16.msra.mxu1 %v3977_v43  ;;  %v4055_v51 = vld [vmem:[#allocation5 + $0x13a0] sm:$0xff]  ;;  %v4057_v43 = vld [vmem:[#allocation5 + $0x13b0] sm:$0xff] }
 0xb37   :  { %5281 = vmatprep.subr.bf16.mxu0 %v3984_v30  ;;  %5609 = vmatprep.subr.bf16.mxu1 %v3986_v39  ;;  %v4064_v30 = vld [vmem:[#allocation5 + $0x13e8] sm:$0xff]  ;;  %v4066_v39 = vld [vmem:[#allocation5 + $0x13f8] sm:$0xff] }
 0xb3a   :  { %5282 = vmatpush1.bf16.msra.mxu0 %v3983_v34  ;;  %5610 = vmatpush1.bf16.msra.mxu1 %v3985_v14  ;;  %v4063_v34 = vld [vmem:[#allocation5 + $0x13e0] sm:$0xff]  ;;  %v4065_v14 = vld [vmem:[#allocation5 + $0x13f0] sm:$0xff] }
 0xb3b   :  { %5283 = vmatprep.subr.bf16.mxu0 %v3992_v57  ;;  %5611 = vmatprep.subr.bf16.mxu1 %v3994_v60  ;;  %v4072_v57 = vld [vmem:[#allocation5 + $0x1428] sm:$0xff]  ;;  %v4074_v60 = vld [vmem:[#allocation5 + $0x1438] sm:$0xff] }
 0xb3e   :  { %5284 = vmatpush1.bf16.msra.mxu0 %v3991_v61  ;;  %5612 = vmatpush1.bf16.msra.mxu1 %v3993_v7  ;;  %v4071_v61 = vld [vmem:[#allocation5 + $0x1420] sm:$0xff]  ;;  %v4073_v7 = vld [vmem:[#allocation5 + $0x1430] sm:$0xff] }
 0xb3f   :  { %5285 = vmatprep.subr.bf16.mxu0 %v4000_v23  ;;  %5613 = vmatprep.subr.bf16.mxu1 %v4002_v31  ;;  %v4080_v23 = vld [vmem:[#allocation5 + $0x1468] sm:$0xff]  ;;  %v4082_v31 = vld [vmem:[#allocation5 + $0x1478] sm:$0xff] }
 0xb42   :  { %5286 = vmatpush1.bf16.msra.mxu0 %v3999_v36  ;;  %5614 = vmatpush1.bf16.msra.mxu1 %v4001_v41  ;;  %v4079_v36 = vld [vmem:[#allocation5 + $0x1460] sm:$0xff]  ;;  %v4081_v41 = vld [vmem:[#allocation5 + $0x1470] sm:$0xff] }
 0xb43   :  { %5287 = vmatprep.subr.bf16.mxu0 %v4008_v20  ;;  %5615 = vmatprep.subr.bf16.mxu1 %v4010_v15  ;;  %v4088_v20 = vld [vmem:[#allocation5 + $0x14a8] sm:$0xff]  ;;  %v4090_v15 = vld [vmem:[#allocation5 + $0x14b8] sm:$0xff] }
 0xb46   :  { %5288 = vmatpush1.bf16.msra.mxu0 %v4007_v45  ;;  %5616 = vmatpush1.bf16.msra.mxu1 %v4009_v62  ;;  %v4087_v45 = vld [vmem:[#allocation5 + $0x14a0] sm:$0xff]  ;;  %v4089_v62 = vld [vmem:[#allocation5 + $0x14b0] sm:$0xff] }
 0xb47   :  { %5289 = vmatprep.subr.bf16.mxu0 %v4016_v56  ;;  %5617 = vmatprep.subr.bf16.mxu1 %v4018_v10  ;;  %v4096_v56 = vld [vmem:[#allocation5 + $0x14e8] sm:$0xff]  ;;  %v4098_v10 = vld [vmem:[#allocation5 + $0x14f8] sm:$0xff] }
 0xb4a   :  { %5290 = vmatpush1.bf16.msra.mxu0 %v4015_v11  ;;  %5618 = vmatpush1.bf16.msra.mxu1 %v4017_v29  ;;  %v4095_v11 = vld [vmem:[#allocation5 + $0x14e0] sm:$0xff]  ;;  %v4097_v29 = vld [vmem:[#allocation5 + $0x14f0] sm:$0xff] }
 0xb4b   :  { %5291 = vmatprep.subr.bf16.mxu0 %v4024_v47  ;;  %5619 = vmatprep.subr.bf16.mxu1 %v4026_v58  ;;  %v4104_v47 = vld [vmem:[#allocation5 + $0x1528] sm:$0xff]  ;;  %v4106_v58 = vld [vmem:[#allocation5 + $0x1538] sm:$0xff] }
 0xb4e   :  { %5292 = vmatpush1.bf16.msra.mxu0 %v4023_v55  ;;  %5620 = vmatpush1.bf16.msra.mxu1 %v4025_v13  ;;  %v4103_v55 = vld [vmem:[#allocation5 + $0x1520] sm:$0xff]  ;;  %v4105_v13 = vld [vmem:[#allocation5 + $0x1530] sm:$0xff] }
 0xb4f   :  { %5293 = vmatprep.subr.bf16.mxu0 %v4032_v50  ;;  %5621 = vmatprep.subr.bf16.mxu1 %v4034_v63  ;;  %v4112_v50 = vld [vmem:[#allocation5 + $0x1568] sm:$0xff]  ;;  %v4114_v63 = vld [vmem:[#allocation5 + $0x1578] sm:$0xff] }
 0xb52   :  { %5294 = vmatpush1.bf16.msra.mxu0 %v4031_v28  ;;  %5622 = vmatpush1.bf16.msra.mxu1 %v4033_v52  ;;  %v4111_v28 = vld [vmem:[#allocation5 + $0x1560] sm:$0xff]  ;;  %v4113_v52 = vld [vmem:[#allocation5 + $0x1570] sm:$0xff] }
 0xb53   :  { %5295 = vmatprep.subr.bf16.mxu0 %v4040_v19  ;;  %5623 = vmatprep.subr.bf16.mxu1 %v4042_v24  ;;  %v4120_v19 = vld [vmem:[#allocation5 + $0x15a8] sm:$0xff]  ;;  %v4122_v24 = vld [vmem:[#allocation5 + $0x15b8] sm:$0xff] }
 0xb56   :  { %5296 = vmatpush1.bf16.msra.mxu0 %v4039_v54  ;;  %5624 = vmatpush1.bf16.msra.mxu1 %v4041_v2  ;;  %v4119_v54 = vld [vmem:[#allocation5 + $0x15a0] sm:$0xff]  ;;  %v4121_v2 = vld [vmem:[#allocation5 + $0x15b0] sm:$0xff] }
 0xb57   :  { %5297 = vmatprep.subr.bf16.mxu0 %v4048_v37  ;;  %5625 = vmatprep.subr.bf16.mxu1 %v4050_v22  ;;  %v4128_v37 = vld [vmem:[#allocation5 + $0x15e8] sm:$0xff]  ;;  %v4130_v22 = vld [vmem:[#allocation5 + $0x15f8] sm:$0xff] }
 0xb5a   :  { %5298 = vmatpush1.bf16.msra.mxu0 %v4047_v49  ;;  %5626 = vmatpush1.bf16.msra.mxu1 %v4049_v1  ;;  %v4127_v49 = vld [vmem:[#allocation5 + $0x15e0] sm:$0xff]  ;;  %v4129_v1 = vld [vmem:[#allocation5 + $0x15f0] sm:$0xff] }
 0xb5b   :  { %5299 = vmatprep.subr.bf16.mxu0 %v4056_v8  ;;  %5627 = vmatprep.subr.bf16.mxu1 %v4058_v9  ;;  %v4136_v8 = vld [vmem:[#allocation5 + $0x1628] sm:$0xff]  ;;  %v4138_v9 = vld [vmem:[#allocation5 + $0x1638] sm:$0xff] }
 0xb5e   :  { %5300 = vmatpush1.bf16.msra.mxu0 %v4055_v51  ;;  %5628 = vmatpush1.bf16.msra.mxu1 %v4057_v43  ;;  %v4135_v51 = vld [vmem:[#allocation5 + $0x1620] sm:$0xff]  ;;  %v4137_v43 = vld [vmem:[#allocation5 + $0x1630] sm:$0xff] }
 0xb5f   :  { %5301 = vmatprep.subr.bf16.mxu0 %v4064_v30  ;;  %5629 = vmatprep.subr.bf16.mxu1 %v4066_v39  ;;  %v4144_v30 = vld [vmem:[#allocation5 + $0x1668] sm:$0xff]  ;;  %v4146_v39 = vld [vmem:[#allocation5 + $0x1678] sm:$0xff] }
 0xb62   :  { %5302 = vmatpush1.bf16.msra.mxu0 %v4063_v34  ;;  %5630 = vmatpush1.bf16.msra.mxu1 %v4065_v14  ;;  %v4143_v34 = vld [vmem:[#allocation5 + $0x1660] sm:$0xff]  ;;  %v4145_v14 = vld [vmem:[#allocation5 + $0x1670] sm:$0xff] }
 0xb63   :  { %5312 = vmatprep.subr.bf16.mxu0 %v4072_v57  ;;  %5640 = vmatprep.subr.bf16.mxu1 %v4074_v60  ;;  %v4152_v57 = vld [vmem:[#allocation5 + $0x16a8] sm:$0xff]  ;;  %v4154_v60 = vld [vmem:[#allocation5 + $0x16b8] sm:$0xff] }
 0xb65   :  { %5304 = vmatmul.mubr.bf16.vlgmr.msra.gmra.mrb[32].mxu0 %v8300_v38  ;;  %5632 = vmatmul.mubr.bf16.vlgmr.msra.gmra.mrb[32].mxu1 %v8300_v38 }
 0xb66   :  { %5313 = vmatpush1.bf16.msra.mxu0 %v4071_v61  ;;  %5641 = vmatpush1.bf16.msra.mxu1 %v4073_v7  ;;  %v4151_v61 = vld [vmem:[#allocation5 + $0x16a0] sm:$0xff]  ;;  %v4153_v7 = vld [vmem:[#allocation5 + $0x16b0] sm:$0xff] }
 0xb67   :  { %5314 = vmatprep.subr.bf16.mxu0 %v4080_v23  ;;  %5642 = vmatprep.subr.bf16.mxu1 %v4082_v31  ;;  %v4160_v23 = vld [vmem:[#allocation5 + $0x16e8] sm:$0xff]  ;;  %v4162_v31 = vld [vmem:[#allocation5 + $0x16f8] sm:$0xff] }
 0xb68   :  { %5344 = vmatprep.mubr.bf16.mxu0 %v8305_v53  ;;  %5672 = vmatprep.mubr.bf16.mxu1 %v8305_v53 }
 0xb6a   :  { %5315 = vmatpush1.bf16.msra.mxu0 %v4079_v36  ;;  %5643 = vmatpush1.bf16.msra.mxu1 %v4081_v41  ;;  %v4159_v36 = vld [vmem:[#allocation5 + $0x16e0] sm:$0xff]  ;;  %v4161_v41 = vld [vmem:[#allocation5 + $0x16f0] sm:$0xff] }
 0xb6b   :  { %5316 = vmatprep.subr.bf16.mxu0 %v4088_v20  ;;  %5644 = vmatprep.subr.bf16.mxu1 %v4090_v15  ;;  %v4168_v20 = vld [vmem:[#allocation5 + $0x1728] sm:$0xff]  ;;  %v4170_v15 = vld [vmem:[#allocation5 + $0x1738] sm:$0xff] }
 0xb6e   :  { %5317 = vmatpush1.bf16.msra.mxu0 %v4087_v45  ;;  %5645 = vmatpush1.bf16.msra.mxu1 %v4089_v62  ;;  %v4167_v45 = vld [vmem:[#allocation5 + $0x1720] sm:$0xff]  ;;  %v4169_v62 = vld [vmem:[#allocation5 + $0x1730] sm:$0xff] }
 0xb6f   :  { %5318 = vmatprep.subr.bf16.mxu0 %v4096_v56  ;;  %5646 = vmatprep.subr.bf16.mxu1 %v4098_v10  ;;  %v4176_v56 = vld [vmem:[#allocation5 + $0x1768] sm:$0xff]  ;;  %v4178_v10 = vld [vmem:[#allocation5 + $0x1778] sm:$0xff] }
 0xb72   :  { %5319 = vmatpush1.bf16.msra.mxu0 %v4095_v11  ;;  %5647 = vmatpush1.bf16.msra.mxu1 %v4097_v29  ;;  %v4175_v11 = vld [vmem:[#allocation5 + $0x1760] sm:$0xff]  ;;  %v4177_v29 = vld [vmem:[#allocation5 + $0x1770] sm:$0xff] }
 0xb73   :  { %5320 = vmatprep.subr.bf16.mxu0 %v4104_v47  ;;  %5648 = vmatprep.subr.bf16.mxu1 %v4106_v58  ;;  %v4184_v47 = vld [vmem:[#allocation5 + $0x17a8] sm:$0xff]  ;;  %v4186_v58 = vld [vmem:[#allocation5 + $0x17b8] sm:$0xff] }
 0xb76   :  { %5321 = vmatpush1.bf16.msra.mxu0 %v4103_v55  ;;  %5649 = vmatpush1.bf16.msra.mxu1 %v4105_v13  ;;  %v4183_v55 = vld [vmem:[#allocation5 + $0x17a0] sm:$0xff]  ;;  %v4185_v13 = vld [vmem:[#allocation5 + $0x17b0] sm:$0xff] }
 0xb77   :  { %5322 = vmatprep.subr.bf16.mxu0 %v4112_v50  ;;  %5650 = vmatprep.subr.bf16.mxu1 %v4114_v63  ;;  %v4192_v50 = vld [vmem:[#allocation5 + $0x17e8] sm:$0xff]  ;;  %v4194_v63 = vld [vmem:[#allocation5 + $0x17f8] sm:$0xff] }
 0xb7a   :  { %5323 = vmatpush1.bf16.msra.mxu0 %v4111_v28  ;;  %5651 = vmatpush1.bf16.msra.mxu1 %v4113_v52  ;;  %v4191_v28 = vld [vmem:[#allocation5 + $0x17e0] sm:$0xff]  ;;  %v4193_v52 = vld [vmem:[#allocation5 + $0x17f0] sm:$0xff] }
 0xb7b   :  { %5324 = vmatprep.subr.bf16.mxu0 %v4120_v19  ;;  %5652 = vmatprep.subr.bf16.mxu1 %v4122_v24  ;;  %v4200_v19 = vld [vmem:[#allocation5 + $0x1828] sm:$0xff]  ;;  %v4202_v24 = vld [vmem:[#allocation5 + $0x1838] sm:$0xff] }
 0xb7e   :  { %5325 = vmatpush1.bf16.msra.mxu0 %v4119_v54  ;;  %5653 = vmatpush1.bf16.msra.mxu1 %v4121_v2  ;;  %v4199_v54 = vld [vmem:[#allocation5 + $0x1820] sm:$0xff]  ;;  %v4201_v2 = vld [vmem:[#allocation5 + $0x1830] sm:$0xff] }
 0xb7f   :  { %5326 = vmatprep.subr.bf16.mxu0 %v4128_v37  ;;  %5654 = vmatprep.subr.bf16.mxu1 %v4130_v22  ;;  %v4208_v37 = vld [vmem:[#allocation5 + $0x1868] sm:$0xff]  ;;  %v4210_v22 = vld [vmem:[#allocation5 + $0x1878] sm:$0xff] }
 0xb82   :  { %5327 = vmatpush1.bf16.msra.mxu0 %v4127_v49  ;;  %5655 = vmatpush1.bf16.msra.mxu1 %v4129_v1  ;;  %v4207_v49 = vld [vmem:[#allocation5 + $0x1860] sm:$0xff]  ;;  %v4209_v1 = vld [vmem:[#allocation5 + $0x1870] sm:$0xff] }
 0xb83   :  { %5328 = vmatprep.subr.bf16.mxu0 %v4136_v8  ;;  %5656 = vmatprep.subr.bf16.mxu1 %v4138_v9  ;;  %v4216_v8 = vld [vmem:[#allocation5 + $0x18a8] sm:$0xff]  ;;  %v4218_v9 = vld [vmem:[#allocation5 + $0x18b8] sm:$0xff] }
 0xb86   :  { %5329 = vmatpush1.bf16.msra.mxu0 %v4135_v51  ;;  %5657 = vmatpush1.bf16.msra.mxu1 %v4137_v43  ;;  %v4215_v51 = vld [vmem:[#allocation5 + $0x18a0] sm:$0xff]  ;;  %v4217_v43 = vld [vmem:[#allocation5 + $0x18b0] sm:$0xff] }
 0xb87   :  { %5330 = vmatprep.subr.bf16.mxu0 %v4144_v30  ;;  %5658 = vmatprep.subr.bf16.mxu1 %v4146_v39  ;;  %v4224_v30 = vld [vmem:[#allocation5 + $0x18e8] sm:$0xff]  ;;  %v4226_v39 = vld [vmem:[#allocation5 + $0x18f8] sm:$0xff] }
 0xb8a   :  { %5331 = vmatpush1.bf16.msra.mxu0 %v4143_v34  ;;  %5659 = vmatpush1.bf16.msra.mxu1 %v4145_v14  ;;  %v4223_v34 = vld [vmem:[#allocation5 + $0x18e0] sm:$0xff]  ;;  %v4225_v14 = vld [vmem:[#allocation5 + $0x18f0] sm:$0xff] }
 0xb8b   :  { %5332 = vmatprep.subr.bf16.mxu0 %v4152_v57  ;;  %5660 = vmatprep.subr.bf16.mxu1 %v4154_v60  ;;  %v4232_v57 = vld [vmem:[#allocation5 + $0x1928] sm:$0xff]  ;;  %v4234_v60 = vld [vmem:[#allocation5 + $0x1938] sm:$0xff] }
 0xb8e   :  { %5333 = vmatpush1.bf16.msra.mxu0 %v4151_v61  ;;  %5661 = vmatpush1.bf16.msra.mxu1 %v4153_v7  ;;  %v4231_v61 = vld [vmem:[#allocation5 + $0x1920] sm:$0xff]  ;;  %v4233_v7 = vld [vmem:[#allocation5 + $0x1930] sm:$0xff] }
 0xb8f   :  { %5334 = vmatprep.subr.bf16.mxu0 %v4160_v23  ;;  %5662 = vmatprep.subr.bf16.mxu1 %v4162_v31  ;;  %v4240_v23 = vld [vmem:[#allocation5 + $0x1968] sm:$0xff]  ;;  %v4242_v31 = vld [vmem:[#allocation5 + $0x1978] sm:$0xff] }
 0xb92   :  { %5335 = vmatpush1.bf16.msra.mxu0 %v4159_v36  ;;  %5663 = vmatpush1.bf16.msra.mxu1 %v4161_v41  ;;  %v4239_v36 = vld [vmem:[#allocation5 + $0x1960] sm:$0xff]  ;;  %v4241_v41 = vld [vmem:[#allocation5 + $0x1970] sm:$0xff] }
 0xb93   :  { %5336 = vmatprep.subr.bf16.mxu0 %v4168_v20  ;;  %5664 = vmatprep.subr.bf16.mxu1 %v4170_v15  ;;  %v4248_v20 = vld [vmem:[#allocation5 + $0x19a8] sm:$0xff]  ;;  %v4250_v15 = vld [vmem:[#allocation5 + $0x19b8] sm:$0xff] }
 0xb96   :  { %5337 = vmatpush1.bf16.msra.mxu0 %v4167_v45  ;;  %5665 = vmatpush1.bf16.msra.mxu1 %v4169_v62  ;;  %v4247_v45 = vld [vmem:[#allocation5 + $0x19a0] sm:$0xff]  ;;  %v4249_v62 = vld [vmem:[#allocation5 + $0x19b0] sm:$0xff] }
 0xb97   :  { %5338 = vmatprep.subr.bf16.mxu0 %v4176_v56  ;;  %5666 = vmatprep.subr.bf16.mxu1 %v4178_v10  ;;  %v4256_v56 = vld [vmem:[#allocation5 + $0x19e8] sm:$0xff]  ;;  %v4258_v10 = vld [vmem:[#allocation5 + $0x19f8] sm:$0xff] }
 0xb9a   :  { %5339 = vmatpush1.bf16.msra.mxu0 %v4175_v11  ;;  %5667 = vmatpush1.bf16.msra.mxu1 %v4177_v29  ;;  %v4255_v11 = vld [vmem:[#allocation5 + $0x19e0] sm:$0xff]  ;;  %v4257_v29 = vld [vmem:[#allocation5 + $0x19f0] sm:$0xff] }
 0xb9b   :  { %5340 = vmatprep.subr.bf16.mxu0 %v4184_v47  ;;  %5668 = vmatprep.subr.bf16.mxu1 %v4186_v58  ;;  %v4264_v47 = vld [vmem:[#allocation5 + $0x1a28] sm:$0xff]  ;;  %v4266_v58 = vld [vmem:[#allocation5 + $0x1a38] sm:$0xff] }
 0xb9e   :  { %5341 = vmatpush1.bf16.msra.mxu0 %v4183_v55  ;;  %5669 = vmatpush1.bf16.msra.mxu1 %v4185_v13  ;;  %v4263_v55 = vld [vmem:[#allocation5 + $0x1a20] sm:$0xff]  ;;  %v4265_v13 = vld [vmem:[#allocation5 + $0x1a30] sm:$0xff] }
 0xb9f   :  { %5342 = vmatprep.subr.bf16.mxu0 %v4192_v50  ;;  %5670 = vmatprep.subr.bf16.mxu1 %v4194_v63  ;;  %v4272_v50 = vld [vmem:[#allocation5 + $0x1a68] sm:$0xff]  ;;  %v4274_v63 = vld [vmem:[#allocation5 + $0x1a78] sm:$0xff] }
 0xba2   :  { %5343 = vmatpush1.bf16.msra.mxu0 %v4191_v28  ;;  %5671 = vmatpush1.bf16.msra.mxu1 %v4193_v52  ;;  %v4271_v28 = vld [vmem:[#allocation5 + $0x1a60] sm:$0xff]  ;;  %v4273_v52 = vld [vmem:[#allocation5 + $0x1a70] sm:$0xff] }
 0xba3   :  { %5353 = vmatprep.subr.bf16.mxu0 %v4200_v19  ;;  %5681 = vmatprep.subr.bf16.mxu1 %v4202_v24  ;;  %v4280_v19 = vld [vmem:[#allocation5 + $0x1aa8] sm:$0xff]  ;;  %v4282_v24 = vld [vmem:[#allocation5 + $0x1ab8] sm:$0xff] }
 0xba5   :  { %5345 = vmatmul.mubr.bf16.vlgmr.msra.gmra.mrb[32].mxu0 %v8314_v16  ;;  %5673 = vmatmul.mubr.bf16.vlgmr.msra.gmra.mrb[32].mxu1 %v8314_v16 }
 0xba6   :  { %5354 = vmatpush1.bf16.msra.mxu0 %v4199_v54  ;;  %5682 = vmatpush1.bf16.msra.mxu1 %v4201_v2  ;;  %v4279_v54 = vld [vmem:[#allocation5 + $0x1aa0] sm:$0xff]  ;;  %v4281_v2 = vld [vmem:[#allocation5 + $0x1ab0] sm:$0xff] }
 0xba7   :  { %5355 = vmatprep.subr.bf16.mxu0 %v4208_v37  ;;  %5683 = vmatprep.subr.bf16.mxu1 %v4210_v22  ;;  %v4288_v37 = vld [vmem:[#allocation5 + $0x1ae8] sm:$0xff]  ;;  %v4290_v22 = vld [vmem:[#allocation5 + $0x1af8] sm:$0xff] }
 0xba8   :  { %5385 = vmatprep.mubr.bf16.mxu0 %v8319_v18  ;;  %5713 = vmatprep.mubr.bf16.mxu1 %v8319_v18 }
 0xbaa   :  { %5356 = vmatpush1.bf16.msra.mxu0 %v4207_v49  ;;  %5684 = vmatpush1.bf16.msra.mxu1 %v4209_v1  ;;  %v4287_v49 = vld [vmem:[#allocation5 + $0x1ae0] sm:$0xff]  ;;  %v4289_v1 = vld [vmem:[#allocation5 + $0x1af0] sm:$0xff] }
 0xbab   :  { %5357 = vmatprep.subr.bf16.mxu0 %v4216_v8  ;;  %5685 = vmatprep.subr.bf16.mxu1 %v4218_v9  ;;  %v4296_v8 = vld [vmem:[#allocation5 + $0x1b28] sm:$0xff]  ;;  %v4298_v9 = vld [vmem:[#allocation5 + $0x1b38] sm:$0xff] }
 0xbae   :  { %5358 = vmatpush1.bf16.msra.mxu0 %v4215_v51  ;;  %5686 = vmatpush1.bf16.msra.mxu1 %v4217_v43  ;;  %v4295_v51 = vld [vmem:[#allocation5 + $0x1b20] sm:$0xff]  ;;  %v4297_v43 = vld [vmem:[#allocation5 + $0x1b30] sm:$0xff] }
 0xbaf   :  { %5359 = vmatprep.subr.bf16.mxu0 %v4224_v30  ;;  %5687 = vmatprep.subr.bf16.mxu1 %v4226_v39  ;;  %v4304_v30 = vld [vmem:[#allocation5 + $0x1b68] sm:$0xff]  ;;  %v4306_v39 = vld [vmem:[#allocation5 + $0x1b78] sm:$0xff] }
 0xbb2   :  { %5360 = vmatpush1.bf16.msra.mxu0 %v4223_v34  ;;  %5688 = vmatpush1.bf16.msra.mxu1 %v4225_v14  ;;  %v4303_v34 = vld [vmem:[#allocation5 + $0x1b60] sm:$0xff]  ;;  %v4305_v14 = vld [vmem:[#allocation5 + $0x1b70] sm:$0xff] }
 0xbb3   :  { %5361 = vmatprep.subr.bf16.mxu0 %v4232_v57  ;;  %5689 = vmatprep.subr.bf16.mxu1 %v4234_v60  ;;  %v4312_v57 = vld [vmem:[#allocation5 + $0x1ba8] sm:$0xff]  ;;  %v4314_v60 = vld [vmem:[#allocation5 + $0x1bb8] sm:$0xff] }
 0xbb6   :  { %5362 = vmatpush1.bf16.msra.mxu0 %v4231_v61  ;;  %5690 = vmatpush1.bf16.msra.mxu1 %v4233_v7  ;;  %v4311_v61 = vld [vmem:[#allocation5 + $0x1ba0] sm:$0xff]  ;;  %v4313_v7 = vld [vmem:[#allocation5 + $0x1bb0] sm:$0xff] }
 0xbb7   :  { %5363 = vmatprep.subr.bf16.mxu0 %v4240_v23  ;;  %5691 = vmatprep.subr.bf16.mxu1 %v4242_v31  ;;  %v4320_v23 = vld [vmem:[#allocation5 + $0x1be8] sm:$0xff]  ;;  %v4322_v31 = vld [vmem:[#allocation5 + $0x1bf8] sm:$0xff] }
 0xbba   :  { %5364 = vmatpush1.bf16.msra.mxu0 %v4239_v36  ;;  %5692 = vmatpush1.bf16.msra.mxu1 %v4241_v41  ;;  %v4319_v36 = vld [vmem:[#allocation5 + $0x1be0] sm:$0xff]  ;;  %v4321_v41 = vld [vmem:[#allocation5 + $0x1bf0] sm:$0xff] }
 0xbbb   :  { %5365 = vmatprep.subr.bf16.mxu0 %v4248_v20  ;;  %5693 = vmatprep.subr.bf16.mxu1 %v4250_v15  ;;  %v4328_v20 = vld [vmem:[#allocation5 + $0x1c28] sm:$0xff]  ;;  %v4330_v15 = vld [vmem:[#allocation5 + $0x1c38] sm:$0xff] }
 0xbbe   :  { %5366 = vmatpush1.bf16.msra.mxu0 %v4247_v45  ;;  %5694 = vmatpush1.bf16.msra.mxu1 %v4249_v62  ;;  %v4327_v45 = vld [vmem:[#allocation5 + $0x1c20] sm:$0xff]  ;;  %v4329_v62 = vld [vmem:[#allocation5 + $0x1c30] sm:$0xff] }
 0xbbf   :  { %5367 = vmatprep.subr.bf16.mxu0 %v4256_v56  ;;  %5695 = vmatprep.subr.bf16.mxu1 %v4258_v10  ;;  %v4336_v56 = vld [vmem:[#allocation5 + $0x1c68] sm:$0xff]  ;;  %v4338_v10 = vld [vmem:[#allocation5 + $0x1c78] sm:$0xff] }
 0xbc2   :  { %5368 = vmatpush1.bf16.msra.mxu0 %v4255_v11  ;;  %5696 = vmatpush1.bf16.msra.mxu1 %v4257_v29  ;;  %v4335_v11 = vld [vmem:[#allocation5 + $0x1c60] sm:$0xff]  ;;  %v4337_v29 = vld [vmem:[#allocation5 + $0x1c70] sm:$0xff] }
 0xbc3   :  { %5369 = vmatprep.subr.bf16.mxu0 %v4264_v47  ;;  %5697 = vmatprep.subr.bf16.mxu1 %v4266_v58  ;;  %v4344_v47 = vld [vmem:[#allocation5 + $0x1ca8] sm:$0xff]  ;;  %v4346_v58 = vld [vmem:[#allocation5 + $0x1cb8] sm:$0xff] }
 0xbc6   :  { %5370 = vmatpush1.bf16.msra.mxu0 %v4263_v55  ;;  %5698 = vmatpush1.bf16.msra.mxu1 %v4265_v13  ;;  %v4343_v55 = vld [vmem:[#allocation5 + $0x1ca0] sm:$0xff]  ;;  %v4345_v13 = vld [vmem:[#allocation5 + $0x1cb0] sm:$0xff] }
 0xbc7   :  { %5371 = vmatprep.subr.bf16.mxu0 %v4272_v50  ;;  %5699 = vmatprep.subr.bf16.mxu1 %v4274_v63  ;;  %v4352_v50 = vld [vmem:[#allocation5 + $0x1ce8] sm:$0xff]  ;;  %v4354_v63 = vld [vmem:[#allocation5 + $0x1cf8] sm:$0xff] }
 0xbca   :  { %5372 = vmatpush1.bf16.msra.mxu0 %v4271_v28  ;;  %5700 = vmatpush1.bf16.msra.mxu1 %v4273_v52  ;;  %v4351_v28 = vld [vmem:[#allocation5 + $0x1ce0] sm:$0xff]  ;;  %v4353_v52 = vld [vmem:[#allocation5 + $0x1cf0] sm:$0xff] }
 0xbcb   :  { %5373 = vmatprep.subr.bf16.mxu0 %v4280_v19  ;;  %5701 = vmatprep.subr.bf16.mxu1 %v4282_v24  ;;  %v4360_v19 = vld [vmem:[#allocation5 + $0x1d28] sm:$0xff]  ;;  %v4362_v24 = vld [vmem:[#allocation5 + $0x1d38] sm:$0xff] }
 0xbce   :  { %5374 = vmatpush1.bf16.msra.mxu0 %v4279_v54  ;;  %5702 = vmatpush1.bf16.msra.mxu1 %v4281_v2  ;;  %v4359_v54 = vld [vmem:[#allocation5 + $0x1d20] sm:$0xff]  ;;  %v4361_v2 = vld [vmem:[#allocation5 + $0x1d30] sm:$0xff] }
 0xbcf   :  { %5375 = vmatprep.subr.bf16.mxu0 %v4288_v37  ;;  %5703 = vmatprep.subr.bf16.mxu1 %v4290_v22  ;;  %v4368_v37 = vld [vmem:[#allocation5 + $0x1d68] sm:$0xff]  ;;  %v4370_v22 = vld [vmem:[#allocation5 + $0x1d78] sm:$0xff] }
 0xbd2   :  { %5376 = vmatpush1.bf16.msra.mxu0 %v4287_v49  ;;  %5704 = vmatpush1.bf16.msra.mxu1 %v4289_v1  ;;  %v4367_v49 = vld [vmem:[#allocation5 + $0x1d60] sm:$0xff]  ;;  %v4369_v1 = vld [vmem:[#allocation5 + $0x1d70] sm:$0xff] }
 0xbd3   :  { %5377 = vmatprep.subr.bf16.mxu0 %v4296_v8  ;;  %5705 = vmatprep.subr.bf16.mxu1 %v4298_v9  ;;  %v4376_v8 = vld [vmem:[#allocation5 + $0x1da8] sm:$0xff]  ;;  %v4378_v9 = vld [vmem:[#allocation5 + $0x1db8] sm:$0xff] }
 0xbd6   :  { %5378 = vmatpush1.bf16.msra.mxu0 %v4295_v51  ;;  %5706 = vmatpush1.bf16.msra.mxu1 %v4297_v43  ;;  %v4375_v51 = vld [vmem:[#allocation5 + $0x1da0] sm:$0xff]  ;;  %v4377_v43 = vld [vmem:[#allocation5 + $0x1db0] sm:$0xff] }
 0xbd7   :  { %5379 = vmatprep.subr.bf16.mxu0 %v4304_v30  ;;  %5707 = vmatprep.subr.bf16.mxu1 %v4306_v39  ;;  %v4384_v30 = vld [vmem:[#allocation5 + $0x1de8] sm:$0xff]  ;;  %v4386_v39 = vld [vmem:[#allocation5 + $0x1df8] sm:$0xff] }
 0xbda   :  { %5380 = vmatpush1.bf16.msra.mxu0 %v4303_v34  ;;  %5708 = vmatpush1.bf16.msra.mxu1 %v4305_v14  ;;  %v4383_v34 = vld [vmem:[#allocation5 + $0x1de0] sm:$0xff]  ;;  %v4385_v14 = vld [vmem:[#allocation5 + $0x1df0] sm:$0xff] }
 0xbdb   :  { %5381 = vmatprep.subr.bf16.mxu0 %v4312_v57  ;;  %5709 = vmatprep.subr.bf16.mxu1 %v4314_v60  ;;  %v4392_v57 = vld [vmem:[#allocation5 + $0x1e28] sm:$0xff]  ;;  %v4394_v60 = vld [vmem:[#allocation5 + $0x1e38] sm:$0xff] }
 0xbde   :  { %5382 = vmatpush1.bf16.msra.mxu0 %v4311_v61  ;;  %5710 = vmatpush1.bf16.msra.mxu1 %v4313_v7  ;;  %v4391_v61 = vld [vmem:[#allocation5 + $0x1e20] sm:$0xff]  ;;  %v4393_v7 = vld [vmem:[#allocation5 + $0x1e30] sm:$0xff] }
 0xbdf   :  { %5383 = vmatprep.subr.bf16.mxu0 %v4320_v23  ;;  %5711 = vmatprep.subr.bf16.mxu1 %v4322_v31  ;;  %v4400_v23 = vld [vmem:[#allocation5 + $0x1e68] sm:$0xff]  ;;  %v4402_v31 = vld [vmem:[#allocation5 + $0x1e78] sm:$0xff] }
 0xbe2   :  { %5384 = vmatpush1.bf16.msra.mxu0 %v4319_v36  ;;  %5712 = vmatpush1.bf16.msra.mxu1 %v4321_v41  ;;  %v4399_v36 = vld [vmem:[#allocation5 + $0x1e60] sm:$0xff]  ;;  %v4401_v41 = vld [vmem:[#allocation5 + $0x1e70] sm:$0xff] }
 0xbe3   :  { %5394 = vmatprep.subr.bf16.mxu0 %v4328_v20  ;;  %5722 = vmatprep.subr.bf16.mxu1 %v4330_v15  ;;  %v4408_v20 = vld [vmem:[#allocation5 + $0x1ea8] sm:$0xff]  ;;  %v4410_v15 = vld [vmem:[#allocation5 + $0x1eb8] sm:$0xff] }
 0xbe5   :  { %5386 = vmatmul.mubr.bf16.vlgmr.msra.gmra.mrb[32].mxu0 %v8328_v32  ;;  %5714 = vmatmul.mubr.bf16.vlgmr.msra.gmra.mrb[32].mxu1 %v8328_v32 }
 0xbe6   :  { %5395 = vmatpush1.bf16.msra.mxu0 %v4327_v45  ;;  %5723 = vmatpush1.bf16.msra.mxu1 %v4329_v62  ;;  %v4407_v45 = vld [vmem:[#allocation5 + $0x1ea0] sm:$0xff]  ;;  %v4409_v62 = vld [vmem:[#allocation5 + $0x1eb0] sm:$0xff] }
 0xbe7   :  { %5396 = vmatprep.subr.bf16.mxu0 %v4336_v56  ;;  %5724 = vmatprep.subr.bf16.mxu1 %v4338_v10  ;;  %v4416_v56 = vld [vmem:[#allocation5 + $0x1ee8] sm:$0xff]  ;;  %v4418_v10 = vld [vmem:[#allocation5 + $0x1ef8] sm:$0xff] }
 0xbe8   :  { %5426 = vmatprep.mubr.bf16.mxu0 %v8333_v25  ;;  %5754 = vmatprep.mubr.bf16.mxu1 %v8333_v25 }
 0xbea   :  { %5397 = vmatpush1.bf16.msra.mxu0 %v4335_v11  ;;  %5725 = vmatpush1.bf16.msra.mxu1 %v4337_v29  ;;  %v4415_v11 = vld [vmem:[#allocation5 + $0x1ee0] sm:$0xff]  ;;  %v4417_v29 = vld [vmem:[#allocation5 + $0x1ef0] sm:$0xff] }
 0xbeb   :  { %5398 = vmatprep.subr.bf16.mxu0 %v4344_v47  ;;  %5726 = vmatprep.subr.bf16.mxu1 %v4346_v58  ;;  %v4424_v47 = vld [vmem:[#allocation5 + $0x1f28] sm:$0xff]  ;;  %v4426_v58 = vld [vmem:[#allocation5 + $0x1f38] sm:$0xff] }
 0xbee   :  { %5399 = vmatpush1.bf16.msra.mxu0 %v4343_v55  ;;  %5727 = vmatpush1.bf16.msra.mxu1 %v4345_v13  ;;  %v4423_v55 = vld [vmem:[#allocation5 + $0x1f20] sm:$0xff]  ;;  %v4425_v13 = vld [vmem:[#allocation5 + $0x1f30] sm:$0xff] }
 0xbef   :  { %5400 = vmatprep.subr.bf16.mxu0 %v4352_v50  ;;  %5728 = vmatprep.subr.bf16.mxu1 %v4354_v63  ;;  %v4432_v50 = vld [vmem:[#allocation5 + $0x1f68] sm:$0xff]  ;;  %v4434_v63 = vld [vmem:[#allocation5 + $0x1f78] sm:$0xff] }
 0xbf2   :  { %5401 = vmatpush1.bf16.msra.mxu0 %v4351_v28  ;;  %5729 = vmatpush1.bf16.msra.mxu1 %v4353_v52  ;;  %v4431_v28 = vld [vmem:[#allocation5 + $0x1f60] sm:$0xff]  ;;  %v4433_v52 = vld [vmem:[#allocation5 + $0x1f70] sm:$0xff] }
 0xbf3   :  { %5402 = vmatprep.subr.bf16.mxu0 %v4360_v19  ;;  %5730 = vmatprep.subr.bf16.mxu1 %v4362_v24  ;;  %v4440_v19 = vld [vmem:[#allocation5 + $0x1fa8] sm:$0xff]  ;;  %v4442_v24 = vld [vmem:[#allocation5 + $0x1fb8] sm:$0xff] }
 0xbf6   :  { %5403 = vmatpush1.bf16.msra.mxu0 %v4359_v54  ;;  %5731 = vmatpush1.bf16.msra.mxu1 %v4361_v2  ;;  %v4439_v54 = vld [vmem:[#allocation5 + $0x1fa0] sm:$0xff]  ;;  %v4441_v2 = vld [vmem:[#allocation5 + $0x1fb0] sm:$0xff] }
 0xbf7   :  { %5404 = vmatprep.subr.bf16.mxu0 %v4368_v37  ;;  %5732 = vmatprep.subr.bf16.mxu1 %v4370_v22  ;;  %v4448_v37 = vld [vmem:[#allocation5 + $0x1fe8] sm:$0xff]  ;;  %v4450_v22 = vld [vmem:[#allocation5 + $0x1ff8] sm:$0xff] }
 0xbfa   :  { %5405 = vmatpush1.bf16.msra.mxu0 %v4367_v49  ;;  %5733 = vmatpush1.bf16.msra.mxu1 %v4369_v1  ;;  %v4447_v49 = vld [vmem:[#allocation5 + $0x1fe0] sm:$0xff]  ;;  %v4449_v1 = vld [vmem:[#allocation5 + $0x1ff0] sm:$0xff] }
 0xbfb   :  { %5406 = vmatprep.subr.bf16.mxu0 %v4376_v8  ;;  %5734 = vmatprep.subr.bf16.mxu1 %v4378_v9 }
 0xbfe   :  { %5407 = vmatpush1.bf16.msra.mxu0 %v4375_v51  ;;  %5735 = vmatpush1.bf16.msra.mxu1 %v4377_v43 }
 0xbff   :  { %5408 = vmatprep.subr.bf16.mxu0 %v4384_v30  ;;  %5736 = vmatprep.subr.bf16.mxu1 %v4386_v39 }
 0xc02   :  { %5409 = vmatpush1.bf16.msra.mxu0 %v4383_v34  ;;  %5737 = vmatpush1.bf16.msra.mxu1 %v4385_v14 }
 0xc03   :  { %5410 = vmatprep.subr.bf16.mxu0 %v4392_v57  ;;  %5738 = vmatprep.subr.bf16.mxu1 %v4394_v60 }
 0xc06   :  { %5411 = vmatpush1.bf16.msra.mxu0 %v4391_v61  ;;  %5739 = vmatpush1.bf16.msra.mxu1 %v4393_v7 }
 0xc07   :  { %5412 = vmatprep.subr.bf16.mxu0 %v4400_v23  ;;  %5740 = vmatprep.subr.bf16.mxu1 %v4402_v31 }
 0xc0a   :  { %5413 = vmatpush1.bf16.msra.mxu0 %v4399_v36  ;;  %5741 = vmatpush1.bf16.msra.mxu1 %v4401_v41 }
 0xc0b   :  { %5414 = vmatprep.subr.bf16.mxu0 %v4408_v20  ;;  %5742 = vmatprep.subr.bf16.mxu1 %v4410_v15 }
 0xc0e   :  { %5415 = vmatpush1.bf16.msra.mxu0 %v4407_v45  ;;  %5743 = vmatpush1.bf16.msra.mxu1 %v4409_v62 }
 0xc0f   :  { %5416 = vmatprep.subr.bf16.mxu0 %v4416_v56  ;;  %5744 = vmatprep.subr.bf16.mxu1 %v4418_v10 }
 0xc12   :  { %5417 = vmatpush1.bf16.msra.mxu0 %v4415_v11  ;;  %5745 = vmatpush1.bf16.msra.mxu1 %v4417_v29 }
 0xc13   :  { %5418 = vmatprep.subr.bf16.mxu0 %v4424_v47  ;;  %5746 = vmatprep.subr.bf16.mxu1 %v4426_v58 }
 0xc16   :  { %5419 = vmatpush1.bf16.msra.mxu0 %v4423_v55  ;;  %5747 = vmatpush1.bf16.msra.mxu1 %v4425_v13 }
 0xc17   :  { %5420 = vmatprep.subr.bf16.mxu0 %v4432_v50  ;;  %5748 = vmatprep.subr.bf16.mxu1 %v4434_v63 }
 0xc1a   :  { %5421 = vmatpush1.bf16.msra.mxu0 %v4431_v28  ;;  %5749 = vmatpush1.bf16.msra.mxu1 %v4433_v52 }
 0xc1b   :  { %5422 = vmatprep.subr.bf16.mxu0 %v4440_v19  ;;  %5750 = vmatprep.subr.bf16.mxu1 %v4442_v24 }
 0xc1e   :  { %5423 = vmatpush1.bf16.msra.mxu0 %v4439_v54  ;;  %5751 = vmatpush1.bf16.msra.mxu1 %v4441_v2 }
 0xc1f   :  { %5424 = vmatprep.subr.bf16.mxu0 %v4448_v37  ;;  %5752 = vmatprep.subr.bf16.mxu1 %v4450_v22 }
 0xc22   :  { %5425 = vmatpush1.bf16.msra.mxu0 %v4447_v49  ;;  %5753 = vmatpush1.bf16.msra.mxu1 %v4449_v1 }
 0xc25   :  { %5427 = vmatmul.mubr.bf16.vlgmr.msra.gmra.mrb[32].mxu0 %v8342_v3  ;;  %5755 = vmatmul.mubr.bf16.vlgmr.msra.gmra.mrb[32].mxu1 %v8342_v3 }
 0xcf8   :  { %v8390_v8 = vpop.f32.mrb[32].mxu0  ;;  %v8392_v9 = vpop.f32.mrb[32].mxu1 }
 0xcf9   :  { %v5767_v51 = vmax.f32 %v8390_v8, 0.0  ;;  %v5769_v43 = vmax.f32 %v8392_v9, 0.0  ;;  %v8396_v30 = vpop.f32.mrb[33].mxu0  ;;  %v8398_v39 = vpop.f32.mrb[33].mxu1 }
 0xcfa   :  { %v5768_v34 = vmax.f32 %v8396_v30, 0.0  ;;  %v5770_v14 = vmax.f32 %v8398_v39, 0.0  ;;  %v5432_v57 = vpop.f32.mrb[34].mxu0  ;;  %v5760_v60 = vpop.f32.mrb[34].mxu1 }
 0xcfb   :  { %v5433_v61 = vpop.f32.mrb[35].mxu0  ;;  %v5761_v7 = vpop.f32.mrb[35].mxu1 }
 0xcfc   :  { %7735 = dma.done.wait [#allocation9 + $0x4], 32768 }
 0xcfd   :  { %7736 = vsyncadd [#allocation9 + $0x4], 4294934528  ;;  %v5775_v23 = vpack.c.bf16 %v5764_v44, %v5764_v44  ;;  %v5783_v31 = vld [vmem:[#allocation6 + $0x8] sm:$0xff]  ;;  %v5785_v36 = vld [vmem:[#allocation6 + $0x18] sm:$0xff] }
 0xcfe   :  { %v5782_v41 = vld [vmem:[#allocation6] sm:$0xff]  ;;  %6038 = vmatprep.subr.bf16.mxu0 %v5783_v31  ;;  %6202 = vmatprep.subr.bf16.mxu1 %v5785_v36  ;;  %v5784_v20 = vld [vmem:[#allocation6 + $0x10] sm:$0xff]  ;;  %v5787_v15 = vld [vmem:[#allocation6 + $0x28] sm:$0xff] }
 0xcff   :  { %6070 = vmatprep.mubr.bf16.mxu0 %v5775_v23  ;;  %6234 = vmatprep.mubr.bf16.mxu1 %v5775_v23  ;;  %v5789_v45 = vld [vmem:[#allocation6 + $0x38] sm:$0xff]  ;;  %v5786_v62 = vld [vmem:[#allocation6 + $0x20] sm:$0xff]  ;;  %v5788_v56 = vld [vmem:[#allocation6 + $0x30] sm:$0xff] }
 0xd00   :  { %6039 = vmatpush1.bf16.msra.mxu0 %v5782_v41  ;;  %6203 = vmatpush1.bf16.msra.mxu1 %v5784_v20  ;;  %v5791_v10 = vld [vmem:[#allocation6 + $0x48] sm:$0xff]  ;;  %v5793_v33 = vld [vmem:[#allocation6 + $0x58] sm:$0xff]  ;;  %v5790_v44 = vld [vmem:[#allocation6 + $0x40] sm:$0xff] }
 0xd01   :  { %6040 = vmatprep.subr.bf16.mxu0 %v5787_v15  ;;  %6204 = vmatprep.subr.bf16.mxu1 %v5789_v45  ;;  %v5792_v11 = vld [vmem:[#allocation6 + $0x50] sm:$0xff]  ;;  %v5795_v29 = vld [vmem:[#allocation6 + $0x68] sm:$0xff]  ;;  %v5797_v47 = vld [vmem:[#allocation6 + $0x78] sm:$0xff] }
 0xd02   :  { %v5794_v58 = vld [vmem:[#allocation6 + $0x60] sm:$0xff]  ;;  %v5796_v55 = vld [vmem:[#allocation6 + $0x70] sm:$0xff]  ;;  %v5799_v13 = vld [vmem:[#allocation6 + $0x88] sm:$0xff] }
 0xd03   :  { %v5801_v50 = vld [vmem:[#allocation6 + $0x98] sm:$0xff]  ;;  %v5798_v63 = vld [vmem:[#allocation6 + $0x80] sm:$0xff]  ;;  %v5800_v28 = vld [vmem:[#allocation6 + $0x90] sm:$0xff] }
 0xd04   :  { %6041 = vmatpush1.bf16.msra.mxu0 %v5786_v62  ;;  %6205 = vmatpush1.bf16.msra.mxu1 %v5788_v56  ;;  %v5803_v52 = vld [vmem:[#allocation6 + $0xa8] sm:$0xff]  ;;  %v5805_v19 = vld [vmem:[#allocation6 + $0xb8] sm:$0xff]  ;;  %v5802_v24 = vld [vmem:[#allocation6 + $0xa0] sm:$0xff] }
 0xd05   :  { %6042 = vmatprep.subr.bf16.mxu0 %v5791_v10  ;;  %6206 = vmatprep.subr.bf16.mxu1 %v5793_v33  ;;  %v5804_v54 = vld [vmem:[#allocation6 + $0xb0] sm:$0xff]  ;;  %v5807_v2 = vld [vmem:[#allocation6 + $0xc8] sm:$0xff]  ;;  %v5809_v37 = vld [vmem:[#allocation6 + $0xd8] sm:$0xff] }
 0xd06   :  { %v5806_v22 = vld [vmem:[#allocation6 + $0xc0] sm:$0xff]  ;;  %v5808_v49 = vld [vmem:[#allocation6 + $0xd0] sm:$0xff]  ;;  %v5811_v1 = vld [vmem:[#allocation6 + $0xe8] sm:$0xff] }
 0xd07   :  { %v5813_v57 = vld [vmem:[#allocation6 + $0xf8] sm:$0xff]  ;;  %v5810_v60 = vld [vmem:[#allocation6 + $0xe0] sm:$0xff]  ;;  %v5812_v61 = vld [vmem:[#allocation6 + $0xf0] sm:$0xff] }
 0xd08   :  { %6043 = vmatpush1.bf16.msra.mxu0 %v5790_v44  ;;  %6207 = vmatpush1.bf16.msra.mxu1 %v5792_v11  ;;  %v5815_v7 = vld [vmem:[#allocation6 + $0x108] sm:$0xff]  ;;  %v5817_v23 = vld [vmem:[#allocation6 + $0x118] sm:$0xff]  ;;  %v5814_v31 = vld [vmem:[#allocation6 + $0x100] sm:$0xff] }
 0xd09   :  { %6044 = vmatprep.subr.bf16.mxu0 %v5795_v29  ;;  %6208 = vmatprep.subr.bf16.mxu1 %v5797_v47  ;;  %v5816_v36 = vld [vmem:[#allocation6 + $0x110] sm:$0xff]  ;;  %v5819_v41 = vld [vmem:[#allocation6 + $0x128] sm:$0xff]  ;;  %v5821_v20 = vld [vmem:[#allocation6 + $0x138] sm:$0xff] }
 0xd0a   :  { %v5818_v15 = vld [vmem:[#allocation6 + $0x120] sm:$0xff]  ;;  %v5820_v45 = vld [vmem:[#allocation6 + $0x130] sm:$0xff]  ;;  %v5823_v62 = vld [vmem:[#allocation6 + $0x148] sm:$0xff] }
 0xd0b   :  { %v5825_v56 = vld [vmem:[#allocation6 + $0x158] sm:$0xff]  ;;  %v5822_v10 = vld [vmem:[#allocation6 + $0x140] sm:$0xff]  ;;  %v5824_v33 = vld [vmem:[#allocation6 + $0x150] sm:$0xff] }
 0xd0c   :  { %6045 = vmatpush1.bf16.msra.mxu0 %v5794_v58  ;;  %6209 = vmatpush1.bf16.msra.mxu1 %v5796_v55  ;;  %v5827_v44 = vld [vmem:[#allocation6 + $0x168] sm:$0xff]  ;;  %v5829_v11 = vld [vmem:[#allocation6 + $0x178] sm:$0xff]  ;;  %v5826_v29 = vld [vmem:[#allocation6 + $0x160] sm:$0xff] }
 0xd0d   :  { %6046 = vmatprep.subr.bf16.mxu0 %v5799_v13  ;;  %6210 = vmatprep.subr.bf16.mxu1 %v5801_v50  ;;  %v5828_v47 = vld [vmem:[#allocation6 + $0x170] sm:$0xff]  ;;  %v5831_v58 = vld [vmem:[#allocation6 + $0x188] sm:$0xff]  ;;  %v5833_v55 = vld [vmem:[#allocation6 + $0x198] sm:$0xff] }
 0xd0e   :  { %v5830_v13 = vld [vmem:[#allocation6 + $0x180] sm:$0xff]  ;;  %v5832_v50 = vld [vmem:[#allocation6 + $0x190] sm:$0xff] }
 0xd0f   :  { %v5850_v40 = vld [vmem:[#allocation6 + $0x220] sm:$0xff]  ;;  %v5856_v42 = vld [vmem:[#allocation6 + $0x250] sm:$0xff] }
 0xd10   :  { %6047 = vmatpush1.bf16.msra.mxu0 %v5798_v63  ;;  %6211 = vmatpush1.bf16.msra.mxu1 %v5800_v28  ;;  %v5835_v63 = vld [vmem:[#allocation6 + $0x1a8] sm:$0xff]  ;;  %v5837_v28 = vld [vmem:[#allocation6 + $0x1b8] sm:$0xff]  ;;  %v5914_v21 = vld [vmem:[#allocation6 + $0x420] sm:$0xff] }
 0xd11   :  { %6048 = vmatprep.subr.bf16.mxu0 %v5803_v52  ;;  %6212 = vmatprep.subr.bf16.mxu1 %v5805_v19  ;;  %v5834_v52 = vld [vmem:[#allocation6 + $0x1a0] sm:$0xff]  ;;  %v5836_v19 = vld [vmem:[#allocation6 + $0x1b0] sm:$0xff] }
 0xd12   :  { %v5920_v30 = vld [vmem:[#allocation6 + $0x450] sm:$0xff]  ;;  %v5978_v8 = vld [vmem:[#allocation6 + $0x620] sm:$0xff] }
 0xd13   :  { %v5984_v39 = vld [vmem:[#allocation6 + $0x650] sm:$0xff] }
 0xd14   :  { %6049 = vmatpush1.bf16.msra.mxu0 %v5802_v24  ;;  %6213 = vmatpush1.bf16.msra.mxu1 %v5804_v54  ;;  %v5839_v24 = vld [vmem:[#allocation6 + $0x1c8] sm:$0xff]  ;;  %v5841_v54 = vld [vmem:[#allocation6 + $0x1d8] sm:$0xff] }
 0xd15   :  { %6050 = vmatprep.subr.bf16.mxu0 %v5807_v2  ;;  %6214 = vmatprep.subr.bf16.mxu1 %v5809_v37  ;;  %v5838_v2 = vld [vmem:[#allocation6 + $0x1c0] sm:$0xff]  ;;  %v5840_v37 = vld [vmem:[#allocation6 + $0x1d0] sm:$0xff] }
 0xd18   :  { %6051 = vmatpush1.bf16.msra.mxu0 %v5806_v22  ;;  %6215 = vmatpush1.bf16.msra.mxu1 %v5808_v49  ;;  %v5843_v22 = vld [vmem:[#allocation6 + $0x1e8] sm:$0xff]  ;;  %v5845_v49 = vld [vmem:[#allocation6 + $0x1f8] sm:$0xff] }
 0xd19   :  { %6052 = vmatprep.subr.bf16.mxu0 %v5811_v1  ;;  %6216 = vmatprep.subr.bf16.mxu1 %v5813_v57  ;;  %v5842_v1 = vld [vmem:[#allocation6 + $0x1e0] sm:$0xff]  ;;  %v5844_v57 = vld [vmem:[#allocation6 + $0x1f0] sm:$0xff] }
 0xd1c   :  { %6053 = vmatpush1.bf16.msra.mxu0 %v5810_v60  ;;  %6217 = vmatpush1.bf16.msra.mxu1 %v5812_v61  ;;  %v5847_v60 = vld [vmem:[#allocation6 + $0x208] sm:$0xff]  ;;  %v5849_v61 = vld [vmem:[#allocation6 + $0x218] sm:$0xff] }
 0xd1d   :  { %6054 = vmatprep.subr.bf16.mxu0 %v5815_v7  ;;  %6218 = vmatprep.subr.bf16.mxu1 %v5817_v23  ;;  %v5774_v7 = vpack.c.bf16 %v5763_v26, %v5763_v26  ;;  %v5846_v23 = vld [vmem:[#allocation6 + $0x200] sm:$0xff]  ;;  %v5852_v26 = vld [vmem:[#allocation6 + $0x230] sm:$0xff] }
 0xd20   :  { %6055 = vmatpush1.bf16.msra.mxu0 %v5814_v31  ;;  %6219 = vmatpush1.bf16.msra.mxu1 %v5816_v36  ;;  %v5848_v31 = vld [vmem:[#allocation6 + $0x210] sm:$0xff]  ;;  %v5851_v36 = vld [vmem:[#allocation6 + $0x228] sm:$0xff] }
 0xd21   :  { %6056 = vmatprep.subr.bf16.mxu0 %v5819_v41  ;;  %6220 = vmatprep.subr.bf16.mxu1 %v5821_v20  ;;  %v5853_v41 = vld [vmem:[#allocation6 + $0x238] sm:$0xff]  ;;  %v5777_v20 = vpack.c.bf16 %v5766_v48, %v5766_v48 }
 0xd22   :  { %v5861_v48 = vld [vmem:[#allocation6 + $0x278] sm:$0xff] }
 0xd24   :  { %6057 = vmatpush1.bf16.msra.mxu0 %v5818_v15  ;;  %6221 = vmatpush1.bf16.msra.mxu1 %v5820_v45  ;;  %v5855_v15 = vld [vmem:[#allocation6 + $0x248] sm:$0xff]  ;;  %v5857_v45 = vld [vmem:[#allocation6 + $0x258] sm:$0xff] }
 0xd25   :  { %6058 = vmatprep.subr.bf16.mxu0 %v5823_v62  ;;  %6222 = vmatprep.subr.bf16.mxu1 %v5825_v56  ;;  %v5854_v62 = vld [vmem:[#allocation6 + $0x240] sm:$0xff]  ;;  %v5859_v56 = vld [vmem:[#allocation6 + $0x268] sm:$0xff] }
 0xd28   :  { %6059 = vmatpush1.bf16.msra.mxu0 %v5822_v10  ;;  %6223 = vmatpush1.bf16.msra.mxu1 %v5824_v33  ;;  %v5858_v10 = vld [vmem:[#allocation6 + $0x260] sm:$0xff]  ;;  %v5860_v33 = vld [vmem:[#allocation6 + $0x270] sm:$0xff] }
 0xd29   :  { %6060 = vmatprep.subr.bf16.mxu0 %v5827_v44  ;;  %6224 = vmatprep.subr.bf16.mxu1 %v5829_v11  ;;  %v5863_v44 = vld [vmem:[#allocation6 + $0x288] sm:$0xff]  ;;  %v5865_v11 = vld [vmem:[#allocation6 + $0x298] sm:$0xff] }
 0xd2c   :  { %6061 = vmatpush1.bf16.msra.mxu0 %v5826_v29  ;;  %6225 = vmatpush1.bf16.msra.mxu1 %v5828_v47  ;;  %v5862_v29 = vld [vmem:[#allocation6 + $0x280] sm:$0xff]  ;;  %v5864_v47 = vld [vmem:[#allocation6 + $0x290] sm:$0xff] }
 0xd2d   :  { %6062 = vmatprep.subr.bf16.mxu0 %v5831_v58  ;;  %6226 = vmatprep.subr.bf16.mxu1 %v5833_v55  ;;  %v5867_v58 = vld [vmem:[#allocation6 + $0x2a8] sm:$0xff]  ;;  %v5869_v55 = vld [vmem:[#allocation6 + $0x2b8] sm:$0xff] }
 0xd30   :  { %6063 = vmatpush1.bf16.msra.mxu0 %v5830_v13  ;;  %6227 = vmatpush1.bf16.msra.mxu1 %v5832_v50  ;;  %v5866_v13 = vld [vmem:[#allocation6 + $0x2a0] sm:$0xff]  ;;  %v5868_v50 = vld [vmem:[#allocation6 + $0x2b0] sm:$0xff] }
 0xd31   :  { %6064 = vmatprep.subr.bf16.mxu0 %v5835_v63  ;;  %6228 = vmatprep.subr.bf16.mxu1 %v5837_v28  ;;  %v5871_v63 = vld [vmem:[#allocation6 + $0x2c8] sm:$0xff]  ;;  %v5873_v28 = vld [vmem:[#allocation6 + $0x2d8] sm:$0xff] }
 0xd34   :  { %6065 = vmatpush1.bf16.msra.mxu0 %v5834_v52  ;;  %6229 = vmatpush1.bf16.msra.mxu1 %v5836_v19  ;;  %v5870_v52 = vld [vmem:[#allocation6 + $0x2c0] sm:$0xff]  ;;  %v5872_v19 = vld [vmem:[#allocation6 + $0x2d0] sm:$0xff] }
 0xd35   :  { %6066 = vmatprep.subr.bf16.mxu0 %v5839_v24  ;;  %6230 = vmatprep.subr.bf16.mxu1 %v5841_v54  ;;  %v5875_v24 = vld [vmem:[#allocation6 + $0x2e8] sm:$0xff]  ;;  %v5877_v54 = vld [vmem:[#allocation6 + $0x2f8] sm:$0xff] }
 0xd38   :  { %6067 = vmatpush1.bf16.msra.mxu0 %v5838_v2  ;;  %6231 = vmatpush1.bf16.msra.mxu1 %v5840_v37  ;;  %v5874_v2 = vld [vmem:[#allocation6 + $0x2e0] sm:$0xff]  ;;  %v5876_v37 = vld [vmem:[#allocation6 + $0x2f0] sm:$0xff] }
 0xd39   :  { %6068 = vmatprep.subr.bf16.mxu0 %v5843_v22  ;;  %6232 = vmatprep.subr.bf16.mxu1 %v5845_v49  ;;  %v5879_v22 = vld [vmem:[#allocation6 + $0x308] sm:$0xff]  ;;  %v5881_v49 = vld [vmem:[#allocation6 + $0x318] sm:$0xff] }
 0xd3c   :  { %6069 = vmatpush1.bf16.msra.mxu0 %v5842_v1  ;;  %6233 = vmatpush1.bf16.msra.mxu1 %v5844_v57  ;;  %v5878_v1 = vld [vmem:[#allocation6 + $0x300] sm:$0xff]  ;;  %v5880_v57 = vld [vmem:[#allocation6 + $0x310] sm:$0xff] }
 0xd3d   :  { %6079 = vmatprep.subr.bf16.mxu0 %v5847_v60  ;;  %6243 = vmatprep.subr.bf16.mxu1 %v5849_v61  ;;  %v5883_v60 = vld [vmem:[#allocation6 + $0x328] sm:$0xff]  ;;  %v5885_v61 = vld [vmem:[#allocation6 + $0x338] sm:$0xff] }
 0xd3f   :  { %6071 = vmatmul.mubr.bf16.vlgmr.msra.gmra.mrb[36].mxu0 %v5774_v7  ;;  %6235 = vmatmul.mubr.bf16.vlgmr.msra.gmra.mrb[36].mxu1 %v5774_v7  ;;  %v5882_v7 = vld [vmem:[#allocation6 + $0x320] sm:$0xff] }
 0xd40   :  { %6080 = vmatpush1.bf16.msra.mxu0 %v5846_v23  ;;  %6244 = vmatpush1.bf16.msra.mxu1 %v5848_v31  ;;  %v5884_v23 = vld [vmem:[#allocation6 + $0x330] sm:$0xff]  ;;  %v5887_v31 = vld [vmem:[#allocation6 + $0x348] sm:$0xff] }
 0xd41   :  { %6081 = vmatprep.subr.bf16.mxu0 %v5851_v36  ;;  %6245 = vmatprep.subr.bf16.mxu1 %v5853_v41  ;;  %v5889_v36 = vld [vmem:[#allocation6 + $0x358] sm:$0xff]  ;;  %v5886_v41 = vld [vmem:[#allocation6 + $0x340] sm:$0xff] }
 0xd42   :  { %6111 = vmatprep.mubr.bf16.mxu0 %v5777_v20  ;;  %6275 = vmatprep.mubr.bf16.mxu1 %v5777_v20  ;;  %v5888_v20 = vld [vmem:[#allocation6 + $0x350] sm:$0xff] }
 0xd44   :  { %6082 = vmatpush1.bf16.msra.mxu0 %v5850_v40  ;;  %6246 = vmatpush1.bf16.msra.mxu1 %v5852_v26  ;;  %v5891_v40 = vld [vmem:[#allocation6 + $0x368] sm:$0xff]  ;;  %v5893_v26 = vld [vmem:[#allocation6 + $0x378] sm:$0xff] }
 0xd45   :  { %6083 = vmatprep.subr.bf16.mxu0 %v5855_v15  ;;  %6247 = vmatprep.subr.bf16.mxu1 %v5857_v45  ;;  %v5890_v15 = vld [vmem:[#allocation6 + $0x360] sm:$0xff]  ;;  %v5892_v45 = vld [vmem:[#allocation6 + $0x370] sm:$0xff] }
 0xd48   :  { %6084 = vmatpush1.bf16.msra.mxu0 %v5854_v62  ;;  %6248 = vmatpush1.bf16.msra.mxu1 %v5856_v42  ;;  %v5895_v62 = vld [vmem:[#allocation6 + $0x388] sm:$0xff]  ;;  %v5897_v42 = vld [vmem:[#allocation6 + $0x398] sm:$0xff] }
 0xd49   :  { %6085 = vmatprep.subr.bf16.mxu0 %v5859_v56  ;;  %6249 = vmatprep.subr.bf16.mxu1 %v5861_v48  ;;  %v5894_v56 = vld [vmem:[#allocation6 + $0x380] sm:$0xff]  ;;  %v5896_v48 = vld [vmem:[#allocation6 + $0x390] sm:$0xff] }
 0xd4c   :  { %6086 = vmatpush1.bf16.msra.mxu0 %v5858_v10  ;;  %6250 = vmatpush1.bf16.msra.mxu1 %v5860_v33  ;;  %v5899_v10 = vld [vmem:[#allocation6 + $0x3a8] sm:$0xff]  ;;  %v5901_v33 = vld [vmem:[#allocation6 + $0x3b8] sm:$0xff] }
 0xd4d   :  { %6087 = vmatprep.subr.bf16.mxu0 %v5863_v44  ;;  %6251 = vmatprep.subr.bf16.mxu1 %v5865_v11  ;;  %v5898_v44 = vld [vmem:[#allocation6 + $0x3a0] sm:$0xff]  ;;  %v5900_v11 = vld [vmem:[#allocation6 + $0x3b0] sm:$0xff] }
 0xd50   :  { %6088 = vmatpush1.bf16.msra.mxu0 %v5862_v29  ;;  %6252 = vmatpush1.bf16.msra.mxu1 %v5864_v47  ;;  %v5903_v29 = vld [vmem:[#allocation6 + $0x3c8] sm:$0xff]  ;;  %v5905_v47 = vld [vmem:[#allocation6 + $0x3d8] sm:$0xff] }
 0xd51   :  { %6089 = vmatprep.subr.bf16.mxu0 %v5867_v58  ;;  %6253 = vmatprep.subr.bf16.mxu1 %v5869_v55  ;;  %v5902_v58 = vld [vmem:[#allocation6 + $0x3c0] sm:$0xff]  ;;  %v5904_v55 = vld [vmem:[#allocation6 + $0x3d0] sm:$0xff] }
 0xd54   :  { %6090 = vmatpush1.bf16.msra.mxu0 %v5866_v13  ;;  %6254 = vmatpush1.bf16.msra.mxu1 %v5868_v50  ;;  %v5907_v13 = vld [vmem:[#allocation6 + $0x3e8] sm:$0xff]  ;;  %v5909_v50 = vld [vmem:[#allocation6 + $0x3f8] sm:$0xff] }
 0xd55   :  { %6091 = vmatprep.subr.bf16.mxu0 %v5871_v63  ;;  %6255 = vmatprep.subr.bf16.mxu1 %v5873_v28  ;;  %v5906_v63 = vld [vmem:[#allocation6 + $0x3e0] sm:$0xff]  ;;  %v5908_v28 = vld [vmem:[#allocation6 + $0x3f0] sm:$0xff] }
 0xd58   :  { %6092 = vmatpush1.bf16.msra.mxu0 %v5870_v52  ;;  %6256 = vmatpush1.bf16.msra.mxu1 %v5872_v19  ;;  %v5911_v52 = vld [vmem:[#allocation6 + $0x408] sm:$0xff]  ;;  %v5913_v19 = vld [vmem:[#allocation6 + $0x418] sm:$0xff] }
 0xd59   :  { %6093 = vmatprep.subr.bf16.mxu0 %v5875_v24  ;;  %6257 = vmatprep.subr.bf16.mxu1 %v5877_v54  ;;  %v5776_v24 = vpack.c.bf16 %v5765_v27, %v5765_v27  ;;  %v5910_v54 = vld [vmem:[#allocation6 + $0x400] sm:$0xff]  ;;  %v5916_v27 = vld [vmem:[#allocation6 + $0x430] sm:$0xff] }
 0xd5c   :  { %6094 = vmatpush1.bf16.msra.mxu0 %v5874_v2  ;;  %6258 = vmatpush1.bf16.msra.mxu1 %v5876_v37  ;;  %v5912_v2 = vld [vmem:[#allocation6 + $0x410] sm:$0xff]  ;;  %v5915_v37 = vld [vmem:[#allocation6 + $0x428] sm:$0xff] }
 0xd5d   :  { %6095 = vmatprep.subr.bf16.mxu0 %v5879_v22  ;;  %6259 = vmatprep.subr.bf16.mxu1 %v5881_v49  ;;  %v5917_v22 = vld [vmem:[#allocation6 + $0x438] sm:$0xff]  ;;  %v5779_v49 = vpack.c.bf16 %v5768_v34, %v5768_v34 }
 0xd5e   :  { %v5925_v34 = vld [vmem:[#allocation6 + $0x478] sm:$0xff] }
 0xd60   :  { %6096 = vmatpush1.bf16.msra.mxu0 %v5878_v1  ;;  %6260 = vmatpush1.bf16.msra.mxu1 %v5880_v57  ;;  %v5919_v1 = vld [vmem:[#allocation6 + $0x448] sm:$0xff]  ;;  %v5921_v57 = vld [vmem:[#allocation6 + $0x458] sm:$0xff] }
 0xd61   :  { %6097 = vmatprep.subr.bf16.mxu0 %v5883_v60  ;;  %6261 = vmatprep.subr.bf16.mxu1 %v5885_v61  ;;  %v5918_v60 = vld [vmem:[#allocation6 + $0x440] sm:$0xff]  ;;  %v5923_v61 = vld [vmem:[#allocation6 + $0x468] sm:$0xff] }
 0xd64   :  { %6098 = vmatpush1.bf16.msra.mxu0 %v5882_v7  ;;  %6262 = vmatpush1.bf16.msra.mxu1 %v5884_v23  ;;  %v5922_v7 = vld [vmem:[#allocation6 + $0x460] sm:$0xff]  ;;  %v5924_v23 = vld [vmem:[#allocation6 + $0x470] sm:$0xff] }
 0xd65   :  { %6099 = vmatprep.subr.bf16.mxu0 %v5887_v31  ;;  %6263 = vmatprep.subr.bf16.mxu1 %v5889_v36  ;;  %v5927_v31 = vld [vmem:[#allocation6 + $0x488] sm:$0xff]  ;;  %v5929_v36 = vld [vmem:[#allocation6 + $0x498] sm:$0xff] }
 0xd68   :  { %6100 = vmatpush1.bf16.msra.mxu0 %v5886_v41  ;;  %6264 = vmatpush1.bf16.msra.mxu1 %v5888_v20  ;;  %v5926_v41 = vld [vmem:[#allocation6 + $0x480] sm:$0xff]  ;;  %v5928_v20 = vld [vmem:[#allocation6 + $0x490] sm:$0xff] }
 0xd69   :  { %6101 = vmatprep.subr.bf16.mxu0 %v5891_v40  ;;  %6265 = vmatprep.subr.bf16.mxu1 %v5893_v26  ;;  %v5931_v40 = vld [vmem:[#allocation6 + $0x4a8] sm:$0xff]  ;;  %v5933_v26 = vld [vmem:[#allocation6 + $0x4b8] sm:$0xff] }
 0xd6c   :  { %6102 = vmatpush1.bf16.msra.mxu0 %v5890_v15  ;;  %6266 = vmatpush1.bf16.msra.mxu1 %v5892_v45  ;;  %v5930_v15 = vld [vmem:[#allocation6 + $0x4a0] sm:$0xff]  ;;  %v5932_v45 = vld [vmem:[#allocation6 + $0x4b0] sm:$0xff] }
 0xd6d   :  { %6103 = vmatprep.subr.bf16.mxu0 %v5895_v62  ;;  %6267 = vmatprep.subr.bf16.mxu1 %v5897_v42  ;;  %v5935_v62 = vld [vmem:[#allocation6 + $0x4c8] sm:$0xff]  ;;  %v5937_v42 = vld [vmem:[#allocation6 + $0x4d8] sm:$0xff] }
 0xd70   :  { %6104 = vmatpush1.bf16.msra.mxu0 %v5894_v56  ;;  %6268 = vmatpush1.bf16.msra.mxu1 %v5896_v48  ;;  %v5934_v56 = vld [vmem:[#allocation6 + $0x4c0] sm:$0xff]  ;;  %v5936_v48 = vld [vmem:[#allocation6 + $0x4d0] sm:$0xff] }
 0xd71   :  { %6105 = vmatprep.subr.bf16.mxu0 %v5899_v10  ;;  %6269 = vmatprep.subr.bf16.mxu1 %v5901_v33  ;;  %v5939_v10 = vld [vmem:[#allocation6 + $0x4e8] sm:$0xff]  ;;  %v5941_v33 = vld [vmem:[#allocation6 + $0x4f8] sm:$0xff] }
 0xd74   :  { %6106 = vmatpush1.bf16.msra.mxu0 %v5898_v44  ;;  %6270 = vmatpush1.bf16.msra.mxu1 %v5900_v11  ;;  %v5938_v44 = vld [vmem:[#allocation6 + $0x4e0] sm:$0xff]  ;;  %v5940_v11 = vld [vmem:[#allocation6 + $0x4f0] sm:$0xff] }
 0xd75   :  { %6107 = vmatprep.subr.bf16.mxu0 %v5903_v29  ;;  %6271 = vmatprep.subr.bf16.mxu1 %v5905_v47  ;;  %v5943_v29 = vld [vmem:[#allocation6 + $0x508] sm:$0xff]  ;;  %v5945_v47 = vld [vmem:[#allocation6 + $0x518] sm:$0xff] }
 0xd78   :  { %6108 = vmatpush1.bf16.msra.mxu0 %v5902_v58  ;;  %6272 = vmatpush1.bf16.msra.mxu1 %v5904_v55  ;;  %v5942_v58 = vld [vmem:[#allocation6 + $0x500] sm:$0xff]  ;;  %v5944_v55 = vld [vmem:[#allocation6 + $0x510] sm:$0xff] }
 0xd79   :  { %6109 = vmatprep.subr.bf16.mxu0 %v5907_v13  ;;  %6273 = vmatprep.subr.bf16.mxu1 %v5909_v50  ;;  %v5947_v13 = vld [vmem:[#allocation6 + $0x528] sm:$0xff]  ;;  %v5949_v50 = vld [vmem:[#allocation6 + $0x538] sm:$0xff] }
 0xd7c   :  { %6110 = vmatpush1.bf16.msra.mxu0 %v5906_v63  ;;  %6274 = vmatpush1.bf16.msra.mxu1 %v5908_v28  ;;  %v5946_v63 = vld [vmem:[#allocation6 + $0x520] sm:$0xff]  ;;  %v5948_v28 = vld [vmem:[#allocation6 + $0x530] sm:$0xff] }
 0xd7d   :  { %6120 = vmatprep.subr.bf16.mxu0 %v5911_v52  ;;  %6284 = vmatprep.subr.bf16.mxu1 %v5913_v19  ;;  %v5951_v52 = vld [vmem:[#allocation6 + $0x548] sm:$0xff]  ;;  %v5953_v19 = vld [vmem:[#allocation6 + $0x558] sm:$0xff] }
 0xd7f   :  { %6112 = vmatmul.mubr.bf16.vlgmr.msra.gmra.mrb[36].mxu0 %v5776_v24  ;;  %6276 = vmatmul.mubr.bf16.vlgmr.msra.gmra.mrb[36].mxu1 %v5776_v24  ;;  %v5950_v24 = vld [vmem:[#allocation6 + $0x540] sm:$0xff] }
 0xd80   :  { %6121 = vmatpush1.bf16.msra.mxu0 %v5910_v54  ;;  %6285 = vmatpush1.bf16.msra.mxu1 %v5912_v2  ;;  %v5952_v54 = vld [vmem:[#allocation6 + $0x550] sm:$0xff]  ;;  %v5955_v2 = vld [vmem:[#allocation6 + $0x568] sm:$0xff] }
 0xd81   :  { %6122 = vmatprep.subr.bf16.mxu0 %v5915_v37  ;;  %6286 = vmatprep.subr.bf16.mxu1 %v5917_v22  ;;  %v5957_v37 = vld [vmem:[#allocation6 + $0x578] sm:$0xff]  ;;  %v5954_v22 = vld [vmem:[#allocation6 + $0x560] sm:$0xff] }
 0xd82   :  { %6152 = vmatprep.mubr.bf16.mxu0 %v5779_v49  ;;  %6316 = vmatprep.mubr.bf16.mxu1 %v5779_v49  ;;  %v5956_v49 = vld [vmem:[#allocation6 + $0x570] sm:$0xff] }
 0xd84   :  { %6123 = vmatpush1.bf16.msra.mxu0 %v5914_v21  ;;  %6287 = vmatpush1.bf16.msra.mxu1 %v5916_v27  ;;  %v5959_v21 = vld [vmem:[#allocation6 + $0x588] sm:$0xff]  ;;  %v5961_v27 = vld [vmem:[#allocation6 + $0x598] sm:$0xff] }
 0xd85   :  { %6124 = vmatprep.subr.bf16.mxu0 %v5919_v1  ;;  %6288 = vmatprep.subr.bf16.mxu1 %v5921_v57  ;;  %v5958_v1 = vld [vmem:[#allocation6 + $0x580] sm:$0xff]  ;;  %v5960_v57 = vld [vmem:[#allocation6 + $0x590] sm:$0xff] }
 0xd88   :  { %6125 = vmatpush1.bf16.msra.mxu0 %v5918_v60  ;;  %6289 = vmatpush1.bf16.msra.mxu1 %v5920_v30  ;;  %v5963_v60 = vld [vmem:[#allocation6 + $0x5a8] sm:$0xff]  ;;  %v5965_v30 = vld [vmem:[#allocation6 + $0x5b8] sm:$0xff] }
 0xd89   :  { %6126 = vmatprep.subr.bf16.mxu0 %v5923_v61  ;;  %6290 = vmatprep.subr.bf16.mxu1 %v5925_v34  ;;  %v5962_v61 = vld [vmem:[#allocation6 + $0x5a0] sm:$0xff]  ;;  %v5964_v34 = vld [vmem:[#allocation6 + $0x5b0] sm:$0xff] }
 0xd8c   :  { %6127 = vmatpush1.bf16.msra.mxu0 %v5922_v7  ;;  %6291 = vmatpush1.bf16.msra.mxu1 %v5924_v23  ;;  %v5967_v7 = vld [vmem:[#allocation6 + $0x5c8] sm:$0xff]  ;;  %v5969_v23 = vld [vmem:[#allocation6 + $0x5d8] sm:$0xff] }
 0xd8d   :  { %6128 = vmatprep.subr.bf16.mxu0 %v5927_v31  ;;  %6292 = vmatprep.subr.bf16.mxu1 %v5929_v36  ;;  %v5966_v31 = vld [vmem:[#allocation6 + $0x5c0] sm:$0xff]  ;;  %v5968_v36 = vld [vmem:[#allocation6 + $0x5d0] sm:$0xff] }
 0xd90   :  { %6129 = vmatpush1.bf16.msra.mxu0 %v5926_v41  ;;  %6293 = vmatpush1.bf16.msra.mxu1 %v5928_v20  ;;  %v5971_v41 = vld [vmem:[#allocation6 + $0x5e8] sm:$0xff]  ;;  %v5973_v20 = vld [vmem:[#allocation6 + $0x5f8] sm:$0xff] }
 0xd91   :  { %6130 = vmatprep.subr.bf16.mxu0 %v5931_v40  ;;  %6294 = vmatprep.subr.bf16.mxu1 %v5933_v26  ;;  %v5970_v40 = vld [vmem:[#allocation6 + $0x5e0] sm:$0xff]  ;;  %v5972_v26 = vld [vmem:[#allocation6 + $0x5f0] sm:$0xff] }
 0xd94   :  { %6131 = vmatpush1.bf16.msra.mxu0 %v5930_v15  ;;  %6295 = vmatpush1.bf16.msra.mxu1 %v5932_v45  ;;  %v5975_v15 = vld [vmem:[#allocation6 + $0x608] sm:$0xff]  ;;  %v5977_v45 = vld [vmem:[#allocation6 + $0x618] sm:$0xff] }
 0xd95   :  { %6132 = vmatprep.subr.bf16.mxu0 %v5935_v62  ;;  %6296 = vmatprep.subr.bf16.mxu1 %v5937_v42  ;;  %v5778_v62 = vpack.c.bf16 %v5767_v51, %v5767_v51  ;;  %v5974_v42 = vld [vmem:[#allocation6 + $0x600] sm:$0xff]  ;;  %v5980_v51 = vld [vmem:[#allocation6 + $0x630] sm:$0xff] }
 0xd98   :  { %6133 = vmatpush1.bf16.msra.mxu0 %v5934_v56  ;;  %6297 = vmatpush1.bf16.msra.mxu1 %v5936_v48  ;;  %v5976_v56 = vld [vmem:[#allocation6 + $0x610] sm:$0xff]  ;;  %v5979_v48 = vld [vmem:[#allocation6 + $0x628] sm:$0xff] }
 0xd99   :  { %6134 = vmatprep.subr.bf16.mxu0 %v5939_v10  ;;  %6298 = vmatprep.subr.bf16.mxu1 %v5941_v33  ;;  %v5981_v10 = vld [vmem:[#allocation6 + $0x638] sm:$0xff]  ;;  %v5781_v33 = vpack.c.bf16 %v5770_v14, %v5770_v14 }
 0xd9a   :  { %v5989_v14 = vld [vmem:[#allocation6 + $0x678] sm:$0xff] }
 0xd9c   :  { %6135 = vmatpush1.bf16.msra.mxu0 %v5938_v44  ;;  %6299 = vmatpush1.bf16.msra.mxu1 %v5940_v11  ;;  %v5983_v44 = vld [vmem:[#allocation6 + $0x648] sm:$0xff]  ;;  %v5985_v11 = vld [vmem:[#allocation6 + $0x658] sm:$0xff] }
 0xd9d   :  { %6136 = vmatprep.subr.bf16.mxu0 %v5943_v29  ;;  %6300 = vmatprep.subr.bf16.mxu1 %v5945_v47  ;;  %v5982_v29 = vld [vmem:[#allocation6 + $0x640] sm:$0xff]  ;;  %v5987_v47 = vld [vmem:[#allocation6 + $0x668] sm:$0xff] }
 0xda0   :  { %6137 = vmatpush1.bf16.msra.mxu0 %v5942_v58  ;;  %6301 = vmatpush1.bf16.msra.mxu1 %v5944_v55  ;;  %v5986_v58 = vld [vmem:[#allocation6 + $0x660] sm:$0xff]  ;;  %v5988_v55 = vld [vmem:[#allocation6 + $0x670] sm:$0xff] }
 0xda1   :  { %6138 = vmatprep.subr.bf16.mxu0 %v5947_v13  ;;  %6302 = vmatprep.subr.bf16.mxu1 %v5949_v50  ;;  %v5991_v13 = vld [vmem:[#allocation6 + $0x688] sm:$0xff]  ;;  %v5993_v50 = vld [vmem:[#allocation6 + $0x698] sm:$0xff] }
 0xda4   :  { %6139 = vmatpush1.bf16.msra.mxu0 %v5946_v63  ;;  %6303 = vmatpush1.bf16.msra.mxu1 %v5948_v28  ;;  %v5990_v63 = vld [vmem:[#allocation6 + $0x680] sm:$0xff]  ;;  %v5992_v28 = vld [vmem:[#allocation6 + $0x690] sm:$0xff] }
 0xda5   :  { %6140 = vmatprep.subr.bf16.mxu0 %v5951_v52  ;;  %6304 = vmatprep.subr.bf16.mxu1 %v5953_v19  ;;  %v5995_v52 = vld [vmem:[#allocation6 + $0x6a8] sm:$0xff]  ;;  %v5997_v19 = vld [vmem:[#allocation6 + $0x6b8] sm:$0xff] }
 0xda8   :  { %6141 = vmatpush1.bf16.msra.mxu0 %v5950_v24  ;;  %6305 = vmatpush1.bf16.msra.mxu1 %v5952_v54  ;;  %v5994_v24 = vld [vmem:[#allocation6 + $0x6a0] sm:$0xff]  ;;  %v5996_v54 = vld [vmem:[#allocation6 + $0x6b0] sm:$0xff] }
 0xda9   :  { %6142 = vmatprep.subr.bf16.mxu0 %v5955_v2  ;;  %6306 = vmatprep.subr.bf16.mxu1 %v5957_v37  ;;  %v5999_v2 = vld [vmem:[#allocation6 + $0x6c8] sm:$0xff]  ;;  %v6001_v37 = vld [vmem:[#allocation6 + $0x6d8] sm:$0xff] }
 0xdac   :  { %6143 = vmatpush1.bf16.msra.mxu0 %v5954_v22  ;;  %6307 = vmatpush1.bf16.msra.mxu1 %v5956_v49  ;;  %v5998_v22 = vld [vmem:[#allocation6 + $0x6c0] sm:$0xff]  ;;  %v6000_v49 = vld [vmem:[#allocation6 + $0x6d0] sm:$0xff] }
 0xdad   :  { %6144 = vmatprep.subr.bf16.mxu0 %v5959_v21  ;;  %6308 = vmatprep.subr.bf16.mxu1 %v5961_v27  ;;  %v6003_v21 = vld [vmem:[#allocation6 + $0x6e8] sm:$0xff]  ;;  %v6005_v27 = vld [vmem:[#allocation6 + $0x6f8] sm:$0xff] }
 0xdb0   :  { %6145 = vmatpush1.bf16.msra.mxu0 %v5958_v1  ;;  %6309 = vmatpush1.bf16.msra.mxu1 %v5960_v57  ;;  %v6002_v1 = vld [vmem:[#allocation6 + $0x6e0] sm:$0xff]  ;;  %v6004_v57 = vld [vmem:[#allocation6 + $0x6f0] sm:$0xff] }
 0xdb1   :  { %6146 = vmatprep.subr.bf16.mxu0 %v5963_v60  ;;  %6310 = vmatprep.subr.bf16.mxu1 %v5965_v30  ;;  %v6007_v60 = vld [vmem:[#allocation6 + $0x708] sm:$0xff]  ;;  %v6009_v30 = vld [vmem:[#allocation6 + $0x718] sm:$0xff] }
 0xdb4   :  { %6147 = vmatpush1.bf16.msra.mxu0 %v5962_v61  ;;  %6311 = vmatpush1.bf16.msra.mxu1 %v5964_v34  ;;  %v6006_v61 = vld [vmem:[#allocation6 + $0x700] sm:$0xff]  ;;  %v6008_v34 = vld [vmem:[#allocation6 + $0x710] sm:$0xff] }
 0xdb5   :  { %6148 = vmatprep.subr.bf16.mxu0 %v5967_v7  ;;  %6312 = vmatprep.subr.bf16.mxu1 %v5969_v23  ;;  %v6011_v7 = vld [vmem:[#allocation6 + $0x728] sm:$0xff]  ;;  %v6013_v23 = vld [vmem:[#allocation6 + $0x738] sm:$0xff] }
 0xdb8   :  { %6149 = vmatpush1.bf16.msra.mxu0 %v5966_v31  ;;  %6313 = vmatpush1.bf16.msra.mxu1 %v5968_v36  ;;  %v6010_v31 = vld [vmem:[#allocation6 + $0x720] sm:$0xff]  ;;  %v6012_v36 = vld [vmem:[#allocation6 + $0x730] sm:$0xff] }
 0xdb9   :  { %6150 = vmatprep.subr.bf16.mxu0 %v5971_v41  ;;  %6314 = vmatprep.subr.bf16.mxu1 %v5973_v20  ;;  %v6015_v41 = vld [vmem:[#allocation6 + $0x748] sm:$0xff]  ;;  %v6017_v20 = vld [vmem:[#allocation6 + $0x758] sm:$0xff] }
 0xdbc   :  { %6151 = vmatpush1.bf16.msra.mxu0 %v5970_v40  ;;  %6315 = vmatpush1.bf16.msra.mxu1 %v5972_v26  ;;  %v6014_v40 = vld [vmem:[#allocation6 + $0x740] sm:$0xff]  ;;  %v6016_v26 = vld [vmem:[#allocation6 + $0x750] sm:$0xff] }
 0xdbd   :  { %6161 = vmatprep.subr.bf16.mxu0 %v5975_v15  ;;  %6325 = vmatprep.subr.bf16.mxu1 %v5977_v45  ;;  %v6019_v15 = vld [vmem:[#allocation6 + $0x768] sm:$0xff]  ;;  %v6021_v45 = vld [vmem:[#allocation6 + $0x778] sm:$0xff] }
 0xdbf   :  { %6153 = vmatmul.mubr.bf16.vlgmr.msra.gmra.mrb[36].mxu0 %v5778_v62  ;;  %6317 = vmatmul.mubr.bf16.vlgmr.msra.gmra.mrb[36].mxu1 %v5778_v62  ;;  %v6018_v62 = vld [vmem:[#allocation6 + $0x760] sm:$0xff] }
 0xdc0   :  { %6162 = vmatpush1.bf16.msra.mxu0 %v5974_v42  ;;  %6326 = vmatpush1.bf16.msra.mxu1 %v5976_v56  ;;  %v6020_v42 = vld [vmem:[#allocation6 + $0x770] sm:$0xff]  ;;  %v6023_v56 = vld [vmem:[#allocation6 + $0x788] sm:$0xff] }
 0xdc1   :  { %6163 = vmatprep.subr.bf16.mxu0 %v5979_v48  ;;  %6327 = vmatprep.subr.bf16.mxu1 %v5981_v10  ;;  %v6025_v48 = vld [vmem:[#allocation6 + $0x798] sm:$0xff]  ;;  %v6022_v10 = vld [vmem:[#allocation6 + $0x780] sm:$0xff] }
 0xdc2   :  { %6193 = vmatprep.mubr.bf16.mxu0 %v5781_v33  ;;  %6357 = vmatprep.mubr.bf16.mxu1 %v5781_v33  ;;  %v6024_v33 = vld [vmem:[#allocation6 + $0x790] sm:$0xff] }
 0xdc4   :  { %6164 = vmatpush1.bf16.msra.mxu0 %v5978_v8  ;;  %6328 = vmatpush1.bf16.msra.mxu1 %v5980_v51  ;;  %v6027_v8 = vld [vmem:[#allocation6 + $0x7a8] sm:$0xff]  ;;  %v6029_v51 = vld [vmem:[#allocation6 + $0x7b8] sm:$0xff] }
 0xdc5   :  { %6165 = vmatprep.subr.bf16.mxu0 %v5983_v44  ;;  %6329 = vmatprep.subr.bf16.mxu1 %v5985_v11  ;;  %v6026_v44 = vld [vmem:[#allocation6 + $0x7a0] sm:$0xff]  ;;  %v6028_v11 = vld [vmem:[#allocation6 + $0x7b0] sm:$0xff] }
 0xdc8   :  { %6166 = vmatpush1.bf16.msra.mxu0 %v5982_v29  ;;  %6330 = vmatpush1.bf16.msra.mxu1 %v5984_v39  ;;  %v6031_v29 = vld [vmem:[#allocation6 + $0x7c8] sm:$0xff]  ;;  %v6033_v39 = vld [vmem:[#allocation6 + $0x7d8] sm:$0xff] }
 0xdc9   :  { %6167 = vmatprep.subr.bf16.mxu0 %v5987_v47  ;;  %6331 = vmatprep.subr.bf16.mxu1 %v5989_v14  ;;  %v6030_v47 = vld [vmem:[#allocation6 + $0x7c0] sm:$0xff]  ;;  %v6032_v14 = vld [vmem:[#allocation6 + $0x7d0] sm:$0xff] }
 0xdcc   :  { %6168 = vmatpush1.bf16.msra.mxu0 %v5986_v58  ;;  %6332 = vmatpush1.bf16.msra.mxu1 %v5988_v55  ;;  %v6035_v58 = vld [vmem:[#allocation6 + $0x7e8] sm:$0xff]  ;;  %v6037_v55 = vld [vmem:[#allocation6 + $0x7f8] sm:$0xff] }
 0xdcd   :  { %6169 = vmatprep.subr.bf16.mxu0 %v5991_v13  ;;  %6333 = vmatprep.subr.bf16.mxu1 %v5993_v50  ;;  %v6034_v13 = vld [vmem:[#allocation6 + $0x7e0] sm:$0xff]  ;;  %v6036_v50 = vld [vmem:[#allocation6 + $0x7f0] sm:$0xff] }
 0xdd0   :  { %6170 = vmatpush1.bf16.msra.mxu0 %v5990_v63  ;;  %6334 = vmatpush1.bf16.msra.mxu1 %v5992_v28  ;;  %v5780_v63 = vpack.c.bf16 %v5769_v43, %v5769_v43 }
 0xdd1   :  { %6171 = vmatprep.subr.bf16.mxu0 %v5995_v52  ;;  %6335 = vmatprep.subr.bf16.mxu1 %v5997_v19 }
 0xdd4   :  { %6172 = vmatpush1.bf16.msra.mxu0 %v5994_v24  ;;  %6336 = vmatpush1.bf16.msra.mxu1 %v5996_v54 }
 0xdd5   :  { %6173 = vmatprep.subr.bf16.mxu0 %v5999_v2  ;;  %6337 = vmatprep.subr.bf16.mxu1 %v6001_v37 }
 0xdd8   :  { %6174 = vmatpush1.bf16.msra.mxu0 %v5998_v22  ;;  %6338 = vmatpush1.bf16.msra.mxu1 %v6000_v49 }
 0xdd9   :  { %6175 = vmatprep.subr.bf16.mxu0 %v6003_v21  ;;  %6339 = vmatprep.subr.bf16.mxu1 %v6005_v27 }
 0xddc   :  { %6176 = vmatpush1.bf16.msra.mxu0 %v6002_v1  ;;  %6340 = vmatpush1.bf16.msra.mxu1 %v6004_v57 }
 0xddd   :  { %6177 = vmatprep.subr.bf16.mxu0 %v6007_v60  ;;  %6341 = vmatprep.subr.bf16.mxu1 %v6009_v30 }
 0xde0   :  { %6178 = vmatpush1.bf16.msra.mxu0 %v6006_v61  ;;  %6342 = vmatpush1.bf16.msra.mxu1 %v6008_v34 }
 0xde1   :  { %6179 = vmatprep.subr.bf16.mxu0 %v6011_v7  ;;  %6343 = vmatprep.subr.bf16.mxu1 %v6013_v23 }
 0xde4   :  { %6180 = vmatpush1.bf16.msra.mxu0 %v6010_v31  ;;  %6344 = vmatpush1.bf16.msra.mxu1 %v6012_v36 }
 0xde5   :  { %6181 = vmatprep.subr.bf16.mxu0 %v6015_v41  ;;  %6345 = vmatprep.subr.bf16.mxu1 %v6017_v20 }
 0xde8   :  { %6182 = vmatpush1.bf16.msra.mxu0 %v6014_v40  ;;  %6346 = vmatpush1.bf16.msra.mxu1 %v6016_v26 }
 0xde9   :  { %6183 = vmatprep.subr.bf16.mxu0 %v6019_v15  ;;  %6347 = vmatprep.subr.bf16.mxu1 %v6021_v45 }
 0xdec   :  { %6184 = vmatpush1.bf16.msra.mxu0 %v6018_v62  ;;  %6348 = vmatpush1.bf16.msra.mxu1 %v6020_v42 }
 0xded   :  { %6185 = vmatprep.subr.bf16.mxu0 %v6023_v56  ;;  %6349 = vmatprep.subr.bf16.mxu1 %v6025_v48 }
 0xdf0   :  { %6186 = vmatpush1.bf16.msra.mxu0 %v6022_v10  ;;  %6350 = vmatpush1.bf16.msra.mxu1 %v6024_v33 }
 0xdf1   :  { %6187 = vmatprep.subr.bf16.mxu0 %v6027_v8  ;;  %6351 = vmatprep.subr.bf16.mxu1 %v6029_v51 }
 0xdf4   :  { %6188 = vmatpush1.bf16.msra.mxu0 %v6026_v44  ;;  %6352 = vmatpush1.bf16.msra.mxu1 %v6028_v11 }
 0xdf5   :  { %6189 = vmatprep.subr.bf16.mxu0 %v6031_v29  ;;  %6353 = vmatprep.subr.bf16.mxu1 %v6033_v39 }
 0xdf8   :  { %6190 = vmatpush1.bf16.msra.mxu0 %v6030_v47  ;;  %6354 = vmatpush1.bf16.msra.mxu1 %v6032_v14 }
 0xdf9   :  { %6191 = vmatprep.subr.bf16.mxu0 %v6035_v58  ;;  %6355 = vmatprep.subr.bf16.mxu1 %v6037_v55 }
 0xdfc   :  { %6192 = vmatpush1.bf16.msra.mxu0 %v6034_v13  ;;  %6356 = vmatpush1.bf16.msra.mxu1 %v6036_v50 }
 0xdff   :  { %6194 = vmatmul.mubr.bf16.vlgmr.msra.gmra.mrb[36].mxu0 %v5780_v63  ;;  %6358 = vmatmul.mubr.bf16.vlgmr.msra.gmra.mrb[36].mxu1 %v5780_v63 }
 0xed2   :  { %v8426_v28 = vpop.f32.mrb[36].mxu0  ;;  %v8428_v52 = vpop.f32.mrb[36].mxu1 }
 0xed3   :  { %v6366_v19 = vmax.f32 %v8426_v28, 0.0  ;;  %v6368_v24 = vmax.f32 %v8428_v52, 0.0  ;;  %v6197_v54 = vpop.f32.mrb[37].mxu0  ;;  %v6361_v2 = vpop.f32.mrb[37].mxu1 }
 0xed4   :  { %v6367_v37 = vmax.f32 %v6197_v54, 0.0  ;;  %v6369_v22 = vmax.f32 %v6361_v2, 0.0  ;;  %v6199_v49 = vpop.f32.mrb[38].mxu0  ;;  %v6363_v9 = vpop.f32.mrb[38].mxu1 }
 0xed5   :  { %v6200_v21 = vpop.f32.mrb[39].mxu0  ;;  %v6364_v43 = vpop.f32.mrb[39].mxu1 }
 0xed6   :  { %7737 = dma.done.wait [#allocation9 + $0x5], 4096 }
 0xed7   :  { %7738 = vsyncadd [#allocation9 + $0x5], 4294963200  ;;  %v6374_v27 = vpack.c.bf16 %v6367_v37, %v6367_v37  ;;  %v6376_v1 = vpack.c.bf16 %v6369_v22, %v6369_v22  ;;  %v6385_v57 = vld [vmem:[#allocation7 + $0x40] sm:$0xff]  ;;  %v6386_v34 = vld [vmem:[#allocation7 + $0x48] sm:$0xff]  ;;  %v6373_v50 = vpack.c.bf16 %v6366_v19, %v6366_v19  ;;  %v6375_v63 = vpack.c.bf16 %v6368_v24, %v6368_v24 }
 0xed8   :  { %v6401_v60 = vld [vmem:[#allocation7 + $0xc0] sm:$0xff]  ;;  %7050 = vmatprep.subr.bf16.mxu0 %v6385_v57  ;;  %v6402_v7 = vld [vmem:[#allocation7 + $0xc8] sm:$0xff]  ;;  %v6387_v36 = vld [vmem:[#allocation7 + $0x50] sm:$0xff] }
 0xed9   :  { %6448 = vmatprep.mubr.bf16.mxu0 %v6374_v27  ;;  %6488 = vmatprep.mubr.bf16.mxu1 %v6376_v1  ;;  %v6377_v30 = vld [vmem:[#allocation7] sm:$0xff]  ;;  %v6378_v23 = vld [vmem:[#allocation7 + $0x8] sm:$0xff]  ;;  %v6403_v41 = vld [vmem:[#allocation7 + $0xd0] sm:$0xff] }
 0xeda   :  { %7072 = vmatprep.subr.bf16.mxu1 %v6401_v60  ;;  %v6393_v61 = vld [vmem:[#allocation7 + $0x80] sm:$0xff]  ;;  %7051 = vmatpush3.bf16.msra.mxu0 %v6377_v30  ;;  %v6394_v31 = vld [vmem:[#allocation7 + $0x88] sm:$0xff]  ;;  %v6379_v20 = vld [vmem:[#allocation7 + $0x10] sm:$0xff] }
 0xedb   :  { %7073 = vmatpush3.bf16.msra.mxu1 %v6393_v61  ;;  %7052 = vmatprep.subr.bf16.mxu0 %v6386_v34  ;;  %v6395_v40 = vld [vmem:[#allocation7 + $0x90] sm:$0xff]  ;;  %v6388_v26 = vld [vmem:[#allocation7 + $0x58] sm:$0xff]  ;;  %v6389_v42 = vld [vmem:[#allocation7 + $0x60] sm:$0xff] }
 0xedc   :  { %7074 = vmatprep.subr.bf16.mxu1 %v6402_v7  ;;  %v6404_v15 = vld [vmem:[#allocation7 + $0xd8] sm:$0xff]  ;;  %v6405_v56 = vld [vmem:[#allocation7 + $0xe0] sm:$0xff]  ;;  %v6390_v33 = vld [vmem:[#allocation7 + $0x68] sm:$0xff] }
 0xedd   :  { %v6380_v45 = vld [vmem:[#allocation7 + $0x18] sm:$0xff]  ;;  %v6381_v48 = vld [vmem:[#allocation7 + $0x20] sm:$0xff]  ;;  %v6406_v8 = vld [vmem:[#allocation7 + $0xe8] sm:$0xff] }
 0xede   :  { %7053 = vmatpush3.bf16.msra.mxu0 %v6378_v23  ;;  %v6396_v62 = vld [vmem:[#allocation7 + $0x98] sm:$0xff]  ;;  %v6397_v10 = vld [vmem:[#allocation7 + $0xa0] sm:$0xff]  ;;  %v6382_v51 = vld [vmem:[#allocation7 + $0x28] sm:$0xff] }
 0xedf   :  { %7075 = vmatpush3.bf16.msra.mxu1 %v6394_v31  ;;  %7054 = vmatprep.subr.bf16.mxu0 %v6387_v36  ;;  %v6398_v44 = vld [vmem:[#allocation7 + $0xa8] sm:$0xff]  ;;  %v6391_v11 = vld [vmem:[#allocation7 + $0x70] sm:$0xff]  ;;  %v6392_v14 = vld [vmem:[#allocation7 + $0x78] sm:$0xff] }
 0xee0   :  { %7076 = vmatprep.subr.bf16.mxu1 %v6403_v41  ;;  %v6407_v29 = vld [vmem:[#allocation7 + $0xf0] sm:$0xff]  ;;  %v6408_v58 = vld [vmem:[#allocation7 + $0xf8] sm:$0xff] }
 0xee1   :  { %v6383_v39 = vld [vmem:[#allocation7 + $0x30] sm:$0xff]  ;;  %v6384_v55 = vld [vmem:[#allocation7 + $0x38] sm:$0xff] }
 0xee2   :  { %7055 = vmatpush3.bf16.msra.mxu0 %v6379_v20  ;;  %v6399_v47 = vld [vmem:[#allocation7 + $0xb0] sm:$0xff]  ;;  %v6400_v13 = vld [vmem:[#allocation7 + $0xb8] sm:$0xff] }
 0xee3   :  { %7077 = vmatpush3.bf16.msra.mxu1 %v6395_v40  ;;  %7056 = vmatprep.subr.bf16.mxu0 %v6388_v26  ;;  %v7041_v37 = vld [vmem:[#allocation13] ss:$0 sm:$0xff] }
 0xee4   :  { %7078 = vmatprep.subr.bf16.mxu1 %v6404_v15 }
 0xee6   :  { %7057 = vmatpush3.bf16.msra.mxu0 %v6380_v45 }
 0xee7   :  { %7079 = vmatpush3.bf16.msra.mxu1 %v6396_v62  ;;  %7058 = vmatprep.subr.bf16.mxu0 %v6389_v42 }
 0xee8   :  { %7080 = vmatprep.subr.bf16.mxu1 %v6405_v56 }
 0xeea   :  { %7059 = vmatpush3.bf16.msra.mxu0 %v6381_v48 }
 0xeeb   :  { %7081 = vmatpush3.bf16.msra.mxu1 %v6397_v10  ;;  %7060 = vmatprep.subr.bf16.mxu0 %v6390_v33 }
 0xeec   :  { %7082 = vmatprep.subr.bf16.mxu1 %v6406_v8 }
 0xeee   :  { %7061 = vmatpush3.bf16.msra.mxu0 %v6382_v51 }
 0xeef   :  { %7083 = vmatpush3.bf16.msra.mxu1 %v6398_v44  ;;  %7062 = vmatprep.subr.bf16.mxu0 %v6391_v11 }
 0xef0   :  { %7084 = vmatprep.subr.bf16.mxu1 %v6407_v29 }
 0xef2   :  { %7063 = vmatpush3.bf16.msra.mxu0 %v6383_v39 }
 0xef3   :  { %7085 = vmatpush3.bf16.msra.mxu1 %v6399_v47  ;;  %7064 = vmatprep.subr.bf16.mxu0 %v6392_v14 }
 0xef4   :  { %7086 = vmatprep.subr.bf16.mxu1 %v6408_v58 }
 0xef6   :  { %7065 = vmatpush3.bf16.msra.mxu0 %v6384_v55 }
 0xef7   :  { %7087 = vmatpush3.bf16.msra.mxu1 %v6400_v13 }
 0xef9   :  { %6449 = vmatmul.mubr.bf16.vlgmr.msra.gmra.mrb[40].mxu0 %v6373_v50 }
 0xefa   :  { %6489 = vmatmul.mubr.bf16.vlgmr.msra.gmra.mrb[40].mxu1 %v6375_v63 }
 0xfcc   :  { %v7066_v54 = vpop.f32.mrb[40].mxu0 }
 0xfcd   :  { %v7088_v2 = vpop.f32.mrb[40].mxu1  ;;  %v7067_v22 = vpop.f32.mrb[41].mxu0 }
 0xfce   :  { %v7089_v49 = vpop.f32.mrb[41].mxu1  ;;  %v7068_v9 = vadd.f32 %v7067_v22, %v7066_v54  ;;  %v7069_v43 = vpop.f32.mrb[42].mxu0 }
 0xfcf   :  { %v7090_v21 = vadd.f32 %v7089_v49, %v7088_v2  ;;  %v7091_v27 = vpop.f32.mrb[42].mxu1  ;;  %v7070_v28 = vpop.f32.mrb[43].mxu0 }
 0xfd0   :  { %v7092_v1 = vpop.f32.mrb[43].mxu1  ;;  %v6451_v19 = vadd.f32 %v7068_v9, %v7041_v37 }
 0xfd2   :  { %v6491_v57 = vadd.f32 %v7090_v21, %v6451_v19 }
 0xfd4   :  { %v6496_v52 = vmax.f32 %v6491_v57, 0.0 }
 0xfd5   :  { %7739 = dma.done.wait [#allocation9 + $0x6], 16384 }
 0xfd6   :  { %7740 = vsyncadd [#allocation9 + $0x6], 4294950912  ;;  %6667 = vmatprep.mubr.bf16.mxu0 %v8237_v4  ;;  %6707 = vmatprep.mubr.bf16.mxu1 %v8249_v35  ;;  %6956 = vst [vmem:[#allocation16] sm:$0xff] %v6496_v52  ;;  %v6508_v24 = vld [vmem:[#allocation8 + $0x40] sm:$0xff]  ;;  %v6509_v34 = vld [vmem:[#allocation8 + $0x48] sm:$0xff]  ;;  %s7772_s0 = smov [#allocation16]  }
 0xfd7   :  { %v6524_v60 = vld [vmem:[#allocation8 + $0xc0] sm:$0xff]  ;;  %7094 = vmatprep.subr.bf16.mxu0 %v6508_v24  ;;  %v6525_v7 = vld [vmem:[#allocation8 + $0xc8] sm:$0xff]  ;;  %v6510_v36 = vld [vmem:[#allocation8 + $0x50] sm:$0xff]  ;;  %s6965_s10 = sshll.u32 %s7772_s0, 4  ;;  %s6966_s10 = int_to_ptr.vmem [resolvable:$true] %s6965_s10 }
 0xfd8   :  { %v6500_v30 = vld [vmem:[#allocation8] sm:$0xff]  ;;  %7116 = vmatprep.subr.bf16.mxu1 %v6524_v60  ;;  %v6501_v23 = vld [vmem:[#allocation8 + $0x8] sm:$0xff]  ;;  %v6526_v41 = vld [vmem:[#allocation8 + $0xd0] sm:$0xff]  ;;  %s7701_s30 = scalar_lea.vmem %s6966_s10, 128  ;;  %p7706_p7 = scmp.lt.s32.totalorder %s6966_s10, %s6966_s10 }
 0xfd9   :  { %v6516_v61 = vld [vmem:[#allocation8 + $0x80] sm:$0xff]  ;;  %7095 = vmatpush3.bf16.msra.mxu0 %v6500_v30  ;;  %v6517_v31 = vld [vmem:[#allocation8 + $0x88] sm:$0xff]  ;;  %v6502_v4 = vld [vmem:[#allocation8 + $0x10] sm:$0xff]  ;;  %p7702_p6 = scmp.ne.s32.totalorder %s6966_s10, %s7701_s30  ;;  %p7707_p8 = scmp.lt.s32.totalorder %s7701_s30, %s7701_s30 }
 0xfda   :  { %7117 = vmatpush3.bf16.msra.mxu1 %v6516_v61  ;;  %7096 = vmatprep.subr.bf16.mxu0 %v6509_v34  ;;  %v6518_v35 = vld [vmem:[#allocation8 + $0x90] sm:$0xff]  ;;  %v6511_v20 = vld [vmem:[#allocation8 + $0x58] sm:$0xff]  ;;  %v6512_v45 = vld [vmem:[#allocation8 + $0x60] sm:$0xff] }
 0xfdb   :  { %7118 = vmatprep.subr.bf16.mxu1 %v6525_v7  ;;  %v6527_v40 = vld [vmem:[#allocation8 + $0xd8] sm:$0xff]  ;;  %v6528_v62 = vld [vmem:[#allocation8 + $0xe0] sm:$0xff]  ;;  %v6513_v48 = vld [vmem:[#allocation8 + $0x68] sm:$0xff]  ;;  %p7708_p9 = por %p7707_p8, %p7706_p7 }
 0xfdc   :  { %v6503_v26 = vld [vmem:[#allocation8 + $0x18] sm:$0xff]  ;;  %v6504_v42 = vld [vmem:[#allocation8 + $0x20] sm:$0xff]  ;;  %v6529_v10 = vld [vmem:[#allocation8 + $0xe8] sm:$0xff] }
 0xfdd   :  { %7097 = vmatpush3.bf16.msra.mxu0 %v6501_v23  ;;  %v6519_v15 = vld [vmem:[#allocation8 + $0x98] sm:$0xff]  ;;  %v6520_v56 = vld [vmem:[#allocation8 + $0xa0] sm:$0xff]  ;;  %v6505_v33 = vld [vmem:[#allocation8 + $0x28] sm:$0xff]  ;;  %p7709_p10 = pnand %p7708_p9, %p7702_p6 }
 0xfde   :  { %7119 = vmatpush3.bf16.msra.mxu1 %v6517_v31  ;;  %7098 = vmatprep.subr.bf16.mxu0 %v6510_v36  ;;  %v6521_v8 = vld [vmem:[#allocation8 + $0xa8] sm:$0xff]  ;;  %v6514_v51 = vld [vmem:[#allocation8 + $0x70] sm:$0xff]  ;;  %v6515_v39 = vld [vmem:[#allocation8 + $0x78] sm:$0xff] }
 0xfdf   :  { %7120 = vmatprep.subr.bf16.mxu1 %v6526_v41  ;;  %v6530_v44 = vld [vmem:[#allocation8 + $0xf0] sm:$0xff]  ;;  %v6531_v47 = vld [vmem:[#allocation8 + $0xf8] sm:$0xff]  ;;  %v6540_v55 = vld [vmem:[#allocation8 + $0x140] sm:$0xff] }
 0xfe0   :  { %v6506_v11 = vld [vmem:[#allocation8 + $0x30] sm:$0xff]  ;;  %v6507_v14 = vld [vmem:[#allocation8 + $0x38] sm:$0xff]  ;;  %v6556_v13 = vld [vmem:[#allocation8 + $0x1c0] sm:$0xff] }
 0xfe1   :  { %7099 = vmatpush3.bf16.msra.mxu0 %v6502_v4  ;;  %v6522_v29 = vld [vmem:[#allocation8 + $0xb0] sm:$0xff]  ;;  %v6523_v58 = vld [vmem:[#allocation8 + $0xb8] sm:$0xff]  ;;  %v6532_v50 = vld [vmem:[#allocation8 + $0x100] sm:$0xff] }
 0xfe2   :  { %7121 = vmatpush3.bf16.msra.mxu1 %v6518_v35  ;;  %7100 = vmatprep.subr.bf16.mxu0 %v6511_v20  ;;  %v6548_v63 = vld [vmem:[#allocation8 + $0x180] sm:$0xff]  ;;  %v6541_v54 = vld [vmem:[#allocation8 + $0x148] sm:$0xff]  ;;  %v6542_v49 = vld [vmem:[#allocation8 + $0x150] sm:$0xff] }
 0xfe3   :  { %7122 = vmatprep.subr.bf16.mxu1 %v6527_v40  ;;  %v6557_v2 = vld [vmem:[#allocation8 + $0x1c8] sm:$0xff]  ;;  %v6558_v9 = vld [vmem:[#allocation8 + $0x1d0] sm:$0xff]  ;;  %v6543_v43 = vld [vmem:[#allocation8 + $0x158] sm:$0xff] }
 0xfe4   :  { %v6533_v37 = vld [vmem:[#allocation8 + $0x108] sm:$0xff]  ;;  %v6534_v21 = vld [vmem:[#allocation8 + $0x110] sm:$0xff]  ;;  %v6535_v27 = vld [vmem:[#allocation8 + $0x118] sm:$0xff] }
 0xfe5   :  { %7101 = vmatpush3.bf16.msra.mxu0 %v6503_v26  ;;  %v6549_v22 = vld [vmem:[#allocation8 + $0x188] sm:$0xff]  ;;  %v6551_v28 = vld [vmem:[#allocation8 + $0x198] sm:$0xff]  ;;  %v6544_v1 = vld [vmem:[#allocation8 + $0x160] sm:$0xff] }
 0xfe6   :  { %7123 = vmatpush3.bf16.msra.mxu1 %v6519_v15  ;;  %7102 = vmatprep.subr.bf16.mxu0 %v6512_v45  ;;  %v6560_v19 = vld [vmem:[#allocation8 + $0x1e0] sm:$0xff]  ;;  %v6545_v57 = vld [vmem:[#allocation8 + $0x168] sm:$0xff]  ;;  %v6546_v30 = vld [vmem:[#allocation8 + $0x170] sm:$0xff] }
 0xfe7   :  { %7124 = vmatprep.subr.bf16.mxu1 %v6528_v62  ;;  %v6561_v52 = vld [vmem:[#allocation8 + $0x1e8] sm:$0xff]  ;;  %v6562_v61 = vld [vmem:[#allocation8 + $0x1f0] sm:$0xff]  ;;  %v6547_v23 = vld [vmem:[#allocation8 + $0x178] sm:$0xff] }
 0xfe8   :  { %v6537_v24 = vld [vmem:[#allocation8 + $0x128] sm:$0xff]  ;;  %v6538_v34 = vld [vmem:[#allocation8 + $0x130] sm:$0xff]  ;;  %v6563_v31 = vld [vmem:[#allocation8 + $0x1f8] sm:$0xff] }
 0xfe9   :  { %7103 = vmatpush3.bf16.msra.mxu0 %v6504_v42  ;;  %v6553_v60 = vld [vmem:[#allocation8 + $0x1a8] sm:$0xff]  ;;  %v6554_v7 = vld [vmem:[#allocation8 + $0x1b0] sm:$0xff]  ;;  %v6539_v36 = vld [vmem:[#allocation8 + $0x138] sm:$0xff] }
 0xfea   :  { %7125 = vmatpush3.bf16.msra.mxu1 %v6520_v56  ;;  %7104 = vmatprep.subr.bf16.mxu0 %v6513_v48  ;;  %v6555_v41 = vld [vmem:[#allocation8 + $0x1b8] sm:$0xff]  ;;  %v6572_v4 = vld [vmem:[#allocation8 + $0x240] sm:$0xff]  ;;  %v6573_v26 = vld [vmem:[#allocation8 + $0x248] sm:$0xff] }
 0xfeb   :  { %7126 = vmatprep.subr.bf16.mxu1 %v6529_v10  ;;  %v6588_v35 = vld [vmem:[#allocation8 + $0x2c0] sm:$0xff]  ;;  %v6589_v15 = vld [vmem:[#allocation8 + $0x2c8] sm:$0xff]  ;;  %v6574_v42 = vld [vmem:[#allocation8 + $0x250] sm:$0xff] }
 0xfec   :  { %v6564_v20 = vld [vmem:[#allocation8 + $0x200] sm:$0xff]  ;;  %v6565_v45 = vld [vmem:[#allocation8 + $0x208] sm:$0xff]  ;;  %v6590_v56 = vld [vmem:[#allocation8 + $0x2d0] sm:$0xff] }
 0xfed   :  { %7105 = vmatpush3.bf16.msra.mxu0 %v6505_v33  ;;  %v6580_v40 = vld [vmem:[#allocation8 + $0x280] sm:$0xff]  ;;  %v6581_v62 = vld [vmem:[#allocation8 + $0x288] sm:$0xff]  ;;  %v6566_v48 = vld [vmem:[#allocation8 + $0x210] sm:$0xff] }
 0xfee   :  { %7127 = vmatpush3.bf16.msra.mxu1 %v6521_v8  ;;  %7106 = vmatprep.subr.bf16.mxu0 %v6514_v51  ;;  %v6575_v10 = vld [vmem:[#allocation8 + $0x258] sm:$0xff]  ;;  %v6576_v51 = vld [vmem:[#allocation8 + $0x260] sm:$0xff] }
 0xfef   :  { %7128 = vmatprep.subr.bf16.mxu1 %v6530_v44  ;;  %v6567_v33 = vld [vmem:[#allocation8 + $0x218] sm:$0xff]  ;;  %v6592_v44 = vld [vmem:[#allocation8 + $0x2e0] sm:$0xff] }
 0xff0   :  { %v6583_v8 = vld [vmem:[#allocation8 + $0x298] sm:$0xff] }
 0xff1   :  { %7107 = vmatpush3.bf16.msra.mxu0 %v6506_v11  ;;  %v6577_v11 = vld [vmem:[#allocation8 + $0x268] sm:$0xff] }
 0xff2   :  { %7129 = vmatpush3.bf16.msra.mxu1 %v6522_v29  ;;  %7108 = vmatprep.subr.bf16.mxu0 %v6515_v39  ;;  %v6593_v29 = vld [vmem:[#allocation8 + $0x2e8] sm:$0xff] }
 0xff3   :  { %7130 = vmatprep.subr.bf16.mxu1 %v6531_v47  ;;  %v6569_v39 = vld [vmem:[#allocation8 + $0x228] sm:$0xff] }
 0xff4   :  { %v6585_v47 = vld [vmem:[#allocation8 + $0x2a8] sm:$0xff] }
 0xff5   :  { %7109 = vmatpush3.bf16.msra.mxu0 %v6507_v14  ;;  %v6578_v14 = vld [vmem:[#allocation8 + $0x270] sm:$0xff] }
 0xff6   :  { %7131 = vmatpush3.bf16.msra.mxu1 %v6523_v58  ;;  %7138 = vmatprep.subr.bf16.mxu0 %v6540_v55  ;;  %v6594_v58 = vld [vmem:[#allocation8 + $0x2f0] sm:$0xff] }
 0xff7   :  { %7160 = vmatprep.subr.bf16.mxu1 %v6556_v13  ;;  %v6570_v55 = vld [vmem:[#allocation8 + $0x230] sm:$0xff] }
 0xff8   :  { %6668 = vmatmul.mubr.bf16.vlgmr.msra.gmra.mrb[44].mxu0 %v8244_v5  ;;  %v6550_v5 = vld [vmem:[#allocation8 + $0x190] sm:$0xff] }
 0xff9   :  { %6708 = vmatmul.mubr.bf16.vlgmr.msra.gmra.mrb[44].mxu1 %v8258_v59  ;;  %7139 = vmatpush3.bf16.msra.mxu0 %v6532_v50  ;;  %v6559_v59 = vld [vmem:[#allocation8 + $0x1d8] sm:$0xff]  ;;  %v6586_v13 = vld [vmem:[#allocation8 + $0x2b0] sm:$0xff] }
 0xffa   :  { %7161 = vmatpush3.bf16.msra.mxu1 %v6548_v63  ;;  %7140 = vmatprep.subr.bf16.mxu0 %v6541_v54  ;;  %v6579_v50 = vld [vmem:[#allocation8 + $0x278] sm:$0xff] }
 0xffb   :  { %7162 = vmatprep.subr.bf16.mxu1 %v6557_v2  ;;  %6747 = vmatprep.mubr.bf16.mxu0 %v8263_v12  ;;  %v6536_v12 = vld [vmem:[#allocation8 + $0x120] sm:$0xff]  ;;  %v6595_v63 = vld [vmem:[#allocation8 + $0x2f8] sm:$0xff] }
 0xffc   :  { %6787 = vmatprep.mubr.bf16.mxu1 %v8277_v46  ;;  %v6552_v46 = vld [vmem:[#allocation8 + $0x1a0] sm:$0xff]  ;;  %v6571_v54 = vld [vmem:[#allocation8 + $0x238] sm:$0xff] }
 0xffd   :  { %7141 = vmatpush3.bf16.msra.mxu0 %v6533_v37  ;;  %v6587_v2 = vld [vmem:[#allocation8 + $0x2b8] sm:$0xff]  ;;  %v6604_v37 = vld [vmem:[#allocation8 + $0x340] sm:$0xff] }
 0xffe   :  { %7163 = vmatpush3.bf16.msra.mxu1 %v6549_v22  ;;  %7142 = vmatprep.subr.bf16.mxu0 %v6542_v49  ;;  %v6620_v22 = vld [vmem:[#allocation8 + $0x3c0] sm:$0xff] }
 0xfff   :  { %7164 = vmatprep.subr.bf16.mxu1 %v6558_v9  ;;  %v6596_v49 = vld [vmem:[#allocation8 + $0x300] sm:$0xff] }
0x1000   :  { %v6612_v9 = vld [vmem:[#allocation8 + $0x380] sm:$0xff] }
0x1001   :  { %7143 = vmatpush3.bf16.msra.mxu0 %v6534_v21  ;;  %v6605_v21 = vld [vmem:[#allocation8 + $0x348] sm:$0xff] }
0x1002   :  { %7165 = vmatpush3.bf16.msra.mxu1 %v6550_v5  ;;  %7144 = vmatprep.subr.bf16.mxu0 %v6543_v43  ;;  %v6621_v5 = vld [vmem:[#allocation8 + $0x3c8] sm:$0xff] }
0x1003   :  { %7166 = vmatprep.subr.bf16.mxu1 %v6559_v59  ;;  %v6597_v43 = vld [vmem:[#allocation8 + $0x308] sm:$0xff] }
0x1004   :  { %v6613_v59 = vld [vmem:[#allocation8 + $0x388] sm:$0xff] }
0x1005   :  { %7145 = vmatpush3.bf16.msra.mxu0 %v6535_v27  ;;  %v6606_v27 = vld [vmem:[#allocation8 + $0x350] sm:$0xff] }
0x1006   :  { %7167 = vmatpush3.bf16.msra.mxu1 %v6551_v28  ;;  %7146 = vmatprep.subr.bf16.mxu0 %v6544_v1  ;;  %v6622_v28 = vld [vmem:[#allocation8 + $0x3d0] sm:$0xff] }
0x1007   :  { %7168 = vmatprep.subr.bf16.mxu1 %v6560_v19  ;;  %v6598_v1 = vld [vmem:[#allocation8 + $0x310] sm:$0xff]  ;;  %v6607_v19 = vld [vmem:[#allocation8 + $0x358] sm:$0xff] }
0x1009   :  { %7147 = vmatpush3.bf16.msra.mxu0 %v6536_v12  ;;  %v6599_v12 = vld [vmem:[#allocation8 + $0x318] sm:$0xff] }
0x100a   :  { %7169 = vmatpush3.bf16.msra.mxu1 %v6552_v46  ;;  %7148 = vmatprep.subr.bf16.mxu0 %v6545_v57  ;;  %v6615_v46 = vld [vmem:[#allocation8 + $0x398] sm:$0xff]  ;;  %v6608_v57 = vld [vmem:[#allocation8 + $0x360] sm:$0xff] }
0x100b   :  { %7170 = vmatprep.subr.bf16.mxu1 %v6561_v52  ;;  %v6624_v52 = vld [vmem:[#allocation8 + $0x3e0] sm:$0xff] }
0x100d   :  { %7149 = vmatpush3.bf16.msra.mxu0 %v6537_v24  ;;  %v6609_v24 = vld [vmem:[#allocation8 + $0x368] sm:$0xff] }
0x100e   :  { %7171 = vmatpush3.bf16.msra.mxu1 %v6553_v60  ;;  %7150 = vmatprep.subr.bf16.mxu0 %v6546_v30  ;;  %v6625_v60 = vld [vmem:[#allocation8 + $0x3e8] sm:$0xff] }
0x100f   :  { %7172 = vmatprep.subr.bf16.mxu1 %v6562_v61  ;;  %v6601_v30 = vld [vmem:[#allocation8 + $0x328] sm:$0xff] }
0x1010   :  { %v6617_v61 = vld [vmem:[#allocation8 + $0x3a8] sm:$0xff] }
0x1011   :  { %7151 = vmatpush3.bf16.msra.mxu0 %v6538_v34  ;;  %v6610_v34 = vld [vmem:[#allocation8 + $0x370] sm:$0xff] }
0x1012   :  { %7173 = vmatpush3.bf16.msra.mxu1 %v6554_v7  ;;  %7152 = vmatprep.subr.bf16.mxu0 %v6547_v23  ;;  %v6626_v7 = vld [vmem:[#allocation8 + $0x3f0] sm:$0xff] }
0x1013   :  { %7174 = vmatprep.subr.bf16.mxu1 %v6563_v31  ;;  %v6602_v23 = vld [vmem:[#allocation8 + $0x330] sm:$0xff] }
0x1014   :  { %v6618_v31 = vld [vmem:[#allocation8 + $0x3b0] sm:$0xff] }
0x1015   :  { %7153 = vmatpush3.bf16.msra.mxu0 %v6539_v36  ;;  %v6611_v36 = vld [vmem:[#allocation8 + $0x378] sm:$0xff] }
0x1016   :  { %7175 = vmatpush3.bf16.msra.mxu1 %v6555_v41  ;;  %7182 = vmatprep.subr.bf16.mxu0 %v6572_v4  ;;  %v6627_v41 = vld [vmem:[#allocation8 + $0x3f8] sm:$0xff] }
0x1017   :  { %7204 = vmatprep.subr.bf16.mxu1 %v6588_v35  ;;  %v6603_v4 = vld [vmem:[#allocation8 + $0x338] sm:$0xff] }
0x1018   :  { %6748 = vmatmul.mubr.bf16.vlgmr.msra.gmra.mrb[48].mxu0 %v8272_v17  ;;  %v6582_v17 = vld [vmem:[#allocation8 + $0x290] sm:$0xff]  ;;  %v6619_v35 = vld [vmem:[#allocation8 + $0x3b8] sm:$0xff] }
0x1019   :  { %6788 = vmatmul.mubr.bf16.vlgmr.msra.gmra.mrb[48].mxu1 %v8286_v0  ;;  %7183 = vmatpush3.bf16.msra.mxu0 %v6564_v20  ;;  %v6591_v0 = vld [vmem:[#allocation8 + $0x2d8] sm:$0xff] }
0x101a   :  { %7205 = vmatpush3.bf16.msra.mxu1 %v6580_v40  ;;  %7184 = vmatprep.subr.bf16.mxu0 %v6573_v26 }
0x101b   :  { %7206 = vmatprep.subr.bf16.mxu1 %v6589_v15  ;;  %6827 = vmatprep.mubr.bf16.mxu0 %v8291_v6  ;;  %v6568_v6 = vld [vmem:[#allocation8 + $0x220] sm:$0xff] }
0x101c   :  { %6867 = vmatprep.mubr.bf16.mxu1 %v8305_v53  ;;  %v6584_v53 = vld [vmem:[#allocation8 + $0x2a0] sm:$0xff] }
0x101d   :  { %7185 = vmatpush3.bf16.msra.mxu0 %v6565_v45 }
0x101e   :  { %7207 = vmatpush3.bf16.msra.mxu1 %v6581_v62  ;;  %7186 = vmatprep.subr.bf16.mxu0 %v6574_v42 }
0x101f   :  { %7208 = vmatprep.subr.bf16.mxu1 %v6590_v56 }
0x1021   :  { %7187 = vmatpush3.bf16.msra.mxu0 %v6566_v48 }
0x1022   :  { %7209 = vmatpush3.bf16.msra.mxu1 %v6582_v17  ;;  %7188 = vmatprep.subr.bf16.mxu0 %v6575_v10 }
0x1023   :  { %7210 = vmatprep.subr.bf16.mxu1 %v6591_v0 }
0x1025   :  { %7189 = vmatpush3.bf16.msra.mxu0 %v6567_v33 }
0x1026   :  { %7211 = vmatpush3.bf16.msra.mxu1 %v6583_v8  ;;  %7190 = vmatprep.subr.bf16.mxu0 %v6576_v51 }
0x1027   :  { %7212 = vmatprep.subr.bf16.mxu1 %v6592_v44 }
0x1029   :  { %7191 = vmatpush3.bf16.msra.mxu0 %v6568_v6 }
0x102a   :  { %7213 = vmatpush3.bf16.msra.mxu1 %v6584_v53  ;;  %7192 = vmatprep.subr.bf16.mxu0 %v6577_v11 }
0x102b   :  { %7214 = vmatprep.subr.bf16.mxu1 %v6593_v29 }
0x102d   :  { %7193 = vmatpush3.bf16.msra.mxu0 %v6569_v39 }
0x102e   :  { %7215 = vmatpush3.bf16.msra.mxu1 %v6585_v47  ;;  %7194 = vmatprep.subr.bf16.mxu0 %v6578_v14 }
0x102f   :  { %7216 = vmatprep.subr.bf16.mxu1 %v6594_v58 }
0x1031   :  { %7195 = vmatpush3.bf16.msra.mxu0 %v6570_v55 }
0x1032   :  { %7217 = vmatpush3.bf16.msra.mxu1 %v6586_v13  ;;  %7196 = vmatprep.subr.bf16.mxu0 %v6579_v50 }
0x1033   :  { %7218 = vmatprep.subr.bf16.mxu1 %v6595_v63 }
0x1035   :  { %7197 = vmatpush3.bf16.msra.mxu0 %v6571_v54 }
0x1036   :  { %7219 = vmatpush3.bf16.msra.mxu1 %v6587_v2  ;;  %7226 = vmatprep.subr.bf16.mxu0 %v6604_v37 }
0x1037   :  { %7248 = vmatprep.subr.bf16.mxu1 %v6620_v22 }
0x1038   :  { %6828 = vmatmul.mubr.bf16.vlgmr.msra.gmra.mrb[52].mxu0 %v8300_v38  ;;  %v6614_v38 = vld [vmem:[#allocation8 + $0x390] sm:$0xff] }
0x1039   :  { %6868 = vmatmul.mubr.bf16.vlgmr.msra.gmra.mrb[52].mxu1 %v8314_v16  ;;  %7227 = vmatpush3.bf16.msra.mxu0 %v6596_v49  ;;  %v6623_v16 = vld [vmem:[#allocation8 + $0x3d8] sm:$0xff] }
0x103a   :  { %7249 = vmatpush3.bf16.msra.mxu1 %v6612_v9  ;;  %7228 = vmatprep.subr.bf16.mxu0 %v6605_v21 }
0x103b   :  { %7250 = vmatprep.subr.bf16.mxu1 %v6621_v5  ;;  %6907 = vmatprep.mubr.bf16.mxu0 %v8319_v18  ;;  %v6600_v18 = vld [vmem:[#allocation8 + $0x320] sm:$0xff] }
0x103c   :  { %6947 = vmatprep.mubr.bf16.mxu1 %v8333_v25  ;;  %v6616_v25 = vld [vmem:[#allocation8 + $0x3a0] sm:$0xff] }
0x103d   :  { %7229 = vmatpush3.bf16.msra.mxu0 %v6597_v43 }
0x103e   :  { %7251 = vmatpush3.bf16.msra.mxu1 %v6613_v59  ;;  %7230 = vmatprep.subr.bf16.mxu0 %v6606_v27 }
0x103f   :  { %7252 = vmatprep.subr.bf16.mxu1 %v6622_v28 }
0x1041   :  { %7231 = vmatpush3.bf16.msra.mxu0 %v6598_v1 }
0x1042   :  { %7253 = vmatpush3.bf16.msra.mxu1 %v6614_v38  ;;  %7232 = vmatprep.subr.bf16.mxu0 %v6607_v19 }
0x1043   :  { %7254 = vmatprep.subr.bf16.mxu1 %v6623_v16 }
0x1045   :  { %7233 = vmatpush3.bf16.msra.mxu0 %v6599_v12 }
0x1046   :  { %7255 = vmatpush3.bf16.msra.mxu1 %v6615_v46  ;;  %7234 = vmatprep.subr.bf16.mxu0 %v6608_v57 }
0x1047   :  { %7256 = vmatprep.subr.bf16.mxu1 %v6624_v52 }
0x1049   :  { %7235 = vmatpush3.bf16.msra.mxu0 %v6600_v18 }
0x104a   :  { %7257 = vmatpush3.bf16.msra.mxu1 %v6616_v25  ;;  %7236 = vmatprep.subr.bf16.mxu0 %v6609_v24 }
0x104b   :  { %7258 = vmatprep.subr.bf16.mxu1 %v6625_v60 }
0x104d   :  { %7237 = vmatpush3.bf16.msra.mxu0 %v6601_v30 }
0x104e   :  { %7259 = vmatpush3.bf16.msra.mxu1 %v6617_v61  ;;  %7238 = vmatprep.subr.bf16.mxu0 %v6610_v34 }
0x104f   :  { %7260 = vmatprep.subr.bf16.mxu1 %v6626_v7 }
0x1051   :  { %7239 = vmatpush3.bf16.msra.mxu0 %v6602_v23 }
0x1052   :  { %7261 = vmatpush3.bf16.msra.mxu1 %v6618_v31  ;;  %7240 = vmatprep.subr.bf16.mxu0 %v6611_v36 }
0x1053   :  { %7262 = vmatprep.subr.bf16.mxu1 %v6627_v41 }
0x1055   :  { %7241 = vmatpush3.bf16.msra.mxu0 %v6603_v4 }
0x1056   :  { %7263 = vmatpush3.bf16.msra.mxu1 %v6619_v35 }
0x1058   :  { %6908 = vmatmul.mubr.bf16.vlgmr.msra.gmra.mrb[56].mxu0 %v8328_v32 }
0x1059   :  { %6948 = vmatmul.mubr.bf16.vlgmr.msra.gmra.mrb[56].mxu1 %v8342_v3 }
0x105a   :  { %7712 = shalt.err (!%p7709_p10)
}
0x105b   :  { %s7713_s14 = scalar_lea.hbm %s8481_s12, 128 }
0x105c   :  { %p7714_p11 = scmp.ne.s32.totalorder %s8481_s12, %s7713_s14  ;;  %p7717_p12 = scmp.lt.u32.totalorder %s7713_s14, %s8481_s12 }
0x105e   :  { %p7719_p13 = pnand %p7717_p12, %p7714_p11 }
0x1060   :  { %7722 = shalt.err (!%p7719_p13)
}
0x1061   :  { %6968 = dma.vmem_to_hbm [thread:$0]  %s6966_s10, 128, %s8481_s12, [#allocation12]   ;;  %v7042_v20 = vld [vmem:[#allocation15] ss:$0 sm:$0xff] }
0x10cb   :  { %v7110_v32 = vpop.f32.mrb[44].mxu0 }
0x10cc   :  { %v7132_v3 = vpop.f32.mrb[44].mxu1  ;;  %v7111_v40 = vpop.f32.mrb[45].mxu0 }
0x10cd   :  { %v7133_v26 = vpop.f32.mrb[45].mxu1  ;;  %v7112_v15 = vadd.f32 %v7111_v40, %v7110_v32  ;;  %v7113_v62 = vpop.f32.mrb[46].mxu0 }
0x10ce   :  { %v7134_v45 = vadd.f32 %v7133_v26, %v7132_v3  ;;  %v7135_v42 = vpop.f32.mrb[46].mxu1  ;;  %v7114_v56 = vpop.f32.mrb[47].mxu0 }
0x10cf   :  { %v7136_v48 = vpop.f32.mrb[47].mxu1  ;;  %v6670_v17 = vadd.f32 %v7112_v15, %v7042_v20 }
0x10d1   :  { %v6710_v10 = vadd.f32 %v7134_v45, %v6670_v17 }
0x10eb   :  { %v7154_v0 = vpop.f32.mrb[48].mxu0 }
0x10ec   :  { %v7176_v33 = vpop.f32.mrb[48].mxu1  ;;  %v7155_v8 = vpop.f32.mrb[49].mxu0 }
0x10ed   :  { %v7177_v51 = vpop.f32.mrb[49].mxu1  ;;  %v7156_v44 = vadd.f32 %v7155_v8, %v7154_v0  ;;  %v7157_v53 = vpop.f32.mrb[50].mxu0 }
0x10ee   :  { %v7178_v6 = vadd.f32 %v7177_v51, %v7176_v33  ;;  %v7179_v11 = vpop.f32.mrb[50].mxu1  ;;  %v7158_v29 = vpop.f32.mrb[51].mxu0 }
0x10ef   :  { %v7180_v39 = vpop.f32.mrb[51].mxu1  ;;  %v6750_v47 = vadd.f32 %v7156_v44, %v6710_v10 }
0x10f1   :  { %v6790_v14 = vadd.f32 %v7178_v6, %v6750_v47 }
0x110b   :  { %v7198_v58 = vpop.f32.mrb[52].mxu0 }
0x110c   :  { %v7220_v55 = vpop.f32.mrb[52].mxu1  ;;  %v7199_v13 = vpop.f32.mrb[53].mxu0 }
0x110d   :  { %v7221_v50 = vpop.f32.mrb[53].mxu1  ;;  %v7200_v63 = vadd.f32 %v7199_v13, %v7198_v58  ;;  %v7201_v2 = vpop.f32.mrb[54].mxu0 }
0x110e   :  { %v7222_v54 = vadd.f32 %v7221_v50, %v7220_v55  ;;  %v7223_v37 = vpop.f32.mrb[54].mxu1  ;;  %v7202_v22 = vpop.f32.mrb[55].mxu0 }
0x110f   :  { %v7224_v49 = vpop.f32.mrb[55].mxu1  ;;  %v6830_v9 = vadd.f32 %v7200_v63, %v6790_v14 }
0x1111   :  { %v6870_v21 = vadd.f32 %v7222_v54, %v6830_v9 }
0x112b   :  { %v7242_v5 = vpop.f32.mrb[56].mxu0 }
0x112c   :  { %v7264_v43 = vpop.f32.mrb[56].mxu1  ;;  %v7243_v59 = vpop.f32.mrb[57].mxu0 }
0x112d   :  { %v7265_v27 = vpop.f32.mrb[57].mxu1  ;;  %v7244_v28 = vadd.f32 %v7243_v59, %v7242_v5  ;;  %v7245_v38 = vpop.f32.mrb[58].mxu0 }
0x112e   :  { %v7266_v1 = vadd.f32 %v7265_v27, %v7264_v43  ;;  %v7267_v19 = vpop.f32.mrb[58].mxu1  ;;  %v7246_v16 = vpop.f32.mrb[59].mxu0 }
0x112f   :  { %v7268_v12 = vpop.f32.mrb[59].mxu1  ;;  %v6910_v46 = vadd.f32 %v7244_v28, %v6870_v21 }
0x1131   :  { %v6950_v57 = vadd.f32 %v7266_v1, %v6910_v46 }
0x1133   :  { %6955 = vst [vmem:[%s8480_s11] sm:$0xff] %v6950_v57 }
0x1134   :  { %7741 = dma.done.wait [#allocation12], 128  }
0x1135   :  { %7742 = vsyncadd [#allocation12], 4294967168 }
0x1136   :  { %6974 = vsyncpa [#allocation11], 1 }
0x1137   :  { %6975 = vsyncpa [#allocation14], 1 }
0x1138   :  { %6976 = vsyncpa [#allocation12], 1 }
0x1139   :  { %6977 = vsyncmov [#allocation9] }
0x113c   :  { %s6978_s18 = vpop.sfrf %6977 }
0x113d   :  { %p7043_p0 = scmp.ne.s32.totalorder %s6978_s18, 0 }
0x113f   :  { %6982 = shalt.err (%p7043_p0)  }
0x1140   :  { %6984 = vsyncmov [#allocation9 + $0x1] }
0x1143   :  { %s6985_s22 = vpop.sfrf %6984 }
0x1144   :  { %p7044_p1 = scmp.ne.s32.totalorder %s6985_s22, 0 }
0x1146   :  { %6989 = shalt.err (%p7044_p1)  }
0x1147   :  { %6991 = vsyncmov [#allocation9 + $0x2] }
0x114a   :  { %s6992_s8 = vpop.sfrf %6991 }
0x114b   :  { %p7045_p2 = scmp.ne.s32.totalorder %s6992_s8, 0 }
0x114d   :  { %6996 = shalt.err (%p7045_p2)  }
0x114e   :  { %6998 = vsyncmov [#allocation9 + $0x3] }
0x1151   :  { %s6999_s24 = vpop.sfrf %6998 }
0x1152   :  { %p7046_p3 = scmp.ne.s32.totalorder %s6999_s24, 0 }
0x1154   :  { %7003 = shalt.err (%p7046_p3)  }
0x1155   :  { %7005 = vsyncmov [#allocation9 + $0x4] }
0x1158   :  { %s7006_s11 = vpop.sfrf %7005 }
0x1159   :  { %p7047_p4 = scmp.ne.s32.totalorder %s7006_s11, 0 }
0x115b   :  { %7010 = shalt.err (%p7047_p4)  }
0x115c   :  { %7012 = vsyncmov [#allocation9 + $0x5] }
0x115f   :  { %s7013_s19 = vpop.sfrf %7012 }
0x1160   :  { %p7048_p5 = scmp.ne.s32.totalorder %s7013_s19, 0 }
0x1162   :  { %7017 = shalt.err (%p7048_p5)  }
0x1163   :  { %7019 = vsyncmov [#allocation9 + $0x6] }
0x1166   :  { %s7020_s6 = vpop.sfrf %7019 }
0x1167   :  { %p7049_p6 = scmp.ne.s32.totalorder %s7020_s6, 0 }
0x1169   :  { %7024 = shalt.err (%p7049_p6)  }

</bundles_post_ra>
